<compile_context>
chip_gen: v6e
topology: v6e:2x2x1
jax: 0.10.0
libtpu: 0.0.40
codegen_flags: <defaults>
</compile_context>

<pallas_src>
import functools

import jax
import jax.numpy as jnp
from jax.experimental import pallas as pl
from jax.experimental.pallas import tpu as pltpu

EPS = 1e-5   # nn.InstanceNorm2d default eps (affine=False, no running stats)
LANE = 128   # TPU lane width


def _round_up(x, m):
    return (x + m - 1) // m * m


def _instance_norm_relu(a):
    """Per-channel InstanceNorm over the spatial (sublane) axis + ReLU, f32."""
    mean = jnp.mean(a, axis=0, keepdims=True)
    var = jnp.mean((a - mean) ** 2, axis=0, keepdims=True)   # biased, as torch
    return jnp.maximum((a - mean) * jax.lax.rsqrt(var + EPS), 0.0)


def _double_conv_kernel(x_ref, w1_ref, w2_ref, o_ref, pad_ref, patch_ref, *,
                        H, W, Cin, Cmid, Cout, K1p, K2p):
    hw = H * W
    dt = pad_ref.dtype                      # bf16 (MXU operand dtype)
    cmax = pad_ref.shape[-1]                # max(Cin, Cmid), no 128 padding

    # ---- halo-only zeroing of the shared padded-image buffer -----------------
    # Only the 1-pixel ring needs to be zero: stage 1 overwrites interior
    # channels [:Cin], stage 2 overwrites interior channels [:Cmid], and each
    # stage only *reads* the channels it wrote.  Neither stage writes the ring,
    # so one ring-clear per grid step serves both stages.  (Cleared every step:
    # scratch is per-core and grid steps may be split across TensorCores.)
    pad_ref[0:1, :, :] = jnp.zeros((1, W + 2, cmax), dt)
    pad_ref[H + 1:H + 2, :, :] = jnp.zeros((1, W + 2, cmax), dt)
    pad_ref[1:H + 1, 0:1, :] = jnp.zeros((H, 1, cmax), dt)
    pad_ref[1:H + 1, W + 1:W + 2, :] = jnp.zeros((H, 1, cmax), dt)

    def im2col(C, Kp):
        # Tight K packing: columns [t*C, (t+1)*C) per tap, K = 9*C exactly.
        for t in range(9):
            dy, dx = divmod(t, 3)
            patch_ref[:, t * C:(t + 1) * C] = (
                pad_ref[dy:dy + H, dx:dx + W, :C].reshape(hw, C))
        if 9 * C < Kp:
            # The matching weight rows are zero, but stale VMEM in the K tail
            # could be NaN/Inf (0*NaN = NaN), so the tail must be zeroed.
            patch_ref[:, 9 * C:Kp] = jnp.zeros((hw, Kp - 9 * C), dt)

    # ---------------- stage 1: conv3x3 -> InstanceNorm -> ReLU ----------------
    # Input block is native-NCHW (Cin, H*W): lane-dense DMA.  Relayout to
    # spatial-major with one small 2-D transpose (XLU), hidden under the MXU.
    x_t = jnp.transpose(x_ref[0])                                  # (H*W, Cin)
    pad_ref[1:H + 1, 1:W + 1, :Cin] = x_t.reshape(H, W, Cin).astype(dt)
    im2col(Cin, K1p)
    # bf16 operands, f32 accumulation.  Conv bias omitted: a per-channel
    # constant added before InstanceNorm is exactly cancelled by its mean.
    a1 = jnp.dot(patch_ref[:, :K1p], w1_ref[...],
                 preferred_element_type=jnp.float32)
    h1 = _instance_norm_relu(a1)                                   # (H*W, Cm_pad) f32

    # ---------------- stage 2: conv3x3 -> InstanceNorm -> ReLU ----------------
    # Reuse the same pad/patch scratch (lifetimes don't overlap).  h1's padded
    # channels are exactly 0 after IN+ReLU, but they are never read anyway
    # because only [:Cmid] is copied and only [:Cmid] is gathered by im2col.
    pad_ref[1:H + 1, 1:W + 1, :Cmid] = (
        h1[:, :Cmid].reshape(H, W, Cmid).astype(dt))
    im2col(Cmid, K2p)
    a2 = jnp.dot(patch_ref[:, :K2p], w2_ref[...],
                 preferred_element_type=jnp.float32)
    y2 = _instance_norm_relu(a2)                                   # (H*W, Co_pad) f32

    # Lane-dense output: (Cout, H*W) with the long spatial axis in lanes; the
    # wrapper reshape back to NCHW is a free bitcast.
    o_ref[0] = jnp.transpose(y2)[:Cout, :].astype(o_ref.dtype)


def _pack_conv_weight(w, kp, cp_out):
    """(3,3,Cin,Cout) -> (Kp, cp_out) bf16; rows ordered (tap, cin), zero-padded."""
    kh, kw, cin, cout = w.shape
    wf = w.reshape(kh * kw * cin, cout).astype(jnp.float32)
    wp = jnp.zeros((kp, cp_out), jnp.float32).at[:kh * kw * cin, :cout].set(wf)
    return wp.astype(jnp.bfloat16)


def double_conv(x_nchw, w1, b1, w2, b2):
    """DoubleConv forward: (N, Cin, H, W) -> (N, Cout, H, W).

    b1/b2 are accepted for parity with nn.Conv2d but unused: a per-channel
    constant added before InstanceNorm is cancelled by its mean subtraction.
    """
    del b1, b2
    N, Cin, H, W = x_nchw.shape
    Cmid, Cout = w1.shape[-1], w2.shape[-1]
    # K padded once (total), output channels padded to a lane-dense N axis.
    K1p = _round_up(9 * Cin, LANE)
    K2p = _round_up(9 * Cmid, LANE)
    Cm_pad = _round_up(Cmid, LANE)
    Co_pad = _round_up(Cout, LANE)
    Cmax = max(Cin, Cmid)
    Kmax = max(K1p, K2p)

    # TODO(synk): for production UNet sizes (64x64 with 256-512 channels) add
    # an H-row tile grid axis with a two-phase InstanceNorm reduction (so the
    # per-step scratch fits v7x's 64 MiB VMEM), single-buffer the constant
    # weight inputs via pipeline_mode=pl.Buffered(1), and for N==1 on v7x add
    # a spatial 'parallel' axis so both TensorCores get work.

    # Free (metadata-only) reshape: each input DMA block is (Cin, H*W) with
    # the long spatial axis lane-dense; no NHWC transpose pass over HBM.
    x3 = x_nchw.reshape(N, Cin, H * W)
    w1p = _pack_conv_weight(w1, K1p, Cm_pad)       # (K1p, Cm_pad) bf16
    w2p = _pack_conv_weight(w2, K2p, Co_pad)       # (K2p, Co_pad) bf16

    # Per-generation VMEM budget (~108 MiB on 128 MiB parts, ~54 MiB on v7x).
    try:
        vmem_cap = pltpu.get_tpu_info().vmem_capacity_bytes
    except Exception:
        vmem_cap = 64 * 1024 * 1024
    vmem_limit = int(min(112 * 1024 * 1024, vmem_cap * 0.85))

    kern = functools.partial(_double_conv_kernel, H=H, W=W, Cin=Cin,
                             Cmid=Cmid, Cout=Cout, K1p=K1p, K2p=K2p)
    out = pl.pallas_call(
        kern,
        out_shape=jax.ShapeDtypeStruct((N, Cout, H * W), x_nchw.dtype),
        grid_spec=pltpu.PrefetchScalarGridSpec(
            num_scalar_prefetch=0,
            grid=(N,),
            in_specs=[
                pl.BlockSpec((1, Cin, H * W), lambda n: (n, 0, 0)),
                # Constant index maps: weights are DMA'd once, kept in VMEM.
                pl.BlockSpec((K1p, Cm_pad), lambda n: (0, 0)),
                pl.BlockSpec((K2p, Co_pad), lambda n: (0, 0)),
            ],
            out_specs=pl.BlockSpec((1, Cout, H * W), lambda n: (n, 0, 0)),
            scratch_shapes=[
                # One shared padded-image buffer and one shared im2col buffer
                # (bf16, tight K) serve both conv stages.
                pltpu.VMEM((H + 2, W + 2, Cmax), jnp.bfloat16),
                pltpu.VMEM((H * W, Kmax), jnp.bfloat16),
            ]),
        compiler_params=pltpu.CompilerParams(
            dimension_semantics=("parallel",),
            vmem_limit_bytes=vmem_limit),
    )(x3, w1p, w2p)
    # Splitting the trailing H*W dim is a free (bitcast) reshape in row-major.
    return out.reshape(N, Cout, H, W)


# ---------------- pure-JAX f32 reference (for correctness check) ----------------
def _ref_double_conv(x_nchw, w1, b1, w2, b2):
    def conv(x, w, b):
        y = jax.lax.conv_general_dilated(
            x, w, window_strides=(1, 1), padding=((1, 1), (1, 1)),
            dimension_numbers=("NCHW", "HWIO", "NCHW"))
        return y + b[None, :, None, None]

    def inorm_relu(x):
        mean = x.mean(axis=(2, 3), keepdims=True)
        var = ((x - mean) ** 2).mean(axis=(2, 3), keepdims=True)
        return jnp.maximum((x - mean) * jax.lax.rsqrt(var + EPS), 0.0)

    y = inorm_relu(conv(x_nchw, w1, b1))
    return inorm_relu(conv(y, w2, b2))


if __name__ == "__main__":
    # DoubleConv(in_channels=4, out_channels=8) -> mid_channels = 8
    N, Cin, H, W = 2, 4, 16, 16
    Cmid, Cout = 8, 8

    key = jax.random.PRNGKey(0)
    k_x, k_w1, k_b1, k_w2, k_b2 = jax.random.split(key, 5)

    x = jax.random.normal(k_x, (N, Cin, H, W), jnp.float32)
    w1 = jax.random.normal(k_w1, (3, 3, Cin, Cmid), jnp.float32) * 0.1
    b1 = jax.random.normal(k_b1, (Cmid,), jnp.float32) * 0.1
    w2 = jax.random.normal(k_w2, (3, 3, Cmid, Cout), jnp.float32) * 0.1
    b2 = jax.random.normal(k_b2, (Cout,), jnp.float32) * 0.1

    out = jax.block_until_ready(double_conv(x, w1, b1, w2, b2))
    ref = jax.block_until_ready(_ref_double_conv(x, w1, b1, w2, b2))

    assert out.shape == (N, Cout, H, W)
    # Kernel uses bf16 MXU operands (f32 accumulation); tolerance vs the f32
    # reference is sized for bf16 input/weight quantization through two
    # conv + InstanceNorm stages.
    assert jnp.allclose(out, ref, atol=2e-2, rtol=2e-2), \
        float(jnp.max(jnp.abs(out - ref)))

    print("KERNEL_OK")
</pallas_src>

<mosaic_0001>
module attributes {stable_mosaic.version = 11 : i64} {
  func.func @_double_conv_kernel(%arg0: i32, %arg1: memref<1x4x256xf32, #tpu.memory_space<vmem>>, %arg2: memref<128x128xbf16, #tpu.memory_space<vmem>>, %arg3: memref<128x128xbf16, #tpu.memory_space<vmem>>, %arg4: memref<1x8x256xf32, #tpu.memory_space<vmem>>, %arg5: memref<18x18x8xbf16, #tpu.memory_space<vmem>>, %arg6: memref<256x128xbf16, #tpu.memory_space<vmem>>) attributes {dimension_semantics = [#tpu.dimension_semantics<parallel>], iteration_bounds = array<i64: 2>, scalar_prefetch = 0 : i64, scratch_operands = 2 : i64, tpu.core_type = #tpu.core_type<tc>, window_params = [{transform_indices = @transform_0, window_bounds = array<i64: 1, 4, 256>}, {pipeline_mode = #tpu.pipeline_mode<synchronous>, transform_indices = @transform_1, window_bounds = array<i64: 128, 128>}, {pipeline_mode = #tpu.pipeline_mode<synchronous>, transform_indices = @transform_2, window_bounds = array<i64: 128, 128>}, {transform_indices = @transform_3, window_bounds = array<i64: 1, 8, 256>}]} {
    %cst = arith.constant 0.000000e+00 : bf16
    %0 = vector.broadcast %cst : bf16 to vector<1x18x8xbf16>
    %c0 = arith.constant 0 : index
    %c0_0 = arith.constant 0 : index
    %c0_1 = arith.constant 0 : index
    %1 = vector.load %arg5[%c0, %c0_0, %c0_1] : memref<18x18x8xbf16, #tpu.memory_space<vmem>>, vector<1x18x8xbf16>
    tpu.vector_store %arg5[%c0, %c0_0, %c0_1], %0 {strides = array<i32>} : memref<18x18x8xbf16, #tpu.memory_space<vmem>>, vector<1x18x8xbf16>,
    %cst_2 = arith.constant 0.000000e+00 : bf16
    %2 = vector.broadcast %cst_2 : bf16 to vector<1x18x8xbf16>
    %c17 = arith.constant 17 : index
    %c0_3 = arith.constant 0 : index
    %c0_4 = arith.constant 0 : index
    %3 = vector.load %arg5[%c17, %c0_3, %c0_4] : memref<18x18x8xbf16, #tpu.memory_space<vmem>>, vector<1x18x8xbf16>
    tpu.vector_store %arg5[%c17, %c0_3, %c0_4], %2 {strides = array<i32>} : memref<18x18x8xbf16, #tpu.memory_space<vmem>>, vector<1x18x8xbf16>,
    %cst_5 = arith.constant 0.000000e+00 : bf16
    %4 = vector.broadcast %cst_5 : bf16 to vector<16x1x8xbf16>
    %c1 = arith.constant 1 : index
    %c0_6 = arith.constant 0 : index
    %c0_7 = arith.constant 0 : index
    %5 = vector.load %arg5[%c1, %c0_6, %c0_7] : memref<18x18x8xbf16, #tpu.memory_space<vmem>>, vector<16x1x8xbf16>
    tpu.vector_store %arg5[%c1, %c0_6, %c0_7], %4 {strides = array<i32>} : memref<18x18x8xbf16, #tpu.memory_space<vmem>>, vector<16x1x8xbf16>,
    %cst_8 = arith.constant 0.000000e+00 : bf16
    %6 = vector.broadcast %cst_8 : bf16 to vector<16x1x8xbf16>
    %c1_9 = arith.constant 1 : index
    %c17_10 = arith.constant 17 : index
    %c0_11 = arith.constant 0 : index
    %7 = vector.load %arg5[%c1_9, %c17_10, %c0_11] : memref<18x18x8xbf16, #tpu.memory_space<vmem>>, vector<16x1x8xbf16>
    tpu.vector_store %arg5[%c1_9, %c17_10, %c0_11], %6 {strides = array<i32>} : memref<18x18x8xbf16, #tpu.memory_space<vmem>>, vector<16x1x8xbf16>,
    %c0_12 = arith.constant 0 : index
    %c0_13 = arith.constant 0 : index
    %c0_14 = arith.constant 0 : index
    %8 = vector.load %arg1[%c0_12, %c0_13, %c0_14] : memref<1x4x256xf32, #tpu.memory_space<vmem>>, vector<1x4x256xf32>
    %9 = vector.shape_cast %8 : vector<1x4x256xf32> to vector<4x256xf32>
    %10 = tpu.transpose %9, [1, 0] : vector<4x256xf32> -> vector<256x4xf32>
    %11 = vector.shape_cast %10 : vector<256x4xf32> to vector<16x16x4xf32>
    %12 = arith.truncf %11 : vector<16x16x4xf32> to vector<16x16x4xbf16>
    %c1_15 = arith.constant 1 : index
    %c1_16 = arith.constant 1 : index
    %c0_17 = arith.constant 0 : index
    %13 = vector.load %arg5[%c1_15, %c1_16, %c0_17] : memref<18x18x8xbf16, #tpu.memory_space<vmem>>, vector<16x16x4xbf16>
    tpu.vector_store %arg5[%c1_15, %c1_16, %c0_17], %12 {strides = array<i32>} : memref<18x18x8xbf16, #tpu.memory_space<vmem>>, vector<16x16x4xbf16>,
    %c0_18 = arith.constant 0 : index
    %c0_19 = arith.constant 0 : index
    %c0_20 = arith.constant 0 : index
    %14 = vector.load %arg5[%c0_18, %c0_19, %c0_20] : memref<18x18x8xbf16, #tpu.memory_space<vmem>>, vector<16x16x4xbf16>
    %15 = vector.shape_cast %14 : vector<16x16x4xbf16> to vector<256x4xbf16>
    %c0_21 = arith.constant 0 : index
    %c0_22 = arith.constant 0 : index
    %16 = vector.load %arg6[%c0_21, %c0_22] : memref<256x128xbf16, #tpu.memory_space<vmem>>, vector<256x4xbf16>
    tpu.vector_store %arg6[%c0_21, %c0_22], %15 {strides = array<i32>} : memref<256x128xbf16, #tpu.memory_space<vmem>>, vector<256x4xbf16>,
    %c0_23 = arith.constant 0 : index
    %c1_24 = arith.constant 1 : index
    %c0_25 = arith.constant 0 : index
    %17 = vector.load %arg5[%c0_23, %c1_24, %c0_25] : memref<18x18x8xbf16, #tpu.memory_space<vmem>>, vector<16x16x4xbf16>
    %18 = vector.shape_cast %17 : vector<16x16x4xbf16> to vector<256x4xbf16>
    %c0_26 = arith.constant 0 : index
    %c4 = arith.constant 4 : index
    %19 = vector.load %arg6[%c0_26, %c4] : memref<256x128xbf16, #tpu.memory_space<vmem>>, vector<256x4xbf16>
    tpu.vector_store %arg6[%c0_26, %c4], %18 {strides = array<i32>} : memref<256x128xbf16, #tpu.memory_space<vmem>>, vector<256x4xbf16>,
    %c0_27 = arith.constant 0 : index
    %c2 = arith.constant 2 : index
    %c0_28 = arith.constant 0 : index
    %20 = vector.load %arg5[%c0_27, %c2, %c0_28] : memref<18x18x8xbf16, #tpu.memory_space<vmem>>, vector<16x16x4xbf16>
    %21 = vector.shape_cast %20 : vector<16x16x4xbf16> to vector<256x4xbf16>
    %c0_29 = arith.constant 0 : index
    %c8 = arith.constant 8 : index
    %22 = vector.load %arg6[%c0_29, %c8] : memref<256x128xbf16, #tpu.memory_space<vmem>>, vector<256x4xbf16>
    tpu.vector_store %arg6[%c0_29, %c8], %21 {strides = array<i32>} : memref<256x128xbf16, #tpu.memory_space<vmem>>, vector<256x4xbf16>,
    %c1_30 = arith.constant 1 : index
    %c0_31 = arith.constant 0 : index
    %c0_32 = arith.constant 0 : index
    %23 = vector.load %arg5[%c1_30, %c0_31, %c0_32] : memref<18x18x8xbf16, #tpu.memory_space<vmem>>, vector<16x16x4xbf16>
    %24 = vector.shape_cast %23 : vector<16x16x4xbf16> to vector<256x4xbf16>
    %c0_33 = arith.constant 0 : index
    %c12 = arith.constant 12 : index
    %25 = vector.load %arg6[%c0_33, %c12] : memref<256x128xbf16, #tpu.memory_space<vmem>>, vector<256x4xbf16>
    tpu.vector_store %arg6[%c0_33, %c12], %24 {strides = array<i32>} : memref<256x128xbf16, #tpu.memory_space<vmem>>, vector<256x4xbf16>,
    %c1_34 = arith.constant 1 : index
    %c1_35 = arith.constant 1 : index
    %c0_36 = arith.constant 0 : index
    %26 = vector.load %arg5[%c1_34, %c1_35, %c0_36] : memref<18x18x8xbf16, #tpu.memory_space<vmem>>, vector<16x16x4xbf16>
    %27 = vector.shape_cast %26 : vector<16x16x4xbf16> to vector<256x4xbf16>
    %c0_37 = arith.constant 0 : index
    %c16 = arith.constant 16 : index
    %28 = vector.load %arg6[%c0_37, %c16] : memref<256x128xbf16, #tpu.memory_space<vmem>>, vector<256x4xbf16>
    tpu.vector_store %arg6[%c0_37, %c16], %27 {strides = array<i32>} : memref<256x128xbf16, #tpu.memory_space<vmem>>, vector<256x4xbf16>,
    %c1_38 = arith.constant 1 : index
    %c2_39 = arith.constant 2 : index
    %c0_40 = arith.constant 0 : index
    %29 = vector.load %arg5[%c1_38, %c2_39, %c0_40] : memref<18x18x8xbf16, #tpu.memory_space<vmem>>, vector<16x16x4xbf16>
    %30 = vector.shape_cast %29 : vector<16x16x4xbf16> to vector<256x4xbf16>
    %c0_41 = arith.constant 0 : index
    %c20 = arith.constant 20 : index
    %31 = vector.load %arg6[%c0_41, %c20] : memref<256x128xbf16, #tpu.memory_space<vmem>>, vector<256x4xbf16>
    tpu.vector_store %arg6[%c0_41, %c20], %30 {strides = array<i32>} : memref<256x128xbf16, #tpu.memory_space<vmem>>, vector<256x4xbf16>,
    %c2_42 = arith.constant 2 : index
    %c0_43 = arith.constant 0 : index
    %c0_44 = arith.constant 0 : index
    %32 = vector.load %arg5[%c2_42, %c0_43, %c0_44] : memref<18x18x8xbf16, #tpu.memory_space<vmem>>, vector<16x16x4xbf16>
    %33 = vector.shape_cast %32 : vector<16x16x4xbf16> to vector<256x4xbf16>
    %c0_45 = arith.constant 0 : index
    %c24 = arith.constant 24 : index
    %34 = vector.load %arg6[%c0_45, %c24] : memref<256x128xbf16, #tpu.memory_space<vmem>>, vector<256x4xbf16>
    tpu.vector_store %arg6[%c0_45, %c24], %33 {strides = array<i32>} : memref<256x128xbf16, #tpu.memory_space<vmem>>, vector<256x4xbf16>,
    %c2_46 = arith.constant 2 : index
    %c1_47 = arith.constant 1 : index
    %c0_48 = arith.constant 0 : index
    %35 = vector.load %arg5[%c2_46, %c1_47, %c0_48] : memref<18x18x8xbf16, #tpu.memory_space<vmem>>, vector<16x16x4xbf16>
    %36 = vector.shape_cast %35 : vector<16x16x4xbf16> to vector<256x4xbf16>
    %c0_49 = arith.constant 0 : index
    %c28 = arith.constant 28 : index
    %37 = vector.load %arg6[%c0_49, %c28] : memref<256x128xbf16, #tpu.memory_space<vmem>>, vector<256x4xbf16>
    tpu.vector_store %arg6[%c0_49, %c28], %36 {strides = array<i32>} : memref<256x128xbf16, #tpu.memory_space<vmem>>, vector<256x4xbf16>,
    %c2_50 = arith.constant 2 : index
    %c2_51 = arith.constant 2 : index
    %c0_52 = arith.constant 0 : index
    %38 = vector.load %arg5[%c2_50, %c2_51, %c0_52] : memref<18x18x8xbf16, #tpu.memory_space<vmem>>, vector<16x16x4xbf16>
    %39 = vector.shape_cast %38 : vector<16x16x4xbf16> to vector<256x4xbf16>
    %c0_53 = arith.constant 0 : index
    %c32 = arith.constant 32 : index
    %40 = vector.load %arg6[%c0_53, %c32] : memref<256x128xbf16, #tpu.memory_space<vmem>>, vector<256x4xbf16>
    tpu.vector_store %arg6[%c0_53, %c32], %39 {strides = array<i32>} : memref<256x128xbf16, #tpu.memory_space<vmem>>, vector<256x4xbf16>,
    %cst_54 = arith.constant 0.000000e+00 : bf16
    %41 = vector.broadcast %cst_54 : bf16 to vector<256x92xbf16>
    %c0_55 = arith.constant 0 : index
    %c36 = arith.constant 36 : index
    %42 = vector.load %arg6[%c0_55, %c36] : memref<256x128xbf16, #tpu.memory_space<vmem>>, vector<256x92xbf16>
    tpu.vector_store %arg6[%c0_55, %c36], %41 {strides = array<i32>} : memref<256x128xbf16, #tpu.memory_space<vmem>>, vector<256x92xbf16>,
    %c0_56 = arith.constant 0 : index
    %c0_57 = arith.constant 0 : index
    %43 = vector.load %arg6[%c0_56, %c0_57] : memref<256x128xbf16, #tpu.memory_space<vmem>>, vector<256x128xbf16>
    %c0_58 = arith.constant 0 : index
    %c0_59 = arith.constant 0 : index
    %44 = vector.load %arg2[%c0_58, %c0_59] : memref<128x128xbf16, #tpu.memory_space<vmem>>, vector<128x128xbf16>
    %cst_60 = arith.constant dense<0.000000e+00> : vector<256x128xf32>
    %45 = tpu.matmul %43, %44, %cst_60 {dimension_numbers = #tpu.dot_dimension_numbers<[1], [0], [0], [1], [0, 0, 1, 1], [], []>} : vector<256x128xbf16>, vector<128x128xbf16>, vector<256x128xf32> -> vector<256x128xf32>
    %cst_61 = arith.constant dense<0.000000e+00> : vector<128xf32>
    %46 = vector.multi_reduction <add>, %45, %cst_61 [0] : vector<256x128xf32> to vector<128xf32>
    %47 = vector.shape_cast %46 : vector<128xf32> to vector<1x128xf32>
    %cst_62 = arith.constant 2.560000e+02 : f32
    %48 = vector.broadcast %cst_62 : f32 to vector<1x128xf32>
    %49 = arith.divf %47, %48 : vector<1x128xf32>
    %50 = vector.broadcast %49 : vector<1x128xf32> to vector<256x128xf32>
    %51 = arith.subf %45, %50 : vector<256x128xf32>
    %52 = arith.mulf %51, %51 : vector<256x128xf32>
    %cst_63 = arith.constant dense<0.000000e+00> : vector<128xf32>
    %53 = vector.multi_reduction <add>, %52, %cst_63 [0] : vector<256x128xf32> to vector<128xf32>
    %54 = vector.shape_cast %53 : vector<128xf32> to vector<1x128xf32>
    %cst_64 = arith.constant 2.560000e+02 : f32
    %55 = vector.broadcast %cst_64 : f32 to vector<1x128xf32>
    %56 = arith.divf %54, %55 : vector<1x128xf32>
    %57 = vector.broadcast %49 : vector<1x128xf32> to vector<256x128xf32>
    %58 = arith.subf %45, %57 : vector<256x128xf32>
    %cst_65 = arith.constant 9.99999974E-6 : f32
    %59 = vector.broadcast %cst_65 : f32 to vector<1x128xf32>
    %60 = arith.addf %56, %59 : vector<1x128xf32>
    %61 = math.rsqrt %60 : vector<1x128xf32>
    %62 = vector.broadcast %61 : vector<1x128xf32> to vector<256x128xf32>
    %63 = arith.mulf %58, %62 : vector<256x128xf32>
    %cst_66 = arith.constant 0.000000e+00 : f32
    %64 = vector.broadcast %cst_66 : f32 to vector<256x128xf32>
    %65 = arith.maximumf %63, %64 : vector<256x128xf32>
    %66 = vector.extract_strided_slice %65 {offsets = [0, 0], sizes = [256, 8], strides = [1, 1]} : vector<256x128xf32> to vector<256x8xf32>
    %67 = vector.shape_cast %66 : vector<256x8xf32> to vector<16x16x8xf32>
    %68 = arith.truncf %67 : vector<16x16x8xf32> to vector<16x16x8xbf16>
    %c1_67 = arith.constant 1 : index
    %c1_68 = arith.constant 1 : index
    %c0_69 = arith.constant 0 : index
    %69 = vector.load %arg5[%c1_67, %c1_68, %c0_69] : memref<18x18x8xbf16, #tpu.memory_space<vmem>>, vector<16x16x8xbf16>
    tpu.vector_store %arg5[%c1_67, %c1_68, %c0_69], %68 {strides = array<i32>} : memref<18x18x8xbf16, #tpu.memory_space<vmem>>, vector<16x16x8xbf16>,
    %c0_70 = arith.constant 0 : index
    %c0_71 = arith.constant 0 : index
    %c0_72 = arith.constant 0 : index
    %70 = vector.load %arg5[%c0_70, %c0_71, %c0_72] : memref<18x18x8xbf16, #tpu.memory_space<vmem>>, vector<16x16x8xbf16>
    %71 = vector.shape_cast %70 : vector<16x16x8xbf16> to vector<256x8xbf16>
    %c0_73 = arith.constant 0 : index
    %c0_74 = arith.constant 0 : index
    %72 = vector.load %arg6[%c0_73, %c0_74] : memref<256x128xbf16, #tpu.memory_space<vmem>>, vector<256x8xbf16>
    tpu.vector_store %arg6[%c0_73, %c0_74], %71 {strides = array<i32>} : memref<256x128xbf16, #tpu.memory_space<vmem>>, vector<256x8xbf16>,
    %c0_75 = arith.constant 0 : index
    %c1_76 = arith.constant 1 : index
    %c0_77 = arith.constant 0 : index
    %73 = vector.load %arg5[%c0_75, %c1_76, %c0_77] : memref<18x18x8xbf16, #tpu.memory_space<vmem>>, vector<16x16x8xbf16>
    %74 = vector.shape_cast %73 : vector<16x16x8xbf16> to vector<256x8xbf16>
    %c0_78 = arith.constant 0 : index
    %c8_79 = arith.constant 8 : index
    %75 = vector.load %arg6[%c0_78, %c8_79] : memref<256x128xbf16, #tpu.memory_space<vmem>>, vector<256x8xbf16>
    tpu.vector_store %arg6[%c0_78, %c8_79], %74 {strides = array<i32>} : memref<256x128xbf16, #tpu.memory_space<vmem>>, vector<256x8xbf16>,
    %c0_80 = arith.constant 0 : index
    %c2_81 = arith.constant 2 : index
    %c0_82 = arith.constant 0 : index
    %76 = vector.load %arg5[%c0_80, %c2_81, %c0_82] : memref<18x18x8xbf16, #tpu.memory_space<vmem>>, vector<16x16x8xbf16>
    %77 = vector.shape_cast %76 : vector<16x16x8xbf16> to vector<256x8xbf16>
    %c0_83 = arith.constant 0 : index
    %c16_84 = arith.constant 16 : index
    %78 = vector.load %arg6[%c0_83, %c16_84] : memref<256x128xbf16, #tpu.memory_space<vmem>>, vector<256x8xbf16>
    tpu.vector_store %arg6[%c0_83, %c16_84], %77 {strides = array<i32>} : memref<256x128xbf16, #tpu.memory_space<vmem>>, vector<256x8xbf16>,
    %c1_85 = arith.constant 1 : index
    %c0_86 = arith.constant 0 : index
    %c0_87 = arith.constant 0 : index
    %79 = vector.load %arg5[%c1_85, %c0_86, %c0_87] : memref<18x18x8xbf16, #tpu.memory_space<vmem>>, vector<16x16x8xbf16>
    %80 = vector.shape_cast %79 : vector<16x16x8xbf16> to vector<256x8xbf16>
    %c0_88 = arith.constant 0 : index
    %c24_89 = arith.constant 24 : index
    %81 = vector.load %arg6[%c0_88, %c24_89] : memref<256x128xbf16, #tpu.memory_space<vmem>>, vector<256x8xbf16>
    tpu.vector_store %arg6[%c0_88, %c24_89], %80 {strides = array<i32>} : memref<256x128xbf16, #tpu.memory_space<vmem>>, vector<256x8xbf16>,
    %c1_90 = arith.constant 1 : index
    %c1_91 = arith.constant 1 : index
    %c0_92 = arith.constant 0 : index
    %82 = vector.load %arg5[%c1_90, %c1_91, %c0_92] : memref<18x18x8xbf16, #tpu.memory_space<vmem>>, vector<16x16x8xbf16>
    %83 = vector.shape_cast %82 : vector<16x16x8xbf16> to vector<256x8xbf16>
    %c0_93 = arith.constant 0 : index
    %c32_94 = arith.constant 32 : index
    %84 = vector.load %arg6[%c0_93, %c32_94] : memref<256x128xbf16, #tpu.memory_space<vmem>>, vector<256x8xbf16>
    tpu.vector_store %arg6[%c0_93, %c32_94], %83 {strides = array<i32>} : memref<256x128xbf16, #tpu.memory_space<vmem>>, vector<256x8xbf16>,
    %c1_95 = arith.constant 1 : index
    %c2_96 = arith.constant 2 : index
    %c0_97 = arith.constant 0 : index
    %85 = vector.load %arg5[%c1_95, %c2_96, %c0_97] : memref<18x18x8xbf16, #tpu.memory_space<vmem>>, vector<16x16x8xbf16>
    %86 = vector.shape_cast %85 : vector<16x16x8xbf16> to vector<256x8xbf16>
    %c0_98 = arith.constant 0 : index
    %c40 = arith.constant 40 : index
    %87 = vector.load %arg6[%c0_98, %c40] : memref<256x128xbf16, #tpu.memory_space<vmem>>, vector<256x8xbf16>
    tpu.vector_store %arg6[%c0_98, %c40], %86 {strides = array<i32>} : memref<256x128xbf16, #tpu.memory_space<vmem>>, vector<256x8xbf16>,
    %c2_99 = arith.constant 2 : index
    %c0_100 = arith.constant 0 : index
    %c0_101 = arith.constant 0 : index
    %88 = vector.load %arg5[%c2_99, %c0_100, %c0_101] : memref<18x18x8xbf16, #tpu.memory_space<vmem>>, vector<16x16x8xbf16>
    %89 = vector.shape_cast %88 : vector<16x16x8xbf16> to vector<256x8xbf16>
    %c0_102 = arith.constant 0 : index
    %c48 = arith.constant 48 : index
    %90 = vector.load %arg6[%c0_102, %c48] : memref<256x128xbf16, #tpu.memory_space<vmem>>, vector<256x8xbf16>
    tpu.vector_store %arg6[%c0_102, %c48], %89 {strides = array<i32>} : memref<256x128xbf16, #tpu.memory_space<vmem>>, vector<256x8xbf16>,
    %c2_103 = arith.constant 2 : index
    %c1_104 = arith.constant 1 : index
    %c0_105 = arith.constant 0 : index
    %91 = vector.load %arg5[%c2_103, %c1_104, %c0_105] : memref<18x18x8xbf16, #tpu.memory_space<vmem>>, vector<16x16x8xbf16>
    %92 = vector.shape_cast %91 : vector<16x16x8xbf16> to vector<256x8xbf16>
    %c0_106 = arith.constant 0 : index
    %c56 = arith.constant 56 : index
    %93 = vector.load %arg6[%c0_106, %c56] : memref<256x128xbf16, #tpu.memory_space<vmem>>, vector<256x8xbf16>
    tpu.vector_store %arg6[%c0_106, %c56], %92 {strides = array<i32>} : memref<256x128xbf16, #tpu.memory_space<vmem>>, vector<256x8xbf16>,
    %c2_107 = arith.constant 2 : index
    %c2_108 = arith.constant 2 : index
    %c0_109 = arith.constant 0 : index
    %94 = vector.load %arg5[%c2_107, %c2_108, %c0_109] : memref<18x18x8xbf16, #tpu.memory_space<vmem>>, vector<16x16x8xbf16>
    %95 = vector.shape_cast %94 : vector<16x16x8xbf16> to vector<256x8xbf16>
    %c0_110 = arith.constant 0 : index
    %c64 = arith.constant 64 : index
    %96 = vector.load %arg6[%c0_110, %c64] : memref<256x128xbf16, #tpu.memory_space<vmem>>, vector<256x8xbf16>
    tpu.vector_store %arg6[%c0_110, %c64], %95 {strides = array<i32>} : memref<256x128xbf16, #tpu.memory_space<vmem>>, vector<256x8xbf16>,
    %cst_111 = arith.constant 0.000000e+00 : bf16
    %97 = vector.broadcast %cst_111 : bf16 to vector<256x56xbf16>
    %c0_112 = arith.constant 0 : index
    %c72 = arith.constant 72 : index
    %98 = vector.load %arg6[%c0_112, %c72] : memref<256x128xbf16, #tpu.memory_space<vmem>>, vector<256x56xbf16>
    tpu.vector_store %arg6[%c0_112, %c72], %97 {strides = array<i32>} : memref<256x128xbf16, #tpu.memory_space<vmem>>, vector<256x56xbf16>,
    %c0_113 = arith.constant 0 : index
    %c0_114 = arith.constant 0 : index
    %99 = vector.load %arg6[%c0_113, %c0_114] : memref<256x128xbf16, #tpu.memory_space<vmem>>, vector<256x128xbf16>
    %c0_115 = arith.constant 0 : index
    %c0_116 = arith.constant 0 : index
    %100 = vector.load %arg3[%c0_115, %c0_116] : memref<128x128xbf16, #tpu.memory_space<vmem>>, vector<128x128xbf16>
    %cst_117 = arith.constant dense<0.000000e+00> : vector<256x128xf32>
    %101 = tpu.matmul %99, %100, %cst_117 {dimension_numbers = #tpu.dot_dimension_numbers<[1], [0], [0], [1], [0, 0, 1, 1], [], []>} : vector<256x128xbf16>, vector<128x128xbf16>, vector<256x128xf32> -> vector<256x128xf32>
    %cst_118 = arith.constant dense<0.000000e+00> : vector<128xf32>
    %102 = vector.multi_reduction <add>, %101, %cst_118 [0] : vector<256x128xf32> to vector<128xf32>
    %103 = vector.shape_cast %102 : vector<128xf32> to vector<1x128xf32>
    %cst_119 = arith.constant 2.560000e+02 : f32
    %104 = vector.broadcast %cst_119 : f32 to vector<1x128xf32>
    %105 = arith.divf %103, %104 : vector<1x128xf32>
    %106 = vector.broadcast %105 : vector<1x128xf32> to vector<256x128xf32>
    %107 = arith.subf %101, %106 : vector<256x128xf32>
    %108 = arith.mulf %107, %107 : vector<256x128xf32>
    %cst_120 = arith.constant dense<0.000000e+00> : vector<128xf32>
    %109 = vector.multi_reduction <add>, %108, %cst_120 [0] : vector<256x128xf32> to vector<128xf32>
    %110 = vector.shape_cast %109 : vector<128xf32> to vector<1x128xf32>
    %cst_121 = arith.constant 2.560000e+02 : f32
    %111 = vector.broadcast %cst_121 : f32 to vector<1x128xf32>
    %112 = arith.divf %110, %111 : vector<1x128xf32>
    %113 = vector.broadcast %105 : vector<1x128xf32> to vector<256x128xf32>
    %114 = arith.subf %101, %113 : vector<256x128xf32>
    %cst_122 = arith.constant 9.99999974E-6 : f32
    %115 = vector.broadcast %cst_122 : f32 to vector<1x128xf32>
    %116 = arith.addf %112, %115 : vector<1x128xf32>
    %117 = math.rsqrt %116 : vector<1x128xf32>
    %118 = vector.broadcast %117 : vector<1x128xf32> to vector<256x128xf32>
    %119 = arith.mulf %114, %118 : vector<256x128xf32>
    %cst_123 = arith.constant 0.000000e+00 : f32
    %120 = vector.broadcast %cst_123 : f32 to vector<256x128xf32>
    %121 = arith.maximumf %119, %120 : vector<256x128xf32>
    %122 = tpu.transpose %121, [1, 0] : vector<256x128xf32> -> vector<128x256xf32>
    %123 = vector.extract_strided_slice %122 {offsets = [0, 0], sizes = [8, 256], strides = [1, 1]} : vector<128x256xf32> to vector<8x256xf32>
    %c0_124 = arith.constant 0 : index
    %c0_125 = arith.constant 0 : index
    %c0_126 = arith.constant 0 : index
    %124 = vector.load %arg4[%c0_124, %c0_125, %c0_126] : memref<1x8x256xf32, #tpu.memory_space<vmem>>, vector<1x8x256xf32>
    %125 = vector.shape_cast %124 : vector<1x8x256xf32> to vector<8x256xf32>
    %126 = vector.shape_cast %123 : vector<8x256xf32> to vector<1x8x256xf32>
    tpu.vector_store %arg4[%c0_124, %c0_125, %c0_126], %126 {strides = array<i32>} : memref<1x8x256xf32, #tpu.memory_space<vmem>>, vector<1x8x256xf32>,
    return
  }
  func.func @transform_0(%arg0: i32) -> (i32, i32, i32) {
    %c0_i32 = arith.constant 0 : i32
    %c0_i32_0 = arith.constant 0 : i32
    %c0_i32_1 = arith.constant 0 : i32
    return %arg0, %c0_i32, %c0_i32_0 : i32, i32, i32
  }
  func.func @transform_1(%arg0: i32) -> (i32, i32) {
    %c0_i32 = arith.constant 0 : i32
    %c0_i32_0 = arith.constant 0 : i32
    %c0_i32_1 = arith.constant 0 : i32
    return %c0_i32, %c0_i32_0 : i32, i32
  }
  func.func @transform_2(%arg0: i32) -> (i32, i32) {
    %c0_i32 = arith.constant 0 : i32
    %c0_i32_0 = arith.constant 0 : i32
    %c0_i32_1 = arith.constant 0 : i32
    return %c0_i32, %c0_i32_0 : i32, i32
  }
  func.func @transform_3(%arg0: i32) -> (i32, i32, i32) {
    %c0_i32 = arith.constant 0 : i32
    %c0_i32_0 = arith.constant 0 : i32
    %c0_i32_1 = arith.constant 0 : i32
    return %arg0, %c0_i32, %c0_i32_0 : i32, i32, i32
  }
}

</mosaic_0001>

<bundles_post_ra>
// kernel: tpu_custom_call.1
= control target key start
LH: loop header
LB: loop body
LE: loop exit
PB: predicated region body
PF: predicated region fallthrough
CT: control target
= control target key end

     0   :  { %8 = vsyncpa [#allocation5], 0  ;;  %s14420_s0 = inlined_call_operand.hbm [shape: f32[2,4,256], index: 0, kind: input, shape index: {}]   ;;  %s14421_s1 = inlined_call_operand.hbm [shape: bf16[128,128], index: 1, kind: input, shape index: {}]   ;;  %s14422_s2 = inlined_call_operand.hbm [shape: bf16[128,128], index: 2, kind: input, shape index: {}]   ;;  %s14423_s3 = inlined_call_operand.hbm [shape: f32[2,8,256], index: 3, kind: output, shape index: {}]  }
   0x1   :  { %10 = vsyncpa [#allocation5 + $0x1], 0 }
   0x2   :  { %11 = vsyncpa [#allocation8], 0 }
   0x3   :  { %12 = vsyncpa [#allocation6], 0 }
   0x4   :  { %14 = vsyncpa [#allocation6 + $0x1], 0  ;;  %s9954_s12 = smov 0   ;;  %s9956_s13 = smov 0  }
   0x5   :  { %s9958_s14 = smov 0   ;;  %s9960_s15 = smov 0  }
   0x6 LB: > { %s9975_s16 = sadd.s32 4294967295, %s9913_s15   ;;  %s9111_s17 = sadd.s32 4294967294, %s9913_s15   ;;  %s9913_s15 = sphi %s9960_s15, %s14568_s15   ;;  %s9909_s14 = sphi %s9958_s14, %s14567_s14   ;;  %s9905_s13 = sphi %s9956_s13, %s14566_s13   ;;  %s9901_s12 = sphi %s9954_s12, %s14565_s12  }
   0x7   : > { %p40_p0 = scmp.ne.s32.totalorder %s9905_s13, %s9901_s12  ;;  %p14424_p1 = scmp.eq.s32.totalorder %s9975_s16, 0 }
   0x8   : > { %p112_p3 = scmp.eq.s32.totalorder %s9111_s17, 1  ;;  %p9112_p5 = scmp.ge.s32.totalorder %s9913_s15, 1 }
   0x9   : > { %p9984_p4 = por %p14424_p1, %p40_p0  ;;  %p119_p7 = scmp.lt.s32.totalorder %s9913_s15, 3 }
   0xa   : > { %p9989_p6 = por %p112_p3, %p40_p0  ;;  %s9915_s21 = smov [#allocation7]  }
   0xb   : > { %s14450_s18 = scalar_select %p9984_p4, 1, 0 }
   0xc   : > { %s14451_s19 = scalar_select %p9989_p6, 1, 0 }
   0xd   : > { %p9994_p8 = pnand %p9112_p5, %p119_p7  ;;  %s131_s22 = sshll.u32 %s9915_s21, 4  ;;  %s132_s22 = int_to_ptr.vmem [resolvable:$true] %s131_s22 }
   0xe   : > { %s9916_s24 = smov [#allocation9]   ;;  %s9776_s26 = scalar_lea.vmem %s132_s22, 1024 }
   0xf   : > { %s14452_s20 = scalar_select %p9994_p8, 1, 0 }
  0x10   : > { %p9559_p9 = pneg %p9994_p8  ;;  %s144_s25 = sshll.u32 %s9916_s24, 4  ;;  %s145_s25 = int_to_ptr.vmem [resolvable:$true] %s144_s25 }
  0x11   : > { %p9777_p13 = scmp.ne.s32.totalorder %s132_s22, %s9776_s26  ;;  %p9784_p5 = scmp.lt.s32.totalorder %s132_s22, %s132_s22 }
  0x12   : > { %p10003_p11 = pnand %p9559_p9, %p14424_p1  ;;  %p9785_p7 = scmp.lt.s32.totalorder %s9776_s26, %s9776_s26 }
  0x14   : > { %p9767_p12 = pneg %p10003_p11  ;;  %p9786_p10 = por %p9785_p7, %p9784_p5 }
  0x16   : > { %p9779_p0 = pnand %p9777_p13, %p9767_p12 }
  0x18   : > { %p9780_p3 = pneg %p9779_p0 }
  0x1a   : > { %p9787_p9 = pnand %p9786_p10, %p9780_p3 }
  0x1c   : > { %9790 = shalt.err (!%p9787_p9)
}
  0x1d   : > { %s9917_s27 = smov 64   ;;  %s9918_s28 = smov 4  }
  0x1e   : > { %9562 = dma.hbm_to_vmem [thread:$0]  (!%p10003_p11), %s14421_s1, 1024, %s132_s22, [#allocation8], %s9917_s27, %s9917_s27, %s9918_s28  }
  0x1f   : > { %s9802_s4 = scalar_lea.vmem %s145_s25, 1024  ;;  %p9810_p2 = scmp.lt.s32.totalorder %s145_s25, %s145_s25 }
  0x20   : > { %p9803_p1 = scmp.ne.s32.totalorder %s145_s25, %s9802_s4  ;;  %p9811_p6 = scmp.lt.s32.totalorder %s9802_s4, %s9802_s4 }
  0x22   : > { %p9805_p13 = pnand %p9803_p1, %p9767_p12  ;;  %p9812_p5 = por %p9811_p6, %p9810_p2 }
  0x24   : > { %p9806_p0 = pneg %p9805_p13 }
  0x26   : > { %p9813_p10 = pnand %p9812_p5, %p9806_p0 }
  0x28   : > { %9816 = shalt.err (!%p9813_p10)
}
  0x29   : > { %9565 = dma.hbm_to_vmem [thread:$0]  (!%p10003_p11), %s14422_s2, 1024, %s145_s25, [#allocation8], %s9917_s27, %s9917_s27, %s9918_s28  }
  0x2a   : > { %s10026_s7 = sadd.s32 1, %s9913_s15   ;;  %s27_s8 = sadd.s32 1, %s9909_s14 }
  0x2b   : > { %s24_s9 = ssub.s32 %s9913_s15, %s10026_s7  ;;  %p34_p1 = scmp.ne.s32.totalorder %s9909_s14, %s9905_s13 }
  0x2c   : > { %p25_p2 = scmp.eq.s32.totalorder %s24_s9, 0  ;;  %p35_p6 = scmp.eq.s32.totalorder %s9913_s15, 0 }
  0x2d   : > { %p14454_p12 = scmp.eq.s32.totalorder %s9975_s16, 1  ;;  %p9576_p7 = scmp.lt.s32.totalorder %s9913_s15, 2 }
  0x2e   : > { %s10042_s11 = scalar_select %p25_p2, %s9909_s14, %s27_s8  }
  0x2f   : > { %p10036_p3 = por %p14454_p12, %p34_p1  ;;  %p36_p9 = por %p35_p6, %p34_p1 }
  0x30   : > { %s158_s17 = sand.u32 1, %s9909_s14   ;;  %s9337_s22 = sshll.u32 %s9913_s15, 7 }
  0x31   : > { %s14455_s10 = scalar_select %p10036_p3, 1, 0 }
  0x32   : > { %s9116_s21 = sshll.u32 %s158_s17, 3  ;;  %s10049_s25 = scalar_lea.hbm %s14420_s0, %s9337_s22 }
  0x33   : > { %s162_s26 = scalar_lea.vmem [#allocation4], %s9116_s21  ;;  %p10051_p11 = pnand %p9576_p7, %p36_p9 }
  0x34   : > { %s170_s27 = sshll.u32 %s162_s26, 4  ;;  %s159_s29 = scalar_lea.sflag [#allocation5], %s158_s17  ;;  %s171_s27 = int_to_ptr.vmem [resolvable:$true] %s170_s27 }
  0x35   : > { %s9817_s30 = scalar_lea.hbm %s10049_s25, 128  ;;  %p9819_p0 = pneg %p10051_p11 }
  0x36   : > { %p9818_p13 = scmp.ne.s32.totalorder %s10049_s25, %s9817_s30  ;;  %s9822_s6 = scalar_lea.hbm %s14420_s0, 256 }
  0x37   : > { %p9823_p1 = scmp.lt.s32.totalorder %s10049_s25, %s14420_s0  ;;  %p9824_p2 = scmp.lt.s32.totalorder %s9822_s6, %s9817_s30 }
  0x38   : > { %p9820_p5 = pnand %p9819_p0, %p9818_p13 }
  0x39   : > { %p9825_p6 = por %p9824_p2, %p9823_p1 }
  0x3a   : > { %p9821_p10 = pneg %p9820_p5 }
  0x3c   : > { %p9826_p12 = pnand %p9825_p6, %p9821_p10 }
  0x3e   : > { %9829 = shalt.err (!%p9826_p12)
}
  0x3f   : > { %s9830_s21 = scalar_lea.vmem %s171_s27, 128  ;;  %s9919_s17 = smov [#allocation4]  }
  0x40   : > { %p9831_p7 = scmp.ne.s32.totalorder %s171_s27, %s9830_s21  ;;  %s9835_s22 = sshll.u32 %s9919_s17, 4  ;;  %s9836_s22 = int_to_ptr.vmem [resolvable:$false] %s9835_s22 }
  0x41   : > { %s9837_s23 = scalar_lea.vmem %s9836_s22, 256  ;;  %p9838_p13 = scmp.lt.s32.totalorder %s171_s27, %s9836_s22 }
  0x42   : > { %p9833_p9 = pnand %p9831_p7, %p9819_p0  ;;  %p9839_p5 = scmp.lt.s32.totalorder %s9837_s23, %s9830_s21 }
  0x44   : > { %p9834_p3 = pneg %p9833_p9  ;;  %p9840_p4 = por %p9839_p5, %p9838_p13 }
  0x46   : > { %p9841_p8 = pnand %p9840_p4, %p9834_p3 }
  0x48   : > { %9844 = shalt.err (!%p9841_p8)
}
  0x49   : > { %9569 = dma.hbm_to_vmem [thread:$0]  (!%p10051_p11), %s10049_s25, 128, %s171_s27, %s159_s29  }
  0x4a   : > { %p14457_p10 = scmp.ne.s32.totalorder %s14452_s20, 0 }
  0x4c   : > { %179 = sbr.rel (%p14457_p10) target bundleno = 2444 (0x98c), region = 32 }
  0x51   : > { %s10072_s24 = sand.u32 1, %s9905_s13   ;;  %p14458_p0 = scmp.ne.s32.totalorder %s14450_s18, 0 }
  0x52   : > { %s9120_s26 = sshll.u32 %s10072_s24, 3  ;;  %s182_s30 = scalar_lea.sflag [#allocation5], %s10072_s24 }
  0x53   : > { %s185_s4 = scalar_lea.vmem [#allocation4], %s9120_s26 }
  0x54   : > { %9888 = dma.done.wait (%p14458_p0), %s182_s30, 128  }
  0x55   : > { %9890 = vsyncadd (%p14458_p0), %s182_s30, 4294967168  ;;  %p14459_p4 = scmp.eq.s32.totalorder %s9975_s16, 0 }
  0x57   : > { %9892 = dma.done.wait (%p14459_p4), [#allocation8], 2048   ;;  %p14460_p8 = pmov %p14459_p4 }
  0x58   : > { %vm220_vm0 = vcmask 57344   ;;  %vm228_vm1 = vsmask.f32 256  ;;  %v14461_v0 = vmov 0  ;;  %vm278_vm3 = vsmask.f32 7938 }
  0x59   : > { %9894 = vsyncadd (%p14460_p8), [#allocation8], 4294965248  ;;  %v328_v1 = vld [vmem:[%s185_s4] sm:$0xff]  ;;  %v230_v3 = vld [vmem:[#allocation2 + $0xc] sm:$0x1]  ;;  %vm217_vm4 = vcmask 60416  }
  0x5a   : > { %vm10086_vm2 = vmand %vm220_vm0, %vm228_vm1  ;;  %v330_v2 = vcombine.high %v328_v1, %v328_v1  ;;  %v254_v4 = vld [vmem:[#allocation2 + $0x6c] sm:$0x1]  ;;  %v14428_v8 = vmov 0   ;;  %v280_v10 = vld [vmem:[#allocation2 + $0x14] sm:$0x1]  ;;  %vm1655_vm6 = vcmask 1042432  }
  0x5b   : > { %v14462_v0 = vsel %vm10086_vm2, 4294967295, %v14461_v0  ;;  %v231_v6 = vsel %vm10086_vm2, 0, %v230_v3  ;;  %v255_v7 = vsel %vm10086_vm2, 0, %v254_v4  ;;  %219 = vst.msk [vmem:[#allocation2 + $0x4] sm:$0xf] %vm217_vm4, %v14428_v8  ;;  %vm10108_vm5 = vmand %vm220_vm0, %vm278_vm3  ;;  %vm1656_vm7 = vcmask 1046532  }
  0x5c   : > { %14463 = vst [vmem:[#allocation14_spill] sm:$0xff] %v14462_v0  ;;  %v9630_v5 = vpack.i.bf16 %v330_v2, %v328_v1  ;;  %232 = vst [vmem:[#allocation2 + $0xc] sm:$0x1] %v231_v6  ;;  %v304_v11 = vld [vmem:[#allocation2 + $0x74] sm:$0x1]  ;;  %v281_v12 = vsel %vm10108_vm5, 0, %v280_v10 }
  0x5d   : > { %256 = vst [vmem:[#allocation2 + $0x6c] sm:$0x1] %v255_v7  ;;  %221 = vst.msk [vmem:[#allocation2 + $0x8] sm:$0x1] %vm220_vm0, %v14428_v8  ;;  %v305_v13 = vsel %vm10108_vm5, 0, %v304_v11  ;;  %v14466_v22 = vmov 0 }
  0x5e   : > { %9631 = vxpose.xlu0.b32.start.end [1/1] (short) %v9630_v5, 128  ;;  %218 = vst.msk [vmem:[#allocation2] sm:$0xf] %vm217_vm4, %v14428_v8  ;;  %223 = vst.msk [vmem:[#allocation2 + $0xcc] sm:$0xf] %vm217_vm4, %v14428_v8  ;;  %s9921_s18 = smov 8   ;;  %v14469_v33 = vmov 0 }
  0x5f   : > { %224 = vst.msk [vmem:[#allocation2 + $0xd0] sm:$0xf] %vm217_vm4, %v14428_v8  ;;  %282 = vst [vmem:[#allocation2 + $0x14] sm:$0x1] %v281_v12  ;;  %vm1043_vm9 = vsmask.f32 3328 }
  0x60   : > { %225 = vst.msk [vmem:[#allocation2 + $0xd4] sm:$0x1] %vm220_vm0, %v14428_v8  ;;  %306 = vst [vmem:[#allocation2 + $0x74] sm:$0x1] %v305_v13  ;;  %vm1044_vm10 = vsmask.f32 7440 }
  0x61   : > { %vm10121_vm8 = vmor %vm1655_vm6, %vm1656_vm7  ;;  %v233_v27 = vld [vmem:[#allocation2 + $0x18] sm:$0x1]  ;;  %s9922_s20 = smov 4   ;;  %v283_v37 = vld [vmem:[#allocation2 + $0x20] sm:$0x1]  ;;  %vm814_vm12 = vcmask 27648  }
  0x62   : > { %v10116_v14 = vld [vmem:[#allocation2 + $0x4] sm:$0xf]  ;;  %v14467_v22 = vsel %vm10121_vm8, 4294967295, %v14466_v22  ;;  %v257_v28 = vld [vmem:[#allocation2 + $0x78] sm:$0x1]  ;;  %v234_v31 = vsel %vm10086_vm2, 0, %v233_v27  ;;  %vm10135_vm11 = vmor %vm1043_vm9, %vm1044_vm10 }
  0x63   : > { %v996_v15 = vld [vmem:[#allocation2 + $0x4] sm:$0xf]  ;;  %v1660_v16 = vrot.slane %v10116_v14, 5  ;;  %14468 = vst [vmem:[#allocation15_spill] sm:$0xff] %v14467_v22  ;;  %v258_v32 = vsel %vm10086_vm2, 0, %v257_v28  ;;  %v14470_v33 = vsel %vm10135_vm11, 4294967295, %v14469_v33  ;;  %vm10205_vm13 = vmand %vm814_vm12, %vm278_vm3 }
  0x64   : > { %v1561_v17 = vld [vmem:[#allocation2 + $0x8] sm:$0x1]  ;;  %v1056_v18 = vshll.u32 %v996_v15, 16  ;;  %v1060_v19 = vshrl.u32 %v996_v15, 16  ;;  %14471 = vst [vmem:[#allocation16_spill] sm:$0xff] %v14470_v33  ;;  %v284_v39 = vsel %vm10108_vm5, 0, %v283_v37 }
  0x65   : > { %v1662_v20 = vrot.slane %v1660_v16, 4  ;;  %v1663_v21 = vrot.slane %v1561_v17, 5  ;;  %v997_v26 = vld [vmem:[#allocation2 + $0x8] sm:$0x1]  ;;  %235 = vst [vmem:[#allocation2 + $0x18] sm:$0x1] %v234_v31 }
  0x66   : > { %v10127_v24 = vrot.slane %v1056_v18, 5  ;;  %v1062_v25 = vrot.slane %v1060_v19, 4  ;;  %v1066_v30 = vshll.u32 %v997_v26, 16  ;;  %259 = vst [vmem:[#allocation2 + $0x78] sm:$0x1] %v258_v32  ;;  %vm821_vm15 = vcmask 24576  }
  0x67   : > { %v1664_v23 = vsel %vm10121_vm8, %v1662_v20, %v1663_v21  ;;  %v307_v38 = vld [vmem:[#allocation2 + $0x80] sm:$0x1]  ;;  %285 = vst [vmem:[#allocation2 + $0x20] sm:$0x1] %v284_v39  ;;  %v236_v41 = vld [vmem:[#allocation2 + $0x24] sm:$0x1] }
  0x68   : > { %1772 = vrot.lane.b32.xlu1 %v1664_v23, %s9921_s18  ;;  %v1063_v29 = vor.u32 %v1062_v25, %v10127_v24  ;;  %v1068_v35 = vrot.slane %v1066_v30, 5  ;;  %v308_v40 = vsel %vm10108_vm5, 0, %v307_v38  ;;  %v237_v42 = vsel %vm10086_vm2, 0, %v236_v41  ;;  %v260_v43 = vld [vmem:[#allocation2 + $0x84] sm:$0x1]  ;;  %s9923_s25 = smov 12  }
  0x69   : > { %309 = vst [vmem:[#allocation2 + $0x80] sm:$0x1] %v308_v40  ;;  %238 = vst [vmem:[#allocation2 + $0x24] sm:$0x1] %v237_v42  ;;  %v261_v44 = vsel %vm10086_vm2, 0, %v260_v43  ;;  %s9924_s27 = smov 16  }
  0x6a   : > { %v1064_v34 = vrot.slane %v1063_v29, 4  ;;  %262 = vst [vmem:[#allocation2 + $0x84] sm:$0x1] %v261_v44  ;;  %v239_v45 = vld [vmem:[#allocation2 + $0x30] sm:$0x1]  ;;  %s9925_s28 = smov 20  }
  0x6b   : > { %v286_v46 = vld [vmem:[#allocation2 + $0x2c] sm:$0x1]  ;;  %v240_v49 = vsel %vm10086_vm2, 0, %v239_v45  ;;  %v263_v51 = vld [vmem:[#allocation2 + $0x90] sm:$0x1]  ;;  %vm1866_vm6 = vcmask 93248  }
  0x6c   : > { %v1069_v36 = vsel %vm10135_vm11, %v1064_v34, %v1068_v35  ;;  %v287_v47 = vsel %vm10108_vm5, 0, %v286_v46  ;;  %v310_v48 = vld [vmem:[#allocation2 + $0x8c] sm:$0x1]  ;;  %241 = vst [vmem:[#allocation2 + $0x30] sm:$0x1] %v240_v49  ;;  %v264_v52 = vsel %vm10086_vm2, 0, %v263_v51 }
  0x6d   : > { %1432 = vrot.lane.b32.xlu1 %v1069_v36, %s9922_s20  ;;  %288 = vst [vmem:[#allocation2 + $0x2c] sm:$0x1] %v287_v47  ;;  %v311_v50 = vsel %vm10108_vm5, 0, %v310_v48  ;;  %265 = vst [vmem:[#allocation2 + $0x90] sm:$0x1] %v264_v52  ;;  %s9926_s29 = smov 24  }
  0x6e   : > { %312 = vst [vmem:[#allocation2 + $0x8c] sm:$0x1] %v311_v50  ;;  %v289_v53 = vld [vmem:[#allocation2 + $0x38] sm:$0x1]  ;;  %v242_v57 = vld [vmem:[#allocation2 + $0x3c] sm:$0x1] }
  0x6f   : > { %v313_v54 = vld [vmem:[#allocation2 + $0x98] sm:$0x1]  ;;  %v290_v55 = vsel %vm10108_vm5, 0, %v289_v53  ;;  %v266_v58 = vld [vmem:[#allocation2 + $0x9c] sm:$0x1]  ;;  %v243_v59 = vsel %vm10086_vm2, 0, %v242_v57 }
  0x70   : > { %v314_v56 = vsel %vm10108_vm5, 0, %v313_v54  ;;  %291 = vst [vmem:[#allocation2 + $0x38] sm:$0x1] %v290_v55  ;;  %v267_v60 = vsel %vm10086_vm2, 0, %v266_v58  ;;  %244 = vst [vmem:[#allocation2 + $0x3c] sm:$0x1] %v243_v59 }
  0x71   : > { %315 = vst [vmem:[#allocation2 + $0x98] sm:$0x1] %v314_v56  ;;  %268 = vst [vmem:[#allocation2 + $0x9c] sm:$0x1] %v267_v60  ;;  %v292_v61 = vld [vmem:[#allocation2 + $0x44] sm:$0x1] }
  0x72   : > { %v316_v62 = vld [vmem:[#allocation2 + $0xa4] sm:$0x1]  ;;  %v293_v63 = vsel %vm10108_vm5, 0, %v292_v61  ;;  %v245_v2 = vld [vmem:[#allocation2 + $0x48] sm:$0x1]  ;;  %s9927_s5 = smov 28  }
  0x73   : > { %v317_v1 = vsel %vm10108_vm5, 0, %v316_v62  ;;  %294 = vst [vmem:[#allocation2 + $0x44] sm:$0x1] %v293_v63  ;;  %v269_v3 = vld [vmem:[#allocation2 + $0xa8] sm:$0x1]  ;;  %v246_v4 = vsel %vm10086_vm2, 0, %v245_v2 }
  0x74   : > { %318 = vst [vmem:[#allocation2 + $0xa4] sm:$0x1] %v317_v1  ;;  %v270_v5 = vsel %vm10086_vm2, 0, %v269_v3  ;;  %247 = vst [vmem:[#allocation2 + $0x48] sm:$0x1] %v246_v4  ;;  %s9928_s6 = smov 32  }
  0x75   : > { %271 = vst [vmem:[#allocation2 + $0xa8] sm:$0x1] %v270_v5  ;;  %v295_v6 = vld [vmem:[#allocation2 + $0x50] sm:$0x1]  ;;  %v248_v12 = vld [vmem:[#allocation2 + $0x54] sm:$0x1] }
  0x76   : > { %v296_v7 = vsel %vm10108_vm5, 0, %v295_v6  ;;  %v319_v10 = vld [vmem:[#allocation2 + $0xb0] sm:$0x1]  ;;  %v272_v13 = vld [vmem:[#allocation2 + $0xb4] sm:$0x1]  ;;  %v249_v15 = vsel %vm10086_vm2, 0, %v248_v12 }
  0x77   : > { %297 = vst [vmem:[#allocation2 + $0x50] sm:$0x1] %v296_v7  ;;  %v320_v11 = vsel %vm10108_vm5, 0, %v319_v10  ;;  %v273_v17 = vsel %vm10086_vm2, 0, %v272_v13  ;;  %250 = vst [vmem:[#allocation2 + $0x54] sm:$0x1] %v249_v15 }
  0x78   : > { %321 = vst [vmem:[#allocation2 + $0xb0] sm:$0x1] %v320_v11  ;;  %274 = vst [vmem:[#allocation2 + $0xb4] sm:$0x1] %v273_v17  ;;  %v995_v18 = vld [vmem:[#allocation2] sm:$0xf] }
  0x79   : > { %v298_v19 = vld [vmem:[#allocation2 + $0x5c] sm:$0x1]  ;;  %v1047_v21 = vshrl.u32 %v995_v18, 16  ;;  %v1050_v23 = vshll.u32 %v995_v18, 16  ;;  %v251_v29 = vld [vmem:[#allocation2 + $0x60] sm:$0x1] }
  0x7a   : > { %v322_v20 = vld [vmem:[#allocation2 + $0xbc] sm:$0x1]  ;;  %v299_v25 = vsel %vm10108_vm5, 0, %v298_v19  ;;  %v275_v30 = vld [vmem:[#allocation2 + $0xc0] sm:$0x1]  ;;  %v252_v31 = vsel %vm10086_vm2, 0, %v251_v29 }
  0x7b   : > { %v323_v26 = vsel %vm10108_vm5, 0, %v322_v20  ;;  %300 = vst [vmem:[#allocation2 + $0x5c] sm:$0x1] %v299_v25  ;;  %v1049_v27 = vrot.slane %v1047_v21, 4  ;;  %v1052_v28 = vrot.slane %v1050_v23, 5  ;;  %v276_v32 = vsel %vm10086_vm2, 0, %v275_v30 }
  0x7c   : > { %324 = vst [vmem:[#allocation2 + $0xbc] sm:$0x1] %v323_v26  ;;  %253 = vst [vmem:[#allocation2 + $0x60] sm:$0x1] %v252_v31  ;;  %v1559_v36 = vld [vmem:[#allocation2] sm:$0xe] }
  0x7d   : > { %277 = vst [vmem:[#allocation2 + $0xc0] sm:$0x1] %v276_v32  ;;  %v1053_v34 = vor.u32 %v1052_v28, %v1049_v27  ;;  %v301_v37 = vld [vmem:[#allocation2 + $0x68] sm:$0x1]  ;;  %v9156_v41 = vrot.slane %v1559_v36, 9  ;;  %vm2059_vm7 = vcmask 126048  }
  0x7e   : > { %v302_v38 = vsel %vm10108_vm5, 0, %v301_v37  ;;  %v325_v39 = vld [vmem:[#allocation2 + $0xc8] sm:$0x1]  ;;  %v816_v55 = vld [vmem:[#allocation2 + $0xc] sm:$0xf]  ;;  %vm2620_vm9 = vcmask 158848  }
  0x7f   : > { %v1054_v35 = vrot.slane %v1053_v34, 4  ;;  %303 = vst [vmem:[#allocation2 + $0x68] sm:$0x1] %v302_v38  ;;  %v326_v42 = vsel %vm10108_vm5, 0, %v325_v39  ;;  %v1661_v43 = vsel %vm10121_vm8, %v9156_v41, %v1660_v16  ;;  %v875_v56 = vld [vmem:[#allocation2 + $0x6c] sm:$0xf]  ;;  %vm10221_vm5 = vmand %vm821_vm15, %vm228_vm1 }
  0x80   : > { %327 = vst [vmem:[#allocation2 + $0xc8] sm:$0x1] %v326_v42  ;;  %vm492_vm14 = vsmask.f32 4368  ;;  %v823_v18 = vld [vmem:[#allocation2 + $0x14] sm:$0x1] }
  0x81   : > { %v1059_v40 = vsel %vm10135_vm11, %v1054_v35, %v10127_v24  ;;  %vm10215_vm0 = vmor %vm228_vm1, %vm492_vm14  ;;  %v879_v19 = vld [vmem:[#allocation2 + $0x74] sm:$0x1]  ;;  %v882_v42 = vld [vmem:[#allocation2 + $0x78] sm:$0xf]  ;;  %vm1526_vm1 = vcmask 60448   ;;  %vm2957_vm10 = vcmask 191648  }
  0x82   : > { %vm4049_vm14 = vcmask 290048   ;;  %vm4082_vm15 = vcmask 1043744   ;;  %s9929_s8 = smov 48   ;;  %s9930_s9 = smov 40  }
  0x83   : > { %s9931_s21 = smov 56   ;;  %s9932_s17 = smov 64  }
  0x84   : > { %s9123_s22 = sshll.u32 %s10072_s24, 4  ;;  %s9402_s30 = sshll.u32 %s9975_s16, 8 }
  0x85   : > { %s215_s23 = scalar_lea.vmem [#allocation10], %s9123_s22  ;;  %p14562_p11 = scmp.ne.s32.totalorder %s14455_s10, 0 }
  0x86   : > { %s9022_s26 = sshll.u32 %s215_s23, 4  ;;  %s9933_s16 = smov [#allocation10]   ;;  %s14374_s26 = int_to_ptr.vmem [resolvable:$true] %s9022_s26 }
  0xc3   : > { %1430 = vrot.lane.b32.xlu0 %v1059_v40, %s9922_s20 }
  0xc7   : > { %1770 = vrot.lane.b32.xlu0 %v1661_v43, %s9921_s18 }
  0xda   : > { %v9632_v44 = vpop.trf.xlu0 }
  0xdb   : > { %v9636_v45 = vunpack.i.h.bf16 %v9632_v44  ;;  %v9633_v46 = vunpack.i.l.bf16 %v9632_v44 }
  0xdd   : > { %v9354_v47 = vpack.c.bf16 %v9636_v45, %v9636_v45  ;;  %v9338_v24 = vpack.c.bf16 %v9633_v46, %v9633_v46 }
  0xde   : > { %v9637_v48 = vpop.trf.xlu0 }
  0xdf   : > { %v631_v49 = vshrl.u32 %v9354_v47, 16  ;;  %v495_v9 = vshrl.u32 %v9338_v24, 16  ;;  %v9641_v50 = vunpack.i.h.bf16 %v9637_v48  ;;  %v9638_v51 = vunpack.i.l.bf16 %v9637_v48 }
  0xe0   : > { %v634_v53 = vshll.u32 %v9354_v47, 16  ;;  %v498_v14 = vshll.u32 %v9338_v24, 16 }
  0xe1   : > { %v633_v52 = vrot.slane %v631_v49, 7  ;;  %v497_v54 = vrot.slane %v495_v9, 7  ;;  %v9355_v57 = vpack.c.bf16 %v9641_v50, %v9641_v50  ;;  %v9339_v58 = vpack.c.bf16 %v9638_v51, %v9638_v51  ;;  %v826_v49 = vld [vmem:[#allocation2 + $0x18] sm:$0xf]  ;;  %v886_v50 = vld [vmem:[#allocation2 + $0x80] sm:$0x1] }
  0xe2   : > { %v9642_v59 = vpop.trf.xlu0 }
  0xe3   : > { %v636_v60 = vor.u32 %v634_v53, %v633_v52  ;;  %v637_v61 = vrot.slane %v633_v52, 4  ;;  %v500_v62 = vor.u32 %v498_v14, %v497_v54  ;;  %v501_v63 = vrot.slane %v497_v54, 4 }
  0xe4   : > { %v639_v1 = vshrl.u32 %v9355_v57, 16  ;;  %v642_v2 = vshll.u32 %v9355_v57, 16  ;;  %v503_v3 = vshrl.u32 %v9339_v58, 16  ;;  %v506_v4 = vshll.u32 %v9339_v58, 16 }
  0xe5   : > { %v817_v5 = vsel %vm10205_vm13, %v500_v62, %v816_v55  ;;  %v876_v6 = vsel %vm10205_vm13, %v636_v60, %v875_v56  ;;  %v9646_v7 = vunpack.i.h.bf16 %v9642_v59  ;;  %v9643_v13 = vunpack.i.l.bf16 %v9642_v59 }
  0xe6   : > { %818 = vst [vmem:[#allocation2 + $0xc] sm:$0xf] %v817_v5  ;;  %877 = vst [vmem:[#allocation2 + $0x6c] sm:$0xf] %v876_v6  ;;  %v641_v11 = vrot.slane %v639_v1, 7  ;;  %v505_v12 = vrot.slane %v503_v3, 7  ;;  %v9647_v15 = vpop.trf.xlu0 }
  0xe7   : > { %v9356_v20 = vpack.c.bf16 %v9646_v7, %v9646_v7  ;;  %v9651_v21 = vunpack.i.h.bf16 %v9647_v15  ;;  %v9340_v30 = vpack.c.bf16 %v9643_v13, %v9643_v13  ;;  %v9648_v44 = vunpack.i.l.bf16 %v9647_v15  ;;  %v889_v15 = vld [vmem:[#allocation2 + $0x84] sm:$0xf] }
  0xe8   : > { %v644_v23 = vor.u32 %v642_v2, %v641_v11  ;;  %v646_v25 = vrot.slane %v641_v11, 4  ;;  %v508_v26 = vor.u32 %v506_v4, %v505_v12  ;;  %v510_v27 = vrot.slane %v505_v12, 4  ;;  %v830_v11 = vld [vmem:[#allocation2 + $0x20] sm:$0x1] }
  0xe9   : > { %v648_v28 = vshrl.u32 %v9356_v20, 16  ;;  %v651_v29 = vshll.u32 %v9356_v20, 16  ;;  %v9357_v31 = vpack.c.bf16 %v9651_v21, %v9651_v21  ;;  %v512_v39 = vshrl.u32 %v9340_v30, 16 }
  0xea   : > { %v509_v32 = vsel %vm10215_vm0, %v501_v63, %v508_v26  ;;  %v645_v34 = vsel %vm10215_vm0, %v637_v61, %v644_v23  ;;  %v824_v35 = vsel %vm10221_vm5, %v510_v27, %v823_v18  ;;  %v880_v36 = vsel %vm10221_vm5, %v646_v25, %v879_v19  ;;  %v9652_v37 = vpop.trf.xlu0 }
  0xeb   : > { %820 = vst.msk [vmem:[#allocation2 + $0x10] sm:$0xf] %vm814_vm12, %v509_v32  ;;  %825 = vst [vmem:[#allocation2 + $0x14] sm:$0x1] %v824_v35  ;;  %v650_v38 = vrot.slane %v648_v28, 7  ;;  %v515_v40 = vshll.u32 %v9340_v30, 16  ;;  %v9656_v45 = vunpack.i.h.bf16 %v9652_v37  ;;  %v9341_v9 = vpack.c.bf16 %v9648_v44, %v9648_v44 }
  0xec   : > { %878 = vst.msk [vmem:[#allocation2 + $0x70] sm:$0xf] %vm814_vm12, %v645_v34  ;;  %881 = vst [vmem:[#allocation2 + $0x74] sm:$0x1] %v880_v36  ;;  %v656_v41 = vshrl.u32 %v9357_v31, 16  ;;  %v659_v43 = vshll.u32 %v9357_v31, 16  ;;  %v9653_v52 = vunpack.i.l.bf16 %v9652_v37 }
  0xed   : > { %v653_v46 = vor.u32 %v651_v29, %v650_v38  ;;  %v654_v47 = vrot.slane %v650_v38, 4  ;;  %v514_v24 = vrot.slane %v512_v39, 7  ;;  %v9358_v51 = vpack.c.bf16 %v9656_v45, %v9656_v45  ;;  %v933_v57 = vld [vmem:[#allocation2 + $0xc] sm:$0xf]  ;;  %v833_v31 = vld [vmem:[#allocation2 + $0x24] sm:$0xf] }
  0xee   : > { %v658_v48 = vrot.slane %v656_v41, 7  ;;  %v9657_v53 = vpop.trf.xlu0  ;;  %v949_v58 = vld [vmem:[#allocation2 + $0x6c] sm:$0xf]  ;;  %v520_v60 = vshrl.u32 %v9341_v9, 16  ;;  %v523_v61 = vshll.u32 %v9341_v9, 16  ;;  %v9342_v3 = vpack.c.bf16 %v9653_v52, %v9653_v52 }
  0xef   : > { %v517_v54 = vor.u32 %v515_v40, %v514_v24  ;;  %v518_v14 = vrot.slane %v514_v24, 4  ;;  %v883_v55 = vsel %vm10205_vm13, %v653_v46, %v882_v42  ;;  %v665_v62 = vshrl.u32 %v9358_v51, 16  ;;  %965 = vst.msk [vmem:[#allocation3 + $0x8] sm:$0xf] %vm814_vm12, %v933_v57  ;;  %981 = vst.msk [vmem:[#allocation3 + $0x48] sm:$0xf] %vm814_vm12, %v949_v58 }
  0xf0   : > { %v661_v56 = vor.u32 %v659_v43, %v658_v48  ;;  %884 = vst [vmem:[#allocation2 + $0x78] sm:$0xf] %v883_v55  ;;  %v663_v59 = vrot.slane %v658_v48, 4  ;;  %v668_v2 = vshll.u32 %v9358_v51, 16  ;;  %v522_v4 = vrot.slane %v520_v60, 7 }
  0xf1   : > { %v827_v63 = vsel %vm10205_vm13, %v517_v54, %v826_v49  ;;  %v667_v6 = vrot.slane %v665_v62, 7  ;;  %v9661_v7 = vunpack.i.h.bf16 %v9657_v53  ;;  %v529_v12 = vshrl.u32 %v9342_v3, 16  ;;  %v1562_v34 = vld [vmem:[#allocation2 + $0xc] sm:$0xe]  ;;  %v893_v48 = vld [vmem:[#allocation2 + $0x8c] sm:$0x1] }
  0xf2   : > { %v662_v1 = vsel %vm10215_vm0, %v654_v47, %v661_v56  ;;  %828 = vst [vmem:[#allocation2 + $0x18] sm:$0xf] %v827_v63  ;;  %v887_v5 = vsel %vm10221_vm5, %v663_v59, %v886_v50  ;;  %v532_v13 = vshll.u32 %v9342_v3, 16  ;;  %v525_v18 = vor.u32 %v523_v61, %v522_v4  ;;  %v9662_v23 = vpop.trf.xlu0  ;;  %v10252_v35 = vld [vmem:[#allocation2 + $0x10] sm:$0xf] }
  0xf3   : > { %885 = vst.msk [vmem:[#allocation2 + $0x7c] sm:$0xf] %vm814_vm12, %v662_v1  ;;  %888 = vst [vmem:[#allocation2 + $0x80] sm:$0x1] %v887_v5  ;;  %v527_v19 = vrot.slane %v522_v4, 4  ;;  %v670_v20 = vor.u32 %v668_v2, %v667_v6  ;;  %v671_v21 = vrot.slane %v667_v6, 4  ;;  %v9359_v26 = vpack.c.bf16 %v9661_v7, %v9661_v7 }
  0xf4   : > { %v531_v25 = vrot.slane %v529_v12, 7  ;;  %v9658_v27 = vunpack.i.l.bf16 %v9657_v53  ;;  %v9666_v28 = vunpack.i.h.bf16 %v9662_v23  ;;  %v526_v29 = vsel %vm10215_vm0, %v518_v14, %v525_v18  ;;  %v837_v52 = vld [vmem:[#allocation2 + $0x2c] sm:$0x1]  ;;  %v896_v57 = vld [vmem:[#allocation2 + $0x90] sm:$0xf] }
  0xf5   : > { %v831_v30 = vsel %vm10221_vm5, %v527_v19, %v830_v11  ;;  %v890_v32 = vsel %vm10205_vm13, %v670_v20, %v889_v15  ;;  %829 = vst.msk [vmem:[#allocation2 + $0x1c] sm:$0xf] %vm814_vm12, %v526_v29  ;;  %v673_v38 = vshrl.u32 %v9359_v26, 16  ;;  %v676_v39 = vshll.u32 %v9359_v26, 16  ;;  %v998_v59 = vld [vmem:[#allocation2 + $0xc] sm:$0xf] }
  0xf6   : > { %832 = vst [vmem:[#allocation2 + $0x20] sm:$0x1] %v831_v30  ;;  %v534_v36 = vor.u32 %v532_v13, %v531_v25  ;;  %v535_v37 = vrot.slane %v531_v25, 4  ;;  %891 = vst [vmem:[#allocation2 + $0x84] sm:$0xf] %v890_v32  ;;  %v9343_v40 = vpack.c.bf16 %v9658_v27, %v9658_v27  ;;  %v9360_v41 = vpack.c.bf16 %v9666_v28, %v9666_v28  ;;  %v9667_v14 = vpop.trf.xlu0 }
  0xf7   : > { %v9663_v42 = vunpack.i.l.bf16 %v9662_v23  ;;  %v675_v44 = vrot.slane %v673_v38, 7  ;;  %v9157_v45 = vrot.slane %v1562_v34, 9  ;;  %v1667_v46 = vrot.slane %v10252_v35, 5  ;;  %v934_v1 = vld [vmem:[#allocation2 + $0x10] sm:$0xf] }
  0xf8   : > { %v834_v43 = vsel %vm10205_vm13, %v534_v36, %v833_v31  ;;  %v537_v47 = vshrl.u32 %v9343_v40, 16  ;;  %v540_v24 = vshll.u32 %v9343_v40, 16  ;;  %v682_v49 = vshrl.u32 %v9360_v41, 16  ;;  %v950_v2 = vld [vmem:[#allocation2 + $0x70] sm:$0xf] }
  0xf9   : > { %835 = vst [vmem:[#allocation2 + $0x24] sm:$0xf] %v834_v43  ;;  %v685_v9 = vshll.u32 %v9360_v41, 16  ;;  %v678_v50 = vor.u32 %v676_v39, %v675_v44  ;;  %v680_v51 = vrot.slane %v675_v44, 4  ;;  %v9344_v53 = vpack.c.bf16 %v9663_v42, %v9663_v42  ;;  %966 = vst.msk [vmem:[#allocation3 + $0xc] sm:$0xf] %vm814_vm12, %v934_v1 }
  0xfa   : > { %v1668_v54 = vsel %vm10121_vm8, %v9157_v45, %v1667_v46  ;;  %v539_v55 = vrot.slane %v537_v47, 7  ;;  %v684_v56 = vrot.slane %v682_v49, 7  ;;  %v9671_v58 = vunpack.i.h.bf16 %v9667_v14  ;;  %982 = vst.msk [vmem:[#allocation3 + $0x4c] sm:$0xf] %vm814_vm12, %v950_v2  ;;  %v10270_v13 = vld [vmem:[#allocation2 + $0x10] sm:$0xf]  ;;  %v9672_v32 = vpop.trf.xlu0 }
  0xfb   : > { %1774 = vrot.lane.b32.xlu0 %v1668_v54, %s9921_s18  ;;  %v679_v60 = vsel %vm10215_vm0, %v671_v21, %v678_v50  ;;  %v894_v61 = vsel %vm10221_vm5, %v680_v51, %v893_v48  ;;  %v546_v62 = vshrl.u32 %v9344_v53, 16  ;;  %v549_v63 = vshll.u32 %v9344_v53, 16  ;;  %v840_v19 = vld [vmem:[#allocation2 + $0x30] sm:$0xf]  ;;  %v900_v40 = vld [vmem:[#allocation2 + $0x98] sm:$0x1] }
  0xfc   : > { %v542_v3 = vor.u32 %v540_v24, %v539_v55  ;;  %v544_v4 = vrot.slane %v539_v55, 4  ;;  %892 = vst.msk [vmem:[#allocation2 + $0x88] sm:$0xf] %vm814_vm12, %v679_v60  ;;  %895 = vst [vmem:[#allocation2 + $0x8c] sm:$0x1] %v894_v61  ;;  %v687_v5 = vor.u32 %v685_v9, %v684_v56  ;;  %v688_v6 = vrot.slane %v684_v56, 4 }
  0xfd   : > { %v548_v7 = vrot.slane %v546_v62, 7  ;;  %v9361_v11 = vpack.c.bf16 %v9671_v58, %v9671_v58  ;;  %v9668_v12 = vunpack.i.l.bf16 %v9667_v14  ;;  %v1071_v21 = vshrl.u32 %v998_v59, 16  ;;  %v1564_v49 = vld [vmem:[#allocation2 + $0x14] sm:$0x1]  ;;  %v844_v51 = vld [vmem:[#allocation2 + $0x38] sm:$0x1] }
  0xfe   : > { %v543_v15 = vsel %vm10215_vm0, %v535_v37, %v542_v3  ;;  %v838_v18 = vsel %vm10221_vm5, %v544_v4, %v837_v52  ;;  %v897_v20 = vsel %vm10205_vm13, %v687_v5, %v896_v57  ;;  %v1074_v30 = vshll.u32 %v998_v59, 16  ;;  %v9677_v58 = vpop.trf.xlu0  ;;  %v903_v35 = vld [vmem:[#allocation2 + $0x9c] sm:$0xf]  ;;  %v1022_v2 = vld [vmem:[#allocation2 + $0x6c] sm:$0xf] }
  0xff   : > { %836 = vst.msk [vmem:[#allocation2 + $0x28] sm:$0xf] %vm814_vm12, %v543_v15  ;;  %839 = vst [vmem:[#allocation2 + $0x2c] sm:$0x1] %v838_v18  ;;  %v551_v23 = vor.u32 %v549_v63, %v548_v7  ;;  %v552_v25 = vrot.slane %v548_v7, 4  ;;  %v690_v26 = vshrl.u32 %v9361_v11, 16  ;;  %v9345_v28 = vpack.c.bf16 %v9668_v12, %v9668_v12 }
 0x100   : > { %898 = vst [vmem:[#allocation2 + $0x90] sm:$0xf] %v897_v20  ;;  %v693_v27 = vshll.u32 %v9361_v11, 16  ;;  %v1073_v29 = vrot.slane %v1071_v21, 4  ;;  %v1080_v31 = vshll.u32 %v10270_v13, 16  ;;  %v9676_v37 = vunpack.i.h.bf16 %v9672_v32 }
 0x101   : > { %v841_v34 = vsel %vm10205_vm13, %v551_v23, %v840_v19  ;;  %v692_v36 = vrot.slane %v690_v26, 7  ;;  %v554_v38 = vshrl.u32 %v9345_v28, 16  ;;  %v557_v39 = vshll.u32 %v9345_v28, 16  ;;  %v10298_v3 = vld [vmem:[#allocation2 + $0x70] sm:$0xf] }
 0x102   : > { %842 = vst [vmem:[#allocation2 + $0x30] sm:$0xf] %v841_v34  ;;  %v1076_v41 = vrot.slane %v1074_v30, 5  ;;  %v10282_v42 = vrot.slane %v1080_v31, 5  ;;  %v9362_v45 = vpack.c.bf16 %v9676_v37, %v9676_v37  ;;  %v9673_v48 = vunpack.i.l.bf16 %v9672_v32  ;;  %v847_v18 = vld [vmem:[#allocation2 + $0x3c] sm:$0xf]  ;;  %v9682_v34 = vpop.trf.xlu0 }
 0x103   : > { %v695_v43 = vor.u32 %v693_v27, %v692_v36  ;;  %v697_v44 = vrot.slane %v692_v36, 4  ;;  %v556_v47 = vrot.slane %v554_v38, 7  ;;  %v1669_v9 = vrot.slane %v1667_v46, 4 }
 0x104   : > { %v1077_v24 = vor.u32 %v1076_v41, %v1073_v29  ;;  %v699_v53 = vshrl.u32 %v9362_v45, 16  ;;  %v702_v54 = vshll.u32 %v9362_v45, 16  ;;  %v9346_v57 = vpack.c.bf16 %v9673_v48, %v9673_v48  ;;  %v931_v45 = vld [vmem:[#allocation2] sm:$0xf] }
 0x105   : > { %v696_v50 = vsel %vm10215_vm0, %v688_v6, %v695_v43  ;;  %v901_v52 = vsel %vm10221_vm5, %v697_v44, %v900_v40  ;;  %v559_v14 = vor.u32 %v557_v39, %v556_v47  ;;  %v561_v55 = vrot.slane %v556_v47, 4  ;;  %v1000_v39 = vld [vmem:[#allocation2 + $0x14] sm:$0x1]  ;;  %v907_v43 = vld [vmem:[#allocation2 + $0xa4] sm:$0x1] }
 0x106   : > { %899 = vst.msk [vmem:[#allocation2 + $0x94] sm:$0xf] %vm814_vm12, %v696_v50  ;;  %902 = vst [vmem:[#allocation2 + $0x98] sm:$0x1] %v901_v52  ;;  %v1078_v56 = vrot.slane %v1077_v24, 4  ;;  %v701_v59 = vrot.slane %v699_v53, 7  ;;  %v9681_v60 = vunpack.i.h.bf16 %v9677_v58  ;;  %v9678_v15 = vunpack.i.l.bf16 %v9677_v58 }
 0x107   : > { %v1670_v46 = vrot.slane %v1564_v49, 5  ;;  %v560_v61 = vsel %vm10215_vm0, %v552_v25, %v559_v14  ;;  %v845_v62 = vsel %vm10221_vm5, %v561_v55, %v844_v51  ;;  %v563_v1 = vshrl.u32 %v9346_v57, 16  ;;  %963 = vst.msk [vmem:[#allocation3] sm:$0xf] %vm814_vm12, %v931_v45  ;;  %v1565_v53 = vld [vmem:[#allocation2 + $0x18] sm:$0xe] }
 0x108   : > { %v1083_v63 = vsel %vm10135_vm11, %v1078_v56, %v10282_v42  ;;  %843 = vst.msk [vmem:[#allocation2 + $0x34] sm:$0xf] %vm814_vm12, %v560_v61  ;;  %846 = vst [vmem:[#allocation2 + $0x38] sm:$0x1] %v845_v62  ;;  %v704_v4 = vor.u32 %v702_v54, %v701_v59  ;;  %v705_v5 = vrot.slane %v701_v59, 4  ;;  %v566_v6 = vshll.u32 %v9346_v57, 16 }
 0x109   : > { %1434 = vrot.lane.b32.xlu1 %v1083_v63, %s9922_s20  ;;  %v1671_v7 = vsel %vm10121_vm8, %v1669_v9, %v1670_v46  ;;  %v565_v11 = vrot.slane %v563_v1, 7  ;;  %v9363_v12 = vpack.c.bf16 %v9681_v60, %v9681_v60  ;;  %v1263_v20 = vshrl.u32 %v1022_v2, 16  ;;  %v851_v14 = vld [vmem:[#allocation2 + $0x44] sm:$0x1]  ;;  %v10322_v60 = vld [vmem:[#allocation2 + $0x1c] sm:$0xf] }
 0x10a   : > { %v904_v19 = vsel %vm10205_vm13, %v704_v4, %v903_v35  ;;  %v1266_v21 = vshll.u32 %v1022_v2, 16  ;;  %v1272_v23 = vshll.u32 %v10298_v3, 16  ;;  %v9347_v29 = vpack.c.bf16 %v9678_v15, %v9678_v15  ;;  %v932_v58 = vld [vmem:[#allocation2 + $0x4] sm:$0xf] }
 0x10b   : > { %v568_v25 = vor.u32 %v566_v6, %v565_v11  ;;  %v569_v26 = vrot.slane %v565_v11, 4  ;;  %905 = vst [vmem:[#allocation2 + $0x9c] sm:$0xf] %v904_v19  ;;  %v707_v27 = vshrl.u32 %v9363_v12, 16  ;;  %v710_v28 = vshll.u32 %v9363_v12, 16  ;;  %v9687_v11 = vpop.trf.xlu0 }
 0x10c   : > { %v1265_v30 = vrot.slane %v1263_v20, 4  ;;  %v1268_v31 = vrot.slane %v1266_v21, 5  ;;  %v10308_v32 = vrot.slane %v1272_v23, 5  ;;  %v9686_v38 = vunpack.i.h.bf16 %v9682_v34  ;;  %964 = vst.msk [vmem:[#allocation3 + $0x4] sm:$0xf] %vm814_vm12, %v932_v58 }
 0x10d   : > { %1776 = vrot.lane.b32.xlu1 %v1671_v7, %s9921_s18  ;;  %v848_v36 = vsel %vm10205_vm13, %v568_v25, %v847_v18  ;;  %v709_v37 = vrot.slane %v707_v27, 7  ;;  %v571_v40 = vshrl.u32 %v9347_v29, 16  ;;  %v574_v41 = vshll.u32 %v9347_v29, 16  ;;  %v910_v7 = vld [vmem:[#allocation2 + $0xa8] sm:$0xf] }
 0x10e   : > { %849 = vst [vmem:[#allocation2 + $0x3c] sm:$0xf] %v848_v36  ;;  %v1269_v44 = vor.u32 %v1268_v31, %v1265_v30  ;;  %v9364_v48 = vpack.c.bf16 %v9686_v38, %v9686_v38  ;;  %v9683_v49 = vunpack.i.l.bf16 %v9682_v34  ;;  %v1084_v51 = vshrl.u32 %v10270_v13, 16  ;;  %v1024_v23 = vld [vmem:[#allocation2 + $0x74] sm:$0x1] }
 0x10f   : > { %v712_v47 = vor.u32 %v710_v28, %v709_v37  ;;  %v714_v24 = vrot.slane %v709_v37, 4  ;;  %v573_v9 = vrot.slane %v571_v40, 7  ;;  %v1090_v52 = vshll.u32 %v1000_v39, 16  ;;  %v1568_v25 = vld [vmem:[#allocation2 + $0x24] sm:$0xe] }
 0x110   : > { %v1270_v50 = vrot.slane %v1269_v44, 4  ;;  %v716_v56 = vshrl.u32 %v9364_v48, 16  ;;  %v719_v57 = vshll.u32 %v9364_v48, 16  ;;  %v9348_v46 = vpack.c.bf16 %v9683_v49, %v9683_v49  ;;  %v10345_v37 = vld [vmem:[#allocation2 + $0x28] sm:$0xf] }
 0x111   : > { %v713_v54 = vsel %vm10215_vm0, %v705_v5, %v712_v47  ;;  %v908_v55 = vsel %vm10221_vm5, %v714_v24, %v907_v43  ;;  %v576_v59 = vor.u32 %v574_v41, %v573_v9  ;;  %v578_v35 = vrot.slane %v573_v9, 4  ;;  %v9692_v9 = vpop.trf.xlu0 }
 0x112   : > { %906 = vst.msk [vmem:[#allocation2 + $0xa0] sm:$0xf] %vm814_vm12, %v713_v54  ;;  %909 = vst [vmem:[#allocation2 + $0xa4] sm:$0x1] %v908_v55  ;;  %v1275_v13 = vsel %vm10135_vm11, %v1270_v50, %v10308_v32  ;;  %v10326_v61 = vrot.slane %v716_v56, 7  ;;  %v1086_v62 = vrot.slane %v1084_v51, 4  ;;  %v9691_v21 = vunpack.i.h.bf16 %v9687_v11 }
 0x113   : > { %1466 = vrot.lane.b32.xlu1 %v1275_v13, %s9922_s20  ;;  %v1092_v63 = vrot.slane %v1090_v52, 5  ;;  %v9158_v1 = vrot.slane %v1565_v53, 9  ;;  %v577_v2 = vsel %vm10215_vm0, %v569_v26, %v576_v59  ;;  %v852_v4 = vsel %vm10221_vm5, %v578_v35, %v851_v14  ;;  %v854_v26 = vld [vmem:[#allocation2 + $0x48] sm:$0xf]  ;;  %v1001_v53 = vld [vmem:[#allocation2 + $0x18] sm:$0xf] }
 0x114   : > { %v580_v5 = vshrl.u32 %v9348_v46, 16  ;;  %v583_v6 = vshll.u32 %v9348_v46, 16  ;;  %850 = vst.msk [vmem:[#allocation2 + $0x40] sm:$0xf] %vm814_vm12, %v577_v2  ;;  %853 = vst [vmem:[#allocation2 + $0x44] sm:$0x1] %v852_v4  ;;  %v721_v12 = vor.u32 %v719_v57, %v10326_v61  ;;  %v1087_v18 = vor.u32 %v1086_v62, %v10282_v42 }
 0x115   : > { %v722_v15 = vrot.slane %v10326_v61, 4  ;;  %v1674_v19 = vrot.slane %v10322_v60, 5  ;;  %v9688_v30 = vunpack.i.l.bf16 %v9687_v11  ;;  %v9365_v42 = vpack.c.bf16 %v9691_v21, %v9691_v21  ;;  %v914_v14 = vld [vmem:[#allocation2 + $0xb0] sm:$0x1]  ;;  %v935_v46 = vld [vmem:[#allocation2 + $0x18] sm:$0xf] }
 0x116   : > { %v582_v20 = vrot.slane %v580_v5, 7  ;;  %v911_v27 = vsel %vm10205_vm13, %v721_v12, %v910_v7  ;;  %v1088_v28 = vrot.slane %v1087_v18, 4  ;;  %v1276_v36 = vshrl.u32 %v10298_v3, 16  ;;  %v858_v59 = vld [vmem:[#allocation2 + $0x50] sm:$0x1] }
 0x117   : > { %v1675_v29 = vsel %vm10121_vm8, %v9158_v1, %v1674_v19  ;;  %912 = vst [vmem:[#allocation2 + $0xa8] sm:$0xf] %v911_v27  ;;  %v9349_v39 = vpack.c.bf16 %v9688_v30, %v9688_v30  ;;  %v1282_v40 = vshll.u32 %v1024_v23, 16  ;;  %v9159_v41 = vrot.slane %v1568_v25, 9  ;;  %967 = vst.msk [vmem:[#allocation3 + $0x10] sm:$0xf] %vm814_vm12, %v935_v46  ;;  %v9697_v30 = vpop.trf.xlu0 }
 0x118   : > { %v585_v31 = vor.u32 %v583_v6, %v582_v20  ;;  %v586_v34 = vrot.slane %v582_v20, 4  ;;  %1778 = vrot.lane.b32.xlu0 %v1675_v29, %s9921_s18  ;;  %v1093_v38 = vsel %vm10135_vm11, %v1088_v28, %v1092_v63  ;;  %v724_v44 = vshrl.u32 %v9365_v42, 16  ;;  %v10359_v63 = vld [vmem:[#allocation2 + $0x1c] sm:$0xf]  ;;  %v951_v2 = vld [vmem:[#allocation2 + $0x78] sm:$0xf] }
 0x119   : > { %1436 = vrot.lane.b32.xlu1 %v1093_v38, %s9922_s20  ;;  %v727_v45 = vshll.u32 %v9365_v42, 16  ;;  %v1278_v47 = vrot.slane %v1276_v36, 4  ;;  %v588_v24 = vshrl.u32 %v9349_v39, 16  ;;  %v591_v48 = vshll.u32 %v9349_v39, 16  ;;  %v1571_v11 = vld [vmem:[#allocation2 + $0x30] sm:$0xe] }
 0x11a   : > { %v855_v43 = vsel %vm10205_vm13, %v585_v31, %v854_v26  ;;  %v1284_v3 = vrot.slane %v1282_v40, 5  ;;  %v1681_v49 = vrot.slane %v10345_v37, 5  ;;  %v726_v50 = vrot.slane %v724_v44, 7  ;;  %v10368_v12 = vld [vmem:[#allocation2 + $0x34] sm:$0xf] }
 0x11b   : > { %856 = vst [vmem:[#allocation2 + $0x48] sm:$0xf] %v855_v43  ;;  %v1279_v51 = vor.u32 %v1278_v47, %v10308_v32  ;;  %v9696_v52 = vunpack.i.h.bf16 %v9692_v9  ;;  %v590_v54 = vrot.slane %v588_v24, 7  ;;  %v9693_v56 = vunpack.i.l.bf16 %v9692_v9  ;;  %983 = vst.msk [vmem:[#allocation3 + $0x50] sm:$0xf] %vm814_vm12, %v951_v2 }
 0x11c   : > { %v1682_v55 = vsel %vm10121_vm8, %v9159_v41, %v1681_v49  ;;  %v729_v57 = vor.u32 %v727_v45, %v726_v50  ;;  %v731_v58 = vrot.slane %v726_v50, 4  ;;  %v1095_v1 = vshrl.u32 %v1001_v53, 16  ;;  %v936_v23 = vld [vmem:[#allocation2 + $0x1c] sm:$0xf]  ;;  %v861_v41 = vld [vmem:[#allocation2 + $0x54] sm:$0xf] }
 0x11d   : > { %v1280_v35 = vrot.slane %v1279_v51, 4  ;;  %1782 = vrot.lane.b32.xlu0 %v1682_v55, %s9921_s18  ;;  %v9366_v13 = vpack.c.bf16 %v9696_v52, %v9696_v52  ;;  %v593_v61 = vor.u32 %v591_v48, %v590_v54  ;;  %v595_v32 = vrot.slane %v590_v54, 4  ;;  %v952_v25 = vld [vmem:[#allocation2 + $0x7c] sm:$0xf]  ;;  %968 = vst.msk [vmem:[#allocation3 + $0x14] sm:$0xf] %vm814_vm12, %v936_v23 }
 0x11e   : > { %v9350_v62 = vpack.c.bf16 %v9693_v56, %v9693_v56  ;;  %v730_v4 = vsel %vm10215_vm0, %v722_v15, %v729_v57  ;;  %v915_v5 = vsel %vm10221_vm5, %v731_v58, %v914_v14  ;;  %v1097_v28 = vrot.slane %v1095_v1, 4  ;;  %984 = vst.msk [vmem:[#allocation3 + $0x54] sm:$0xf] %vm814_vm12, %v952_v25  ;;  %v937_v9 = vld [vmem:[#allocation2 + $0x24] sm:$0xf] }
 0x11f   : > { %v1285_v6 = vsel %vm10135_vm11, %v1280_v35, %v1284_v3  ;;  %v733_v7 = vshrl.u32 %v9366_v13, 16  ;;  %v594_v18 = vsel %vm10215_vm0, %v586_v34, %v593_v61  ;;  %v859_v20 = vsel %vm10221_vm5, %v595_v32, %v858_v59  ;;  %913 = vst.msk [vmem:[#allocation2 + $0xac] sm:$0xf] %vm814_vm12, %v730_v4  ;;  %916 = vst [vmem:[#allocation2 + $0xb0] sm:$0x1] %v915_v5 }
 0x120   : > { %1468 = vrot.lane.b32.xlu1 %v1285_v6, %s9922_s20  ;;  %v736_v15 = vshll.u32 %v9366_v13, 16  ;;  %v597_v21 = vshrl.u32 %v9350_v62, 16  ;;  %857 = vst.msk [vmem:[#allocation2 + $0x4c] sm:$0xf] %vm814_vm12, %v594_v18  ;;  %860 = vst [vmem:[#allocation2 + $0x50] sm:$0x1] %v859_v20  ;;  %v9701_v44 = vunpack.i.h.bf16 %v9697_v30  ;;  %v9698_v55 = vunpack.i.l.bf16 %v9697_v30  ;;  %v9702_v13 = vpop.trf.xlu0 }
 0x121   : > { %v10378_v26 = vrot.slane %v733_v7, 7  ;;  %v600_v27 = vshll.u32 %v9350_v62, 16  ;;  %v1098_v29 = vshll.u32 %v1001_v53, 16  ;;  %v917_v34 = vld [vmem:[#allocation2 + $0xb4] sm:$0xf]  ;;  %v1104_v42 = vshll.u32 %v10359_v63, 16 }
 0x122   : > { %v10382_v31 = vrot.slane %v597_v21, 7  ;;  %v9160_v36 = vrot.slane %v1571_v11, 9  ;;  %v1688_v38 = vrot.slane %v10368_v12, 5  ;;  %v1567_v3 = vld [vmem:[#allocation2 + $0x20] sm:$0x1]  ;;  %v9367_v52 = vpack.c.bf16 %v9701_v44, %v9701_v44 }
 0x123   : > { %v738_v39 = vor.u32 %v736_v15, %v10378_v26  ;;  %v739_v40 = vrot.slane %v10378_v26, 4  ;;  %v1100_v43 = vrot.slane %v1098_v29, 5  ;;  %v10390_v24 = vrot.slane %v1104_v42, 5  ;;  %v1586_v53 = vld [vmem:[#allocation2 + $0x6c] sm:$0xe] }
 0x124   : > { %v602_v45 = vor.u32 %v600_v27, %v10382_v31  ;;  %v603_v47 = vrot.slane %v10382_v31, 4  ;;  %v1689_v48 = vsel %vm10121_vm8, %v9160_v36, %v1688_v38  ;;  %v10399_v54 = vld [vmem:[#allocation2 + $0x70] sm:$0xf]  ;;  %969 = vst.msk [vmem:[#allocation3 + $0x18] sm:$0xf] %vm814_vm12, %v937_v9  ;;  %v1676_v56 = vrot.slane %v1674_v19, 4 }
 0x125   : > { %v918_v50 = vsel %vm10205_vm13, %v738_v39, %v917_v34  ;;  %v1101_v51 = vor.u32 %v1100_v43, %v1097_v28  ;;  %1786 = vrot.lane.b32.xlu0 %v1689_v48, %s9921_s18  ;;  %v741_v58 = vshrl.u32 %v9367_v52, 16  ;;  %v744_v59 = vshll.u32 %v9367_v52, 16  ;;  %v1025_v19 = vld [vmem:[#allocation2 + $0x78] sm:$0xf]  ;;  %v921_v6 = vld [vmem:[#allocation2 + $0xbc] sm:$0x1] }
 0x126   : > { %v862_v14 = vsel %vm10205_vm13, %v602_v45, %v861_v41  ;;  %919 = vst [vmem:[#allocation2 + $0xb4] sm:$0xf] %v918_v50  ;;  %v1677_v35 = vrot.slane %v1567_v3, 5  ;;  %v9351_v46 = vpack.c.bf16 %v9698_v55, %v9698_v55  ;;  %v9165_v61 = vrot.slane %v1586_v53, 9  ;;  %v10418_v26 = vld [vmem:[#allocation2 + $0x7c] sm:$0xf] }
 0x127   : > { %863 = vst [vmem:[#allocation2 + $0x54] sm:$0xf] %v862_v14  ;;  %v1102_v57 = vrot.slane %v1101_v51, 4  ;;  %v1723_v32 = vrot.slane %v10399_v54, 5  ;;  %v9706_v62 = vunpack.i.h.bf16 %v9702_v13  ;;  %v743_v2 = vrot.slane %v741_v58, 7 }
 0x128   : > { %v1678_v60 = vsel %vm10121_vm8, %v1676_v56, %v1677_v35  ;;  %v605_v4 = vshrl.u32 %v9351_v46, 16  ;;  %v608_v5 = vshll.u32 %v9351_v46, 16  ;;  %v9703_v15 = vunpack.i.l.bf16 %v9702_v13  ;;  %v865_v29 = vld [vmem:[#allocation2 + $0x5c] sm:$0x1]  ;;  %v924_v42 = vld [vmem:[#allocation2 + $0xc0] sm:$0xf]  ;;  %v9707_v35 = vpop.trf.xlu0 }
 0x129   : > { %v1107_v1 = vsel %vm10135_vm11, %v1102_v57, %v10390_v24  ;;  %v1724_v7 = vsel %vm10121_vm8, %v9165_v61, %v1723_v32  ;;  %v9368_v11 = vpack.c.bf16 %v9706_v62, %v9706_v62  ;;  %v746_v18 = vor.u32 %v744_v59, %v743_v2  ;;  %v1574_v45 = vld [vmem:[#allocation2 + $0x3c] sm:$0xe]  ;;  %v10429_v50 = vld [vmem:[#allocation2 + $0x40] sm:$0xf]  ;;  %v1589_v56 = vld [vmem:[#allocation2 + $0x78] sm:$0xe] }
 0x12a   : > { %1438 = vrot.lane.b32.xlu1 %v1107_v1, %s9922_s20  ;;  %v748_v20 = vrot.slane %v743_v2, 4  ;;  %1806 = vrot.lane.b32.xlu0 %v1724_v7, %s9921_s18  ;;  %v607_v21 = vrot.slane %v605_v4, 7  ;;  %v1287_v27 = vshrl.u32 %v1025_v19, 16  ;;  %v9352_v34 = vpack.c.bf16 %v9703_v15, %v9703_v15  ;;  %v868_v55 = vld [vmem:[#allocation2 + $0x60] sm:$0xf] }
 0x12b   : > { %v750_v23 = vshrl.u32 %v9368_v11, 16  ;;  %v753_v25 = vshll.u32 %v9368_v11, 16  ;;  %v747_v28 = vsel %vm10215_vm0, %v739_v40, %v746_v18  ;;  %v1290_v36 = vshll.u32 %v1025_v19, 16  ;;  %v1003_v62 = vld [vmem:[#allocation2 + $0x20] sm:$0x1] }
 0x12c   : > { %v922_v30 = vsel %vm10221_vm5, %v748_v20, %v921_v6  ;;  %v610_v39 = vor.u32 %v608_v5, %v607_v21  ;;  %v612_v41 = vrot.slane %v607_v21, 4  ;;  %920 = vst.msk [vmem:[#allocation2 + $0xb8] sm:$0xf] %vm814_vm12, %v747_v28  ;;  %v1289_v44 = vrot.slane %v1287_v27, 4  ;;  %v938_v1 = vld [vmem:[#allocation2 + $0x28] sm:$0xf] }
 0x12d   : > { %923 = vst [vmem:[#allocation2 + $0xbc] sm:$0x1] %v922_v30  ;;  %v10426_v43 = vrot.slane %v750_v23, 7  ;;  %v614_v48 = vshrl.u32 %v9352_v34, 16  ;;  %v617_v40 = vshll.u32 %v9352_v34, 16  ;;  %v1292_v3 = vrot.slane %v1290_v36, 5 }
 0x12e   : > { %1780 = vrot.lane.b32.xlu1 %v1678_v60, %s9921_s18  ;;  %v1296_v9 = vshll.u32 %v10418_v26, 16  ;;  %v611_v51 = vsel %vm10215_vm0, %v603_v47, %v610_v39  ;;  %v866_v52 = vsel %vm10221_vm5, %v612_v41, %v865_v29  ;;  %v9161_v31 = vrot.slane %v1574_v45, 9  ;;  %v953_v47 = vld [vmem:[#allocation2 + $0x84] sm:$0xf]  ;;  %970 = vst.msk [vmem:[#allocation3 + $0x1c] sm:$0xf] %vm814_vm12, %v938_v1 }
 0x12f   : > { %v755_v53 = vor.u32 %v753_v25, %v10426_v43  ;;  %v756_v14 = vrot.slane %v10426_v43, 4  ;;  %864 = vst.msk [vmem:[#allocation2 + $0x58] sm:$0xf] %vm814_vm12, %v611_v51  ;;  %867 = vst [vmem:[#allocation2 + $0x5c] sm:$0x1] %v866_v52  ;;  %v10440_v57 = vrot.slane %v614_v48, 7  ;;  %v1293_v58 = vor.u32 %v1292_v3, %v1289_v44 }
 0x130   : > { %v10442_v59 = vrot.slane %v1296_v9, 5  ;;  %v1695_v46 = vrot.slane %v10429_v50, 5  ;;  %v9711_v61 = vunpack.i.h.bf16 %v9707_v35  ;;  %985 = vst.msk [vmem:[#allocation3 + $0x58] sm:$0xf] %vm814_vm12, %v953_v47  ;;  %v9708_v6 = vunpack.i.l.bf16 %v9707_v35  ;;  %v10456_v11 = vld [vmem:[#allocation2 + $0x7c] sm:$0xf] }
 0x131   : > { %v925_v13 = vsel %vm10205_vm13, %v755_v53, %v924_v42  ;;  %v619_v2 = vor.u32 %v617_v40, %v10440_v57  ;;  %v620_v60 = vrot.slane %v10440_v57, 4  ;;  %v1294_v19 = vrot.slane %v1293_v58, 4  ;;  %v1027_v18 = vld [vmem:[#allocation2 + $0x80] sm:$0x1]  ;;  %v1577_v25 = vld [vmem:[#allocation2 + $0x48] sm:$0xe] }
 0x132   : > { %926 = vst [vmem:[#allocation2 + $0xc0] sm:$0xf] %v925_v13  ;;  %v1696_v4 = vsel %vm10121_vm8, %v9161_v31, %v1695_v46  ;;  %v9369_v5 = vpack.c.bf16 %v9711_v61, %v9711_v61  ;;  %v1108_v7 = vshrl.u32 %v10359_v63, 16  ;;  %v1114_v21 = vshll.u32 %v1003_v62, 16  ;;  %v954_v30 = vld [vmem:[#allocation2 + $0x88] sm:$0xf] }
 0x133   : > { %v869_v20 = vsel %vm10205_vm13, %v619_v2, %v868_v55  ;;  %v1299_v15 = vsel %vm10135_vm11, %v1294_v19, %v10442_v59  ;;  %1790 = vrot.lane.b32.xlu0 %v1696_v4, %s9921_s18  ;;  %v9166_v23 = vrot.slane %v1589_v56, 9  ;;  %v9353_v28 = vpack.c.bf16 %v9708_v6, %v9708_v6  ;;  %v1004_v39 = vld [vmem:[#allocation2 + $0x24] sm:$0xf]  ;;  %986 = vst.msk [vmem:[#allocation3 + $0x5c] sm:$0xf] %vm814_vm12, %v954_v30 }
 0x134   : > { %870 = vst [vmem:[#allocation2 + $0x60] sm:$0xf] %v869_v20  ;;  %1470 = vrot.lane.b32.xlu1 %v1299_v15, %s9922_s20  ;;  %v758_v27 = vshrl.u32 %v9369_v5, 16  ;;  %v761_v63 = vshll.u32 %v9369_v5, 16  ;;  %v1110_v29 = vrot.slane %v1108_v7, 4  ;;  %v1116_v34 = vrot.slane %v1114_v21, 5 }
 0x135   : > { %v1730_v16 = vrot.slane %v10456_v11, 5  ;;  %v1300_v42 = vshrl.u32 %v10418_v26, 16  ;;  %v1306_v36 = vshll.u32 %v1027_v18, 16  ;;  %v622_v44 = vshrl.u32 %v9353_v28, 16  ;;  %v10469_v40 = vld [vmem:[#allocation2 + $0x4c] sm:$0xf] }
 0x136   : > { %v760_v41 = vrot.slane %v758_v27, 7  ;;  %v625_v45 = vshll.u32 %v9353_v28, 16  ;;  %v1111_v48 = vor.u32 %v1110_v29, %v10390_v24  ;;  %v872_v3 = vld [vmem:[#allocation2 + $0x68] sm:$0x1]  ;;  %v9162_v53 = vrot.slane %v1577_v25, 9 }
 0x137   : > { %v928_v9 = vld [vmem:[#allocation2 + $0xc8] sm:$0x1]  ;;  %v1731_v51 = vsel %vm10121_vm8, %v9166_v23, %v1730_v16  ;;  %v1302_v52 = vrot.slane %v1300_v42, 4  ;;  %v1308_v26 = vrot.slane %v1306_v36, 5  ;;  %v624_v58 = vrot.slane %v622_v44, 7 }
 0x138   : > { %v763_v55 = vor.u32 %v761_v63, %v760_v41  ;;  %v765_v56 = vrot.slane %v760_v41, 4  ;;  %v1112_v31 = vrot.slane %v1111_v48, 4  ;;  %1810 = vrot.lane.b32.xlu0 %v1731_v51, %s9921_s18  ;;  %v10476_v35 = vld [vmem:[#allocation2 + $0x28] sm:$0xf]  ;;  %v1702_v47 = vrot.slane %v10469_v40, 5 }
 0x139   : > { %v1303_v24 = vor.u32 %v1302_v52, %v10442_v59  ;;  %v1119_v13 = vshrl.u32 %v1004_v39, 16  ;;  %v1122_v61 = vshll.u32 %v1004_v39, 16  ;;  %v1037_v62 = vld [vmem:[#allocation2 + $0xa8] sm:$0xf]  ;;  %v627_v1 = vor.u32 %v625_v45, %v624_v58  ;;  %v10486_v5 = vld [vmem:[#allocation2 + $0xac] sm:$0xf] }
 0x13a   : > { %v629_v2 = vrot.slane %v624_v58, 4  ;;  %v764_v19 = vsel %vm10215_vm0, %v756_v14, %v763_v55  ;;  %v929_v4 = vsel %vm10221_vm5, %v765_v56, %v928_v9  ;;  %v959_v6 = vld [vmem:[#allocation2 + $0xa8] sm:$0xf]  ;;  %v1117_v59 = vsel %vm10135_vm11, %v1112_v31, %v1116_v34  ;;  %v1028_v23 = vld [vmem:[#allocation2 + $0x84] sm:$0xf] }
 0x13b   : > { %927 = vst.msk [vmem:[#allocation2 + $0xc4] sm:$0xf] %vm814_vm12, %v764_v19  ;;  %930 = vst [vmem:[#allocation2 + $0xc8] sm:$0x1] %v929_v4  ;;  %v1304_v7 = vrot.slane %v1303_v24, 4  ;;  %v1703_v43 = vsel %vm10121_vm8, %v9162_v53, %v1702_v47  ;;  %v1121_v18 = vrot.slane %v1119_v13, 4  ;;  %v628_v14 = vsel %vm10215_vm0, %v620_v60, %v627_v1  ;;  %1440 = vrot.lane.b32.xlu1 %v1117_v59, %s9922_s20 }
 0x13c   : > { %991 = vst.msk [vmem:[#allocation3 + $0x70] sm:$0xf] %vm814_vm12, %v959_v6  ;;  %v873_v20 = vsel %vm10221_vm5, %v629_v2, %v872_v3  ;;  %1794 = vrot.lane.b32.xlu0 %v1703_v43, %s9921_s18  ;;  %v1124_v15 = vrot.slane %v1122_v61, 5  ;;  %v1128_v21 = vshll.u32 %v10476_v35, 16  ;;  %871 = vst.msk [vmem:[#allocation2 + $0x64] sm:$0xf] %vm814_vm12, %v628_v14 }
 0x13d   : > { %874 = vst [vmem:[#allocation2 + $0x68] sm:$0x1] %v873_v20  ;;  %v1383_v25 = vshrl.u32 %v1037_v62, 16  ;;  %v1386_v27 = vshll.u32 %v1037_v62, 16  ;;  %v1392_v57 = vshll.u32 %v10486_v5, 16  ;;  %v1309_v17 = vsel %vm10135_vm11, %v1304_v7, %v1308_v26  ;;  %vm12377_vm5 = vmand %vm217_vm4, %vm278_vm3 }
 0x13e   : > { %v1570_v63 = vld [vmem:[#allocation2 + $0x2c] sm:$0x1]  ;;  %v1125_v60 = vor.u32 %v1124_v15, %v1121_v18  ;;  %v1580_v28 = vld [vmem:[#allocation2 + $0x54] sm:$0xe]  ;;  %v1029_v29 = vld [vmem:[#allocation2 + $0x88] sm:$0xf] }
 0x13f   : > { %v1040_v30 = vld [vmem:[#allocation2 + $0xb4] sm:$0xf]  ;;  %v1130_v34 = vrot.slane %v1128_v21, 5  ;;  %v1385_v42 = vrot.slane %v1383_v25, 4  ;;  %v1388_v36 = vrot.slane %v1386_v27, 5  ;;  %v1683_v39 = vrot.slane %v1681_v49, 4  ;;  %1472 = vrot.lane.b32.xlu1 %v1309_v17, %s9922_s20 }
 0x140   : > { %v10511_v41 = vld [vmem:[#allocation2 + $0x58] sm:$0xf]  ;;  %v1126_v44 = vrot.slane %v1125_v60, 4  ;;  %v10514_v45 = vrot.slane %v1392_v57, 5  ;;  %v1684_v48 = vrot.slane %v1570_v63, 5  ;;  %v1311_v3 = vshrl.u32 %v1028_v23, 16 }
 0x141   : > { %v961_v9 = vld [vmem:[#allocation2 + $0xb4] sm:$0xf]  ;;  %v1389_v51 = vor.u32 %v1388_v36, %v1385_v42  ;;  %v1314_v52 = vshll.u32 %v1028_v23, 16  ;;  %v1320_v26 = vshll.u32 %v1029_v29, 16  ;;  %v10516_v53 = vld [vmem:[#allocation2 + $0xb8] sm:$0xf] }
 0x142   : > { %v1407_v55 = vshrl.u32 %v1040_v30, 16  ;;  %993 = vst.msk [vmem:[#allocation3 + $0x78] sm:$0xf] %vm814_vm12, %v961_v9  ;;  %v9163_v37 = vrot.slane %v1580_v28, 9  ;;  %v1709_v49 = vrot.slane %v10511_v41, 5  ;;  %v1313_v56 = vrot.slane %v1311_v3, 4 }
 0x143   : > { %v1410_v58 = vshll.u32 %v1040_v30, 16  ;;  %v1131_v31 = vsel %vm10135_vm11, %v1126_v44, %v1130_v34  ;;  %v1390_v24 = vrot.slane %v1389_v51, 4  ;;  %v1316_v13 = vrot.slane %v1314_v52, 5  ;;  %v1006_v62 = vld [vmem:[#allocation2 + $0x2c] sm:$0x1] }
 0x144   : > { %v1409_v61 = vrot.slane %v1407_v55, 4  ;;  %1442 = vrot.lane.b32.xlu1 %v1131_v31, %s9922_s20  ;;  %v1416_v2 = vshll.u32 %v10516_v53, 16  ;;  %v1132_v19 = vshrl.u32 %v10476_v35, 16  ;;  %v1322_v59 = vrot.slane %v1320_v26, 5  ;;  %v1583_v7 = vld [vmem:[#allocation2 + $0x60] sm:$0xe] }
 0x145   : > { %v1412_v1 = vrot.slane %v1410_v58, 5  ;;  %v1395_v4 = vsel %vm10135_vm11, %v1390_v24, %v10514_v45  ;;  %v1317_v6 = vor.u32 %v1316_v13, %v1313_v56  ;;  %v1138_v20 = vshll.u32 %v1006_v62, 16  ;;  %v10531_v15 = vld [vmem:[#allocation2 + $0x64] sm:$0xf]  ;;  %v1030_v25 = vld [vmem:[#allocation2 + $0x8c] sm:$0x1] }
 0x146   : > { %1486 = vrot.lane.b32.xlu0 %v1395_v4, %s9922_s20  ;;  %v10529_v18 = vrot.slane %v1416_v2, 5  ;;  %v1134_v14 = vrot.slane %v1132_v19, 4  ;;  %v1685_v21 = vsel %vm10121_vm8, %v1683_v39, %v1684_v48  ;;  %v1710_v35 = vsel %vm10121_vm8, %v9163_v37, %v1709_v49  ;;  %v1007_v17 = vld [vmem:[#allocation2 + $0x30] sm:$0xf]  ;;  %v1592_v52 = vld [vmem:[#allocation2 + $0x84] sm:$0xe] }
 0x147   : > { %v1413_v43 = vor.u32 %v1412_v1, %v1409_v61  ;;  %v1318_v23 = vrot.slane %v1317_v6, 4  ;;  %v1324_v27 = vshrl.u32 %v1029_v29, 16  ;;  %v9164_v60 = vrot.slane %v1583_v7, 9  ;;  %v939_v44 = vld [vmem:[#allocation2 + $0x30] sm:$0xf] }
 0x148   : > { %1784 = vrot.lane.b32.xlu1 %v1685_v21, %s9921_s18  ;;  %v1135_v63 = vor.u32 %v1134_v14, %v1130_v34  ;;  %v1716_v28 = vrot.slane %v10531_v15, 5  ;;  %v1140_v39 = vrot.slane %v1138_v20, 5  ;;  %v1330_v29 = vshll.u32 %v1030_v25, 16  ;;  %971 = vst.msk [vmem:[#allocation3 + $0x20] sm:$0xf] %vm814_vm12, %v939_v44 }
 0x149   : > { %v1414_v57 = vrot.slane %v1413_v43, 4  ;;  %v1326_v30 = vrot.slane %v1324_v27, 4  ;;  %v1323_v42 = vsel %vm10135_vm11, %v1318_v23, %v1322_v59  ;;  %v1143_v34 = vshrl.u32 %v1007_v17, 16  ;;  %v955_v51 = vld [vmem:[#allocation2 + $0x90] sm:$0xf] }
 0x14a   : > { %1798 = vrot.lane.b32.xlu0 %v1710_v35, %s9921_s18  ;;  %v1136_v48 = vrot.slane %v1135_v63, 4  ;;  %v1146_v9 = vshll.u32 %v1007_v17, 16  ;;  %v10549_v26 = vld [vmem:[#allocation2 + $0x88] sm:$0xf]  ;;  %987 = vst.msk [vmem:[#allocation3 + $0x60] sm:$0xf] %vm814_vm12, %v955_v51  ;;  %v1717_v37 = vsel %vm10121_vm8, %v9164_v60, %v1716_v28 }
 0x14b   : > { %v1419_v36 = vsel %vm10135_vm11, %v1414_v57, %v10529_v18  ;;  %v1327_v3 = vor.u32 %v1326_v30, %v1322_v59  ;;  %v940_v55 = vld [vmem:[#allocation2 + $0x34] sm:$0xf]  ;;  %v1332_v56 = vrot.slane %v1330_v29, 5  ;;  %v2093_v58 = vld [vmem:[#allocation2 + $0x10] sm:$0xf]  ;;  %v1145_v61 = vrot.slane %v1143_v34, 4 }
 0x14c   : > { %1474 = vrot.lane.b32.xlu1 %v1323_v42, %s9922_s20  ;;  %972 = vst.msk [vmem:[#allocation3 + $0x24] sm:$0xf] %vm814_vm12, %v940_v55  ;;  %v956_v31 = vld [vmem:[#allocation2 + $0x94] sm:$0xf]  ;;  %v1141_v24 = vsel %vm10135_vm11, %v1136_v48, %v1140_v39  ;;  %v1148_v62 = vrot.slane %v1146_v9, 5  ;;  %v9167_v2 = vrot.slane %v1592_v52, 9 }
 0x14d   : > { %v1328_v13 = vrot.slane %v1327_v3, 4  ;;  %v1031_v1 = vld [vmem:[#allocation2 + $0x90] sm:$0xf]  ;;  %988 = vst.msk [vmem:[#allocation3 + $0x64] sm:$0xf] %vm814_vm12, %v956_v31  ;;  %v1737_v19 = vrot.slane %v10549_v26, 5 }
 0x14e   : > { %1490 = vrot.lane.b32.xlu0 %v1419_v36, %s9922_s20  ;;  %v1008_v4 = vld [vmem:[#allocation2 + $0x34] sm:$0xf]  ;;  %v2150_v59 = vshll.u32 %v2093_v58, 16  ;;  %v2154_v7 = vshrl.u32 %v2093_v58, 16  ;;  %v1335_v43 = vshrl.u32 %v1031_v1, 16  ;;  %v1338_v14 = vshll.u32 %v1031_v1, 16 }
 0x14f   : > { %v1588_v6 = vld [vmem:[#allocation2 + $0x74] sm:$0x1]  ;;  %v2096_v20 = vld [vmem:[#allocation2 + $0x1c] sm:$0xf]  ;;  %v1333_v21 = vsel %vm10135_vm11, %v1328_v13, %v1332_v56  ;;  %v1725_v35 = vrot.slane %v1723_v32, 4  ;;  %v1149_v23 = vor.u32 %v1148_v62, %v1145_v61  ;;  %v1152_v25 = vshll.u32 %v1008_v4, 16 }
 0x150   : > { %1444 = vrot.lane.b32.xlu1 %v1141_v24, %s9922_s20  ;;  %v1738_v27 = vsel %vm10121_vm8, %v9167_v2, %v1737_v19  ;;  %v1726_v57 = vrot.slane %v1588_v6, 5  ;;  %v10573_v63 = vrot.slane %v2150_v59, 5  ;;  %v2156_v17 = vrot.slane %v2154_v7, 4  ;;  %v1032_v42 = vld [vmem:[#allocation2 + $0x94] sm:$0xf] }
 0x151   : > { %v2174_v60 = vshll.u32 %v2096_v20, 16  ;;  %v2178_v30 = vshrl.u32 %v2096_v20, 16  ;;  %v1337_v54 = vrot.slane %v1335_v43, 4  ;;  %v1340_v32 = vrot.slane %v1338_v14, 5  ;;  %v1573_v44 = vld [vmem:[#allocation2 + $0x38] sm:$0x1] }
 0x152   : > { %1802 = vrot.lane.b32.xlu0 %v1717_v37, %s9921_s18  ;;  %v1727_v36 = vsel %vm10121_vm8, %v1725_v35, %v1726_v57  ;;  %v1150_v39 = vrot.slane %v1149_v23, 4  ;;  %v1154_v29 = vrot.slane %v1152_v25, 5  ;;  %v1156_v48 = vshrl.u32 %v1008_v4, 16  ;;  %v2094_v3 = vld [vmem:[#allocation2 + $0x14] sm:$0x1] }
 0x153   : > { %v1900_v34 = vld [vmem:[#allocation2 + $0x10] sm:$0xf]  ;;  %v2157_v9 = vor.u32 %v2156_v17, %v10573_v63  ;;  %v10580_v51 = vrot.slane %v2174_v60, 5  ;;  %v2180_v52 = vrot.slane %v2178_v30, 4  ;;  %v1690_v55 = vrot.slane %v1688_v38, 4 }
 0x154   : > { %1476 = vrot.lane.b32.xlu1 %v1333_v21, %s9922_s20  ;;  %v1691_v37 = vrot.slane %v1573_v44, 5  ;;  %v1341_v56 = vor.u32 %v1340_v32, %v1337_v54  ;;  %v1344_v58 = vshll.u32 %v1032_v42, 16  ;;  %v2097_v31 = vld [vmem:[#allocation2 + $0x20] sm:$0x1]  ;;  %v1155_v24 = vsel %vm10135_vm11, %v1150_v39, %v1154_v29  ;;  %v1009_v61 = vld [vmem:[#allocation2 + $0x38] sm:$0x1] }
 0x155   : > { %v2160_v13 = vshll.u32 %v2094_v3, 16  ;;  %v1158_v62 = vrot.slane %v1156_v48, 4  ;;  %v1348_v1 = vshrl.u32 %v1032_v42, 16  ;;  %v1902_v2 = vld [vmem:[#allocation2 + $0x1c] sm:$0xf]  ;;  %v2158_v4 = vrot.slane %v2157_v9, 4 }
 0x156   : > { %1814 = vrot.lane.b32.xlu0 %v1738_v27, %s9921_s18  ;;  %v2181_v6 = vor.u32 %v2180_v52, %v10580_v51  ;;  %v2184_v59 = vshll.u32 %v2097_v31, 16  ;;  %v1342_v12 = vrot.slane %v1341_v56, 4  ;;  %v1346_v38 = vrot.slane %v1344_v58, 5  ;;  %v10590_v43 = vld [vmem:[#allocation2 + $0x10] sm:$0xf]  ;;  %v10595_v27 = vpop.permute.xlu1 %1772  ;;  %v1431_v31 = vpop.permute.xlu0 %1430 }
 0x157   : > { %v1162_v7 = vshll.u32 %v1009_v61, 16  ;;  %v1692_v14 = vsel %vm10121_vm8, %v1690_v55, %v1691_v37  ;;  %v2162_v20 = vrot.slane %v2160_v13, 5  ;;  %v1159_v21 = vor.u32 %v1158_v62, %v1154_v29  ;;  %v1033_v35 = vld [vmem:[#allocation2 + $0x98] sm:$0x1]  ;;  %v1010_v25 = vld [vmem:[#allocation2 + $0x3c] sm:$0xf] }
 0x158   : > { %1808 = vrot.lane.b32.xlu1 %v1727_v36, %s9921_s18  ;;  %v1350_v23 = vrot.slane %v1348_v1, 4  ;;  %v2182_v17 = vrot.slane %v2181_v6, 4  ;;  %v2186_v60 = vrot.slane %v2184_v59, 5  ;;  %v2751_v30 = vrot.slane %v10590_v43, 5  ;;  %v2655_v32 = vld [vmem:[#allocation2 + $0x14] sm:$0x1] }
 0x159   : > { %v2163_v57 = vsel %vm10135_vm11, %v2158_v4, %v2162_v20  ;;  %v1347_v42 = vsel %vm10135_vm11, %v1342_v12, %v1346_v38  ;;  %v1164_v54 = vrot.slane %v1162_v7, 5  ;;  %v1354_v36 = vshll.u32 %v1033_v35, 16  ;;  %v941_v39 = vld [vmem:[#allocation2 + $0x3c] sm:$0xf]  ;;  %v2658_v9 = vld [vmem:[#allocation2 + $0x20] sm:$0x1] }
 0x15a   : > { %1965 = vrot.lane.b32.xlu0 %v1900_v34, %s9923_s25  ;;  %v1160_v29 = vrot.slane %v1159_v21, 4  ;;  %v1351_v44 = vor.u32 %v1350_v23, %v1346_v38  ;;  %v10603_v48 = vld [vmem:[#allocation2 + $0x1c] sm:$0xf]  ;;  %v1167_v3 = vshrl.u32 %v1010_v25, 16  ;;  %v1170_v34 = vshll.u32 %v1010_v25, 16  ;;  %v1433_v1 = vpop.permute.xlu1 %1432 }
 0x15b   : > { %973 = vst.msk [vmem:[#allocation3 + $0x28] sm:$0xf] %vm814_vm12, %v941_v39  ;;  %v957_v52 = vld [vmem:[#allocation2 + $0x9c] sm:$0xf]  ;;  %v2187_v55 = vsel %vm10135_vm11, %v2182_v17, %v2186_v60  ;;  %v2753_v37 = vrot.slane %v2751_v30, 4  ;;  %v2754_v13 = vrot.slane %v2655_v32, 5  ;;  %v1771_v39 = vpop.permute.xlu0 %1770 }
 0x15c   : > { %1446 = vrot.lane.b32.xlu1 %v1155_v24, %s9922_s20  ;;  %v1591_v56 = vld [vmem:[#allocation2 + $0x80] sm:$0x1]  ;;  %v3185_v58 = vld [vmem:[#allocation2 + $0x1c] sm:$0xf]  ;;  %989 = vst.msk [vmem:[#allocation3 + $0x68] sm:$0xf] %vm814_vm12, %v957_v52  ;;  %v1165_v4 = vsel %vm10135_vm11, %v1160_v29, %v1164_v54 }
 0x15d   : > { %v942_v24 = vld [vmem:[#allocation2 + $0x40] sm:$0xf]  ;;  %v1356_v61 = vrot.slane %v1354_v36, 5  ;;  %v2758_v62 = vrot.slane %v10603_v48, 5  ;;  %v1352_v6 = vrot.slane %v1351_v44, 4  ;;  %v1169_v59 = vrot.slane %v1167_v3, 4 }
 0x15e   : > { %1969 = vrot.lane.b32.xlu0 %v1902_v2, %s9923_s25  ;;  %974 = vst.msk [vmem:[#allocation3 + $0x2c] sm:$0xf] %vm814_vm12, %v942_v24  ;;  %v958_v2 = vld [vmem:[#allocation2 + $0xa0] sm:$0xf]  ;;  %v1172_v12 = vrot.slane %v1170_v34, 5  ;;  %v2755_v21 = vsel %vm10121_vm8, %v2753_v37, %v2754_v13  ;;  %v3242_v35 = vshll.u32 %v3185_v58, 16 }
 0x15f   : > { %v1034_v38 = vld [vmem:[#allocation2 + $0x9c] sm:$0xf]  ;;  %990 = vst.msk [vmem:[#allocation3 + $0x6c] sm:$0xf] %vm814_vm12, %v958_v2  ;;  %v2760_v7 = vrot.slane %v2758_v62, 4  ;;  %v3246_v23 = vshrl.u32 %v3185_v58, 16  ;;  %v1357_v54 = vsel %vm10135_vm11, %v1352_v6, %v1356_v61 }
 0x160   : > { %1788 = vrot.lane.b32.xlu1 %v1692_v14, %s9921_s18  ;;  %v2761_v14 = vrot.slane %v2658_v9, 5  ;;  %v1011_v20 = vld [vmem:[#allocation2 + $0x40] sm:$0xf]  ;;  %1527 = vst.msk [vmem:[#allocation3] sm:$0xf] %vm1526_vm1, %v1431_v31  ;;  %v1732_v25 = vrot.slane %v1730_v16, 4  ;;  %v1173_v32 = vor.u32 %v1172_v12, %v1169_v59 }
 0x161   : > { %1528 = vst.msk [vmem:[#allocation3 + $0x4] sm:$0xf] %vm1526_vm1, %v1433_v1  ;;  %v1359_v17 = vshrl.u32 %v1034_v38, 16  ;;  %v1362_v60 = vshll.u32 %v1034_v38, 16  ;;  %v1176_v36 = vshll.u32 %v1011_v20, 16  ;;  %v10636_v11 = vrot.slane %v3242_v35, 5 }
 0x162   : > { %2526 = vrot.lane.b32.xlu0 %v2163_v57, %s9924_s27  ;;  %v1733_v57 = vrot.slane %v1591_v56, 5  ;;  %v2762_v29 = vsel %vm10121_vm8, %v2760_v7, %v2761_v14  ;;  %1867 = vst.msk [vmem:[#allocation3] sm:$0xf] %vm1866_vm6, %v1771_v39  ;;  %1868 = vst.msk [vmem:[#allocation3 + $0x4] sm:$0xf] %vm1866_vm6, %v10595_v27  ;;  %v3248_v16 = vrot.slane %v3246_v23, 4 }
 0x163   : > { %v3186_v34 = vld [vmem:[#allocation2 + $0x20] sm:$0x1]  ;;  %v1361_v52 = vrot.slane %v1359_v17, 4  ;;  %v1174_v56 = vrot.slane %v1173_v32, 4  ;;  %v1178_v58 = vrot.slane %v1176_v36, 5  ;;  %v1180_v24 = vshrl.u32 %v1011_v20, 16 }
 0x164   : > { %1478 = vrot.lane.b32.xlu1 %v1347_v42, %s9922_s20  ;;  %v3188_v42 = vld [vmem:[#allocation2 + $0x28] sm:$0xf]  ;;  %v1035_v9 = vld [vmem:[#allocation2 + $0xa0] sm:$0xf]  ;;  %v1734_v37 = vsel %vm10121_vm8, %v1732_v25, %v1733_v57  ;;  %v1576_v31 = vld [vmem:[#allocation2 + $0x44] sm:$0x1]  ;;  %v3249_v13 = vor.u32 %v3248_v16, %v10636_v11 }
 0x165   : > { %v3266_v44 = vshll.u32 %v3188_v42, 16  ;;  %v3270_v3 = vshrl.u32 %v3188_v42, 16  ;;  %v2992_v27 = vld [vmem:[#allocation2 + $0x1c] sm:$0xf]  ;;  %v3252_v61 = vshll.u32 %v3186_v34, 16  ;;  %v1698_v6 = vrot.slane %v1576_v31, 5 }
 0x166   : > { %2530 = vrot.lane.b32.xlu0 %v2187_v55, %s9924_s27  ;;  %v1364_v55 = vrot.slane %v1362_v60, 5  ;;  %v1368_v12 = vshll.u32 %v1035_v9, 16  ;;  %v3189_v38 = vld [vmem:[#allocation2 + $0x2c] sm:$0x1]  ;;  %v1179_v7 = vsel %vm10135_vm11, %v1174_v56, %v1178_v58  ;;  %v1012_v14 = vld [vmem:[#allocation2 + $0x44] sm:$0x1] }
 0x167   : > { %v10643_v1 = vrot.slane %v3266_v44, 5  ;;  %v3272_v2 = vrot.slane %v3270_v3, 4  ;;  %v1182_v20 = vrot.slane %v1180_v24, 4  ;;  %v2994_v35 = vld [vmem:[#allocation2 + $0x28] sm:$0xf]  ;;  %v3250_v25 = vrot.slane %v3249_v13, 4 }
 0x168   : > { %1448 = vrot.lane.b32.xlu1 %v1165_v4, %s9922_s20  ;;  %v1697_v4 = vrot.slane %v1695_v46, 4  ;;  %v1365_v59 = vor.u32 %v1364_v55, %v1361_v52  ;;  %v1013_v23 = vld [vmem:[#allocation2 + $0x48] sm:$0xf]  ;;  %v3254_v57 = vrot.slane %v3252_v61, 5  ;;  %v3276_v50 = vshll.u32 %v3189_v38, 16 }
 0x169   : > { %v3273_v17 = vor.u32 %v3272_v2, %v10643_v1  ;;  %v10652_v46 = vld [vmem:[#allocation2 + $0x1c] sm:$0xf]  ;;  %v1186_v32 = vshll.u32 %v1012_v14, 16  ;;  %v943_v36 = vld [vmem:[#allocation2 + $0x48] sm:$0xf]  ;;  %v1183_v39 = vor.u32 %v1182_v20, %v1178_v58  ;;  %v1191_v44 = vshrl.u32 %v1013_v23, 16 }
 0x16a   : > { %2863 = vrot.lane.b32.xlu0 %v2755_v21, %s9925_s28  ;;  %v1372_v21 = vshrl.u32 %v1035_v9, 16  ;;  %v1699_v60 = vsel %vm10121_vm8, %v1697_v4, %v1698_v6  ;;  %v1366_v42 = vrot.slane %v1365_v59, 4  ;;  %v1194_v3 = vshll.u32 %v1013_v23, 16  ;;  %975 = vst.msk [vmem:[#allocation3 + $0x30] sm:$0xf] %vm814_vm12, %v943_v36 }
 0x16b   : > { %v3747_v9 = vld [vmem:[#allocation2 + $0x20] sm:$0x1]  ;;  %v3255_v55 = vsel %vm10135_vm11, %v3250_v25, %v3254_v57  ;;  %v3278_v56 = vrot.slane %v3276_v50, 5  ;;  %v10662_v31 = vld [vmem:[#allocation2 + $0x28] sm:$0xf]  ;;  %v3843_v13 = vrot.slane %v10652_v46, 5 }
 0x16c   : > { %1480 = vrot.lane.b32.xlu1 %v1357_v54, %s9922_s20  ;;  %v1370_v54 = vrot.slane %v1368_v12, 5  ;;  %v1374_v16 = vrot.slane %v1372_v21, 4  ;;  %v944_v58 = vld [vmem:[#allocation2 + $0x4c] sm:$0xf]  ;;  %v1184_v4 = vrot.slane %v1183_v39, 4  ;;  %v1193_v12 = vrot.slane %v1191_v44, 4 }
 0x16d   : > { %v1775_v52 = vpop.permute.xlu0 %1774  ;;  %976 = vst.msk [vmem:[#allocation3 + $0x34] sm:$0xf] %vm814_vm12, %v944_v58  ;;  %v960_v2 = vld [vmem:[#allocation2 + $0xac] sm:$0xf]  ;;  %v1196_v38 = vrot.slane %v1194_v3, 5  ;;  %v3845_v20 = vrot.slane %v3843_v13, 4 }
 0x16e   : > { %2867 = vrot.lane.b32.xlu0 %v2762_v29, %s9925_s28  ;;  %v1036_v29 = vld [vmem:[#allocation2 + $0xa4] sm:$0x1]  ;;  %v1371_v24 = vsel %vm10135_vm11, %v1366_v42, %v1370_v54  ;;  %v1375_v6 = vor.u32 %v1374_v16, %v1370_v54  ;;  %v1014_v59 = vld [vmem:[#allocation2 + $0x4c] sm:$0xf]  ;;  %992 = vst.msk [vmem:[#allocation3 + $0x74] sm:$0xf] %vm814_vm12, %v960_v2 }
 0x16f   : > { %v1378_v61 = vshll.u32 %v1036_v29, 16  ;;  %v3846_v21 = vrot.slane %v3747_v9, 5  ;;  %v3850_v25 = vrot.slane %v10662_v31, 5  ;;  %v1200_v57 = vshll.u32 %v1014_v59, 16  ;;  %v1579_v3 = vld [vmem:[#allocation2 + $0x50] sm:$0x1] }
 0x170   : > { %1812 = vrot.lane.b32.xlu1 %v1734_v37, %s9921_s18  ;;  %v3274_v37 = vrot.slane %v3273_v17, 4  ;;  %v2099_v17 = vld [vmem:[#allocation2 + $0x28] sm:$0xf]  ;;  %v1197_v42 = vor.u32 %v1196_v38, %v1193_v12  ;;  %v1204_v54 = vshrl.u32 %v1014_v59, 16  ;;  %v2102_v9 = vld [vmem:[#allocation2 + $0x34] sm:$0xf] }
 0x171   : > { %v1380_v23 = vrot.slane %v1378_v61, 5  ;;  %v3847_v39 = vsel %vm10121_vm8, %v3845_v20, %v3846_v21  ;;  %v2198_v29 = vshll.u32 %v2099_v17, 16  ;;  %v2202_v16 = vshrl.u32 %v2099_v17, 16  ;;  %v1016_v58 = vld [vmem:[#allocation2 + $0x54] sm:$0xf] }
 0x172   : > { %3057 = vrot.lane.b32.xlu0 %v2992_v27, %s9926_s29  ;;  %v1188_v27 = vrot.slane %v1186_v32, 5  ;;  %v3279_v14 = vsel %vm10135_vm11, %v3274_v37, %v3278_v56  ;;  %v3852_v32 = vrot.slane %v3850_v25, 4  ;;  %v1202_v44 = vrot.slane %v1200_v57, 5  ;;  %v2100_v61 = vld [vmem:[#allocation2 + $0x2c] sm:$0x1] }
 0x173   : > { %v1206_v37 = vrot.slane %v1204_v54, 4  ;;  %v1396_v56 = vshrl.u32 %v10486_v5, 16  ;;  %v10695_v2 = vrot.slane %v2198_v29, 5  ;;  %v2226_v59 = vshrl.u32 %v2102_v9, 16  ;;  %v945_v20 = vld [vmem:[#allocation2 + $0x54] sm:$0xf] }
 0x174   : > { %1450 = vrot.lane.b32.xlu1 %v1179_v7, %s9922_s20  ;;  %v1189_v50 = vsel %vm10135_vm11, %v1184_v4, %v1188_v27  ;;  %v1015_v27 = vld [vmem:[#allocation2 + $0x50] sm:$0x1]  ;;  %v2204_v4 = vrot.slane %v2202_v16, 4  ;;  %v1704_v5 = vrot.slane %v1702_v47, 4  ;;  %v1705_v12 = vrot.slane %v1579_v3, 5 }
 0x175   : > { %v1215_v38 = vshrl.u32 %v1016_v58, 16  ;;  %v1398_v57 = vrot.slane %v1396_v56, 4  ;;  %977 = vst.msk [vmem:[#allocation3 + $0x38] sm:$0xf] %vm814_vm12, %v945_v20  ;;  %v1039_v17 = vld [vmem:[#allocation2 + $0xb0] sm:$0x1] }
 0x176   : > { %3061 = vrot.lane.b32.xlu0 %v2994_v35, %s9926_s29  ;;  %v3750_v35 = vld [vmem:[#allocation2 + $0x2c] sm:$0x1]  ;;  %v2208_v40 = vshll.u32 %v2100_v61, 16  ;;  %vm3712_vm13 = vcmask 257248   ;;  %v3781_v26 = vld [vmem:[#allocation2 + $0xa8] sm:$0xe] }
 0x177   : > { %v3853_v36 = vrot.slane %v3750_v35, 5  ;;  %v1207_v35 = vor.u32 %v1206_v37, %v1202_v44  ;;  %v1399_v3 = vor.u32 %v1398_v57, %v10514_v45  ;;  %vm6134_vm3 = vcmask 191616  }
 0x178   : > { %1792 = vrot.lane.b32.xlu1 %v1699_v60, %s9921_s18  ;;  %v1376_v60 = vrot.slane %v1375_v6, 4  ;;  %v2222_v6 = vshll.u32 %v2102_v9, 16  ;;  %v1017_v9 = vld [vmem:[#allocation2 + $0x58] sm:$0xf]  ;;  %v2210_v56 = vrot.slane %v2208_v40, 5 }
 0x179   : > { %v1208_v16 = vrot.slane %v1207_v35, 4  ;;  %v1224_v61 = vshll.u32 %v1017_v9, 16  ;;  %v946_v35 = vld [vmem:[#allocation2 + $0x58] sm:$0xf] }
 0x17a   : > { %3618 = vrot.lane.b32.xlu0 %v3255_v55, %s9927_s5  ;;  %v1198_v55 = vrot.slane %v1197_v42, 4  ;;  %v10705_v47 = vrot.slane %v2222_v6, 5  ;;  %v2228_v42 = vrot.slane %v2226_v59, 4  ;;  %978 = vst.msk [vmem:[#allocation3 + $0x3c] sm:$0xf] %vm814_vm12, %v946_v35 }
 0x17b   : > { %v1435_v34 = vpop.permute.xlu1 %1434  ;;  %v1226_v57 = vrot.slane %v1224_v61, 5 }
 0x17c   : > { %1529 = vst.msk [vmem:[#allocation3 + $0x8] sm:$0xf] %vm1526_vm1, %v1435_v34  ;;  %1482 = vrot.lane.b32.xlu1 %v1371_v24, %s9922_s20  ;;  %v3854_v24 = vsel %vm10121_vm8, %v3852_v32, %v3853_v36  ;;  %v1203_v21 = vsel %vm10135_vm11, %v1198_v55, %v1202_v44  ;;  %v1706_v32 = vsel %vm10121_vm8, %v1704_v5, %v1705_v12  ;;  %v2103_v36 = vld [vmem:[#allocation2 + $0x38] sm:$0x1]  ;;  %v1906_v55 = vld [vmem:[#allocation2 + $0x34] sm:$0xf] }
 0x17d   : > { %1869 = vst.msk [vmem:[#allocation3 + $0x8] sm:$0xf] %vm1866_vm6, %v1775_v52  ;;  %v1381_v52 = vsel %vm10135_vm11, %v1376_v60, %v1380_v23  ;;  %v1210_v23 = vshll.u32 %v1015_v27, 16  ;;  %v2205_v60 = vor.u32 %v2204_v4, %v10695_v2  ;;  %v1400_v4 = vrot.slane %v1399_v3, 4  ;;  %v10724_v5 = vld [vmem:[#allocation2 + $0x28] sm:$0xf] }
 0x17e   : > { %3622 = vrot.lane.b32.xlu0 %v3279_v14, %s9927_s5  ;;  %v1218_v14 = vshll.u32 %v1016_v58, 16  ;;  %v2229_v58 = vor.u32 %v2228_v42, %v10705_v47  ;;  %v2765_v40 = vrot.slane %v10724_v5, 5  ;;  %v1018_v42 = vld [vmem:[#allocation2 + $0x5c] sm:$0x1]  ;;  %v1711_v3 = vrot.slane %v1709_v49, 4 }
 0x17f   : > { %v10672_v7 = vpop.permute.xlu1 %1776  ;;  %v1212_v44 = vrot.slane %v1210_v23, 5  ;;  %v2206_v37 = vrot.slane %v2205_v60, 4 }
 0x180   : > { %1452 = vrot.lane.b32.xlu1 %v1189_v50, %s9922_s20  ;;  %v1904_v50 = vld [vmem:[#allocation2 + $0x28] sm:$0xf]  ;;  %v1220_v29 = vrot.slane %v1218_v14, 5  ;;  %v2230_v14 = vrot.slane %v2229_v58, 4  ;;  %v3191_v58 = vld [vmem:[#allocation2 + $0x34] sm:$0xf] }
 0x181   : > { %v1213_v45 = vsel %vm10135_vm11, %v1208_v16, %v1212_v44  ;;  %v2767_v16 = vrot.slane %v2765_v40, 4 }
 0x182   : > { %3955 = vrot.lane.b32.xlu0 %v3847_v39, %s9928_s6  ;;  %v1217_v39 = vrot.slane %v1215_v38, 4  ;;  %v2211_v38 = vsel %vm10135_vm11, %v2206_v37, %v2210_v56  ;;  %v1234_v56 = vshll.u32 %v1018_v42, 16 }
 0x184   : > { %1484 = vrot.lane.b32.xlu1 %v1381_v52, %s9922_s20  ;;  %v1221_v27 = vor.u32 %v1220_v29, %v1217_v39  ;;  %v1019_v39 = vld [vmem:[#allocation2 + $0x60] sm:$0xf] }
 0x185   : > { %v1467_v34 = vpop.permute.xlu1 %1466  ;;  %v1239_v41 = vshrl.u32 %v1019_v39, 16  ;;  %v1242_v49 = vshll.u32 %v1019_v39, 16 }
 0x186   : > { %1545 = vst.msk [vmem:[#allocation3 + $0x48] sm:$0xf] %vm1526_vm1, %v1467_v34  ;;  %3959 = vrot.lane.b32.xlu0 %v3854_v24, %s9928_s6  ;;  %v1402_v34 = vshll.u32 %v1039_v17, 16  ;;  %v2232_v24 = vshll.u32 %v2103_v36, 16  ;;  %v1222_v23 = vrot.slane %v1221_v27, 4 }
 0x187   : > { %v1582_v17 = vld [vmem:[#allocation2 + $0x5c] sm:$0x1]  ;;  %v2664_v36 = vld [vmem:[#allocation2 + $0x38] sm:$0x1]  ;;  %v1241_v42 = vrot.slane %v1239_v41, 4 }
 0x188   : > { %1454 = vrot.lane.b32.xlu1 %v1203_v21, %s9922_s20  ;;  %v1404_v6 = vrot.slane %v1402_v34, 5  ;;  %v2234_v20 = vrot.slane %v2232_v24, 5  ;;  %v2661_v21 = vld [vmem:[#allocation2 + $0x2c] sm:$0x1]  ;;  %v1042_v27 = vld [vmem:[#allocation2 + $0xbc] sm:$0x1] }
 0x189   : > { %v2768_v44 = vrot.slane %v2661_v21, 5  ;;  %v1426_v35 = vshll.u32 %v1042_v27, 16 }
 0x18a   : > { %1973 = vrot.lane.b32.xlu0 %v1904_v50, %s9923_s25  ;;  %v10714_v52 = vpop.permute.xlu0 %1778  ;;  %v10730_v50 = vld [vmem:[#allocation2 + $0x34] sm:$0xf]  ;;  %v1405_v60 = vsel %vm10135_vm11, %v1400_v4, %v1404_v6  ;;  %v2235_v29 = vsel %vm10135_vm11, %v2230_v14, %v2234_v20  ;;  %v2775_v4 = vrot.slane %v2664_v36, 5  ;;  %v1236_v20 = vrot.slane %v1234_v56, 5 }
 0x18b   : > { %v1437_v54 = vpop.permute.xlu1 %1436  ;;  %v2772_v37 = vrot.slane %v10730_v50, 5  ;;  %v2769_v6 = vsel %vm10121_vm8, %v2767_v16, %v2768_v44 }
 0x18c   : > { %1530 = vst.msk [vmem:[#allocation3 + $0xc] sm:$0xf] %vm1526_vm1, %v1437_v54  ;;  %1796 = vrot.lane.b32.xlu1 %v1706_v32, %s9921_s18  ;;  %v1420_v32 = vshrl.u32 %v10516_v53, 16  ;;  %v1227_v53 = vsel %vm10135_vm11, %v1222_v23, %v1226_v57  ;;  %v3194_v23 = vld [vmem:[#allocation2 + $0x40] sm:$0xf] }
 0x18d   : > { %1870 = vst.msk [vmem:[#allocation3 + $0xc] sm:$0xf] %vm1866_vm6, %v10672_v7  ;;  %v1228_v7 = vshrl.u32 %v1017_v9, 16  ;;  %v962_v9 = vld [vmem:[#allocation2 + $0xb8] sm:$0xf]  ;;  %v3314_v16 = vshll.u32 %v3194_v23, 16 }
 0x18e   : > { %1977 = vrot.lane.b32.xlu0 %v1906_v55, %s9923_s25  ;;  %v1712_v55 = vrot.slane %v1582_v17, 5  ;;  %994 = vst.msk [vmem:[#allocation3 + $0x7c] sm:$0xf] %vm814_vm12, %v962_v9  ;;  %v1422_v61 = vrot.slane %v1420_v32, 4  ;;  %v3318_v44 = vshrl.u32 %v3194_v23, 16 }
 0x18f   : > { %v10721_v59 = vpop.permute.xlu0 %1782  ;;  %v1230_v54 = vrot.slane %v1228_v7, 4  ;;  %v3290_v7 = vshll.u32 %v3191_v58, 16  ;;  %v3192_v9 = vld [vmem:[#allocation2 + $0x38] sm:$0x1]  ;;  %v10777_v41 = vrot.slane %v3314_v16, 5 }
 0x190   : > { %1456 = vrot.lane.b32.xlu1 %v1213_v45, %s9922_s20  ;;  %v2774_v45 = vrot.slane %v2772_v37, 4  ;;  %v1713_v14 = vsel %vm10121_vm8, %v1711_v3, %v1712_v55  ;;  %v1423_v17 = vor.u32 %v1422_v61, %v10529_v18  ;;  %v1428_v18 = vrot.slane %v1426_v35, 5 }
 0x191   : > { %v1231_v24 = vor.u32 %v1230_v54, %v1226_v57  ;;  %v1244_v54 = vrot.slane %v1242_v49, 5  ;;  %v10768_v39 = vrot.slane %v3290_v7, 5  ;;  %v3300_v61 = vshll.u32 %v3192_v9, 16 }
 0x192   : > { %v1469_v12 = vpop.permute.xlu1 %1468  ;;  %2534 = vrot.lane.b32.xlu0 %v2211_v38, %s9924_s27  ;;  %v947_v38 = vld [vmem:[#allocation2 + $0x60] sm:$0xf]  ;;  %v2776_v36 = vsel %vm10121_vm8, %v2774_v45, %v2775_v4  ;;  %v1424_v55 = vrot.slane %v1423_v17, 4  ;;  %v3320_v49 = vrot.slane %v3318_v44, 4  ;;  %v948_v45 = vld [vmem:[#allocation2 + $0x64] sm:$0xf] }
 0x193   : > { %1546 = vst.msk [vmem:[#allocation3 + $0x4c] sm:$0xf] %vm1526_vm1, %v1469_v12  ;;  %v3294_v12 = vshrl.u32 %v3191_v58, 16  ;;  %v1232_v57 = vrot.slane %v1231_v24, 4  ;;  %v1245_v56 = vor.u32 %v1244_v54, %v1241_v42  ;;  %v3195_v4 = vld [vmem:[#allocation2 + $0x44] sm:$0x1] }
 0x194   : > { %1488 = vrot.lane.b32.xlu1 %v1405_v60, %s9922_s20  ;;  %979 = vst.msk [vmem:[#allocation3 + $0x40] sm:$0xf] %vm814_vm12, %v947_v38  ;;  %v1020_v60 = vld [vmem:[#allocation2 + $0x64] sm:$0xf]  ;;  %980 = vst.msk [vmem:[#allocation3 + $0x44] sm:$0xf] %vm814_vm12, %v948_v45  ;;  %v3321_v17 = vor.u32 %v3320_v49, %v10777_v41 }
 0x195   : > { %v1248_v3 = vshll.u32 %v1020_v60, 16  ;;  %v1252_v58 = vshrl.u32 %v1020_v60, 16  ;;  %v1246_v7 = vrot.slane %v1245_v56, 4  ;;  %v1585_v38 = vld [vmem:[#allocation2 + $0x68] sm:$0x1]  ;;  %v3302_v23 = vrot.slane %v3300_v61, 5 }
 0x196   : > { %2538 = vrot.lane.b32.xlu0 %v2235_v29, %s9924_s27  ;;  %v3296_v29 = vrot.slane %v3294_v12, 4  ;;  %v3324_v60 = vshll.u32 %v3195_v4, 16  ;;  %v1718_v54 = vrot.slane %v1716_v28, 4  ;;  %v10793_v44 = vld [vmem:[#allocation2 + $0x34] sm:$0xf]  ;;  %v3322_v9 = vrot.slane %v3321_v17, 4 }
 0x197   : > { %v10744_v34 = vpop.permute.xlu0 %1786  ;;  %v1250_v12 = vrot.slane %v1248_v3, 5  ;;  %v3857_v56 = vrot.slane %v10793_v44, 5  ;;  %v10803_v61 = vld [vmem:[#allocation2 + $0x40] sm:$0xf]  ;;  %vm3151_vm12 = vcmask 224448  }
 0x198   : > { %1458 = vrot.lane.b32.xlu1 %v1227_v53, %s9922_s20  ;;  %v1237_v53 = vsel %vm10135_vm11, %v1232_v57, %v1236_v20  ;;  %v3297_v27 = vor.u32 %v3296_v29, %v10768_v39  ;;  %v1021_v20 = vld [vmem:[#allocation2 + $0x68] sm:$0x1] }
 0x199   : > { %v1258_v16 = vshll.u32 %v1021_v20, 16 }
 0x19a   : > { %2871 = vrot.lane.b32.xlu0 %v2769_v6, %s9925_s28  ;;  %v1429_v6 = vsel %vm10135_vm11, %v1424_v55, %v1428_v18  ;;  %v3298_v35 = vrot.slane %v3297_v27, 4  ;;  %v2092_v18 = vld [vmem:[#allocation2 + $0xc] sm:$0xf]  ;;  %v3753_v55 = vld [vmem:[#allocation2 + $0x38] sm:$0x1] }
 0x19b   : > { %v1260_v27 = vrot.slane %v1258_v16, 5  ;;  %v2141_v49 = vshrl.u32 %v2092_v18, 16  ;;  %v2144_v45 = vshll.u32 %v2092_v18, 16 }
 0x19c   : > { %v1439_v21 = vpop.permute.xlu1 %1438  ;;  %v1807_v32 = vpop.permute.xlu0 %1806  ;;  %1800 = vrot.lane.b32.xlu1 %v1713_v14, %s9921_s18  ;;  %v1254_v14 = vrot.slane %v1252_v58, 4  ;;  %v3303_v3 = vsel %vm10135_vm11, %v3298_v35, %v3302_v23  ;;  %v2095_v58 = vld [vmem:[#allocation2 + $0x18] sm:$0xf] }
 0x19d   : > { %1531 = vst.msk [vmem:[#allocation3 + $0x10] sm:$0xf] %vm1526_vm1, %v1439_v21  ;;  %v2998_v21 = vld [vmem:[#allocation2 + $0x40] sm:$0xf]  ;;  %v2165_v20 = vshrl.u32 %v2095_v58, 16  ;;  %v2143_v23 = vrot.slane %v2141_v49, 4 }
 0x19e   : > { %1871 = vst.msk [vmem:[#allocation3 + $0x10] sm:$0xf] %vm1866_vm6, %v10714_v52  ;;  %1885 = vst.msk [vmem:[#allocation3 + $0x48] sm:$0xf] %vm1866_vm6, %v1807_v32  ;;  %2875 = vrot.lane.b32.xlu0 %v2776_v36, %s9925_s28  ;;  %v2996_v52 = vld [vmem:[#allocation2 + $0x34] sm:$0xf]  ;;  %v1251_v36 = vsel %vm10135_vm11, %v1246_v7, %v1250_v12  ;;  %v1255_v29 = vor.u32 %v1254_v14, %v1250_v12 }
 0x19f   : > { %v1719_v32 = vrot.slane %v1585_v38, 5  ;;  %v3860_v7 = vrot.slane %v3753_v55, 5  ;;  %v3756_v12 = vld [vmem:[#allocation2 + $0x44] sm:$0x1]  ;;  %v3864_v14 = vrot.slane %v10803_v61, 5  ;;  %v2146_v17 = vrot.slane %v2144_v45, 5 }
 0x1a0   : > { %1460 = vrot.lane.b32.xlu1 %v1237_v53, %s9922_s20  ;;  %v10774_v24 = vpop.permute.xlu1 %1780  ;;  %v3326_v53 = vrot.slane %v3324_v60, 5  ;;  %v2168_v60 = vshll.u32 %v2095_v58, 16  ;;  %v2106_v45 = vld [vmem:[#allocation2 + $0x44] sm:$0x1] }
 0x1a1   : > { %v1720_v15 = vsel %vm10121_vm8, %v1718_v54, %v1719_v32  ;;  %v3867_v54 = vrot.slane %v3756_v12, 5 }
 0x1a2   : > { %3065 = vrot.lane.b32.xlu0 %v2996_v52, %s9926_s29  ;;  %v1256_v52 = vrot.slane %v1255_v29, 4  ;;  %v3327_v4 = vsel %vm10135_vm11, %v3322_v9, %v3326_v53  ;;  %v2147_v9 = vor.u32 %v2146_v17, %v2143_v23  ;;  %v2167_v53 = vrot.slane %v2165_v20, 4 }
 0x1a4   : > { %1492 = vrot.lane.b32.xlu1 %v1429_v6, %s9922_s20  ;;  %v3859_v6 = vrot.slane %v3857_v56, 4  ;;  %v1261_v35 = vsel %vm10135_vm11, %v1256_v52, %v1260_v27 }
 0x1a5   : > { %v10784_v57 = vpop.permute.xlu0 %1790 }
 0x1a6   : > { %3069 = vrot.lane.b32.xlu0 %v2998_v21, %s9926_s29  ;;  %v1471_v42 = vpop.permute.xlu1 %1470  ;;  %v2105_v21 = vld [vmem:[#allocation2 + $0x40] sm:$0xf]  ;;  %v3861_v32 = vsel %vm10121_vm8, %v3859_v6, %v3860_v7  ;;  %v2148_v6 = vrot.slane %v2147_v9, 4  ;;  %v2653_v9 = vld [vmem:[#allocation2 + $0xc] sm:$0xe] }
 0x1a7   : > { %1547 = vst.msk [vmem:[#allocation3 + $0x50] sm:$0xf] %vm1526_vm1, %v1471_v42  ;;  %v3866_v42 = vrot.slane %v3864_v14, 4  ;;  %v2250_v29 = vshrl.u32 %v2105_v21, 16 }
 0x1a8   : > { %1462 = vrot.lane.b32.xlu1 %v1251_v36, %s9922_s20  ;;  %v2246_v36 = vshll.u32 %v2105_v21, 16  ;;  %v2256_v21 = vshll.u32 %v2106_v45, 16 }
 0x1a9   : > { %v2252_v58 = vrot.slane %v2250_v29, 4 }
 0x1aa   : > { %3626 = vrot.lane.b32.xlu0 %v3303_v3, %s9927_s5  ;;  %v1811_v28 = vpop.permute.xlu0 %1810  ;;  %v2108_v3 = vld [vmem:[#allocation2 + $0x4c] sm:$0xf]  ;;  %v10829_v55 = vrot.slane %v2246_v36, 5  ;;  %v2258_v29 = vrot.slane %v2256_v21, 5 }
 0x1ab   : > { %1887 = vst.msk [vmem:[#allocation3 + $0x50] sm:$0xf] %vm1866_vm6, %v1811_v28  ;;  %v3868_v28 = vsel %vm10121_vm8, %v3866_v42, %v3867_v54  ;;  %v2270_v52 = vshll.u32 %v2108_v3, 16  ;;  %v2274_v27 = vshrl.u32 %v2108_v3, 16 }
 0x1ac   : > { %1804 = vrot.lane.b32.xlu1 %v1720_v15, %s9921_s18  ;;  %v2170_v15 = vrot.slane %v2168_v60, 5  ;;  %v2253_v20 = vor.u32 %v2252_v58, %v10829_v55  ;;  %v2109_v60 = vld [vmem:[#allocation2 + $0x50] sm:$0x1]  ;;  %v3184_v58 = vld [vmem:[#allocation2 + $0x18] sm:$0xf] }
 0x1ad   : > { %v1441_v38 = vpop.permute.xlu1 %1440  ;;  %v2276_v23 = vrot.slane %v2274_v27, 4  ;;  %v2280_v3 = vshll.u32 %v2109_v60, 16  ;;  %v9172_v27 = vrot.slane %v2653_v9, 9  ;;  %v3236_v21 = vshll.u32 %v3184_v58, 16  ;;  %v3187_v60 = vld [vmem:[#allocation2 + $0x24] sm:$0xf] }
 0x1ae   : > { %3630 = vrot.lane.b32.xlu0 %v3327_v4, %s9927_s5  ;;  %1532 = vst.msk [vmem:[#allocation3 + $0x14] sm:$0xf] %vm1526_vm1, %v1441_v38  ;;  %v10823_v18 = vpop.permute.xlu0 %1794  ;;  %v1901_v4 = vld [vmem:[#allocation2 + $0x18] sm:$0xf]  ;;  %v2171_v7 = vor.u32 %v2170_v15, %v2167_v53  ;;  %v1908_v38 = vld [vmem:[#allocation2 + $0x40] sm:$0xf] }
 0x1af   : > { %1872 = vst.msk [vmem:[#allocation3 + $0x14] sm:$0xf] %vm1866_vm6, %v10774_v24  ;;  %v1899_v24 = vld [vmem:[#allocation2 + $0xc] sm:$0xf]  ;;  %v2254_v36 = vrot.slane %v2253_v20, 4  ;;  %v2282_v45 = vrot.slane %v2280_v3, 5 }
 0x1b0   : > { %1464 = vrot.lane.b32.xlu1 %v1261_v35, %s9922_s20  ;;  %v10838_v35 = vrot.slane %v2270_v52, 5  ;;  %v2172_v42 = vrot.slane %v2171_v7, 4  ;;  %v2656_v53 = vld [vmem:[#allocation2 + $0x18] sm:$0xe]  ;;  %v2752_v7 = vsel %vm10121_vm8, %v9172_v27, %v2751_v30  ;;  %v3233_v20 = vshrl.u32 %v3184_v58, 16  ;;  %s14379_s20 = scalar_lea.hbm %s14423_s3, %s9402_s30 }
 0x1b1   : > { %v1473_v16 = vpop.permute.xlu1 %1472  ;;  %v2259_v52 = vsel %vm10135_vm11, %v2254_v36, %v2258_v29  ;;  %v3197_v29 = vld [vmem:[#allocation2 + $0x4c] sm:$0xf]  ;;  %v3238_v3 = vrot.slane %v3236_v21, 5  ;;  %v3260_v9 = vshll.u32 %v3187_v60, 16  ;;  %v3200_v27 = vld [vmem:[#allocation2 + $0x58] sm:$0xf] }
 0x1b2   : > { %3963 = vrot.lane.b32.xlu0 %v3861_v32, %s9928_s6  ;;  %1548 = vst.msk [vmem:[#allocation3 + $0x54] sm:$0xf] %vm1526_vm1, %v1473_v16  ;;  %v1910_v32 = vld [vmem:[#allocation2 + $0x4c] sm:$0xf]  ;;  %v2277_v16 = vor.u32 %v2276_v23, %v10838_v35  ;;  %v3342_v58 = vshrl.u32 %v3197_v29, 16 }
 0x1b4   : > { %1963 = vrot.lane.b32.xlu1 %v1899_v24, %s9923_s25  ;;  %v3344_v21 = vrot.slane %v3342_v58, 4  ;;  %v3745_v58 = vld [vmem:[#allocation2 + $0x18] sm:$0xe] }
 0x1b6   : > { %v1443_v49 = vpop.permute.xlu1 %1442  ;;  %3967 = vrot.lane.b32.xlu0 %v3868_v28, %s9928_s6  ;;  %v10854_v28 = vld [vmem:[#allocation2 + $0x40] sm:$0xf] }
 0x1b7   : > { %1533 = vst.msk [vmem:[#allocation3 + $0x18] sm:$0xf] %vm1526_vm1, %v1443_v49  ;;  %v2278_v49 = vrot.slane %v2277_v16, 4  ;;  %v3235_v16 = vrot.slane %v3233_v20, 4 }
 0x1b8   : > { %1873 = vst.msk [vmem:[#allocation3 + $0x18] sm:$0xf] %vm1866_vm6, %v10721_v59  ;;  %1967 = vrot.lane.b32.xlu1 %v1901_v4, %s9923_s25  ;;  %v1487_v12 = vpop.permute.xlu0 %1486  ;;  %v2153_v59 = vsel %vm10135_vm11, %v2148_v6, %v10573_v63  ;;  %v2177_v63 = vsel %vm10135_vm11, %v2172_v42, %v10580_v51  ;;  %v9173_v6 = vrot.slane %v2656_v53, 9  ;;  %v2667_v51 = vld [vmem:[#allocation2 + $0x44] sm:$0x1] }
 0x1b9   : > { %1555 = vst.msk [vmem:[#allocation3 + $0x70] sm:$0xf] %vm1526_vm1, %v1487_v12  ;;  %v2779_v12 = vrot.slane %v10854_v28, 5  ;;  %v2782_v30 = vrot.slane %v2667_v51, 5  ;;  %v2670_v42 = vld [vmem:[#allocation2 + $0x50] sm:$0x1] }
 0x1ba   : > { %v1785_v17 = vpop.permute.xlu1 %1784  ;;  %1981 = vrot.lane.b32.xlu0 %v1908_v38, %s9923_s25  ;;  %v10866_v38 = vld [vmem:[#allocation2 + $0x4c] sm:$0xf] }
 0x1bb   : > { %v2781_v43 = vrot.slane %v2779_v12, 4  ;;  %v2786_v36 = vrot.slane %v10866_v38, 5 }
 0x1bc   : > { %2524 = vrot.lane.b32.xlu1 %v2153_v59, %s9924_s27  ;;  %v10845_v54 = vpop.permute.xlu0 %1798  ;;  %v2283_v59 = vsel %vm10135_vm11, %v2278_v49, %v2282_v45  ;;  %v2991_v49 = vld [vmem:[#allocation2 + $0x18] sm:$0xf]  ;;  %v3239_v45 = vor.u32 %v3238_v3, %v3235_v16  ;;  %v3000_v16 = vld [vmem:[#allocation2 + $0x4c] sm:$0xf] }
 0x1bd   : > { %v2788_v53 = vrot.slane %v2786_v36, 4  ;;  %v2783_v48 = vsel %vm10121_vm8, %v2781_v43, %v2782_v30  ;;  %v3198_v30 = vld [vmem:[#allocation2 + $0x50] sm:$0x1] }
 0x1be   : > { %v1475_v24 = vpop.permute.xlu1 %1474  ;;  %1985 = vrot.lane.b32.xlu0 %v1910_v32, %s9923_s25 }
 0x1bf   : > { %1549 = vst.msk [vmem:[#allocation3 + $0x58] sm:$0xf] %vm1526_vm1, %v1475_v24  ;;  %v3257_v24 = vshrl.u32 %v3187_v60, 16  ;;  %v3362_v60 = vshll.u32 %v3200_v27, 16 }
 0x1c0   : > { %2528 = vrot.lane.b32.xlu1 %v2177_v63, %s9924_s27  ;;  %v1491_v15 = vpop.permute.xlu0 %1490 }
 0x1c1   : > { %1557 = vst.msk [vmem:[#allocation3 + $0x78] sm:$0xf] %vm1526_vm1, %v1491_v15  ;;  %v2789_v15 = vrot.slane %v2670_v42, 5  ;;  %v2993_v42 = vld [vmem:[#allocation2 + $0x24] sm:$0xf] }
 0x1c2   : > { %v1445_v4 = vpop.permute.xlu1 %1444  ;;  %2542 = vrot.lane.b32.xlu0 %v2259_v52, %s9924_s27 }
 0x1c3   : > { %1534 = vst.msk [vmem:[#allocation3 + $0x1c] sm:$0xf] %vm1526_vm1, %v1445_v4  ;;  %v3259_v4 = vrot.slane %v3257_v24, 4  ;;  %v3348_v24 = vshll.u32 %v3198_v30, 16 }
 0x1c4   : > { %1874 = vst.msk [vmem:[#allocation3 + $0x1c] sm:$0xf] %vm1866_vm6, %v1785_v17  ;;  %2861 = vrot.lane.b32.xlu1 %v2752_v7, %s9925_s28  ;;  %v10870_v23 = vpop.permute.xlu0 %1802  ;;  %v2759_v17 = vsel %vm10121_vm8, %v9173_v6, %v2758_v62  ;;  %v3338_v62 = vshll.u32 %v3197_v29, 16  ;;  %v3262_v6 = vrot.slane %v3260_v9, 5  ;;  %v2790_v7 = vsel %vm10121_vm8, %v2788_v53, %v2789_v15  ;;  %v3201_v15 = vld [vmem:[#allocation2 + $0x5c] sm:$0x1] }
 0x1c5   : > { %v10904_v9 = vrot.slane %v3362_v60, 5  ;;  %v10919_v60 = vld [vmem:[#allocation2 + $0x4c] sm:$0xf] }
 0x1c6   : > { %v1477_v32 = vpop.permute.xlu1 %1476  ;;  %2546 = vrot.lane.b32.xlu0 %v2283_v59, %s9924_s27  ;;  %v10895_v20 = vrot.slane %v3338_v62, 5  ;;  %v3366_v59 = vshrl.u32 %v3200_v27, 16 }
 0x1c7   : > { %1550 = vst.msk [vmem:[#allocation3 + $0x5c] sm:$0xf] %vm1526_vm1, %v1477_v32  ;;  %v3240_v32 = vrot.slane %v3239_v45, 4 }
 0x1c8   : > { %2865 = vrot.lane.b32.xlu1 %v2759_v17, %s9925_s28  ;;  %v1815_v63 = vpop.permute.xlu0 %1814  ;;  %v3263_v17 = vor.u32 %v3262_v6, %v3259_v4  ;;  %v3345_v3 = vor.u32 %v3344_v21, %v10895_v20  ;;  %v3372_v4 = vshll.u32 %v3201_v15, 16 }
 0x1c9   : > { %1889 = vst.msk [vmem:[#allocation3 + $0x58] sm:$0xf] %vm1866_vm6, %v1815_v63  ;;  %v3368_v63 = vrot.slane %v3366_v59, 4  ;;  %v2098_v59 = vld [vmem:[#allocation2 + $0x24] sm:$0xf] }
 0x1ca   : > { %v1809_v52 = vpop.permute.xlu1 %1808  ;;  %2879 = vrot.lane.b32.xlu0 %v2783_v48, %s9925_s28  ;;  %v3264_v48 = vrot.slane %v3263_v17, 4  ;;  %v3346_v27 = vrot.slane %v3345_v3, 4  ;;  %v3759_v17 = vld [vmem:[#allocation2 + $0x50] sm:$0x1]  ;;  %v10931_v3 = vld [vmem:[#allocation2 + $0x58] sm:$0xf] }
 0x1cb   : > { %1886 = vst.msk [vmem:[#allocation3 + $0x4c] sm:$0xf] %vm1866_vm6, %v1809_v52  ;;  %v3002_v52 = vld [vmem:[#allocation2 + $0x58] sm:$0xf]  ;;  %v3369_v45 = vor.u32 %v3368_v63, %v10904_v9  ;;  %v2192_v63 = vshll.u32 %v2098_v59, 16 }
 0x1cc   : > { %3055 = vrot.lane.b32.xlu1 %v2991_v49, %s9926_s29  ;;  %v1966_v51 = vpop.permute.xlu0 %1965  ;;  %v3350_v49 = vrot.slane %v3348_v24, 5  ;;  %v2189_v24 = vshrl.u32 %v2098_v59, 16 }
 0x1cd   : > { %2061 = vst.msk [vmem:[#allocation3 + $0x4] sm:$0xf] %vm2059_vm7, %v1966_v51  ;;  %v9188_v51 = vrot.slane %v3745_v58, 9  ;;  %v3370_v30 = vrot.slane %v3369_v45, 4  ;;  %v2194_v45 = vrot.slane %v2192_v63, 5 }
 0x1ce   : > { %v1447_v43 = vpop.permute.xlu1 %1446  ;;  %2883 = vrot.lane.b32.xlu0 %v2790_v7, %s9925_s28  ;;  %v3748_v7 = vld [vmem:[#allocation2 + $0x24] sm:$0xe] }
 0x1cf   : > { %1535 = vst.msk [vmem:[#allocation3 + $0x20] sm:$0xf] %vm1526_vm1, %v1447_v43  ;;  %v3351_v43 = vsel %vm10135_vm11, %v3346_v27, %v3350_v49  ;;  %v2111_v27 = vld [vmem:[#allocation2 + $0x58] sm:$0xf]  ;;  %v2191_v49 = vrot.slane %v2189_v24, 4 }
 0x1d0   : > { %1875 = vst.msk [vmem:[#allocation3 + $0x20] sm:$0xf] %vm1866_vm6, %v10744_v34  ;;  %3059 = vrot.lane.b32.xlu1 %v2993_v42, %s9926_s29  ;;  %v1970_v29 = vpop.permute.xlu0 %1969  ;;  %v3245_v34 = vsel %vm10135_vm11, %v3240_v32, %v10636_v11  ;;  %v3269_v11 = vsel %vm10135_vm11, %v3264_v48, %v10643_v1  ;;  %v3374_v42 = vrot.slane %v3372_v4, 5  ;;  %v9189_v1 = vrot.slane %v3748_v7, 9 }
 0x1d1   : > { %2063 = vst.msk [vmem:[#allocation3 + $0xc] sm:$0xf] %vm2059_vm7, %v1970_v29  ;;  %v3844_v29 = vsel %vm10121_vm8, %v9188_v51, %v3843_v13  ;;  %v3874_v48 = vrot.slane %v3759_v17, 5 }
 0x1d2   : > { %v1789_v53 = vpop.permute.xlu1 %1788  ;;  %3073 = vrot.lane.b32.xlu0 %v3000_v16, %s9926_s29  ;;  %v3871_v16 = vrot.slane %v10919_v60, 5  ;;  %v3375_v46 = vsel %vm10135_vm11, %v3370_v30, %v3374_v42  ;;  %v1903_v30 = vld [vmem:[#allocation2 + $0x24] sm:$0xf]  ;;  %v2195_v42 = vor.u32 %v2194_v45, %v2191_v49 }
 0x1d4   : > { %3616 = vrot.lane.b32.xlu1 %v3245_v34, %s9927_s5  ;;  %v2527_v62 = vpop.permute.xlu0 %2526  ;;  %v2101_v34 = vld [vmem:[#allocation2 + $0x30] sm:$0xf]  ;;  %v3873_v13 = vrot.slane %v3871_v16, 4 }
 0x1d5   : > { %2622 = vst.msk [vmem:[#allocation3 + $0x4] sm:$0xf] %vm2620_vm9, %v2527_v62  ;;  %v3762_v62 = vld [vmem:[#allocation2 + $0x5c] sm:$0x1]  ;;  %v2213_v4 = vshrl.u32 %v2101_v34, 16 }
 0x1d6   : > { %v1479_v6 = vpop.permute.xlu1 %1478  ;;  %3077 = vrot.lane.b32.xlu0 %v3002_v52, %s9926_s29  ;;  %v3878_v52 = vrot.slane %v10931_v3, 5  ;;  %v3881_v7 = vrot.slane %v3762_v62, 5  ;;  %v3875_v31 = vsel %vm10121_vm8, %v3873_v13, %v3874_v48  ;;  %v2112_v13 = vld [vmem:[#allocation2 + $0x5c] sm:$0x1]  ;;  %v1905_v48 = vld [vmem:[#allocation2 + $0x30] sm:$0xf] }
 0x1d7   : > { %1551 = vst.msk [vmem:[#allocation3 + $0x60] sm:$0xf] %vm1526_vm1, %v1479_v6  ;;  %v2216_v6 = vshll.u32 %v2101_v34, 16  ;;  %v2196_v62 = vrot.slane %v2195_v42, 4  ;;  %v2304_v45 = vshll.u32 %v2112_v13, 16 }
 0x1d8   : > { %3620 = vrot.lane.b32.xlu1 %v3269_v11, %s9927_s5  ;;  %v2531_v21 = vpop.permute.xlu0 %2530  ;;  %v3880_v51 = vrot.slane %v3878_v52, 4 }
 0x1d9   : > { %2624 = vst.msk [vmem:[#allocation3 + $0xc] sm:$0xf] %vm2620_vm9, %v2531_v21  ;;  %v2298_v21 = vshrl.u32 %v2111_v27, 16 }
 0x1da   : > { %v1449_v32 = vpop.permute.xlu1 %1448  ;;  %3634 = vrot.lane.b32.xlu0 %v3351_v43, %s9927_s5  ;;  %v2114_v43 = vld [vmem:[#allocation2 + $0x64] sm:$0xf] }
 0x1db   : > { %1536 = vst.msk [vmem:[#allocation3 + $0x24] sm:$0xf] %vm1526_vm1, %v1449_v32  ;;  %v2215_v32 = vrot.slane %v2213_v4, 4  ;;  %v2300_v63 = vrot.slane %v2298_v21, 4  ;;  %v2322_v34 = vshrl.u32 %v2114_v43, 16 }
 0x1dc   : > { %1876 = vst.msk [vmem:[#allocation3 + $0x24] sm:$0xf] %vm1866_vm6, %v1789_v53  ;;  %3953 = vrot.lane.b32.xlu1 %v3844_v29, %s9928_s6  ;;  %v2864_v15 = vpop.permute.xlu0 %2863  ;;  %v3851_v53 = vsel %vm10121_vm8, %v9189_v1, %v3850_v25  ;;  %v2294_v25 = vshll.u32 %v2111_v27, 16  ;;  %v2218_v1 = vrot.slane %v2216_v6, 5  ;;  %v3882_v29 = vsel %vm10121_vm8, %v3880_v51, %v3881_v7  ;;  %v1912_v27 = vld [vmem:[#allocation2 + $0x58] sm:$0xf] }
 0x1dd   : > { %2959 = vst.msk [vmem:[#allocation3 + $0x4] sm:$0xf] %vm2957_vm10, %v2864_v15  ;;  %v2318_v15 = vshll.u32 %v2114_v43, 16  ;;  %v2324_v6 = vrot.slane %v2322_v34, 4  ;;  %v2115_v51 = vld [vmem:[#allocation2 + $0x68] sm:$0x1] }
 0x1de   : > { %v1481_v58 = vpop.permute.xlu1 %1480  ;;  %3638 = vrot.lane.b32.xlu0 %v3375_v46, %s9927_s5  ;;  %v10959_v24 = vrot.slane %v2294_v25, 5  ;;  %v2659_v25 = vld [vmem:[#allocation2 + $0x24] sm:$0xe]  ;;  %v2306_v43 = vrot.slane %v2304_v45, 5  ;;  %v2328_v42 = vshll.u32 %v2115_v51, 16 }
 0x1df   : > { %1552 = vst.msk [vmem:[#allocation3 + $0x64] sm:$0xf] %vm1526_vm1, %v1481_v58  ;;  %v2219_v58 = vor.u32 %v2218_v1, %v2215_v32  ;;  %v10968_v4 = vrot.slane %v2318_v15, 5  ;;  %v1914_v21 = vld [vmem:[#allocation2 + $0x64] sm:$0xf]  ;;  %v9174_v1 = vrot.slane %v2659_v25, 9 }
 0x1e0   : > { %3957 = vrot.lane.b32.xlu1 %v3851_v53, %s9928_s6  ;;  %v2868_v11 = vpop.permute.xlu0 %2867  ;;  %v2301_v49 = vor.u32 %v2300_v63, %v10959_v24  ;;  %v10983_v63 = vld [vmem:[#allocation2 + $0x58] sm:$0xf]  ;;  %v3190_v15 = vld [vmem:[#allocation2 + $0x30] sm:$0xf]  ;;  %v2330_v13 = vrot.slane %v2328_v42, 5 }
 0x1e1   : > { %2961 = vst.msk [vmem:[#allocation3 + $0xc] sm:$0xf] %vm2957_vm10, %v2868_v11  ;;  %v2220_v7 = vrot.slane %v2219_v58, 4  ;;  %v2766_v58 = vsel %vm10121_vm8, %v9174_v1, %v2765_v40  ;;  %v3284_v45 = vshll.u32 %v3190_v15, 16  ;;  %v3193_v51 = vld [vmem:[#allocation2 + $0x3c] sm:$0xf] }
 0x1e2   : > { %v1813_v59 = vpop.permute.xlu1 %1812  ;;  %3971 = vrot.lane.b32.xlu0 %v3875_v31, %s9928_s6  ;;  %v3308_v42 = vshll.u32 %v3193_v51, 16 }
 0x1e3   : > { %1888 = vst.msk [vmem:[#allocation3 + $0x54] sm:$0xf] %vm1866_vm6, %v1813_v59  ;;  %v2302_v59 = vrot.slane %v2301_v49, 4  ;;  %v3281_v49 = vshrl.u32 %v3190_v15, 16  ;;  %v3206_v15 = vld [vmem:[#allocation2 + $0x70] sm:$0xf] }
 0x1e4   : > { %1971 = vrot.lane.b32.xlu1 %v1903_v30, %s9923_s25  ;;  %v3058_v17 = vpop.permute.xlu0 %3057  ;;  %v2325_v30 = vor.u32 %v2324_v6, %v10968_v4 }
 0x1e5   : > { %3153 = vst.msk [vmem:[#allocation3 + $0x4] sm:$0xf] %vm3151_vm12, %v3058_v17  ;;  %v2662_v17 = vld [vmem:[#allocation2 + $0x30] sm:$0xe]  ;;  %v2307_v34 = vsel %vm10135_vm11, %v2302_v59, %v2306_v43  ;;  %v3283_v59 = vrot.slane %v3281_v49, 4  ;;  %v3286_v43 = vrot.slane %v3284_v45, 5 }
 0x1e6   : > { %v1451_v46 = vpop.permute.xlu1 %1450  ;;  %3975 = vrot.lane.b32.xlu0 %v3882_v29, %s9928_s6  ;;  %v3410_v45 = vshll.u32 %v3206_v15, 16 }
 0x1e7   : > { %1537 = vst.msk [vmem:[#allocation3 + $0x28] sm:$0xf] %vm1526_vm1, %v1451_v46  ;;  %v2326_v46 = vrot.slane %v2325_v30, 4  ;;  %v3305_v30 = vshrl.u32 %v3193_v51, 16 }
 0x1e8   : > { %1877 = vst.msk [vmem:[#allocation3 + $0x28] sm:$0xf] %vm1866_vm6, %v10784_v57  ;;  %1975 = vrot.lane.b32.xlu1 %v1905_v48, %s9923_s25  ;;  %v3062_v53 = vpop.permute.xlu0 %3061  ;;  %v2201_v57 = vsel %vm10135_vm11, %v2196_v62, %v10695_v2  ;;  %v2225_v2 = vsel %vm10135_vm11, %v2220_v7, %v10705_v47  ;;  %v9175_v47 = vrot.slane %v2662_v17, 9  ;;  %v2673_v62 = vld [vmem:[#allocation2 + $0x5c] sm:$0x1] }
 0x1e9   : > { %3155 = vst.msk [vmem:[#allocation3 + $0xc] sm:$0xf] %vm3151_vm12, %v3062_v53  ;;  %v2793_v53 = vrot.slane %v10983_v63, 5  ;;  %v2331_v5 = vsel %vm10135_vm11, %v2326_v46, %v2330_v13  ;;  %v2676_v7 = vld [vmem:[#allocation2 + $0x68] sm:$0x1]  ;;  %v3287_v46 = vor.u32 %v3286_v43, %v3283_v59  ;;  %v3307_v13 = vrot.slane %v3305_v30, 4 }
 0x1ea   : > { %v1793_v11 = vpop.permute.xlu1 %1792  ;;  %1989 = vrot.lane.b32.xlu0 %v1912_v27, %s9923_s25  ;;  %v10995_v27 = vld [vmem:[#allocation2 + $0x64] sm:$0xf]  ;;  %v2803_v1 = vrot.slane %v2676_v7, 5  ;;  %v11035_v59 = vrot.slane %v3410_v45, 5 }
 0x1eb   : > { %v2795_v40 = vrot.slane %v2793_v53, 4  ;;  %v2800_v25 = vrot.slane %v10995_v27, 5 }
 0x1ec   : > { %2532 = vrot.lane.b32.xlu1 %v2201_v57, %s9924_s27  ;;  %v3619_v31 = vpop.permute.xlu0 %3618  ;;  %v2796_v57 = vrot.slane %v2673_v62, 5 }
 0x1ed   : > { %3714 = vst.msk [vmem:[#allocation3 + $0x4] sm:$0xf] %vm3712_vm13, %v3619_v31 }
 0x1ee   : > { %v1483_v32 = vpop.permute.xlu1 %1482  ;;  %1993 = vrot.lane.b32.xlu0 %v1914_v21, %s9923_s25  ;;  %v3203_v21 = vld [vmem:[#allocation2 + $0x64] sm:$0xf]  ;;  %v2797_v50 = vsel %vm10121_vm8, %v2795_v40, %v2796_v57  ;;  %v2997_v40 = vld [vmem:[#allocation2 + $0x3c] sm:$0xf]  ;;  %v3288_v57 = vrot.slane %v3287_v46, 4 }
 0x1ef   : > { %1553 = vst.msk [vmem:[#allocation3 + $0x68] sm:$0xf] %vm1526_vm1, %v1483_v32  ;;  %v3390_v17 = vshrl.u32 %v3203_v21, 16 }
 0x1f0   : > { %2536 = vrot.lane.b32.xlu1 %v2225_v2, %s9924_s27  ;;  %v3623_v29 = vpop.permute.xlu0 %3622  ;;  %v2802_v2 = vrot.slane %v2800_v25, 4 }
 0x1f1   : > { %3716 = vst.msk [vmem:[#allocation3 + $0xc] sm:$0xf] %vm3712_vm13, %v3623_v29  ;;  %v3392_v49 = vrot.slane %v3390_v17, 4 }
 0x1f2   : > { %v1453_v48 = vpop.permute.xlu1 %1452  ;;  %2550 = vrot.lane.b32.xlu0 %v2307_v34, %s9924_s27  ;;  %v2995_v34 = vld [vmem:[#allocation2 + $0x30] sm:$0xf]  ;;  %v2804_v62 = vsel %vm10121_vm8, %v2802_v2, %v2803_v1 }
 0x1f3   : > { %1538 = vst.msk [vmem:[#allocation3 + $0x2c] sm:$0xf] %vm1526_vm1, %v1453_v48  ;;  %v3310_v48 = vrot.slane %v3308_v42, 5  ;;  %v3293_v42 = vsel %vm10135_vm11, %v3288_v57, %v10768_v39  ;;  %v3751_v2 = vld [vmem:[#allocation2 + $0x30] sm:$0xe] }
 0x1f4   : > { %1878 = vst.msk [vmem:[#allocation3 + $0x2c] sm:$0xf] %vm1866_vm6, %v1793_v11  ;;  %2869 = vrot.lane.b32.xlu1 %v2766_v58, %s9925_s28  ;;  %v3956_v6 = vpop.permute.xlu0 %3955  ;;  %v2773_v11 = vsel %vm10121_vm8, %v9175_v47, %v2772_v37  ;;  %v3386_v37 = vshll.u32 %v3203_v21, 16  ;;  %v9190_v46 = vrot.slane %v3751_v2, 9  ;;  %v3765_v57 = vld [vmem:[#allocation2 + $0x68] sm:$0x1] }
 0x1f5   : > { %4051 = vst.msk [vmem:[#allocation3 + $0x4] sm:$0xf] %vm4049_vm14, %v3956_v6  ;;  %v3414_v6 = vshrl.u32 %v3206_v15, 16  ;;  %v2117_v2 = vld [vmem:[#allocation2 + $0x70] sm:$0xf] }
 0x1f6   : > { %4084 = vst.msk [vmem:[#allocation3 + $0x4] sm:$0xf] %vm4082_vm15, %v14428_v8  ;;  %v1485_v31 = vpop.permute.xlu1 %1484  ;;  %2554 = vrot.lane.b32.xlu0 %v2331_v5, %s9924_s27  ;;  %v11029_v58 = vrot.slane %v3386_v37, 5  ;;  %v3204_v5 = vld [vmem:[#allocation2 + $0x68] sm:$0x1] }
 0x1f7   : > { %1554 = vst.msk [vmem:[#allocation3 + $0x6c] sm:$0xf] %vm1526_vm1, %v1485_v31  ;;  %v3004_v31 = vld [vmem:[#allocation2 + $0x64] sm:$0xf]  ;;  %v3396_v21 = vshll.u32 %v3204_v5, 16  ;;  %v3416_v43 = vrot.slane %v3414_v6, 4 }
 0x1f8   : > { %2873 = vrot.lane.b32.xlu1 %v2773_v11, %s9925_s28  ;;  %v3960_v32 = vpop.permute.xlu0 %3959  ;;  %v3393_v11 = vor.u32 %v3392_v49, %v11029_v58  ;;  %v3006_v37 = vld [vmem:[#allocation2 + $0x70] sm:$0xf]  ;;  %v2104_v49 = vld [vmem:[#allocation2 + $0x3c] sm:$0xf] }
 0x1f9   : > { %4053 = vst.msk [vmem:[#allocation3 + $0xc] sm:$0xf] %vm4049_vm14, %v3960_v32  ;;  %v3417_v15 = vor.u32 %v3416_v43, %v11035_v59  ;;  %v2107_v43 = vld [vmem:[#allocation2 + $0x48] sm:$0xf] }
 0x1fa   : > { %4086 = vst.msk [vmem:[#allocation3 + $0xc] sm:$0xf] %vm4082_vm15, %v14428_v8  ;;  %v1455_v29 = vpop.permute.xlu1 %1454  ;;  %2887 = vrot.lane.b32.xlu0 %v2797_v50, %s9925_s28  ;;  %v3207_v50 = vld [vmem:[#allocation2 + $0x74] sm:$0x1]  ;;  %v3394_v17 = vrot.slane %v3393_v11, 4  ;;  %v2240_v11 = vshll.u32 %v2104_v49, 16 }
 0x1fb   : > { %1539 = vst.msk [vmem:[#allocation3 + $0x30] sm:$0xf] %vm1526_vm1, %v1455_v29  ;;  %v3398_v29 = vrot.slane %v3396_v21, 5  ;;  %v3418_v6 = vrot.slane %v3417_v15, 4 }
 0x1fc   : > { %1879 = vst.msk [vmem:[#allocation3 + $0x30] sm:$0xf] %vm1866_vm6, %v10823_v18  ;;  %3063 = vrot.lane.b32.xlu1 %v2995_v34, %s9926_s29  ;;  %v1974_v47 = vpop.permute.xlu0 %1973  ;;  %v3311_v18 = vor.u32 %v3310_v48, %v3307_v13  ;;  %v3420_v13 = vshll.u32 %v3207_v50, 16  ;;  %v3754_v48 = vld [vmem:[#allocation2 + $0x3c] sm:$0xe] }
 0x1fd   : > { %2065 = vst.msk [vmem:[#allocation3 + $0x14] sm:$0xf] %vm2059_vm7, %v1974_v47  ;;  %v3399_v45 = vsel %vm10135_vm11, %v3394_v17, %v3398_v29  ;;  %v2261_v17 = vshrl.u32 %v2107_v43, 16  ;;  %v2264_v29 = vshll.u32 %v2107_v43, 16 }
 0x1fe   : > { %v1797_v51 = vpop.permute.xlu1 %1796  ;;  %2891 = vrot.lane.b32.xlu0 %v2804_v62, %s9925_s28  ;;  %v3312_v32 = vrot.slane %v3311_v18, 4  ;;  %v11052_v62 = vld [vmem:[#allocation2 + $0x64] sm:$0xf]  ;;  %v3422_v18 = vrot.slane %v3420_v13, 5 }
 0x200   : > { %3067 = vrot.lane.b32.xlu1 %v2997_v40, %s9926_s29  ;;  %v1978_v7 = vpop.permute.xlu0 %1977  ;;  %v3317_v39 = vsel %vm10135_vm11, %v3312_v32, %v10777_v41  ;;  %v3858_v41 = vsel %vm10121_vm8, %v9190_v46, %v3857_v56  ;;  %v9191_v40 = vrot.slane %v3754_v48, 9  ;;  %v3423_v56 = vsel %vm10135_vm11, %v3418_v6, %v3422_v18  ;;  %v2120_v48 = vld [vmem:[#allocation2 + $0x7c] sm:$0xf] }
 0x201   : > { %2067 = vst.msk [vmem:[#allocation3 + $0x1c] sm:$0xf] %vm2059_vm7, %v1978_v7  ;;  %v3885_v7 = vrot.slane %v11052_v62, 5  ;;  %v2342_v46 = vshll.u32 %v2117_v2, 16  ;;  %v2266_v6 = vrot.slane %v2264_v29, 5  ;;  %v2366_v18 = vshll.u32 %v2120_v48, 16 }
 0x202   : > { %v1457_v30 = vpop.permute.xlu1 %1456  ;;  %3081 = vrot.lane.b32.xlu0 %v3004_v31, %s9926_s29  ;;  %v2237_v31 = vshrl.u32 %v2104_v49, 16 }
 0x203   : > { %1540 = vst.msk [vmem:[#allocation3 + $0x34] sm:$0xf] %vm1526_vm1, %v1457_v30  ;;  %v3887_v30 = vrot.slane %v3885_v7, 4 }
 0x204   : > { %1880 = vst.msk [vmem:[#allocation3 + $0x34] sm:$0xf] %vm1866_vm6, %v1797_v51  ;;  %3624 = vrot.lane.b32.xlu1 %v3293_v42, %s9927_s5  ;;  %v2535_v1 = vpop.permute.xlu0 %2534  ;;  %v11057_v51 = vld [vmem:[#allocation2 + $0x70] sm:$0xf]  ;;  %v3888_v42 = vrot.slane %v3765_v57, 5  ;;  %v2239_v50 = vrot.slane %v2237_v31, 4 }
 0x205   : > { %2626 = vst.msk [vmem:[#allocation3 + $0x14] sm:$0xf] %vm2620_vm9, %v2535_v1  ;;  %v3892_v44 = vrot.slane %v11057_v51, 5  ;;  %v3768_v1 = vld [vmem:[#allocation2 + $0x74] sm:$0x1]  ;;  %v2370_v31 = vshrl.u32 %v2120_v48, 16 }
 0x206   : > { %v1489_v34 = vpop.permute.xlu1 %1488  ;;  %3085 = vrot.lane.b32.xlu0 %v3006_v37, %s9926_s29  ;;  %v2242_v37 = vrot.slane %v2240_v11, 5  ;;  %v3889_v61 = vsel %vm10121_vm8, %v3887_v30, %v3888_v42  ;;  %v3895_v13 = vrot.slane %v3768_v1, 5  ;;  %v2118_v42 = vld [vmem:[#allocation2 + $0x74] sm:$0x1] }
 0x207   : > { %1556 = vst.msk [vmem:[#allocation3 + $0x74] sm:$0xf] %vm1526_vm1, %v1489_v34  ;;  %v3894_v34 = vrot.slane %v3892_v44, 4  ;;  %v2372_v1 = vrot.slane %v2370_v31, 4 }
 0x208   : > { %3628 = vrot.lane.b32.xlu1 %v3317_v39, %s9927_s5  ;;  %v2539_v47 = vpop.permute.xlu0 %2538  ;;  %v2346_v39 = vshrl.u32 %v2117_v2, 16  ;;  %v2243_v49 = vor.u32 %v2242_v37, %v2239_v50  ;;  %v11100_v2 = vrot.slane %v2366_v18, 5  ;;  %v2121_v37 = vld [vmem:[#allocation2 + $0x80] sm:$0x1] }
 0x209   : > { %2628 = vst.msk [vmem:[#allocation3 + $0x1c] sm:$0xf] %vm2620_vm9, %v2539_v47  ;;  %v1907_v47 = vld [vmem:[#allocation2 + $0x3c] sm:$0xf] }
 0x20a   : > { %v1459_v5 = vpop.permute.xlu1 %1458  ;;  %3642 = vrot.lane.b32.xlu0 %v3399_v45, %s9927_s5  ;;  %v2263_v45 = vrot.slane %v2261_v17, 4  ;;  %v2348_v57 = vrot.slane %v2346_v39, 4  ;;  %v2244_v43 = vrot.slane %v2243_v49, 4 }
 0x20b   : > { %1541 = vst.msk [vmem:[#allocation3 + $0x38] sm:$0xf] %vm1526_vm1, %v1459_v5 }
 0x20c   : > { %1881 = vst.msk [vmem:[#allocation3 + $0x38] sm:$0xf] %vm1866_vm6, %v10845_v54  ;;  %3961 = vrot.lane.b32.xlu1 %v3858_v41, %s9928_s6  ;;  %v2872_v21 = vpop.permute.xlu0 %2871  ;;  %v3865_v54 = vsel %vm10121_vm8, %v9191_v40, %v3864_v14  ;;  %v3896_v41 = vsel %vm10121_vm8, %v3894_v34, %v3895_v13  ;;  %v11093_v40 = vrot.slane %v2342_v46, 5  ;;  %v2249_v17 = vsel %vm10135_vm11, %v2244_v43, %v10829_v55  ;;  %v1918_v46 = vld [vmem:[#allocation2 + $0x7c] sm:$0xf] }
 0x20d   : > { %2963 = vst.msk [vmem:[#allocation3 + $0x14] sm:$0xf] %vm2957_vm10, %v2872_v21  ;;  %v1909_v21 = vld [vmem:[#allocation2 + $0x48] sm:$0xf]  ;;  %v2376_v13 = vshll.u32 %v2121_v37, 16 }
 0x20e   : > { %v1801_v32 = vpop.permute.xlu1 %1800  ;;  %3646 = vrot.lane.b32.xlu0 %v3423_v56, %s9927_s5  ;;  %v2267_v56 = vor.u32 %v2266_v6, %v2263_v45  ;;  %v11113_v55 = vld [vmem:[#allocation2 + $0x70] sm:$0xf]  ;;  %v2668_v45 = vld [vmem:[#allocation2 + $0x48] sm:$0xe]  ;;  %v2679_v43 = vld [vmem:[#allocation2 + $0x74] sm:$0x1] }
 0x20f   : > { %v2378_v18 = vrot.slane %v2376_v13, 5  ;;  %v2807_v31 = vrot.slane %v11113_v55, 5 }
 0x210   : > { %3965 = vrot.lane.b32.xlu1 %v3865_v54, %s9928_s6  ;;  %v2876_v15 = vpop.permute.xlu0 %2875  ;;  %v2349_v54 = vor.u32 %v2348_v57, %v11093_v40  ;;  %v2268_v29 = vrot.slane %v2267_v56, 4  ;;  %v11129_v56 = vld [vmem:[#allocation2 + $0x7c] sm:$0xf] }
 0x211   : > { %2965 = vst.msk [vmem:[#allocation3 + $0x1c] sm:$0xf] %vm2957_vm10, %v2876_v15  ;;  %v2352_v15 = vshll.u32 %v2118_v42, 16  ;;  %v2809_v28 = vrot.slane %v2807_v31, 4 }
 0x212   : > { %v1461_v14 = vpop.permute.xlu1 %1460  ;;  %3979 = vrot.lane.b32.xlu0 %v3889_v61, %s9928_s6  ;;  %v2665_v61 = vld [vmem:[#allocation2 + $0x3c] sm:$0xe]  ;;  %v2350_v39 = vrot.slane %v2349_v54, 4  ;;  %v3199_v54 = vld [vmem:[#allocation2 + $0x54] sm:$0xf] }
 0x213   : > { %1542 = vst.msk [vmem:[#allocation3 + $0x3c] sm:$0xf] %vm1526_vm1, %v1461_v14  ;;  %v2373_v14 = vor.u32 %v2372_v1, %v11100_v2  ;;  %v9176_v49 = vrot.slane %v2665_v61, 9 }
 0x214   : > { %1882 = vst.msk [vmem:[#allocation3 + $0x3c] sm:$0xf] %vm1866_vm6, %v1801_v32  ;;  %1979 = vrot.lane.b32.xlu1 %v1907_v47, %s9923_s25  ;;  %v3066_v5 = vpop.permute.xlu0 %3065  ;;  %v1916_v32 = vld [vmem:[#allocation2 + $0x70] sm:$0xf]  ;;  %v2354_v47 = vrot.slane %v2352_v15, 5 }
 0x215   : > { %3157 = vst.msk [vmem:[#allocation3 + $0x14] sm:$0xf] %vm3151_vm12, %v3066_v5  ;;  %v3196_v5 = vld [vmem:[#allocation2 + $0x48] sm:$0xf]  ;;  %v2374_v57 = vrot.slane %v2373_v14, 4 }
 0x216   : > { %v1493_v11 = vpop.permute.xlu1 %1492  ;;  %3983 = vrot.lane.b32.xlu0 %v3896_v41, %s9928_s6  ;;  %v2355_v41 = vsel %vm10135_vm11, %v2350_v39, %v2354_v47  ;;  %v3332_v42 = vshll.u32 %v3196_v5, 16  ;;  %v3209_v15 = vld [vmem:[#allocation2 + $0x7c] sm:$0xf]  ;;  %v3356_v39 = vshll.u32 %v3199_v54, 16 }
 0x217   : > { %1558 = vst.msk [vmem:[#allocation3 + $0x7c] sm:$0xf] %vm1526_vm1, %v1493_v11  ;;  %v2379_v1 = vsel %vm10135_vm11, %v2374_v57, %v2378_v18 }
 0x218   : > { %1983 = vrot.lane.b32.xlu1 %v1909_v21, %s9923_s25  ;;  %v3070_v30 = vpop.permute.xlu0 %3069  ;;  %v2780_v21 = vsel %vm10121_vm8, %v9176_v49, %v2779_v12  ;;  %v2682_v12 = vld [vmem:[#allocation2 + $0x80] sm:$0x1]  ;;  %v3334_v61 = vrot.slane %v3332_v42, 5  ;;  %v3212_v49 = vld [vmem:[#allocation2 + $0x88] sm:$0xf] }
 0x219   : > { %3159 = vst.msk [vmem:[#allocation3 + $0x1c] sm:$0xf] %vm3151_vm12, %v3070_v30  ;;  %v3329_v30 = vshrl.u32 %v3196_v5, 16  ;;  %v2817_v38 = vrot.slane %v2682_v12, 5  ;;  %v3210_v42 = vld [vmem:[#allocation2 + $0x80] sm:$0x1] }
 0x21a   : > { %v1463_v50 = vpop.permute.xlu1 %1462  ;;  %1997 = vrot.lane.b32.xlu0 %v1916_v32, %s9923_s25  ;;  %v3008_v12 = vld [vmem:[#allocation2 + $0x7c] sm:$0xf] }
 0x21b   : > { %1543 = vst.msk [vmem:[#allocation3 + $0x40] sm:$0xf] %vm1526_vm1, %v1463_v50 }
 0x21c   : > { %1883 = vst.msk [vmem:[#allocation3 + $0x40] sm:$0xf] %vm1866_vm6, %v10870_v23  ;;  %2540 = vrot.lane.b32.xlu1 %v2249_v17, %s9924_s27  ;;  %v3627_v34 = vpop.permute.xlu0 %3626  ;;  %v2273_v23 = vsel %vm10135_vm11, %v2268_v29, %v10838_v35  ;;  %v9177_v35 = vrot.slane %v2668_v45, 9  ;;  %v2810_v17 = vrot.slane %v2679_v43, 5  ;;  %v2814_v29 = vrot.slane %v11129_v56, 5 }
 0x21d   : > { %3718 = vst.msk [vmem:[#allocation3 + $0x14] sm:$0xf] %vm3712_vm13, %v3627_v34  ;;  %v3331_v34 = vrot.slane %v3329_v30, 4  ;;  %v2999_v45 = vld [vmem:[#allocation2 + $0x48] sm:$0xf]  ;;  %v3462_v43 = vshrl.u32 %v3212_v49, 16 }
 0x21e   : > { %v1805_v48 = vpop.permute.xlu1 %1804  ;;  %2001 = vrot.lane.b32.xlu0 %v1918_v46, %s9923_s25  ;;  %v2787_v37 = vsel %vm10121_vm8, %v9177_v35, %v2786_v36  ;;  %v3353_v46 = vshrl.u32 %v3199_v54, 16  ;;  %v2816_v13 = vrot.slane %v2814_v29, 4  ;;  %v2811_v36 = vsel %vm10121_vm8, %v2809_v28, %v2810_v17 }
 0x220   : > { %2544 = vrot.lane.b32.xlu1 %v2273_v23, %s9924_s27  ;;  %v3631_v6 = vpop.permute.xlu0 %3630  ;;  %v3438_v23 = vshrl.u32 %v3209_v15, 16  ;;  %v3355_v5 = vrot.slane %v3353_v46, 4  ;;  %v2818_v18 = vsel %vm10121_vm8, %v2816_v13, %v2817_v38  ;;  %v3757_v13 = vld [vmem:[#allocation2 + $0x48] sm:$0xe] }
 0x221   : > { %3720 = vst.msk [vmem:[#allocation3 + $0x1c] sm:$0xf] %vm3712_vm13, %v3631_v6  ;;  %v3335_v6 = vor.u32 %v3334_v61, %v3331_v34  ;;  %v3213_v61 = vld [vmem:[#allocation2 + $0x8c] sm:$0x1]  ;;  %v3010_v38 = vld [vmem:[#allocation2 + $0x88] sm:$0xf] }
 0x222   : > { %v1465_v11 = vpop.permute.xlu1 %1464  ;;  %2558 = vrot.lane.b32.xlu0 %v2355_v41, %s9924_s27  ;;  %v3358_v41 = vrot.slane %v3356_v39, 5  ;;  %v3440_v35 = vrot.slane %v3438_v23, 4 }
 0x223   : > { %1544 = vst.msk [vmem:[#allocation3 + $0x44] sm:$0xf] %vm1526_vm1, %v1465_v11  ;;  %v3336_v54 = vrot.slane %v3335_v6, 4  ;;  %v3760_v6 = vld [vmem:[#allocation2 + $0x54] sm:$0xe]  ;;  %vm7225_vm1 = vcmask 388416  }
 0x224   : > { %1884 = vst.msk [vmem:[#allocation3 + $0x44] sm:$0xf] %vm1866_vm6, %v1805_v48  ;;  %2877 = vrot.lane.b32.xlu1 %v2780_v21, %s9925_s28  ;;  %v3964_v32 = vpop.permute.xlu0 %3963  ;;  %v3434_v48 = vshll.u32 %v3209_v15, 16  ;;  %v3458_v21 = vshll.u32 %v3212_v49, 16  ;;  %v3464_v15 = vrot.slane %v3462_v43, 4 }
 0x225   : > { %4055 = vst.msk [vmem:[#allocation3 + $0x14] sm:$0xf] %vm4049_vm14, %v3964_v32  ;;  %v3001_v32 = vld [vmem:[#allocation2 + $0x54] sm:$0xf]  ;;  %v3341_v46 = vsel %vm10135_vm11, %v3336_v54, %v10895_v20  ;;  %v11196_v54 = vld [vmem:[#allocation2 + $0x88] sm:$0xf] }
 0x226   : > { %4088 = vst.msk [vmem:[#allocation3 + $0x14] sm:$0xf] %vm4082_vm15, %v14428_v8  ;;  %v1964_v50 = vpop.permute.xlu1 %1963  ;;  %2562 = vrot.lane.b32.xlu0 %v2379_v1, %s9924_s27  ;;  %v11161_v11 = vrot.slane %v3434_v48, 5  ;;  %v3359_v1 = vor.u32 %v3358_v41, %v3355_v5  ;;  %v11168_v17 = vrot.slane %v3458_v21, 5  ;;  %v11184_v41 = vld [vmem:[#allocation2 + $0x7c] sm:$0xf] }
 0x227   : > { %2060 = vst.msk [vmem:[#allocation3] sm:$0xf] %vm2059_vm7, %v1964_v50 }
 0x228   : > { %2881 = vrot.lane.b32.xlu1 %v2787_v37, %s9925_s28  ;;  %v3968_v14 = vpop.permute.xlu0 %3967  ;;  %v3441_v50 = vor.u32 %v3440_v35, %v11161_v11  ;;  %v3444_v37 = vshll.u32 %v3210_v42, 16  ;;  %v3360_v39 = vrot.slane %v3359_v1, 4  ;;  %v3465_v23 = vor.u32 %v3464_v15, %v11168_v17 }
 0x229   : > { %4057 = vst.msk [vmem:[#allocation3 + $0x1c] sm:$0xf] %vm4049_vm14, %v3968_v14 }
 0x22a   : > { %4090 = vst.msk [vmem:[#allocation3 + $0x1c] sm:$0xf] %vm4082_vm15, %v14428_v8  ;;  %v1968_v47 = vpop.permute.xlu1 %1967  ;;  %2895 = vrot.lane.b32.xlu0 %v2811_v36, %s9925_s28  ;;  %v3442_v36 = vrot.slane %v3441_v50, 4  ;;  %v3446_v48 = vrot.slane %v3444_v37, 5  ;;  %v3365_v20 = vsel %vm10135_vm11, %v3360_v39, %v10904_v9  ;;  %v3466_v35 = vrot.slane %v3465_v23, 4 }
 0x22b   : > { %2062 = vst.msk [vmem:[#allocation3 + $0x8] sm:$0xf] %vm2059_vm7, %v1968_v47  ;;  %v3468_v47 = vshll.u32 %v3213_v61, 16  ;;  %v3771_v9 = vld [vmem:[#allocation2 + $0x80] sm:$0x1] }
 0x22c   : > { %3071 = vrot.lane.b32.xlu1 %v2999_v45, %s9926_s29  ;;  %v1982_v57 = vpop.permute.xlu0 %1981  ;;  %v9192_v45 = vrot.slane %v3757_v13, 9  ;;  %v2113_v50 = vld [vmem:[#allocation2 + $0x60] sm:$0xf]  ;;  %v3902_v15 = vrot.slane %v3771_v9, 5  ;;  %v2122_v39 = vld [vmem:[#allocation2 + $0x84] sm:$0xf] }
 0x22d   : > { %2069 = vst.msk [vmem:[#allocation3 + $0x24] sm:$0xf] %vm2059_vm7, %v1982_v57  ;;  %v2110_v57 = vld [vmem:[#allocation2 + $0x54] sm:$0xf]  ;;  %v3470_v21 = vrot.slane %v3468_v47, 5 }
 0x22e   : > { %v2525_v30 = vpop.permute.xlu1 %2524  ;;  %2899 = vrot.lane.b32.xlu0 %v2818_v18, %s9925_s28  ;;  %v3447_v18 = vsel %vm10135_vm11, %v3442_v36, %v3446_v48  ;;  %v3872_v42 = vsel %vm10121_vm8, %v9192_v45, %v3871_v16  ;;  %v2285_v1 = vshrl.u32 %v2110_v57, 16  ;;  %v3774_v16 = vld [vmem:[#allocation2 + $0x8c] sm:$0x1]  ;;  %v2312_v36 = vshll.u32 %v2113_v50, 16  ;;  %v2125_v45 = vld [vmem:[#allocation2 + $0x90] sm:$0xf] }
 0x22f   : > { %2621 = vst.msk [vmem:[#allocation3] sm:$0xf] %vm2620_vm9, %v2525_v30  ;;  %v9193_v30 = vrot.slane %v3760_v6, 9  ;;  %v3471_v37 = vsel %vm10135_vm11, %v3466_v35, %v3470_v21  ;;  %v3909_v47 = vrot.slane %v3774_v16, 5  ;;  %v1911_v6 = vld [vmem:[#allocation2 + $0x54] sm:$0xf] }
 0x230   : > { %3075 = vrot.lane.b32.xlu1 %v3001_v32, %s9926_s29  ;;  %v1986_v28 = vpop.permute.xlu0 %1985  ;;  %v3899_v32 = vrot.slane %v11184_v41, 5  ;;  %v2405_v9 = vshrl.u32 %v2125_v45, 16 }
 0x231   : > { %2071 = vst.msk [vmem:[#allocation3 + $0x2c] sm:$0xf] %vm2059_vm7, %v1986_v28  ;;  %v2288_v28 = vshll.u32 %v2110_v57, 16  ;;  %v3879_v61 = vsel %vm10121_vm8, %v9193_v30, %v3878_v52  ;;  %v2381_v52 = vshrl.u32 %v2122_v39, 16 }
 0x232   : > { %v2529_v34 = vpop.permute.xlu1 %2528  ;;  %3089 = vrot.lane.b32.xlu0 %v3008_v12, %s9926_s29  ;;  %v3901_v60 = vrot.slane %v3899_v32, 4 }
 0x233   : > { %2623 = vst.msk [vmem:[#allocation3 + $0x8] sm:$0xf] %vm2620_vm9, %v2529_v34  ;;  %v2290_v13 = vrot.slane %v2288_v28, 5  ;;  %v11224_v28 = vld [vmem:[#allocation2 + $0x88] sm:$0xf] }
 0x234   : > { %3632 = vrot.lane.b32.xlu1 %v3341_v46, %s9927_s5  ;;  %v2543_v14 = vpop.permute.xlu0 %2542  ;;  %v3906_v46 = vrot.slane %v11196_v54, 5  ;;  %v3903_v3 = vsel %vm10121_vm8, %v3901_v60, %v3902_v15  ;;  %v1919_v15 = vld [vmem:[#allocation2 + $0x84] sm:$0xf] }
 0x235   : > { %2630 = vst.msk [vmem:[#allocation3 + $0x24] sm:$0xf] %vm2620_vm9, %v2543_v14  ;;  %v2287_v14 = vrot.slane %v2285_v1, 4 }
 0x236   : > { %v2862_v49 = vpop.permute.xlu1 %2861  ;;  %3093 = vrot.lane.b32.xlu0 %v3010_v38, %s9926_s29  ;;  %v2309_v38 = vshrl.u32 %v2113_v50, 16  ;;  %v3908_v23 = vrot.slane %v3906_v46, 4 }
 0x237   : > { %2958 = vst.msk [vmem:[#allocation3] sm:$0xf] %vm2957_vm10, %v2862_v49  ;;  %v2384_v49 = vshll.u32 %v2122_v39, 16 }
 0x238   : > { %3636 = vrot.lane.b32.xlu1 %v3365_v20, %s9927_s5  ;;  %v2547_v5 = vpop.permute.xlu0 %2546  ;;  %v2311_v57 = vrot.slane %v2309_v38, 4  ;;  %v3910_v21 = vsel %vm10121_vm8, %v3908_v23, %v3909_v47  ;;  %v2671_v23 = vld [vmem:[#allocation2 + $0x54] sm:$0xe]  ;;  %v1921_v47 = vld [vmem:[#allocation2 + $0x90] sm:$0xf] }
 0x239   : > { %2632 = vst.msk [vmem:[#allocation3 + $0x2c] sm:$0xf] %vm2620_vm9, %v2547_v5  ;;  %v2291_v5 = vor.u32 %v2290_v13, %v2287_v14  ;;  %v2386_v30 = vrot.slane %v2384_v49, 5  ;;  %v11231_v13 = vld [vmem:[#allocation2 + $0x94] sm:$0xf] }
 0x23a   : > { %v2866_v43 = vpop.permute.xlu1 %2865  ;;  %3650 = vrot.lane.b32.xlu0 %v3447_v18, %s9927_s5  ;;  %v2314_v18 = vrot.slane %v2312_v36, 5 }
 0x23b   : > { %2960 = vst.msk [vmem:[#allocation3 + $0x8] sm:$0xf] %vm2957_vm10, %v2866_v43  ;;  %v2383_v43 = vrot.slane %v2381_v52, 4  ;;  %v2292_v50 = vrot.slane %v2291_v5, 4  ;;  %v2674_v5 = vld [vmem:[#allocation2 + $0x60] sm:$0xe] }
 0x23c   : > { %3969 = vrot.lane.b32.xlu1 %v3872_v42, %s9928_s6  ;;  %v2880_v12 = vpop.permute.xlu0 %2879  ;;  %v2408_v42 = vshll.u32 %v2125_v45, 16 }
 0x23d   : > { %2967 = vst.msk [vmem:[#allocation3 + $0x24] sm:$0xf] %vm2957_vm10, %v2880_v12  ;;  %v1913_v12 = vld [vmem:[#allocation2 + $0x60] sm:$0xf]  ;;  %v2387_v16 = vor.u32 %v2386_v30, %v2383_v43  ;;  %v2297_v38 = vsel %vm10135_vm11, %v2292_v50, %v10959_v24 }
 0x23e   : > { %v3056_v34 = vpop.permute.xlu1 %3055  ;;  %3654 = vrot.lane.b32.xlu0 %v3471_v37, %s9927_s5  ;;  %v2315_v37 = vor.u32 %v2314_v18, %v2311_v57  ;;  %v2410_v39 = vrot.slane %v2408_v42, 5  ;;  %v3202_v18 = vld [vmem:[#allocation2 + $0x60] sm:$0xf]  ;;  %v11257_v42 = vld [vmem:[#allocation2 + $0x88] sm:$0xf] }
 0x23f   : > { %3152 = vst.msk [vmem:[#allocation3] sm:$0xf] %vm3151_vm12, %v3056_v34  ;;  %v2390_v34 = vshll.u32 %v11224_v28, 16  ;;  %v3380_v50 = vshll.u32 %v3202_v18, 16  ;;  %v2821_v63 = vrot.slane %v11257_v42, 5 }
 0x240   : > { %3973 = vrot.lane.b32.xlu1 %v3879_v61, %s9928_s6  ;;  %v2884_v48 = vpop.permute.xlu0 %2883  ;;  %v2407_v61 = vrot.slane %v2405_v9, 4  ;;  %v2316_v36 = vrot.slane %v2315_v37, 4  ;;  %v2683_v9 = vld [vmem:[#allocation2 + $0x84] sm:$0xe] }
 0x241   : > { %2969 = vst.msk [vmem:[#allocation3 + $0x2c] sm:$0xf] %vm2957_vm10, %v2884_v48  ;;  %v11239_v52 = vrot.slane %v2390_v34, 5  ;;  %v2686_v34 = vld [vmem:[#allocation2 + $0x90] sm:$0xe] }
 0x242   : > { %v3060_v20 = vpop.permute.xlu1 %3059  ;;  %3987 = vrot.lane.b32.xlu0 %v3903_v3, %s9928_s6  ;;  %v2388_v3 = vrot.slane %v2387_v16, 4  ;;  %v2411_v49 = vor.u32 %v2410_v39, %v2407_v61  ;;  %v2321_v24 = vsel %vm10135_vm11, %v2316_v36, %v10968_v4  ;;  %v9179_v4 = vrot.slane %v2674_v5, 9 }
 0x243   : > { %3154 = vst.msk [vmem:[#allocation3 + $0x8] sm:$0xf] %vm3151_vm12, %v3060_v20  ;;  %v2414_v20 = vshll.u32 %v11231_v13, 16  ;;  %v9182_v16 = vrot.slane %v2683_v9, 9  ;;  %v3382_v36 = vrot.slane %v3380_v50, 5 }
 0x244   : > { %1987 = vrot.lane.b32.xlu1 %v1911_v6, %s9923_s25  ;;  %v3074_v35 = vpop.permute.xlu0 %3073  ;;  %v9178_v6 = vrot.slane %v2671_v23, 9  ;;  %v2801_v39 = vsel %vm10121_vm8, %v9179_v4, %v2800_v25  ;;  %v11300_v50 = vld [vmem:[#allocation2 + $0x94] sm:$0xf] }
 0x245   : > { %3161 = vst.msk [vmem:[#allocation3 + $0x24] sm:$0xf] %vm3151_vm12, %v3074_v35  ;;  %v2393_v35 = vsel %vm10135_vm11, %v2388_v3, %v11239_v52  ;;  %v11254_v43 = vrot.slane %v2414_v20, 5  ;;  %v9183_v3 = vrot.slane %v2686_v34, 9  ;;  %v2822_v27 = vsel %vm10121_vm8, %v9182_v16, %v2821_v63  ;;  %v3011_v34 = vld [vmem:[#allocation2 + $0x90] sm:$0xf] }
 0x246   : > { %v3617_v1 = vpop.permute.xlu1 %3616  ;;  %3991 = vrot.lane.b32.xlu0 %v3910_v21, %s9928_s6  ;;  %v2412_v21 = vrot.slane %v2411_v49, 4 }
 0x247   : > { %3713 = vst.msk [vmem:[#allocation3] sm:$0xf] %vm3712_vm13, %v3617_v1  ;;  %v2794_v1 = vsel %vm10121_vm8, %v9178_v6, %v2793_v53  ;;  %v11272_v53 = vld [vmem:[#allocation2 + $0x94] sm:$0xf]  ;;  %v3003_v6 = vld [vmem:[#allocation2 + $0x60] sm:$0xf] }
 0x248   : > { %1991 = vrot.lane.b32.xlu1 %v1913_v12, %s9923_s25  ;;  %v3078_v60 = vpop.permute.xlu0 %3077  ;;  %v3377_v12 = vshrl.u32 %v3202_v18, 16  ;;  %v2828_v49 = vrot.slane %v11272_v53, 5  ;;  %v11590_v53 = vld [vmem:[#allocation2 + $0xc4] sm:$0xf] }
 0x249   : > { %3163 = vst.msk [vmem:[#allocation3 + $0x2c] sm:$0xf] %vm3151_vm12, %v3078_v60  ;;  %v3205_v60 = vld [vmem:[#allocation2 + $0x6c] sm:$0xf] }
 0x24a   : > { %v3621_v14 = vpop.permute.xlu1 %3620  ;;  %2003 = vrot.lane.b32.xlu0 %v1919_v15, %s9923_s25  ;;  %v2417_v15 = vsel %vm10135_vm11, %v2412_v21, %v11254_v43  ;;  %v3404_v23 = vshll.u32 %v3205_v60, 16  ;;  %v2829_v21 = vsel %vm10121_vm8, %v9183_v3, %v2828_v49 }
 0x24b   : > { %3715 = vst.msk [vmem:[#allocation3 + $0x8] sm:$0xf] %vm3712_vm13, %v3621_v14  ;;  %v3214_v14 = vld [vmem:[#allocation2 + $0x90] sm:$0xf] }
 0x24c   : > { %2548 = vrot.lane.b32.xlu1 %v2297_v38, %s9924_s27  ;;  %v3635_v48 = vpop.permute.xlu0 %3634  ;;  %v3379_v38 = vrot.slane %v3377_v12, 4  ;;  %v3473_v25 = vshrl.u32 %v3214_v14, 16  ;;  %v3476_v20 = vshll.u32 %v3214_v14, 16  ;;  %v3406_v18 = vrot.slane %v3404_v23, 5 }
 0x24d   : > { %3722 = vst.msk [vmem:[#allocation3 + $0x24] sm:$0xf] %vm3712_vm13, %v3635_v48  ;;  %v3401_v48 = vshrl.u32 %v3205_v60, 16 }
 0x24e   : > { %v3954_v45 = vpop.permute.xlu1 %3953  ;;  %2007 = vrot.lane.b32.xlu0 %v1921_v47, %s9923_s25  ;;  %v3383_v5 = vor.u32 %v3382_v36, %v3379_v38  ;;  %v3478_v4 = vrot.slane %v3476_v20, 5 }
 0x24f   : > { %4050 = vst.msk [vmem:[#allocation3] sm:$0xf] %vm4049_vm14, %v3954_v45 }
 0x250   : > { %4083 = vst.msk [vmem:[#allocation3] sm:$0xf] %vm4082_vm15, %v14428_v8  ;;  %2552 = vrot.lane.b32.xlu1 %v2321_v24, %s9924_s27  ;;  %v3639_v57 = vpop.permute.xlu0 %3638  ;;  %v3217_v24 = vld [vmem:[#allocation2 + $0x9c] sm:$0xf]  ;;  %v3384_v60 = vrot.slane %v3383_v5, 4 }
 0x251   : > { %3724 = vst.msk [vmem:[#allocation3 + $0x2c] sm:$0xf] %vm3712_vm13, %v3639_v57  ;;  %v3403_v57 = vrot.slane %v3401_v48, 4  ;;  %v3497_v9 = vshrl.u32 %v3217_v24, 16  ;;  %v11307_v48 = vld [vmem:[#allocation2 + $0xa0] sm:$0xf] }
 0x252   : > { %v3958_v30 = vpop.permute.xlu1 %3957  ;;  %2564 = vrot.lane.b32.xlu0 %v2393_v35, %s9924_s27  ;;  %v3389_v23 = vsel %vm10135_vm11, %v3384_v60, %v11029_v58 }
 0x253   : > { %4052 = vst.msk [vmem:[#allocation3 + $0x8] sm:$0xf] %vm4049_vm14, %v3958_v30  ;;  %v3475_v30 = vrot.slane %v3473_v25, 4  ;;  %v3499_v14 = vrot.slane %v3497_v9, 4  ;;  %v3013_v25 = vld [vmem:[#allocation2 + $0x9c] sm:$0xf] }
 0x254   : > { %4085 = vst.msk [vmem:[#allocation3 + $0x8] sm:$0xf] %vm4082_vm15, %v14428_v8  ;;  %2885 = vrot.lane.b32.xlu1 %v2794_v1, %s9925_s28  ;;  %v3972_v37 = vpop.permute.xlu0 %3971  ;;  %v3500_v1 = vshll.u32 %v3217_v24, 16  ;;  %v3766_v9 = vld [vmem:[#allocation2 + $0x6c] sm:$0xe] }
 0x255   : > { %4059 = vst.msk [vmem:[#allocation3 + $0x24] sm:$0xf] %vm4049_vm14, %v3972_v37  ;;  %v3005_v37 = vld [vmem:[#allocation2 + $0x6c] sm:$0xf] }
 0x256   : > { %4092 = vst.msk [vmem:[#allocation3 + $0x24] sm:$0xf] %vm4082_vm15, %v14428_v8  ;;  %v1972_v61 = vpop.permute.xlu1 %1971  ;;  %2568 = vrot.lane.b32.xlu0 %v2417_v15, %s9924_s27  ;;  %v3407_v15 = vor.u32 %v3406_v18, %v3403_v57  ;;  %v3502_v38 = vrot.slane %v3500_v1, 5 }
 0x257   : > { %2064 = vst.msk [vmem:[#allocation3 + $0x10] sm:$0xf] %vm2059_vm7, %v1972_v61  ;;  %v3479_v61 = vor.u32 %v3478_v4, %v3475_v30 }
 0x258   : > { %2889 = vrot.lane.b32.xlu1 %v2801_v39, %s9925_s28  ;;  %v3976_v47 = vpop.permute.xlu0 %3975  ;;  %v3482_v39 = vshll.u32 %v11300_v50, 16  ;;  %v3503_v24 = vor.u32 %v3502_v38, %v3499_v14 }
 0x259   : > { %4061 = vst.msk [vmem:[#allocation3 + $0x2c] sm:$0xf] %vm4049_vm14, %v3976_v47  ;;  %v3408_v47 = vrot.slane %v3407_v15, 4  ;;  %v3480_v20 = vrot.slane %v3479_v61, 4  ;;  %v2119_v61 = vld [vmem:[#allocation2 + $0x78] sm:$0xf] }
 0x25a   : > { %4094 = vst.msk [vmem:[#allocation3 + $0x2c] sm:$0xf] %vm4082_vm15, %v14428_v8  ;;  %v1976_v45 = vpop.permute.xlu1 %1975  ;;  %2901 = vrot.lane.b32.xlu0 %v2822_v27, %s9925_s28  ;;  %v3763_v27 = vld [vmem:[#allocation2 + $0x60] sm:$0xe]  ;;  %v3504_v30 = vrot.slane %v3503_v24, 4 }
 0x25b   : > { %2066 = vst.msk [vmem:[#allocation3 + $0x18] sm:$0xf] %vm2059_vm7, %v1976_v45  ;;  %v11315_v45 = vrot.slane %v3482_v39, 5  ;;  %v3413_v58 = vsel %vm10135_vm11, %v3408_v47, %v11035_v59  ;;  %v9194_v57 = vrot.slane %v3763_v27, 9  ;;  %v11331_v59 = vld [vmem:[#allocation2 + $0x94] sm:$0xf] }
 0x25c   : > { %3079 = vrot.lane.b32.xlu1 %v3003_v6, %s9926_s29  ;;  %v1990_v35 = vpop.permute.xlu0 %1989  ;;  %v3506_v6 = vshll.u32 %v11307_v48, 16  ;;  %v3913_v38 = vrot.slane %v11331_v59, 5  ;;  %v2357_v27 = vshrl.u32 %v2119_v61, 16 }
 0x25d   : > { %2073 = vst.msk [vmem:[#allocation3 + $0x34] sm:$0xf] %vm2059_vm7, %v1990_v35  ;;  %v2116_v35 = vld [vmem:[#allocation2 + $0x6c] sm:$0xf] }
 0x25e   : > { %v2533_v12 = vpop.permute.xlu1 %2532  ;;  %2905 = vrot.lane.b32.xlu0 %v2829_v21, %s9925_s28  ;;  %v3485_v21 = vsel %vm10135_vm11, %v3480_v20, %v11315_v45  ;;  %v11328_v4 = vrot.slane %v3506_v6, 5  ;;  %v2333_v60 = vshrl.u32 %v2116_v35, 16  ;;  %v2336_v15 = vshll.u32 %v2116_v35, 16 }
 0x25f   : > { %2625 = vst.msk [vmem:[#allocation3 + $0x10] sm:$0xf] %vm2620_vm9, %v2533_v12  ;;  %v3775_v12 = vld [vmem:[#allocation2 + $0x90] sm:$0xe]  ;;  %v2359_v35 = vrot.slane %v2357_v27, 4 }
 0x260   : > { %3083 = vrot.lane.b32.xlu1 %v3005_v37, %s9926_s29  ;;  %v1994_v16 = vpop.permute.xlu0 %1993  ;;  %v3886_v37 = vsel %vm10121_vm8, %v9194_v57, %v3885_v7  ;;  %v3509_v39 = vsel %vm10135_vm11, %v3504_v30, %v11328_v4  ;;  %v9198_v14 = vrot.slane %v3775_v12, 9  ;;  %v2335_v47 = vrot.slane %v2333_v60, 4  ;;  %v1915_v57 = vld [vmem:[#allocation2 + $0x6c] sm:$0xf]  ;;  %v11370_v60 = vld [vmem:[#allocation2 + $0xa0] sm:$0xf] }
 0x261   : > { %2075 = vst.msk [vmem:[#allocation3 + $0x3c] sm:$0xf] %vm2059_vm7, %v1994_v16 }
 0x262   : > { %v2537_v36 = vpop.permute.xlu1 %2536  ;;  %3095 = vrot.lane.b32.xlu0 %v3011_v34, %s9926_s29  ;;  %v9195_v34 = vrot.slane %v3766_v9, 9  ;;  %v3914_v51 = vsel %vm10121_vm8, %v9198_v14, %v3913_v38 }
 0x263   : > { %2627 = vst.msk [vmem:[#allocation3 + $0x18] sm:$0xf] %vm2620_vm9, %v2537_v36  ;;  %v3778_v36 = vld [vmem:[#allocation2 + $0x9c] sm:$0xe] }
 0x264   : > { %3640 = vrot.lane.b32.xlu1 %v3389_v23, %s9927_s5  ;;  %v2551_v3 = vpop.permute.xlu0 %2550  ;;  %v3893_v7 = vsel %vm10121_vm8, %v9195_v34, %v3892_v44  ;;  %v11349_v23 = vld [vmem:[#allocation2 + $0xa0] sm:$0xf]  ;;  %v9199_v44 = vrot.slane %v3778_v36, 9  ;;  %v1917_v34 = vld [vmem:[#allocation2 + $0x78] sm:$0xf] }
 0x265   : > { %2634 = vst.msk [vmem:[#allocation3 + $0x34] sm:$0xf] %vm2620_vm9, %v2551_v3  ;;  %v2338_v3 = vrot.slane %v2336_v15, 5  ;;  %v3920_v24 = vrot.slane %v11349_v23, 5  ;;  %v3019_v23 = vld [vmem:[#allocation2 + $0xc0] sm:$0xf] }
 0x266   : > { %v2870_v5 = vpop.permute.xlu1 %2869  ;;  %3099 = vrot.lane.b32.xlu0 %v3013_v25, %s9926_s29  ;;  %v2360_v25 = vshll.u32 %v2119_v61, 16 }
 0x267   : > { %2962 = vst.msk [vmem:[#allocation3 + $0x10] sm:$0xf] %vm2957_vm10, %v2870_v5  ;;  %v1595_v5 = vld [vmem:[#allocation2 + $0x90] sm:$0xe]  ;;  %v3921_v9 = vsel %vm10121_vm8, %v9199_v44, %v3920_v24 }
 0x268   : > { %3644 = vrot.lane.b32.xlu1 %v3413_v58, %s9927_s5  ;;  %v2555_v18 = vpop.permute.xlu0 %2554  ;;  %v11360_v58 = vld [vmem:[#allocation2 + $0x94] sm:$0xf] }
 0x269   : > { %2636 = vst.msk [vmem:[#allocation3 + $0x3c] sm:$0xf] %vm2620_vm9, %v2555_v18  ;;  %v2339_v18 = vor.u32 %v2338_v3, %v2335_v47  ;;  %v1744_v12 = vrot.slane %v11360_v58, 5 }
 0x26a   : > { %v2874_v1 = vpop.permute.xlu1 %2873  ;;  %3656 = vrot.lane.b32.xlu0 %v3485_v21, %s9927_s5  ;;  %v2362_v21 = vrot.slane %v2360_v25, 5  ;;  %v2131_v25 = vld [vmem:[#allocation2 + $0xa8] sm:$0xf] }
 0x26b   : > { %2964 = vst.msk [vmem:[#allocation3 + $0x18] sm:$0xf] %vm2957_vm10, %v2874_v1  ;;  %v9168_v1 = vrot.slane %v1595_v5, 9  ;;  %v2340_v61 = vrot.slane %v2339_v18, 4  ;;  %v2677_v5 = vld [vmem:[#allocation2 + $0x6c] sm:$0xe] }
 0x26c   : > { %3977 = vrot.lane.b32.xlu1 %v3886_v37, %s9928_s6  ;;  %v2888_v16 = vpop.permute.xlu0 %2887  ;;  %v1598_v37 = vld [vmem:[#allocation2 + $0x9c] sm:$0xe] }
 0x26d   : > { %2971 = vst.msk [vmem:[#allocation3 + $0x34] sm:$0xf] %vm2957_vm10, %v2888_v16  ;;  %v2128_v16 = vld [vmem:[#allocation2 + $0x9c] sm:$0xf]  ;;  %v1745_v36 = vsel %vm10121_vm8, %v9168_v1, %v1744_v12  ;;  %v2680_v1 = vld [vmem:[#allocation2 + $0x78] sm:$0xe] }
 0x26e   : > { %v3064_v62 = vpop.permute.xlu1 %3063  ;;  %3660 = vrot.lane.b32.xlu0 %v3509_v39, %s9927_s5  ;;  %v2363_v39 = vor.u32 %v2362_v21, %v2359_v35  ;;  %v2429_v47 = vshrl.u32 %v2128_v16, 16  ;;  %v2432_v3 = vshll.u32 %v2128_v16, 16  ;;  %v2453_v35 = vshrl.u32 %v2131_v25, 16  ;;  %v3208_v16 = vld [vmem:[#allocation2 + $0x78] sm:$0xf] }
 0x26f   : > { %3156 = vst.msk [vmem:[#allocation3 + $0x10] sm:$0xf] %vm3151_vm12, %v3064_v62  ;;  %v9169_v62 = vrot.slane %v1598_v37, 9  ;;  %v2456_v21 = vshll.u32 %v2131_v25, 16  ;;  %v3428_v25 = vshll.u32 %v3208_v16, 16 }
 0x270   : > { %3981 = vrot.lane.b32.xlu1 %v3893_v7, %s9928_s6  ;;  %v2892_v20 = vpop.permute.xlu0 %2891  ;;  %v1751_v7 = vrot.slane %v11370_v60, 5  ;;  %v2434_v18 = vrot.slane %v2432_v3, 5 }
 0x271   : > { %2973 = vst.msk [vmem:[#allocation3 + $0x3c] sm:$0xf] %vm2957_vm10, %v2892_v20  ;;  %v2345_v20 = vsel %vm10135_vm11, %v2340_v61, %v11093_v40  ;;  %v11393_v40 = vld [vmem:[#allocation2 + $0xa0] sm:$0xf] }
 0x272   : > { %v3068_v6 = vpop.permute.xlu1 %3067  ;;  %3993 = vrot.lane.b32.xlu0 %v3914_v51, %s9928_s6  ;;  %v2364_v51 = vrot.slane %v2363_v39, 4  ;;  %v2438_v39 = vshll.u32 %v11393_v40, 16 }
 0x273   : > { %3158 = vst.msk [vmem:[#allocation3 + $0x18] sm:$0xf] %vm3151_vm12, %v3068_v6  ;;  %v1752_v6 = vsel %vm10121_vm8, %v9169_v62, %v1751_v7  ;;  %v2458_v62 = vrot.slane %v2456_v21, 5  ;;  %v3430_v21 = vrot.slane %v3428_v25, 5 }
 0x274   : > { %1995 = vrot.lane.b32.xlu1 %v1915_v57, %s9923_s25  ;;  %v3082_v30 = vpop.permute.xlu0 %3081  ;;  %v2431_v57 = vrot.slane %v2429_v47, 4  ;;  %v11405_v47 = vld [vmem:[#allocation2 + $0xac] sm:$0xf] }
 0x275   : > { %3165 = vst.msk [vmem:[#allocation3 + $0x34] sm:$0xf] %vm3151_vm12, %v3082_v30  ;;  %v2462_v55 = vshll.u32 %v11405_v47, 16 }
 0x276   : > { %v3625_v15 = vpop.permute.xlu1 %3624  ;;  %3997 = vrot.lane.b32.xlu0 %v3921_v9, %s9928_s6  ;;  %v2369_v9 = vsel %vm10135_vm11, %v2364_v51, %v11100_v2  ;;  %v2435_v61 = vor.u32 %v2434_v18, %v2431_v57  ;;  %v9181_v2 = vrot.slane %v2680_v1, 9  ;;  %v3211_v51 = vld [vmem:[#allocation2 + $0x84] sm:$0xf] }
 0x277   : > { %3717 = vst.msk [vmem:[#allocation3 + $0x10] sm:$0xf] %vm3712_vm13, %v3625_v15  ;;  %v9180_v15 = vrot.slane %v2677_v5, 9  ;;  %v11416_v5 = vrot.slane %v2438_v39, 5  ;;  %v11432_v56 = vrot.slane %v2462_v55, 5 }
 0x278   : > { %1999 = vrot.lane.b32.xlu1 %v1917_v34, %s9923_s25  ;;  %v3086_v14 = vpop.permute.xlu0 %3085  ;;  %v1923_v34 = vld [vmem:[#allocation2 + $0x9c] sm:$0xf]  ;;  %v2815_v18 = vsel %vm10121_vm8, %v9181_v2, %v2814_v29  ;;  %v2692_v2 = vld [vmem:[#allocation2 + $0xa8] sm:$0xe] }
 0x279   : > { %3167 = vst.msk [vmem:[#allocation3 + $0x3c] sm:$0xf] %vm3151_vm12, %v3086_v14  ;;  %v2455_v14 = vrot.slane %v2453_v35, 4  ;;  %v2808_v3 = vsel %vm10121_vm8, %v9180_v15, %v2807_v31 }
 0x27a   : > { %v3629_v27 = vpop.permute.xlu1 %3628  ;;  %1818 = vrot.lane.b32.xlu0 %v1745_v36, %s9921_s18 }
 0x27b   : > { %3719 = vst.msk [vmem:[#allocation3 + $0x18] sm:$0xf] %vm3712_vm13, %v3629_v27  ;;  %v3425_v27 = vshrl.u32 %v3208_v16, 16  ;;  %v2459_v57 = vor.u32 %v2458_v62, %v2455_v14  ;;  %v2689_v16 = vld [vmem:[#allocation2 + $0x9c] sm:$0xe] }
 0x27c   : > { %2556 = vrot.lane.b32.xlu1 %v2345_v20, %s9924_s27  ;;  %v3643_v44 = vpop.permute.xlu0 %3642 }
 0x27d   : > { %3726 = vst.msk [vmem:[#allocation3 + $0x34] sm:$0xf] %vm3712_vm13, %v3643_v44  ;;  %v1925_v44 = vld [vmem:[#allocation2 + $0xa8] sm:$0xf]  ;;  %v3427_v35 = vrot.slane %v3425_v27, 4  ;;  %v2460_v15 = vrot.slane %v2459_v57, 4 }
 0x27e   : > { %v3962_v30 = vpop.permute.xlu1 %3961  ;;  %1822 = vrot.lane.b32.xlu0 %v1752_v6, %s9921_s18  ;;  %v2436_v6 = vrot.slane %v2435_v61, 4  ;;  %v3007_v61 = vld [vmem:[#allocation2 + $0x78] sm:$0xf]  ;;  %v9184_v27 = vrot.slane %v2689_v16, 9 }
 0x27f   : > { %4054 = vst.msk [vmem:[#allocation3 + $0x10] sm:$0xf] %vm4049_vm14, %v3962_v30  ;;  %v3449_v30 = vshrl.u32 %v3211_v51, 16  ;;  %v3431_v39 = vor.u32 %v3430_v21, %v3427_v35 }
 0x280   : > { %4087 = vst.msk [vmem:[#allocation3 + $0x10] sm:$0xf] %vm4082_vm15, %v14428_v8  ;;  %2560 = vrot.lane.b32.xlu1 %v2369_v9, %s9924_s27  ;;  %v3647_v37 = vpop.permute.xlu0 %3646  ;;  %v3452_v9 = vshll.u32 %v3211_v51, 16 }
 0x281   : > { %3728 = vst.msk [vmem:[#allocation3 + $0x3c] sm:$0xf] %vm3712_vm13, %v3647_v37  ;;  %v2441_v37 = vsel %vm10135_vm11, %v2436_v6, %v11416_v5  ;;  %v3451_v14 = vrot.slane %v3449_v30, 4  ;;  %v3009_v6 = vld [vmem:[#allocation2 + $0x84] sm:$0xf]  ;;  %v3432_v57 = vrot.slane %v3431_v39, 4 }
 0x282   : > { %v3966_v36 = vpop.permute.xlu1 %3965  ;;  %2011 = vrot.lane.b32.xlu0 %v1923_v34, %s9923_s25  ;;  %v11437_v34 = vld [vmem:[#allocation2 + $0xa0] sm:$0xf]  ;;  %v3454_v62 = vrot.slane %v3452_v9, 5  ;;  %v3769_v39 = vld [vmem:[#allocation2 + $0x78] sm:$0xe] }
 0x283   : > { %4056 = vst.msk [vmem:[#allocation3 + $0x18] sm:$0xf] %vm4049_vm14, %v3966_v36  ;;  %v2835_v25 = vrot.slane %v11437_v34, 5 }
 0x284   : > { %4089 = vst.msk [vmem:[#allocation3 + $0x18] sm:$0xf] %vm4082_vm15, %v14428_v8  ;;  %2893 = vrot.lane.b32.xlu1 %v2808_v3, %s9925_s28  ;;  %v3980_v20 = vpop.permute.xlu0 %3979  ;;  %v2465_v3 = vsel %vm10135_vm11, %v2460_v15, %v11432_v56  ;;  %v3455_v55 = vor.u32 %v3454_v62, %v3451_v14  ;;  %v3437_v15 = vsel %vm10135_vm11, %v3432_v57, %v11161_v11  ;;  %v11469_v11 = vld [vmem:[#allocation2 + $0xac] sm:$0xf]  ;;  %v3015_v57 = vld [vmem:[#allocation2 + $0xa8] sm:$0xf] }
 0x285   : > { %4063 = vst.msk [vmem:[#allocation3 + $0x34] sm:$0xf] %vm4049_vm14, %v3980_v20  ;;  %v11446_v20 = vld [vmem:[#allocation2 + $0xac] sm:$0xf]  ;;  %v2836_v21 = vsel %vm10121_vm8, %v9184_v27, %v2835_v25 }
 0x286   : > { %4096 = vst.msk [vmem:[#allocation3 + $0x34] sm:$0xf] %vm4082_vm15, %v14428_v8  ;;  %v1980_v31 = vpop.permute.xlu1 %1979  ;;  %2015 = vrot.lane.b32.xlu0 %v1925_v44, %s9923_s25  ;;  %v3220_v44 = vld [vmem:[#allocation2 + $0xa8] sm:$0xf]  ;;  %v2842_v35 = vrot.slane %v11446_v20, 5 }
 0x287   : > { %2068 = vst.msk [vmem:[#allocation3 + $0x20] sm:$0xf] %vm2059_vm7, %v1980_v31  ;;  %v3521_v30 = vshrl.u32 %v3220_v44, 16  ;;  %v3524_v9 = vshll.u32 %v3220_v44, 16 }
 0x288   : > { %2897 = vrot.lane.b32.xlu1 %v2815_v18, %s9925_s28  ;;  %v3984_v1 = vpop.permute.xlu0 %3983  ;;  %v9185_v18 = vrot.slane %v2692_v2, 9  ;;  %v2844_v34 = vrot.slane %v2842_v35, 4 }
 0x289   : > { %4065 = vst.msk [vmem:[#allocation3 + $0x3c] sm:$0xf] %vm4049_vm14, %v3984_v1  ;;  %v3523_v14 = vrot.slane %v3521_v30, 4  ;;  %v3526_v62 = vrot.slane %v3524_v9, 5  ;;  %v11479_v9 = vld [vmem:[#allocation2 + $0xb8] sm:$0xf] }
 0x28a   : > { %4098 = vst.msk [vmem:[#allocation3 + $0x3c] sm:$0xf] %vm4082_vm15, %v14428_v8  ;;  %v1984_v29 = vpop.permute.xlu1 %1983  ;;  %2572 = vrot.lane.b32.xlu0 %v2441_v37, %s9924_s27  ;;  %v3223_v37 = vld [vmem:[#allocation2 + $0xb4] sm:$0xf]  ;;  %v3558_v20 = vshrl.u32 %v11479_v9, 16 }
 0x28b   : > { %2070 = vst.msk [vmem:[#allocation3 + $0x28] sm:$0xf] %vm2059_vm7, %v1984_v29  ;;  %v3456_v29 = vrot.slane %v3455_v55, 4  ;;  %v3548_v2 = vshll.u32 %v3223_v37, 16  ;;  %v3527_v55 = vor.u32 %v3526_v62, %v3523_v14  ;;  %v3554_v14 = vshll.u32 %v11479_v9, 16 }
 0x28c   : > { %3087 = vrot.lane.b32.xlu1 %v3007_v61, %s9926_s29  ;;  %v1998_v36 = vpop.permute.xlu0 %1997  ;;  %v2843_v61 = vsel %vm10121_vm8, %v9185_v18, %v2842_v35  ;;  %v9718_v35 = vld [vmem:[#allocation7 + $0x10] sm:$0xff]  }
 0x28d   : > { %2077 = vst.msk [vmem:[#allocation3 + $0x44] sm:$0xf] %vm2059_vm7, %v1998_v36  ;;  %v3545_v36 = vshrl.u32 %v3223_v37, 16  ;;  %v3461_v27 = vsel %vm10135_vm11, %v3456_v29, %v11168_v17  ;;  %v3017_v29 = vld [vmem:[#allocation2 + $0xb4] sm:$0xf]  ;;  %v11505_v54 = vrot.slane %v3554_v14, 5 }
 0x28e   : > { %v2541_v51 = vpop.permute.xlu1 %2540  ;;  %2576 = vrot.lane.b32.xlu0 %v2465_v3, %s9924_s27 }
 0x28f   : > { %2629 = vst.msk [vmem:[#allocation3 + $0x20] sm:$0xf] %vm2620_vm9, %v2541_v51  ;;  %v9196_v51 = vrot.slane %v3769_v39, 9  ;;  %v3547_v18 = vrot.slane %v3545_v36, 4 }
 0x290   : > { %3091 = vrot.lane.b32.xlu1 %v3009_v6, %s9926_s29  ;;  %v2002_v31 = vpop.permute.xlu0 %2001  ;;  %v3772_v6 = vld [vmem:[#allocation2 + $0x84] sm:$0xe] }
 0x291   : > { %2079 = vst.msk [vmem:[#allocation3 + $0x4c] sm:$0xf] %vm2059_vm7, %v2002_v31  ;;  %v3530_v31 = vshll.u32 %v11469_v11, 16  ;;  %v3900_v17 = vsel %vm10121_vm8, %v9196_v51, %v3899_v32  ;;  %v1739_v32 = vrot.slane %v1737_v19, 4  ;;  %v11508_v19 = vld [vmem:[#allocation2 + $0xac] sm:$0xf] }
 0x292   : > { %v2545_v1 = vpop.permute.xlu1 %2544  ;;  %2909 = vrot.lane.b32.xlu0 %v2836_v21, %s9925_s28  ;;  %v3550_v21 = vrot.slane %v3548_v2, 5  ;;  %v2394_v2 = vshrl.u32 %v11224_v28, 16 }
 0x293   : > { %2631 = vst.msk [vmem:[#allocation3 + $0x28] sm:$0xf] %vm2620_vm9, %v2545_v1  ;;  %v9197_v1 = vrot.slane %v3772_v6, 9  ;;  %v2418_v6 = vshrl.u32 %v11231_v13, 16  ;;  %v1920_v13 = vld [vmem:[#allocation2 + $0x88] sm:$0xf] }
 0x294   : > { %3648 = vrot.lane.b32.xlu1 %v3437_v15, %s9927_s5  ;;  %v2559_v16 = vpop.permute.xlu0 %2558  ;;  %v1594_v15 = vld [vmem:[#allocation2 + $0x8c] sm:$0x1]  ;;  %v3551_v39 = vor.u32 %v3550_v21, %v3547_v18  ;;  %v2396_v28 = vrot.slane %v2394_v2, 4  ;;  %v9200_v18 = vrot.slane %v3781_v26, 9  ;;  %v3927_v21 = vrot.slane %v11508_v19, 5 }
 0x295   : > { %2638 = vst.msk [vmem:[#allocation3 + $0x44] sm:$0xf] %vm2620_vm9, %v2559_v16  ;;  %v3528_v16 = vrot.slane %v3527_v55, 4  ;;  %v3907_v41 = vsel %vm10121_vm8, %v9197_v1, %v3906_v46  ;;  %v1740_v36 = vrot.slane %v1594_v15, 5  ;;  %v2124_v55 = vld [vmem:[#allocation2 + $0x8c] sm:$0x1] }
 0x296   : > { %v2878_v3 = vpop.permute.xlu1 %2877  ;;  %2913 = vrot.lane.b32.xlu0 %v2843_v61, %s9925_s28  ;;  %v11488_v61 = vrot.slane %v3530_v31, 5  ;;  %v3552_v51 = vrot.slane %v3551_v39, 4  ;;  %v11521_v1 = vld [vmem:[#allocation2 + $0xb8] sm:$0xf]  ;;  %v2400_v15 = vshll.u32 %v2124_v55, 16  ;;  %v3928_v14 = vsel %vm10121_vm8, %v9200_v18, %v3927_v21  ;;  %v9723_v19 = vld [vmem:[#allocation3 + $0x10] sm:$0xff]  }
 0x297   : > { %2966 = vst.msk [vmem:[#allocation3 + $0x20] sm:$0xf] %vm2957_vm10, %v2878_v3  ;;  %v1741_v46 = vsel %vm10121_vm8, %v1739_v32, %v1740_v36  ;;  %v2127_v39 = vld [vmem:[#allocation2 + $0x98] sm:$0x1]  ;;  %v11533_v36 = vld [vmem:[#allocation2 + $0xac] sm:$0xf] }
 0x298   : > { %3652 = vrot.lane.b32.xlu1 %v3461_v27, %s9927_s5  ;;  %v2563_v44 = vpop.permute.xlu0 %2562  ;;  %v3533_v27 = vsel %vm10135_vm11, %v3528_v16, %v11488_v61  ;;  %v3557_v31 = vsel %vm10135_vm11, %v3552_v51, %v11505_v54  ;;  %v1922_v2 = vld [vmem:[#allocation2 + $0x94] sm:$0xf]  ;;  %v11544_v55 = vld [vmem:[#allocation2 + $0xb8] sm:$0xf] }
 0x299   : > { %2640 = vst.msk [vmem:[#allocation3 + $0x4c] sm:$0xf] %vm2620_vm9, %v2563_v44 }
 0x29a   : > { %v2882_v30 = vpop.permute.xlu1 %2881  ;;  %3103 = vrot.lane.b32.xlu0 %v3015_v57, %s9926_s29 }
 0x29b   : > { %2968 = vst.msk [vmem:[#allocation3 + $0x28] sm:$0xf] %vm2957_vm10, %v2882_v30 }
 0x29c   : > { %3985 = vrot.lane.b32.xlu1 %v3900_v17, %s9928_s6  ;;  %v2896_v37 = vpop.permute.xlu0 %2895  ;;  %v3784_v17 = vld [vmem:[#allocation2 + $0xb4] sm:$0xe] }
 0x29d   : > { %2975 = vst.msk [vmem:[#allocation3 + $0x44] sm:$0xf] %vm2957_vm10, %v2896_v37  ;;  %v2397_v37 = vor.u32 %v2396_v28, %v11239_v52  ;;  %v1601_v52 = vld [vmem:[#allocation2 + $0xa8] sm:$0xe] }
 0x29e   : > { %v3072_v62 = vpop.permute.xlu1 %3071  ;;  %3107 = vrot.lane.b32.xlu0 %v3017_v29, %s9926_s29  ;;  %v2420_v29 = vrot.slane %v2418_v6, 4  ;;  %v9170_v28 = vrot.slane %v1601_v52, 9  ;;  %v1758_v6 = vrot.slane %v11533_v36, 5 }
 0x29f   : > { %3160 = vst.msk [vmem:[#allocation3 + $0x20] sm:$0xf] %vm3151_vm12, %v3072_v62  ;;  %v9201_v62 = vrot.slane %v3784_v17, 9 }
 0x2a0   : > { %3989 = vrot.lane.b32.xlu1 %v3907_v41, %s9928_s6  ;;  %v2900_v3 = vpop.permute.xlu0 %2899  ;;  %v3934_v41 = vrot.slane %v11521_v1, 5  ;;  %v2421_v51 = vor.u32 %v2420_v29, %v11254_v43  ;;  %v2134_v43 = vld [vmem:[#allocation2 + $0xb4] sm:$0xf]  ;;  %v2685_v29 = vld [vmem:[#allocation2 + $0x8c] sm:$0x1]  ;;  %v1760_v1 = vrot.slane %v1758_v6, 4 }
 0x2a1   : > { %2977 = vst.msk [vmem:[#allocation3 + $0x4c] sm:$0xf] %vm2957_vm10, %v2900_v3  ;;  %v2398_v3 = vrot.slane %v2397_v37, 4 }
 0x2a2   : > { %v3076_v44 = vpop.permute.xlu1 %3075  ;;  %3664 = vrot.lane.b32.xlu0 %v3533_v27, %s9927_s5  ;;  %v2402_v27 = vrot.slane %v2400_v15, 5  ;;  %v1765_v15 = vrot.slane %v11544_v55, 5 }
 0x2a3   : > { %3162 = vst.msk [vmem:[#allocation3 + $0x28] sm:$0xf] %vm3151_vm12, %v3076_v44  ;;  %v2424_v44 = vshll.u32 %v2127_v39, 16  ;;  %v2477_v39 = vshrl.u32 %v2134_v43, 16 }
 0x2a4   : > { %1816 = vrot.lane.b32.xlu1 %v1741_v46, %s9921_s18  ;;  %v3090_v57 = vpop.permute.xlu0 %3089  ;;  %v3935_v46 = vsel %vm10121_vm8, %v9201_v62, %v3934_v41  ;;  %v2403_v18 = vsel %vm10135_vm11, %v2398_v3, %v2402_v27  ;;  %v2824_v3 = vrot.slane %v2685_v29, 5 }
 0x2a5   : > { %3169 = vst.msk [vmem:[#allocation3 + $0x44] sm:$0xf] %vm3151_vm12, %v3090_v57  ;;  %v1604_v57 = vld [vmem:[#allocation2 + $0xb4] sm:$0xe]  ;;  %v2426_v17 = vrot.slane %v2424_v44, 5 }
 0x2a6   : > { %v3633_v30 = vpop.permute.xlu1 %3632  ;;  %3668 = vrot.lane.b32.xlu0 %v3557_v31, %s9927_s5  ;;  %v9171_v37 = vrot.slane %v1604_v57, 9  ;;  %v2688_v44 = vld [vmem:[#allocation2 + $0x98] sm:$0x1] }
 0x2a7   : > { %3721 = vst.msk [vmem:[#allocation3 + $0x20] sm:$0xf] %vm3712_vm13, %v3633_v30  ;;  %v2422_v30 = vrot.slane %v2421_v51, 4  ;;  %v11576_v57 = vld [vmem:[#allocation2 + $0xb8] sm:$0xf] }
 0x2a8   : > { %2005 = vrot.lane.b32.xlu1 %v1920_v13, %s9923_s25  ;;  %v3094_v16 = vpop.permute.xlu0 %3093  ;;  %v1766_v51 = vsel %vm10121_vm8, %v9171_v37, %v1765_v15  ;;  %v2486_v29 = vshll.u32 %v11576_v57, 16  ;;  %v2490_v36 = vshrl.u32 %v11576_v57, 16  ;;  %v2514_v57 = vshrl.u32 %v11590_v53, 16 }
 0x2a9   : > { %3171 = vst.msk [vmem:[#allocation3 + $0x4c] sm:$0xf] %vm3151_vm12, %v3094_v16  ;;  %v1759_v16 = vsel %vm10121_vm8, %v9170_v28, %v1758_v6  ;;  %v2427_v52 = vsel %vm10135_vm11, %v2422_v30, %v2426_v17  ;;  %v3486_v30 = vshrl.u32 %v11300_v50, 16 }
 0x2aa   : > { %v3637_v32 = vpop.permute.xlu1 %3636  ;;  %4001 = vrot.lane.b32.xlu0 %v3928_v14, %s9928_s6  ;;  %v2480_v14 = vshll.u32 %v2134_v43, 16  ;;  %v2830_v43 = vrot.slane %v2828_v49, 4 }
 0x2ab   : > { %3723 = vst.msk [vmem:[#allocation3 + $0x28] sm:$0xf] %vm3712_vm13, %v3637_v32  ;;  %v2137_v32 = vld [vmem:[#allocation2 + $0xc0] sm:$0xf]  ;;  %v3488_v50 = vrot.slane %v3486_v30, 4 }
 0x2ac   : > { %2009 = vrot.lane.b32.xlu1 %v1922_v2, %s9923_s25  ;;  %v3651_v26 = vpop.permute.xlu0 %3650  ;;  %v2823_v2 = vrot.slane %v2821_v63, 4  ;;  %v2501_v28 = vshrl.u32 %v2137_v32, 16  ;;  %v2504_v42 = vshll.u32 %v2137_v32, 16 }
 0x2ad   : > { %3730 = vst.msk [vmem:[#allocation3 + $0x44] sm:$0xf] %vm3712_vm13, %v3651_v26  ;;  %v2479_v26 = vrot.slane %v2477_v39, 4 }
 0x2ae   : > { %v3970_v31 = vpop.permute.xlu1 %3969  ;;  %4005 = vrot.lane.b32.xlu0 %v3935_v46, %s9928_s6  ;;  %v2482_v46 = vrot.slane %v2480_v14, 5  ;;  %v2506_v39 = vrot.slane %v2504_v42, 5 }
 0x2af   : > { %4058 = vst.msk [vmem:[#allocation3 + $0x20] sm:$0xf] %vm4049_vm14, %v3970_v31  ;;  %v2825_v31 = vsel %vm10121_vm8, %v2823_v2, %v2824_v3  ;;  %v3216_v2 = vld [vmem:[#allocation2 + $0x98] sm:$0x1] }
 0x2b0   : > { %4091 = vst.msk [vmem:[#allocation3 + $0x20] sm:$0xf] %vm4082_vm15, %v14428_v8  ;;  %2566 = vrot.lane.b32.xlu1 %v2403_v18, %s9924_s27  ;;  %v3655_v13 = vpop.permute.xlu0 %3654  ;;  %v2831_v18 = vrot.slane %v2688_v44, 5  ;;  %v2483_v37 = vor.u32 %v2482_v46, %v2479_v26  ;;  %v2510_v44 = vshll.u32 %v11590_v53, 16  ;;  %v3012_v46 = vld [vmem:[#allocation2 + $0x94] sm:$0xf] }
 0x2b1   : > { %3732 = vst.msk [vmem:[#allocation3 + $0x4c] sm:$0xf] %vm3712_vm13, %v3655_v13  ;;  %v1927_v13 = vld [vmem:[#allocation2 + $0xb4] sm:$0xf] }
 0x2b2   : > { %v3974_v62 = vpop.permute.xlu1 %3973  ;;  %1826 = vrot.lane.b32.xlu0 %v1759_v16, %s9921_s18  ;;  %v2503_v16 = vrot.slane %v2501_v28, 4  ;;  %v2832_v49 = vsel %vm10121_vm8, %v2830_v43, %v2831_v18  ;;  %v2484_v3 = vrot.slane %v2483_v37, 4  ;;  %v3492_v28 = vshll.u32 %v3216_v2, 16  ;;  %v3219_v43 = vld [vmem:[#allocation2 + $0xa4] sm:$0x1] }
 0x2b3   : > { %4060 = vst.msk [vmem:[#allocation3 + $0x28] sm:$0xf] %vm4049_vm14, %v3974_v62  ;;  %v3510_v62 = vshrl.u32 %v11307_v48, 16  ;;  %v3489_v48 = vor.u32 %v3488_v50, %v11315_v45  ;;  %v3014_v45 = vld [vmem:[#allocation2 + $0xa0] sm:$0xf] }
 0x2b4   : > { %4093 = vst.msk [vmem:[#allocation3 + $0x28] sm:$0xf] %vm4082_vm15, %v14428_v8  ;;  %2570 = vrot.lane.b32.xlu1 %v2427_v52, %s9924_s27  ;;  %v3988_v27 = vpop.permute.xlu0 %3987  ;;  %v1929_v52 = vld [vmem:[#allocation2 + $0xc0] sm:$0xf] }
 0x2b5   : > { %4067 = vst.msk [vmem:[#allocation3 + $0x44] sm:$0xf] %vm4049_vm14, %v3988_v27  ;;  %v11598_v27 = vrot.slane %v2486_v29, 5  ;;  %v3512_v42 = vrot.slane %v3510_v62, 4  ;;  %v3490_v29 = vrot.slane %v3489_v48, 4 }
 0x2b6   : > { %4100 = vst.msk [vmem:[#allocation3 + $0x44] sm:$0xf] %vm4082_vm15, %v14428_v8  ;;  %v1988_v63 = vpop.permute.xlu1 %1987  ;;  %1830 = vrot.lane.b32.xlu0 %v1766_v51, %s9921_s18  ;;  %v2507_v51 = vor.u32 %v2506_v39, %v2503_v16  ;;  %v3494_v16 = vrot.slane %v3492_v28, 5  ;;  %v2698_v2 = vld [vmem:[#allocation2 + $0xc0] sm:$0xe] }
 0x2b7   : > { %2072 = vst.msk [vmem:[#allocation3 + $0x30] sm:$0xf] %vm2059_vm7, %v1988_v63  ;;  %v2489_v18 = vsel %vm10135_vm11, %v2484_v3, %v11598_v27  ;;  %v3513_v39 = vor.u32 %v3512_v42, %v11328_v4  ;;  %v11623_v3 = vld [vmem:[#allocation2 + $0xc4] sm:$0xf]  ;;  %v3226_v4 = vld [vmem:[#allocation2 + $0xc0] sm:$0xf] }
 0x2b8   : > { %2903 = vrot.lane.b32.xlu1 %v2825_v31, %s9925_s28  ;;  %v3992_v17 = vpop.permute.xlu0 %3991  ;;  %v2695_v31 = vld [vmem:[#allocation2 + $0xb4] sm:$0xe]  ;;  %v2508_v30 = vrot.slane %v2507_v51, 4  ;;  %v3495_v51 = vsel %vm10135_vm11, %v3490_v29, %v3494_v16  ;;  %v3777_v28 = vld [vmem:[#allocation2 + $0x98] sm:$0x1] }
 0x2b9   : > { %4069 = vst.msk [vmem:[#allocation3 + $0x4c] sm:$0xf] %vm4049_vm14, %v3992_v17  ;;  %v11609_v17 = vrot.slane %v2510_v44, 5  ;;  %v9186_v50 = vrot.slane %v2695_v31, 9  ;;  %v3514_v44 = vrot.slane %v3513_v39, 4  ;;  %v2856_v31 = vrot.slane %v11623_v3, 5 }
 0x2ba   : > { %4102 = vst.msk [vmem:[#allocation3 + $0x4c] sm:$0xf] %vm4082_vm15, %v14428_v8  ;;  %v1992_v14 = vpop.permute.xlu1 %1991  ;;  %2019 = vrot.lane.b32.xlu0 %v1927_v13, %s9923_s25  ;;  %v11611_v13 = vld [vmem:[#allocation2 + $0xb8] sm:$0xf]  ;;  %v3229_v42 = vld [vmem:[#allocation2 + $0xcc] sm:$0xf] }
 0x2bb   : > { %2074 = vst.msk [vmem:[#allocation3 + $0x38] sm:$0xf] %vm2059_vm7, %v1992_v14  ;;  %v3516_v14 = vshll.u32 %v3219_v43, 16  ;;  %v2849_v62 = vrot.slane %v11611_v13, 5  ;;  %v3569_v43 = vshrl.u32 %v3226_v4, 16  ;;  %v3916_v29 = vrot.slane %v3777_v28, 5 }
 0x2bc   : > { %2907 = vrot.lane.b32.xlu1 %v2832_v49, %s9925_s28  ;;  %v2004_v32 = vpop.permute.xlu0 %2003  ;;  %v3593_v16 = vshrl.u32 %v3229_v42, 16  ;;  %v3596_v39 = vshll.u32 %v3229_v42, 16  ;;  %v11656_v28 = vld [vmem:[#allocation2 + $0xd0] sm:$0xf]  ;;  %v9725_v6 = vld [vmem:[#allocation3 + $0x20] sm:$0xff]  }
 0x2bd   : > { %2080 = vst.msk [vmem:[#allocation3 + $0x50] sm:$0xf] %vm2059_vm7, %v2004_v32  ;;  %v2513_v32 = vsel %vm10135_vm11, %v2508_v30, %v11609_v17  ;;  %v2850_v48 = vsel %vm10121_vm8, %v9186_v50, %v2849_v62 }
 0x2be   : > { %v2549_v26 = vpop.permute.xlu1 %2548  ;;  %2023 = vrot.lane.b32.xlu0 %v1929_v52, %s9923_s25 }
 0x2bf   : > { %2633 = vst.msk [vmem:[#allocation3 + $0x30] sm:$0xf] %vm2620_vm9, %v2549_v26  ;;  %v3518_v26 = vrot.slane %v3516_v14, 5 }
 0x2c0   : > { %3097 = vrot.lane.b32.xlu1 %v3012_v46, %s9926_s29  ;;  %v2008_v63 = vpop.permute.xlu0 %2007 }
 0x2c1   : > { %2082 = vst.msk [vmem:[#allocation3 + $0x58] sm:$0xf] %vm2059_vm7, %v2008_v63  ;;  %v9187_v63 = vrot.slane %v2698_v2, 9  ;;  %v11650_v2 = vld [vmem:[#allocation2 + $0xc4] sm:$0xf] }
 0x2c2   : > { %v2553_v37 = vpop.permute.xlu1 %2552  ;;  %2580 = vrot.lane.b32.xlu0 %v2489_v18, %s9924_s27  ;;  %v3572_v18 = vshll.u32 %v3226_v4, 16  ;;  %v3578_v42 = vshll.u32 %v11650_v2, 16  ;;  %v3582_v13 = vshrl.u32 %v11650_v2, 16 }
 0x2c3   : > { %2635 = vst.msk [vmem:[#allocation3 + $0x38] sm:$0xf] %vm2620_vm9, %v2553_v37  ;;  %v3915_v37 = vrot.slane %v3913_v38, 4  ;;  %v2857_v59 = vsel %vm10121_vm8, %v9187_v63, %v2856_v31  ;;  %v3571_v38 = vrot.slane %v3569_v43, 4  ;;  %v1746_v43 = vrot.slane %v1744_v12, 4 }
 0x2c4   : > { %3101 = vrot.lane.b32.xlu1 %v3014_v45, %s9926_s29  ;;  %v2565_v49 = vpop.permute.xlu0 %2564  ;;  %v3519_v45 = vsel %vm10135_vm11, %v3514_v44, %v3518_v26  ;;  %v3574_v50 = vrot.slane %v3572_v18, 5  ;;  %v3595_v44 = vrot.slane %v3593_v16, 4  ;;  %v3598_v26 = vrot.slane %v3596_v39, 5 }
 0x2c5   : > { %2641 = vst.msk [vmem:[#allocation3 + $0x50] sm:$0xf] %vm2620_vm9, %v2565_v49  ;;  %v3780_v49 = vld [vmem:[#allocation2 + $0xa4] sm:$0x1]  ;;  %v3917_v4 = vsel %vm10121_vm8, %v3915_v37, %v3916_v29  ;;  %v3602_v16 = vshll.u32 %v11656_v28, 16  ;;  %v1753_v12 = vrot.slane %v1751_v7, 4 }
 0x2c6   : > { %v2886_v52 = vpop.permute.xlu1 %2885  ;;  %2584 = vrot.lane.b32.xlu0 %v2513_v32, %s9924_s27  ;;  %v3599_v29 = vor.u32 %v3598_v26, %v3595_v44  ;;  %v11686_v44 = vld [vmem:[#allocation2 + $0xc4] sm:$0xf] }
 0x2c7   : > { %2970 = vst.msk [vmem:[#allocation3 + $0x30] sm:$0xf] %vm2957_vm10, %v2886_v52  ;;  %v3922_v52 = vrot.slane %v3920_v24, 4  ;;  %v3575_v24 = vor.u32 %v3574_v50, %v3571_v38 }
 0x2c8   : > { %3658 = vrot.lane.b32.xlu1 %v3495_v51, %s9927_s5  ;;  %v2569_v46 = vpop.permute.xlu0 %2568  ;;  %v3923_v51 = vrot.slane %v3780_v49, 5  ;;  %v11669_v49 = vrot.slane %v3578_v42, 5  ;;  %v3600_v50 = vrot.slane %v3599_v29, 4  ;;  %v3790_v42 = vld [vmem:[#allocation2 + $0xcc] sm:$0xe] }
 0x2c9   : > { %2643 = vst.msk [vmem:[#allocation3 + $0x58] sm:$0xf] %vm2620_vm9, %v2569_v46  ;;  %v2133_v29 = vld [vmem:[#allocation2 + $0xb0] sm:$0x1] }
 0x2ca   : > { %v2890_v30 = vpop.permute.xlu1 %2889  ;;  %2917 = vrot.lane.b32.xlu0 %v2850_v48, %s9925_s28  ;;  %v1597_v48 = vld [vmem:[#allocation2 + $0x98] sm:$0x1]  ;;  %v3924_v18 = vsel %vm10121_vm8, %v3922_v52, %v3923_v51  ;;  %v2442_v52 = vshrl.u32 %v11393_v40, 16  ;;  %v3787_v51 = vld [vmem:[#allocation2 + $0xc0] sm:$0xe] }
 0x2cb   : > { %2972 = vst.msk [vmem:[#allocation3 + $0x38] sm:$0xf] %vm2957_vm10, %v2890_v30  ;;  %v3021_v30 = vld [vmem:[#allocation2 + $0xcc] sm:$0xf]  ;;  %v1747_v37 = vrot.slane %v1597_v48, 5  ;;  %v2466_v48 = vshrl.u32 %v11405_v47, 16 }
 0x2cc   : > { %3662 = vrot.lane.b32.xlu1 %v3519_v45, %s9927_s5  ;;  %v2902_v14 = vpop.permute.xlu0 %2901  ;;  %v1600_v45 = vld [vmem:[#allocation2 + $0xa4] sm:$0x1] }
 0x2cd   : > { %2978 = vst.msk [vmem:[#allocation3 + $0x50] sm:$0xf] %vm2957_vm10, %v2902_v14  ;;  %v3576_v14 = vrot.slane %v3575_v24, 4  ;;  %v1748_v38 = vsel %vm10121_vm8, %v1746_v43, %v1747_v37  ;;  %v2130_v24 = vld [vmem:[#allocation2 + $0xa4] sm:$0x1]  ;;  %v3941_v43 = vrot.slane %v11686_v44, 5 }
 0x2ce   : > { %v3080_v32 = vpop.permute.xlu1 %3079  ;;  %2921 = vrot.lane.b32.xlu0 %v2857_v59, %s9925_s28  ;;  %v1754_v59 = vrot.slane %v1600_v45, 5  ;;  %v11699_v37 = vld [vmem:[#allocation2 + $0xd0] sm:$0xf]  ;;  %v2448_v45 = vshll.u32 %v2130_v24, 16 }
 0x2cf   : > { %3164 = vst.msk [vmem:[#allocation3 + $0x30] sm:$0xf] %vm3151_vm12, %v3080_v32  ;;  %v11677_v32 = vrot.slane %v3602_v16, 5  ;;  %v3581_v60 = vsel %vm10135_vm11, %v3576_v14, %v11669_v49  ;;  %v2468_v16 = vrot.slane %v2466_v48, 4  ;;  %v9713_v14 = vld [vmem:[#allocation7 + $0x38] sm:$0xff]  }
 0x2d0   : > { %3995 = vrot.lane.b32.xlu1 %v3917_v4, %s9928_s6  ;;  %v2906_v46 = vpop.permute.xlu0 %2905  ;;  %v1755_v40 = vsel %vm10121_vm8, %v1753_v12, %v1754_v59  ;;  %9451 = vmatprep.subr.bf16.mxu0 %v9713_v14 }
 0x2d1   : > { %2980 = vst.msk [vmem:[#allocation3 + $0x58] sm:$0xf] %vm2957_vm10, %v2906_v46  ;;  %v3605_v26 = vsel %vm10135_vm11, %v3600_v50, %v11677_v32  ;;  %v2444_v46 = vrot.slane %v2442_v52, 4  ;;  %9452 = vmatpush3.bf16.msra.mxu0 %v9713_v14  ;;  %v1926_v50 = vld [vmem:[#allocation2 + $0xac] sm:$0xf] }
 0x2d2   : > { %v3084_v63 = vpop.permute.xlu1 %3083  ;;  %3111 = vrot.lane.b32.xlu0 %v3019_v23, %s9926_s29 }
 0x2d3   : > { %3166 = vst.msk [vmem:[#allocation3 + $0x38] sm:$0xf] %vm3151_vm12, %v3084_v63  ;;  %v9202_v63 = vrot.slane %v3787_v51, 9  ;;  %v2445_v47 = vor.u32 %v2444_v46, %v11416_v5  ;;  %v3948_v5 = vrot.slane %v11699_v37, 5  ;;  %v9714_v51 = vld [vmem:[#allocation7 + $0x30] sm:$0xff]  }
 0x2d4   : > { %3999 = vrot.lane.b32.xlu1 %v3924_v18, %s9928_s6  ;;  %v3096_v39 = vpop.permute.xlu0 %3095  ;;  %9453 = vmatprep.subr.bf16.mxu0 %v9714_v51 }
 0x2d5   : > { %3172 = vst.msk [vmem:[#allocation3 + $0x50] sm:$0xf] %vm3151_vm12, %v3096_v39  ;;  %v9203_v39 = vrot.slane %v3790_v42, 9  ;;  %v3942_v12 = vsel %vm10121_vm8, %v9202_v63, %v3941_v43  ;;  %v2446_v52 = vrot.slane %v2445_v47, 4  ;;  %9454 = vmatpush3.bf16.msra.mxu0 %v9714_v51  ;;  %v2691_v42 = vld [vmem:[#allocation2 + $0xa4] sm:$0x1] }
 0x2d6   : > { %v3641_v58 = vpop.permute.xlu1 %3640  ;;  %3115 = vrot.lane.b32.xlu0 %v3021_v30, %s9926_s29  ;;  %v1924_v30 = vld [vmem:[#allocation2 + $0xa0] sm:$0xf]  ;;  %v2838_v47 = vrot.slane %v2691_v42, 5 }
 0x2d7   : > { %3725 = vst.msk [vmem:[#allocation3 + $0x30] sm:$0xf] %vm3712_vm13, %v3641_v58 }
 0x2d8   : > { %1820 = vrot.lane.b32.xlu1 %v1748_v38, %s9921_s18  ;;  %v3100_v4 = vpop.permute.xlu0 %3099  ;;  %v2472_v38 = vshll.u32 %v2133_v29, 16 }
 0x2d9   : > { %3174 = vst.msk [vmem:[#allocation3 + $0x58] sm:$0xf] %vm3151_vm12, %v3100_v4  ;;  %v2450_v4 = vrot.slane %v2448_v45, 5  ;;  %v9716_v45 = vld [vmem:[#allocation7 + $0x20] sm:$0xff]  }
 0x2da   : > { %v3645_v7 = vpop.permute.xlu1 %3644  ;;  %3672 = vrot.lane.b32.xlu0 %v3581_v60, %s9927_s5  ;;  %v2469_v60 = vor.u32 %v2468_v16, %v11432_v56  ;;  %v2474_v48 = vrot.slane %v2472_v38, 5  ;;  %v2694_v16 = vld [vmem:[#allocation2 + $0xb0] sm:$0x1] }
 0x2db   : > { %3727 = vst.msk [vmem:[#allocation3 + $0x38] sm:$0xf] %vm3712_vm13, %v3645_v7  ;;  %v3949_v7 = vsel %vm10121_vm8, %v9203_v39, %v3948_v5  ;;  %v2451_v56 = vsel %vm10135_vm11, %v2446_v52, %v2450_v4  ;;  %v3222_v4 = vld [vmem:[#allocation2 + $0xb0] sm:$0x1] }
 0x2dc   : > { %1824 = vrot.lane.b32.xlu1 %v1755_v40, %s9921_s18  ;;  %v3657_v23 = vpop.permute.xlu0 %3656  ;;  %v2470_v46 = vrot.slane %v2469_v60, 4 }
 0x2dd   : > { %3733 = vst.msk [vmem:[#allocation3 + $0x50] sm:$0xf] %vm3712_vm13, %v3657_v23  ;;  %v9715_v23 = vld [vmem:[#allocation7 + $0x28] sm:$0xff]  }
 0x2de   : > { %v3978_v18 = vpop.permute.xlu1 %3977  ;;  %3676 = vrot.lane.b32.xlu0 %v3605_v26, %s9927_s5  ;;  %9455 = vmatprep.subr.bf16.mxu0 %v9715_v23 }
 0x2df   : > { %4062 = vst.msk [vmem:[#allocation3 + $0x30] sm:$0xf] %vm4049_vm14, %v3978_v18  ;;  %9456 = vmatpush3.bf16.msra.mxu0 %v9715_v23  ;;  %v2475_v18 = vsel %vm10135_vm11, %v2470_v46, %v2474_v48  ;;  %v3225_v46 = vld [vmem:[#allocation2 + $0xbc] sm:$0x1]  ;;  %v3018_v23 = vld [vmem:[#allocation2 + $0xb8] sm:$0xf] }
 0x2e0   : > { %4095 = vst.msk [vmem:[#allocation3 + $0x30] sm:$0xf] %vm4082_vm15, %v14428_v8  ;;  %2013 = vrot.lane.b32.xlu1 %v1924_v30, %s9923_s25  ;;  %v3661_v58 = vpop.permute.xlu0 %3660  ;;  %v2837_v30 = vrot.slane %v2835_v25, 4  ;;  %9457 = vmatprep.subr.bf16.mxu0 %v9716_v45  ;;  %v2845_v25 = vrot.slane %v2694_v16, 5 }
 0x2e1   : > { %3735 = vst.msk [vmem:[#allocation3 + $0x58] sm:$0xf] %vm3712_vm13, %v3661_v58  ;;  %v3534_v58 = vshrl.u32 %v11469_v11, 16 }
 0x2e2   : > { %v3982_v59 = vpop.permute.xlu1 %3981  ;;  %4009 = vrot.lane.b32.xlu0 %v3942_v12, %s9928_s6  ;;  %v2839_v14 = vsel %vm10121_vm8, %v2837_v30, %v2838_v47  ;;  %v9717_v12 = vld [vmem:[#allocation7 + $0x18] sm:$0xff]   ;;  %v9720_v30 = vld [vmem:[#allocation7] sm:$0xff]  }
 0x2e3   : > { %4064 = vst.msk [vmem:[#allocation3 + $0x38] sm:$0xf] %vm4049_vm14, %v3982_v59  ;;  %9458 = vmatpush3.bf16.msra.mxu0 %v9716_v45  ;;  %v3536_v52 = vrot.slane %v3534_v58, 4 }
 0x2e4   : > { %4097 = vst.msk [vmem:[#allocation3 + $0x38] sm:$0xf] %vm4082_vm15, %v14428_v8  ;;  %2017 = vrot.lane.b32.xlu1 %v1926_v50, %s9923_s25  ;;  %v3994_v40 = vpop.permute.xlu0 %3993  ;;  %9459 = vmatprep.subr.bf16.mxu0 %v9717_v12  ;;  %v2846_v50 = vsel %vm10121_vm8, %v2844_v34, %v2845_v25  ;;  %v9722_v34 = vld [vmem:[#allocation3 + $0x8] sm:$0xff]  }
 0x2e5   : > { %4070 = vst.msk [vmem:[#allocation3 + $0x50] sm:$0xf] %vm4049_vm14, %v3994_v40  ;;  %v3537_v51 = vor.u32 %v3536_v52, %v11488_v61  ;;  %v3540_v40 = vshll.u32 %v3222_v4, 16  ;;  %v3564_v61 = vshll.u32 %v3225_v46, 16  ;;  %v1767_v46 = vrot.slane %v1765_v15, 4 }
 0x2e6   : > { %4103 = vst.msk [vmem:[#allocation3 + $0x50] sm:$0xf] %vm4082_vm15, %v14428_v8  ;;  %v1996_v26 = vpop.permute.xlu1 %1995  ;;  %4013 = vrot.lane.b32.xlu0 %v3949_v7, %s9928_s6  ;;  %v3016_v7 = vld [vmem:[#allocation2 + $0xac] sm:$0xf]  ;;  %v2492_v15 = vrot.slane %v2490_v36, 4  ;;  %v3584_v36 = vrot.slane %v3582_v13, 4 }
 0x2e7   : > { %2076 = vst.msk [vmem:[#allocation3 + $0x40] sm:$0xf] %vm2059_vm7, %v1996_v26  ;;  %9460 = vmatpush3.bf16.msra.mxu0 %v9717_v12  ;;  %v3560_v26 = vrot.slane %v3558_v20, 4  ;;  %v3542_v42 = vrot.slane %v3540_v40, 5  ;;  %v3566_v16 = vrot.slane %v3564_v61, 5  ;;  %v3929_v12 = vrot.slane %v3927_v21, 4 }
 0x2e8   : > { %2574 = vrot.lane.b32.xlu1 %v2451_v56, %s9924_s27  ;;  %v3998_v24 = vpop.permute.xlu0 %3997  ;;  %9461 = vmatprep.subr.bf16.mxu0 %v9718_v35  ;;  %v9719_v56 = vld [vmem:[#allocation7 + $0x8] sm:$0xff]   ;;  %v2136_v61 = vld [vmem:[#allocation2 + $0xbc] sm:$0x1] }
 0x2e9   : > { %4072 = vst.msk [vmem:[#allocation3 + $0x58] sm:$0xf] %vm4049_vm14, %v3998_v24  ;;  %v3538_v24 = vrot.slane %v3537_v51, 4  ;;  %v9724_v21 = vld [vmem:[#allocation3 + $0x18] sm:$0xff]  }
 0x2ea   : > { %4105 = vst.msk [vmem:[#allocation3 + $0x58] sm:$0xf] %vm4082_vm15, %v14428_v8  ;;  %v2000_v63 = vpop.permute.xlu1 %1999 }
 0x2eb   : > { %2078 = vst.msk [vmem:[#allocation3 + $0x48] sm:$0xf] %vm2059_vm7, %v2000_v63  ;;  %9462 = vmatpush3.bf16.msra.mxu0 %v9718_v35  ;;  %v3561_v63 = vor.u32 %v3560_v26, %v11505_v54  ;;  %v3543_v45 = vsel %vm10135_vm11, %v3538_v24, %v3542_v42  ;;  %v3936_v35 = vrot.slane %v3934_v41, 4  ;;  %v1606_v26 = vld [vmem:[#allocation2 + $0xbc] sm:$0x1]  ;;  %v9728_v53 = vld [vmem:[#allocation3 + $0x38] sm:$0xff]  }
 0x2ec   : > { %2578 = vrot.lane.b32.xlu1 %v2475_v18, %s9924_s27  ;;  %v1819_v29 = vpop.permute.xlu0 %1818  ;;  %9463 = vmatprep.subr.bf16.mxu0 %v9719_v56 }
 0x2ed   : > { %1891 = vst.msk [vmem:[#allocation3 + $0x60] sm:$0xf] %vm1866_vm6, %v1819_v29  ;;  %v3562_v29 = vrot.slane %v3561_v63, 4 }
 0x2ee   : > { %v2557_v39 = vpop.permute.xlu1 %2556 }
 0x2ef   : > { %2637 = vst.msk [vmem:[#allocation3 + $0x40] sm:$0xf] %vm2620_vm9, %v2557_v39  ;;  %9464 = vmatpush3.bf16.msra.mxu0 %v9719_v56  ;;  %v3783_v39 = vld [vmem:[#allocation2 + $0xb0] sm:$0x1]  ;;  %v3567_v58 = vsel %vm10135_vm11, %v3562_v29, %v3566_v16  ;;  %v2516_v29 = vrot.slane %v2514_v57, 4  ;;  %v9727_v16 = vld [vmem:[#allocation3 + $0x30] sm:$0xff]  }
 0x2f0   : > { %2911 = vrot.lane.b32.xlu1 %v2839_v14, %s9925_s28  ;;  %v1823_v59 = vpop.permute.xlu0 %1822  ;;  %9465 = vmatprep.subr.bf16.mxu0 %v9720_v30  ;;  %v9721_v14 = vld [vmem:[#allocation3] sm:$0xff]  }
 0x2f1   : > { %1893 = vst.msk [vmem:[#allocation3 + $0x68] sm:$0xf] %vm1866_vm6, %v1823_v59  ;;  %9467 = vmatprep.mubr.bf16.mxu0 %v9721_v14  ;;  %v3930_v59 = vrot.slane %v3783_v39, 5  ;;  %v2139_v39 = vld [vmem:[#allocation2 + $0xc8] sm:$0x1] }
 0x2f2   : > { %v2561_v38 = vpop.permute.xlu1 %2560 }
 0x2f3   : > { %2639 = vst.msk [vmem:[#allocation3 + $0x48] sm:$0xf] %vm2620_vm9, %v2561_v38  ;;  %9466 = vmatpush3.bf16.msra.mxu0 %v9720_v30  ;;  %v3931_v20 = vsel %vm10121_vm8, %v3929_v12, %v3930_v59  ;;  %v1928_v30 = vld [vmem:[#allocation2 + $0xb8] sm:$0xf]  ;;  %v2517_v12 = vor.u32 %v2516_v29, %v11609_v17 }
 0x2f4   : > { %2915 = vrot.lane.b32.xlu1 %v2846_v50, %s9925_s28  ;;  %v2012_v11 = vpop.permute.xlu0 %2011  ;;  %v3786_v50 = vld [vmem:[#allocation2 + $0xbc] sm:$0x1] }
 0x2f5   : > { %2084 = vst.msk [vmem:[#allocation3 + $0x60] sm:$0xf] %vm2059_vm7, %v2012_v11  ;;  %v3937_v11 = vrot.slane %v3786_v50, 5 }
 0x2f6   : > { %v2894_v60 = vpop.permute.xlu1 %2893  ;;  %9468 = vmatmul.mubr.bf16.vlgmr.msra.gmra.mxu0 %v9722_v34  ;;  %v1930_v34 = vld [vmem:[#allocation2 + $0xc4] sm:$0xf] }
 0x2f7   : > { %2974 = vst.msk [vmem:[#allocation3 + $0x40] sm:$0xf] %vm2957_vm10, %v2894_v60  ;;  %v1603_v60 = vld [vmem:[#allocation2 + $0xb0] sm:$0x1]  ;;  %9471 = vmatprep.mubr.bf16.mxu0 %v9723_v19  ;;  %v3938_v51 = vsel %vm10121_vm8, %v3936_v35, %v3937_v11  ;;  %v2697_v19 = vld [vmem:[#allocation2 + $0xbc] sm:$0x1] }
 0x2f8   : > { %3105 = vrot.lane.b32.xlu1 %v3016_v7, %s9926_s29  ;;  %v2016_v9 = vpop.permute.xlu0 %2015  ;;  %v1761_v41 = vrot.slane %v1603_v60, 5  ;;  %v2851_v60 = vrot.slane %v2849_v62, 4 }
 0x2f9   : > { %2086 = vst.msk [vmem:[#allocation3 + $0x68] sm:$0xf] %vm2059_vm7, %v2016_v9 }
 0x2fa   : > { %v2898_v48 = vpop.permute.xlu1 %2897  ;;  %v1762_v9 = vsel %vm10121_vm8, %v1760_v1, %v1761_v41  ;;  %v2700_v1 = vld [vmem:[#allocation2 + $0xc8] sm:$0x1] }
 0x2fb   : > { %2976 = vst.msk [vmem:[#allocation3 + $0x48] sm:$0xf] %vm2957_vm10, %v2898_v48  ;;  %v1768_v48 = vrot.slane %v1606_v26, 5  ;;  %v2858_v26 = vrot.slane %v2856_v31, 4  ;;  %v3228_v31 = vld [vmem:[#allocation2 + $0xc8] sm:$0x1] }
 0x2fc   : > { %3109 = vrot.lane.b32.xlu1 %v3018_v23, %s9926_s29  ;;  %v2573_v18 = vpop.permute.xlu0 %2572  ;;  %v9726_v23 = vld [vmem:[#allocation3 + $0x28] sm:$0xff]  }
 0x2fd   : > { %2645 = vst.msk [vmem:[#allocation3 + $0x60] sm:$0xf] %vm2620_vm9, %v2573_v18  ;;  %v1769_v55 = vsel %vm10121_vm8, %v1767_v46, %v1768_v48 }
 0x2fe   : > { %v3088_v47 = vpop.permute.xlu1 %3087  ;;  %9472 = vmatmul.mubr.bf16.gmra.mxu0 %v9724_v21 }
 0x2ff   : > { %3168 = vst.msk [vmem:[#allocation3 + $0x40] sm:$0xf] %vm3151_vm12, %v3088_v47  ;;  %9475 = vmatprep.mubr.bf16.mxu0 %v9725_v6  ;;  %v2493_v47 = vor.u32 %v2492_v15, %v11598_v27  ;;  %v2520_v27 = vshll.u32 %v2139_v39, 16  ;;  %v3022_v15 = vld [vmem:[#allocation2 + $0xd0] sm:$0xf] }
 0x300   : > { %3666 = vrot.lane.b32.xlu1 %v3543_v45, %s9927_s5  ;;  %v2577_v54 = vpop.permute.xlu0 %2576  ;;  %v2496_v45 = vshll.u32 %v2136_v61, 16 }
 0x301   : > { %2647 = vst.msk [vmem:[#allocation3 + $0x68] sm:$0xf] %vm2620_vm9, %v2577_v54 }
 0x302   : > { %v3092_v25 = vpop.permute.xlu1 %3091 }
 0x303   : > { %3170 = vst.msk [vmem:[#allocation3 + $0x48] sm:$0xf] %vm3151_vm12, %v3092_v25  ;;  %v2494_v25 = vrot.slane %v2493_v47, 4 }
 0x304   : > { %3670 = vrot.lane.b32.xlu1 %v3567_v58, %s9927_s5  ;;  %v2910_v38 = vpop.permute.xlu0 %2909  ;;  %v2498_v58 = vrot.slane %v2496_v45, 5 }
 0x305   : > { %2982 = vst.msk [vmem:[#allocation3 + $0x60] sm:$0xf] %vm2957_vm10, %v2910_v38 }
 0x306   : > { %v3649_v52 = vpop.permute.xlu1 %3648  ;;  %9476 = vmatmul.mubr.bf16.gmra.mxu0 %v9726_v23  ;;  %v2499_v50 = vsel %vm10135_vm11, %v2494_v25, %v2498_v58  ;;  %v3231_v23 = vld [vmem:[#allocation2 + $0xd4] sm:$0x1] }
 0x307   : > { %3729 = vst.msk [vmem:[#allocation3 + $0x40] sm:$0xf] %vm3712_vm13, %v3649_v52  ;;  %9479 = vmatprep.mubr.bf16.mxu0 %v9727_v16  ;;  %v2518_v52 = vrot.slane %v2517_v12, 4  ;;  %v3950_v12 = vrot.slane %v3948_v5, 4 }
 0x308   : > { %4003 = vrot.lane.b32.xlu1 %v3931_v20, %s9928_s6  ;;  %v2914_v4 = vpop.permute.xlu0 %2913  ;;  %v2522_v20 = vrot.slane %v2520_v27, 5 }
 0x309   : > { %2984 = vst.msk [vmem:[#allocation3 + $0x68] sm:$0xf] %vm2957_vm10, %v2914_v4 }
 0x30a   : > { %v3653_v7 = vpop.permute.xlu1 %3652  ;;  %v2523_v4 = vsel %vm10135_vm11, %v2518_v52, %v2522_v20 }
 0x30b   : > { %3731 = vst.msk [vmem:[#allocation3 + $0x48] sm:$0xf] %vm3712_vm13, %v3653_v7  ;;  %v2852_v7 = vrot.slane %v2697_v19, 5 }
 0x30c   : > { %4007 = vrot.lane.b32.xlu1 %v3938_v51, %s9928_s6  ;;  %v3104_v40 = vpop.permute.xlu0 %3103 }
 0x30d   : > { %3176 = vst.msk [vmem:[#allocation3 + $0x60] sm:$0xf] %vm3151_vm12, %v3104_v40  ;;  %v2853_v40 = vsel %vm10121_vm8, %v2851_v60, %v2852_v7 }
 0x30e   : > { %v3986_v56 = vpop.permute.xlu1 %3985  ;;  %9480 = vmatmul.mubr.bf16.gmra.mxu0 %v9728_v53  ;;  %v3789_v53 = vld [vmem:[#allocation2 + $0xc8] sm:$0x1] }
 0x30f   : > { %4066 = vst.msk [vmem:[#allocation3 + $0x40] sm:$0xf] %vm4049_vm14, %v3986_v56  ;;  %v2859_v56 = vrot.slane %v2700_v1, 5  ;;  %v3944_v25 = vrot.slane %v3789_v53, 5 }
 0x310   : > { %4099 = vst.msk [vmem:[#allocation3 + $0x40] sm:$0xf] %vm4082_vm15, %v14428_v8  ;;  %1828 = vrot.lane.b32.xlu1 %v1762_v9, %s9921_s18  ;;  %v3108_v24 = vpop.permute.xlu0 %3107  ;;  %v3606_v9 = vshrl.u32 %v11656_v28, 16  ;;  %v3020_v28 = vld [vmem:[#allocation2 + $0xc4] sm:$0xf] }
 0x311   : > { %3178 = vst.msk [vmem:[#allocation3 + $0x68] sm:$0xf] %vm3151_vm12, %v3108_v24  ;;  %v2860_v48 = vsel %vm10121_vm8, %v2858_v26, %v2859_v56  ;;  %v3585_v24 = vor.u32 %v3584_v36, %v11669_v49 }
 0x312   : > { %v3990_v42 = vpop.permute.xlu1 %3989  ;;  %v3608_v2 = vrot.slane %v3606_v9, 4 }
 0x313   : > { %4068 = vst.msk [vmem:[#allocation3 + $0x48] sm:$0xf] %vm4049_vm14, %v3990_v42  ;;  %v3588_v42 = vshll.u32 %v3228_v31, 16 }
 0x314   : > { %4101 = vst.msk [vmem:[#allocation3 + $0x48] sm:$0xf] %vm4082_vm15, %v14428_v8  ;;  %1832 = vrot.lane.b32.xlu1 %v1769_v55, %s9921_s18  ;;  %v3665_v63 = vpop.permute.xlu0 %3664  ;;  %v3609_v57 = vor.u32 %v3608_v2, %v11677_v32 }
 0x315   : > { %3737 = vst.msk [vmem:[#allocation3 + $0x60] sm:$0xf] %vm3712_vm13, %v3665_v63  ;;  %v3612_v63 = vshll.u32 %v3231_v23, 16 }
 0x316   : > { %v1817_v18 = vpop.permute.xlu1 %1816  ;;  %v3610_v49 = vrot.slane %v3609_v57, 4 }
 0x317   : > { %1890 = vst.msk [vmem:[#allocation3 + $0x5c] sm:$0xf] %vm1866_vm6, %v1817_v18  ;;  %v9729_v35 = vld [vmem:[#allocation3 + $0x40] sm:$0xff]   ;;  %v3586_v18 = vrot.slane %v3585_v24, 4  ;;  %v3614_v45 = vrot.slane %v3612_v63, 5 }
 0x318   : > { %2021 = vrot.lane.b32.xlu1 %v1928_v30, %s9923_s25  ;;  %v3669_v54 = vpop.permute.xlu0 %3668  ;;  %9483 = vmatprep.mubr.bf16.mxu0 %v9729_v35  ;;  %v3590_v30 = vrot.slane %v3588_v42, 5 }
 0x319   : > { %3739 = vst.msk [vmem:[#allocation3 + $0x68] sm:$0xf] %vm3712_vm13, %v3669_v54  ;;  %v3615_v54 = vsel %vm10135_vm11, %v3610_v49, %v3614_v45 }
 0x31a   : > { %v2006_v14 = vpop.permute.xlu1 %2005  ;;  %v3591_v16 = vsel %vm10135_vm11, %v3586_v18, %v3590_v30 }
 0x31b   : > { %2081 = vst.msk [vmem:[#allocation3 + $0x54] sm:$0xf] %vm2059_vm7, %v2006_v14  ;;  %v9730_v17 = vld [vmem:[#allocation3 + $0x48] sm:$0xff]   ;;  %v3792_v14 = vld [vmem:[#allocation2 + $0xd4] sm:$0x1] }
 0x31c   : > { %2025 = vrot.lane.b32.xlu1 %v1930_v34, %s9923_s25  ;;  %v4002_v59 = vpop.permute.xlu0 %4001  ;;  %9484 = vmatmul.mubr.bf16.gmra.mxu0 %v9730_v17  ;;  %v3943_v34 = vrot.slane %v3941_v43, 4  ;;  %v3951_v27 = vrot.slane %v3792_v14, 5  ;;  %s9008_s25 = scalar_lea.sflag [#allocation6], %s10072_s24 }
 0x31d   : > { %4074 = vst.msk [vmem:[#allocation3 + $0x60] sm:$0xf] %vm4049_vm14, %v4002_v59 }
 0x31e   : > { %4107 = vst.msk [vmem:[#allocation3 + $0x60] sm:$0xf] %vm4082_vm15, %v14428_v8  ;;  %v2010_v38 = vpop.permute.xlu1 %2009  ;;  %v3952_v43 = vsel %vm10121_vm8, %v3950_v12, %v3951_v27 }
 0x31f   : > { %2083 = vst.msk [vmem:[#allocation3 + $0x5c] sm:$0xf] %vm2059_vm7, %v2010_v38  ;;  %v3945_v38 = vsel %vm10121_vm8, %v3943_v34, %v3944_v25 }
 0x320   : > { %2582 = vrot.lane.b32.xlu1 %v2499_v50, %s9924_s27  ;;  %v4006_v11 = vpop.permute.xlu0 %4005 }
 0x321   : > { %4076 = vst.msk [vmem:[#allocation3 + $0x68] sm:$0xf] %vm4049_vm14, %v4006_v11 }
 0x322   : > { %4109 = vst.msk [vmem:[#allocation3 + $0x68] sm:$0xf] %vm4082_vm15, %v14428_v8  ;;  %v2567_v21 = vpop.permute.xlu1 %2566 }
 0x323   : > { %2642 = vst.msk [vmem:[#allocation3 + $0x54] sm:$0xf] %vm2620_vm9, %v2567_v21 }
 0x324   : > { %2586 = vrot.lane.b32.xlu1 %v2523_v4, %s9924_s27  ;;  %v1827_v51 = vpop.permute.xlu0 %1826 }
 0x325   : > { %1895 = vst.msk [vmem:[#allocation3 + $0x70] sm:$0xf] %vm1866_vm6, %v1827_v51 }
 0x326   : > { %v2571_v41 = vpop.permute.xlu1 %2570 }
 0x327   : > { %2644 = vst.msk [vmem:[#allocation3 + $0x5c] sm:$0xf] %vm2620_vm9, %v2571_v41 }
 0x328   : > { %2919 = vrot.lane.b32.xlu1 %v2853_v40, %s9925_s28  ;;  %v1831_v62 = vpop.permute.xlu0 %1830 }
 0x329   : > { %1897 = vst.msk [vmem:[#allocation3 + $0x78] sm:$0xf] %vm1866_vm6, %v1831_v62 }
 0x32a   : > { %v2904_v46 = vpop.permute.xlu1 %2903 }
 0x32b   : > { %2979 = vst.msk [vmem:[#allocation3 + $0x54] sm:$0xf] %vm2957_vm10, %v2904_v46 }
 0x32c   : > { %2923 = vrot.lane.b32.xlu1 %v2860_v48, %s9925_s28  ;;  %v2020_v3 = vpop.permute.xlu0 %2019  ;;  %s9849_s28 = sshll.u32 %s9933_s16, 4  ;;  %s9850_s28 = int_to_ptr.vmem [resolvable:$false] %s9849_s28 }
 0x32d   : > { %2088 = vst.msk [vmem:[#allocation3 + $0x70] sm:$0xf] %vm2059_vm7, %v2020_v3  ;;  %p9852_p6 = scmp.lt.s32.totalorder %s14374_s26, %s9850_s28 }
 0x32e   : > { %v2908_v6 = vpop.permute.xlu1 %2907 }
 0x32f   : > { %2981 = vst.msk [vmem:[#allocation3 + $0x5c] sm:$0xf] %vm2957_vm10, %v2908_v6 }
 0x330   : > { %3113 = vrot.lane.b32.xlu1 %v3020_v28, %s9926_s29  ;;  %v2024_v55 = vpop.permute.xlu0 %2023 }
 0x331   : > { %2090 = vst.msk [vmem:[#allocation3 + $0x78] sm:$0xf] %vm2059_vm7, %v2024_v55 }
 0x332   : > { %v3098_v61 = vpop.permute.xlu1 %3097 }
 0x333   : > { %3173 = vst.msk [vmem:[#allocation3 + $0x54] sm:$0xf] %vm3151_vm12, %v3098_v61 }
 0x334   : > { %3117 = vrot.lane.b32.xlu1 %v3022_v15, %s9926_s29  ;;  %v2581_v47 = vpop.permute.xlu0 %2580 }
 0x335   : > { %2649 = vst.msk [vmem:[#allocation3 + $0x70] sm:$0xf] %vm2620_vm9, %v2581_v47 }
 0x336   : > { %v3102_v29 = vpop.permute.xlu1 %3101 }
 0x337   : > { %3175 = vst.msk [vmem:[#allocation3 + $0x5c] sm:$0xf] %vm3151_vm12, %v3102_v29 }
 0x338   : > { %3674 = vrot.lane.b32.xlu1 %v3591_v16, %s9927_s5  ;;  %v2585_v32 = vpop.permute.xlu0 %2584 }
 0x339   : > { %2651 = vst.msk [vmem:[#allocation3 + $0x78] sm:$0xf] %vm2620_vm9, %v2585_v32 }
 0x33a   : > { %v3659_v39 = vpop.permute.xlu1 %3658 }
 0x33b   : > { %3734 = vst.msk [vmem:[#allocation3 + $0x54] sm:$0xf] %vm3712_vm13, %v3659_v39 }
 0x33c   : > { %3678 = vrot.lane.b32.xlu1 %v3615_v54, %s9927_s5  ;;  %v2918_v58 = vpop.permute.xlu0 %2917 }
 0x33d   : > { %2986 = vst.msk [vmem:[#allocation3 + $0x70] sm:$0xf] %vm2957_vm10, %v2918_v58 }
 0x33e   : > { %v3663_v59 = vpop.permute.xlu1 %3662 }
 0x33f   : > { %3736 = vst.msk [vmem:[#allocation3 + $0x5c] sm:$0xf] %vm3712_vm13, %v3663_v59 }
 0x340   : > { %4011 = vrot.lane.b32.xlu1 %v3945_v38, %s9928_s6  ;;  %v2922_v44 = vpop.permute.xlu0 %2921 }
 0x341   : > { %2988 = vst.msk [vmem:[#allocation3 + $0x78] sm:$0xf] %vm2957_vm10, %v2922_v44 }
 0x342   : > { %v3996_v50 = vpop.permute.xlu1 %3995 }
 0x343   : > { %4071 = vst.msk [vmem:[#allocation3 + $0x54] sm:$0xf] %vm4049_vm14, %v3996_v50 }
 0x344   : > { %4104 = vst.msk [vmem:[#allocation3 + $0x54] sm:$0xf] %vm4082_vm15, %v14428_v8  ;;  %4015 = vrot.lane.b32.xlu1 %v3952_v43, %s9928_s6  ;;  %v3112_v37 = vpop.permute.xlu0 %3111 }
 0x345   : > { %3180 = vst.msk [vmem:[#allocation3 + $0x70] sm:$0xf] %vm3151_vm12, %v3112_v37 }
 0x346   : > { %v4000_v5 = vpop.permute.xlu1 %3999 }
 0x347   : > { %4073 = vst.msk [vmem:[#allocation3 + $0x5c] sm:$0xf] %vm4049_vm14, %v4000_v5 }
 0x348   : > { %4106 = vst.msk [vmem:[#allocation3 + $0x5c] sm:$0xf] %vm4082_vm15, %v14428_v8  ;;  %v3116_v52 = vpop.permute.xlu0 %3115 }
 0x349   : > { %3182 = vst.msk [vmem:[#allocation3 + $0x78] sm:$0xf] %vm3151_vm12, %v3116_v52 }
 0x34a   : > { %v1821_v20 = vpop.permute.xlu1 %1820 }
 0x34b   : > { %1892 = vst.msk [vmem:[#allocation3 + $0x64] sm:$0xf] %vm1866_vm6, %v1821_v20  ;;  %v9731_v35 = vld [vmem:[#allocation3 + $0x50] sm:$0xff]  }
 0x34c   : > { %v3673_v17 = vpop.permute.xlu0 %3672  ;;  %9487 = vmatprep.mubr.bf16.mxu0 %v9731_v35 }
 0x34d   : > { %3741 = vst.msk [vmem:[#allocation3 + $0x70] sm:$0xf] %vm3712_vm13, %v3673_v17 }
 0x34e   : > { %v1825_v11 = vpop.permute.xlu1 %1824 }
 0x34f   : > { %1894 = vst.msk [vmem:[#allocation3 + $0x6c] sm:$0xf] %vm1866_vm6, %v1825_v11  ;;  %v9732_v19 = vld [vmem:[#allocation3 + $0x58] sm:$0xff]  }
 0x350   : > { %v3677_v21 = vpop.permute.xlu0 %3676  ;;  %9488 = vmatmul.mubr.bf16.gmra.mxu0 %v9732_v19 }
 0x351   : > { %3743 = vst.msk [vmem:[#allocation3 + $0x78] sm:$0xf] %vm3712_vm13, %v3677_v21 }
 0x352   : > { %v2014_v4 = vpop.permute.xlu1 %2013 }
 0x353   : > { %2085 = vst.msk [vmem:[#allocation3 + $0x64] sm:$0xf] %vm2059_vm7, %v2014_v4 }
 0x354   : > { %v4010_v60 = vpop.permute.xlu0 %4009 }
 0x355   : > { %4078 = vst.msk [vmem:[#allocation3 + $0x70] sm:$0xf] %vm4049_vm14, %v4010_v60 }
 0x356   : > { %4111 = vst.msk [vmem:[#allocation3 + $0x70] sm:$0xf] %vm4082_vm15, %v14428_v8  ;;  %v2018_v7 = vpop.permute.xlu1 %2017 }
 0x357   : > { %2087 = vst.msk [vmem:[#allocation3 + $0x6c] sm:$0xf] %vm2059_vm7, %v2018_v7 }
 0x358   : > { %v4014_v51 = vpop.permute.xlu0 %4013 }
 0x359   : > { %4080 = vst.msk [vmem:[#allocation3 + $0x78] sm:$0xf] %vm4049_vm14, %v4014_v51 }
 0x35a   : > { %v2575_v1 = vpop.permute.xlu1 %2574  ;;  %4113 = vst.msk [vmem:[#allocation3 + $0x78] sm:$0xf] %vm4082_vm15, %v14428_v8 }
 0x35b   : > { %2646 = vst.msk [vmem:[#allocation3 + $0x64] sm:$0xf] %vm2620_vm9, %v2575_v1 }
 0x35e   : > { %v2579_v41 = vpop.permute.xlu1 %2578 }
 0x35f   : > { %2648 = vst.msk [vmem:[#allocation3 + $0x6c] sm:$0xf] %vm2620_vm9, %v2579_v41 }
 0x362   : > { %v2912_v40 = vpop.permute.xlu1 %2911 }
 0x363   : > { %2983 = vst.msk [vmem:[#allocation3 + $0x64] sm:$0xf] %vm2957_vm10, %v2912_v40 }
 0x366   : > { %v2916_v26 = vpop.permute.xlu1 %2915 }
 0x367   : > { %2985 = vst.msk [vmem:[#allocation3 + $0x6c] sm:$0xf] %vm2957_vm10, %v2916_v26 }
 0x36a   : > { %v3106_v56 = vpop.permute.xlu1 %3105 }
 0x36b   : > { %3177 = vst.msk [vmem:[#allocation3 + $0x64] sm:$0xf] %vm3151_vm12, %v3106_v56 }
 0x36e   : > { %v3110_v13 = vpop.permute.xlu1 %3109 }
 0x36f   : > { %3179 = vst.msk [vmem:[#allocation3 + $0x6c] sm:$0xf] %vm3151_vm12, %v3110_v13 }
 0x372   : > { %v3667_v62 = vpop.permute.xlu1 %3666 }
 0x373   : > { %3738 = vst.msk [vmem:[#allocation3 + $0x64] sm:$0xf] %vm3712_vm13, %v3667_v62 }
 0x376   : > { %v3671_v9 = vpop.permute.xlu1 %3670 }
 0x377   : > { %3740 = vst.msk [vmem:[#allocation3 + $0x6c] sm:$0xf] %vm3712_vm13, %v3671_v9 }
 0x37a   : > { %v4004_v46 = vpop.permute.xlu1 %4003 }
 0x37b   : > { %4075 = vst.msk [vmem:[#allocation3 + $0x64] sm:$0xf] %vm4049_vm14, %v4004_v46 }
 0x37c   : > { %4108 = vst.msk [vmem:[#allocation3 + $0x64] sm:$0xf] %vm4082_vm15, %v14428_v8 }
 0x37e   : > { %v4008_v48 = vpop.permute.xlu1 %4007 }
 0x37f   : > { %4077 = vst.msk [vmem:[#allocation3 + $0x6c] sm:$0xf] %vm4049_vm14, %v4008_v48 }
 0x380   : > { %4110 = vst.msk [vmem:[#allocation3 + $0x6c] sm:$0xf] %vm4082_vm15, %v14428_v8 }
 0x382   : > { %v1829_v36 = vpop.permute.xlu1 %1828 }
 0x383   : > { %1896 = vst.msk [vmem:[#allocation3 + $0x74] sm:$0xf] %vm1866_vm6, %v1829_v36  ;;  %v9733_v3 = vld [vmem:[#allocation3 + $0x60] sm:$0xff]  }
 0x384   : > { %9491 = vmatprep.mubr.bf16.mxu0 %v9733_v3 }
 0x386   : > { %v1833_v31 = vpop.permute.xlu1 %1832 }
 0x387   : > { %1898 = vst.msk [vmem:[#allocation3 + $0x7c] sm:$0xf] %vm1866_vm6, %v1833_v31  ;;  %v9734_v2 = vld [vmem:[#allocation3 + $0x68] sm:$0xff]   ;;  %vm7418_vm6 = vcmask 454016  }
 0x388   : > { %9492 = vmatmul.mubr.bf16.gmra.mxu0 %v9734_v2 }
 0x38a   : > { %v2022_v6 = vpop.permute.xlu1 %2021 }
 0x38b   : > { %2089 = vst.msk [vmem:[#allocation3 + $0x74] sm:$0xf] %vm2059_vm7, %v2022_v6 }
 0x38e   : > { %v2026_v23 = vpop.permute.xlu1 %2025 }
 0x38f   : > { %2091 = vst.msk [vmem:[#allocation3 + $0x7c] sm:$0xf] %vm2059_vm7, %v2026_v23  ;;  %vm7979_vm7 = vcmask 519616  }
 0x392   : > { %v2583_v28 = vpop.permute.xlu1 %2582 }
 0x393   : > { %2650 = vst.msk [vmem:[#allocation3 + $0x74] sm:$0xf] %vm2620_vm9, %v2583_v28 }
 0x396   : > { %v2587_v24 = vpop.permute.xlu1 %2586 }
 0x397   : > { %2652 = vst.msk [vmem:[#allocation3 + $0x7c] sm:$0xf] %vm2620_vm9, %v2587_v24  ;;  %vm8316_vm9 = vcmask 585216  }
 0x39a   : > { %v2920_v42 = vpop.permute.xlu1 %2919 }
 0x39b   : > { %2987 = vst.msk [vmem:[#allocation3 + $0x74] sm:$0xf] %vm2957_vm10, %v2920_v42 }
 0x39e   : > { %v2924_v55 = vpop.permute.xlu1 %2923 }
 0x39f   : > { %2989 = vst.msk [vmem:[#allocation3 + $0x7c] sm:$0xf] %vm2957_vm10, %v2924_v55  ;;  %vm8349_vm10 = vcmask 1044032  }
 0x3a2   : > { %v3114_v15 = vpop.permute.xlu1 %3113 }
 0x3a3   : > { %3181 = vst.msk [vmem:[#allocation3 + $0x74] sm:$0xf] %vm3151_vm12, %v3114_v15 }
 0x3a6   : > { %v3118_v57 = vpop.permute.xlu1 %3117 }
 0x3a7   : > { %3183 = vst.msk [vmem:[#allocation3 + $0x7c] sm:$0xf] %vm3151_vm12, %v3118_v57 }
 0x3aa   : > { %v3675_v63 = vpop.permute.xlu1 %3674 }
 0x3ab   : > { %3742 = vst.msk [vmem:[#allocation3 + $0x74] sm:$0xf] %vm3712_vm13, %v3675_v63 }
 0x3ae   : > { %v3679_v61 = vpop.permute.xlu1 %3678 }
 0x3af   : > { %3744 = vst.msk [vmem:[#allocation3 + $0x7c] sm:$0xf] %vm3712_vm13, %v3679_v61 }
 0x3b2   : > { %v4012_v18 = vpop.permute.xlu1 %4011 }
 0x3b3   : > { %4079 = vst.msk [vmem:[#allocation3 + $0x74] sm:$0xf] %vm4049_vm14, %v4012_v18 }
 0x3b4   : > { %4112 = vst.msk [vmem:[#allocation3 + $0x74] sm:$0xf] %vm4082_vm15, %v14428_v8 }
 0x3b6   : > { %v4016_v30 = vpop.permute.xlu1 %4015  ;;  %v11926_v45 = vpop.f32.mrf.mxu0 }
 0x3b7   : > { %4081 = vst.msk [vmem:[#allocation3 + $0x7c] sm:$0xf] %vm4049_vm14, %v4016_v30 }
 0x3b8   : > { %4114 = vst.msk [vmem:[#allocation3 + $0x7c] sm:$0xf] %vm4082_vm15, %v14428_v8  ;;  %v11928_v29 = vpop.f32.mrf.mxu0 }
 0x3ba   : > { %v11930_v16 = vpop.f32.mrf.mxu0 }
 0x3bb   : > { %v9735_v47 = vld [vmem:[#allocation3 + $0x70] sm:$0xff]  }
 0x3bc   : > { %9495 = vmatprep.mubr.bf16.mxu0 %v9735_v47  ;;  %v11932_v32 = vpop.f32.mrf.mxu0 }
 0x3bd   : > { %v4468_v53 = vadd.f32 %v11932_v32, %v11928_v29 }
 0x3be   : > { %v11936_v54 = vpop.f32.mrf.mxu0 }
 0x3bf   : > { %v9736_v49 = vld [vmem:[#allocation3 + $0x78] sm:$0xff]   ;;  %v4469_v39 = vadd.f32 %v11926_v45, %v4468_v53 }
 0x3c0   : > { %9496 = vmatmul.mubr.bf16.gmra.mxu0 %v9736_v49  ;;  %v11939_v14 = vpop.f32.mrf.mxu0 }
 0x3c1   : > { %v4470_v34 = vadd.f32 %v11930_v16, %v4469_v39 }
 0x3c2   : > { %v11942_v25 = vpop.f32.mrf.mxu0 }
 0x3c3   : > { %v4471_v58 = vadd.f32 %v4470_v34, %v11939_v14 }
 0x3c4   : > { %v11945_v12 = vpop.f32.mrf.mxu0 }
 0x3c5   : > { %v4472_v27 = vadd.f32 %v4471_v58, %v11945_v12 }
 0x3c6   : > { %v11948_v59 = vpop.f32.mrf.mxu0 }
 0x3c7   : > { %v4473_v38 = vadd.f32 %v11936_v54, %v4472_v27 }
 0x3c8   : > { %v11951_v44 = vpop.f32.mrf.mxu0 }
 0x3c9   : > { %v4474_v43 = vadd.f32 %v11942_v25, %v4473_v38 }
 0x3ca   : > { %v11954_v50 = vpop.f32.mrf.mxu0 }
 0x3cb   : > { %v4475_v37 = vadd.f32 %v4474_v43, %v11951_v44 }
 0x3cc   : > { %v11957_v5 = vpop.f32.mrf.mxu0 }
 0x3cd   : > { %v4476_v52 = vadd.f32 %v4475_v37, %v11957_v5 }
 0x3ce   : > { %v11960_v20 = vpop.f32.mrf.mxu0 }
 0x3cf   : > { %v4477_v35 = vadd.f32 %v11948_v59, %v4476_v52 }
 0x3d0   : > { %v11963_v17 = vpop.f32.mrf.mxu0 }
 0x3d1   : > { %v4478_v11 = vadd.f32 %v11954_v50, %v4477_v35 }
 0x3d2   : > { %v11966_v19 = vpop.f32.mrf.mxu0 }
 0x3d3   : > { %v4479_v21 = vadd.f32 %v4478_v11, %v11963_v17  ;;  %v5270_v11 = vld [vmem:[#allocation2 + $0x4] sm:$0xf] }
 0x3d4   : > { %v11969_v4 = vpop.f32.mrf.mxu0 }
 0x3d5   : > { %v4480_v60 = vadd.f32 %v4479_v21, %v11969_v4 }
 0x3d7   : > { %v4481_v51 = vadd.f32 %v11960_v20, %v4480_v60  ;;  %v5327_v60 = vshll.u32 %v5270_v11, 16 }
 0x3d9   : > { %v4482_v41 = vadd.f32 %v11966_v19, %v4481_v51  ;;  %v5331_v51 = vshrl.u32 %v5270_v11, 16 }
 0x3dc   : > { %v11972_v7 = vpop.f32.mrf.mxu0 }
 0x3de   : > { %v11975_v1 = vpop.f32.mrf.mxu0 }
 0x3df   : > { %v4483_v26 = vadd.f32 %v4482_v41, %v11975_v1  ;;  %v5271_v41 = vld [vmem:[#allocation2 + $0x8] sm:$0x1] }
 0x3e0   : > { %v11978_v40 = vpop.f32.mrf.mxu0 }
 0x3e2   : > { %v11981_v56 = vpop.f32.mrf.mxu0 }
 0x3e3   : > { %v4484_v13 = vadd.f32 %v4483_v26, %v11981_v56 }
 0x3e5   : > { %v4485_v9 = vadd.f32 %v11972_v7, %v4484_v13 }
 0x3e7   : > { %v4486_v48 = vadd.f32 %v11978_v40, %v4485_v9  ;;  %v5329_v9 = vrot.slane %v5327_v60, 5 }
 0x410   : > { %v11984_v62 = vpop.f32.mrf.mxu0 }
 0x412   : > { %v11987_v46 = vpop.f32.mrf.mxu0 }
 0x413   : > { %v4487_v3 = vadd.f32 %v4486_v48, %v11987_v46  ;;  %v5333_v48 = vrot.slane %v5331_v51, 4 }
 0x414   : > { %v11990_v36 = vpop.f32.mrf.mxu0 }
 0x416   : > { %v11993_v31 = vpop.f32.mrf.mxu0 }
 0x417   : > { %v4488_v2 = vadd.f32 %v4487_v3, %v11993_v31  ;;  %v5337_v3 = vshll.u32 %v5271_v41, 16 }
 0x419   : > { %v4489_v23 = vadd.f32 %v11984_v62, %v4488_v2 }
 0x41b   : > { %v4490_v24 = vadd.f32 %v11990_v36, %v4489_v23 }
 0x448   : > { %v11996_v6 = vpop.f32.mrf.mxu0 }
 0x44a   : > { %v11999_v28 = vpop.f32.mrf.mxu0 }
 0x44b   : > { %v4491_v55 = vadd.f32 %v4490_v24, %v11999_v28 }
 0x44c   : > { %v12002_v42 = vpop.f32.mrf.mxu0 }
 0x44e   : > { %v12005_v15 = vpop.f32.mrf.mxu0 }
 0x44f   : > { %v4492_v57 = vadd.f32 %v4491_v55, %v12005_v15  ;;  %v5334_v55 = vor.u32 %v5333_v48, %v5329_v9 }
 0x451   : > { %v4493_v63 = vadd.f32 %v11996_v6, %v4492_v57  ;;  %v5339_v57 = vrot.slane %v5337_v3, 5 }
 0x453   : > { %v4494_v30 = vadd.f32 %v12002_v42, %v4493_v63  ;;  %v5831_v63 = vld [vmem:[#allocation2 + $0x4] sm:$0xf] }
 0x480   : > { %v12009_v61 = vpop.f32.mrf.mxu0 }
 0x482   : > { %v12011_v18 = vpop.f32.mrf.mxu0 }
 0x483   : > { %v4495_v49 = vadd.f32 %v4494_v30, %v12011_v18  ;;  %v5832_v30 = vld [vmem:[#allocation2 + $0x8] sm:$0x1] }
 0x484   : > { %v12014_v47 = vpop.f32.mrf.mxu0 }
 0x486   : > { %v12017_v53 = vpop.f32.mrf.mxu0 }
 0x487   : > { %v4496_v39 = vadd.f32 %v4495_v49, %v12017_v53 }
 0x489   : > { %v4497_v34 = vadd.f32 %v12009_v61, %v4496_v39 }
 0x48b   : > { %v4498_v58 = vadd.f32 %v12014_v47, %v4497_v34  ;;  %v5335_v34 = vrot.slane %v5334_v55, 4 }
 0x48d   : > { %v4499_v27 = vrot.slane %v4498_v58, 4 }
 0x48f   : > { %v4500_v38 = vadd.f32 %v4499_v27, %v4498_v58 }
 0x491   : > { %v4501_v43 = vrot.slane %v4500_v38, 2 }
 0x493   : > { %v4502_v37 = vadd.f32 %v4501_v43, %v4500_v38  ;;  %v5928_v43 = vrot.slane %v5831_v63, 5 }
 0x495   : > { %v4503_v52 = vrot.slane %v4502_v37, 1  ;;  %v5930_v60 = vrot.slane %v5928_v43, 4 }
 0x497   : > { %v4504_v35 = vadd.f32 %v4503_v52, %v4502_v37  ;;  %v5931_v37 = vrot.slane %v5832_v30, 5 }
 0x499   : > { %v12022_v21 = vmul.f32 0.00390625, %v4504_v35  ;;  %v5932_v3 = vsel %vm10121_vm8, %v5930_v60, %v5931_v37 }
 0x49b   : > { %v12026_v26 = vsub.f32 %v11928_v29, %v12022_v21  ;;  %v12030_v13 = vsub.f32 %v11932_v32, %v12022_v21  ;;  %v12034_v2 = vsub.f32 %v11926_v45, %v12022_v21  ;;  %v12042_v29 = vsub.f32 %v11930_v16, %v12022_v21  ;;  %v5269_v32 = vld [vmem:[#allocation2] sm:$0xf] }
 0x49c   : > { %v12046_v49 = vsub.f32 %v11939_v14, %v12022_v21  ;;  %v5318_v58 = vshrl.u32 %v5269_v32, 16  ;;  %v5321_v27 = vshll.u32 %v5269_v32, 16  ;;  %v12052_v38 = vsub.f32 %v11945_v12, %v12022_v21 }
 0x49d   : > { %v4539_v23 = vmul.f32 %v12026_v26, %v12026_v26  ;;  %v4540_v24 = vmul.f32 %v12030_v13, %v12030_v13  ;;  %v4541_v45 = vmul.f32 %v12034_v2, %v12034_v2  ;;  %v4542_v16 = vmul.f32 %v12042_v29, %v12042_v29 }
 0x49e   : > { %v5340_v14 = vsel %vm10135_vm11, %v5335_v34, %v5339_v57  ;;  %v5320_v35 = vrot.slane %v5318_v58, 4  ;;  %v5323_v11 = vrot.slane %v5321_v27, 5  ;;  %v12061_v51 = vsub.f32 %v11936_v54, %v12022_v21  ;;  %v5830_v57 = vld [vmem:[#allocation2] sm:$0xe] }
 0x49f   : > { %v4571_v39 = vadd.f32 %v4540_v24, %v4539_v23  ;;  %5703 = vrot.lane.b32.xlu1 %v5340_v14, %s9921_s18  ;;  %v4543_v12 = vmul.f32 %v12046_v49, %v12046_v49  ;;  %v12069_v23 = vsub.f32 %v11942_v25, %v12022_v21  ;;  %v4544_v24 = vmul.f32 %v12052_v38, %v12052_v38 }
 0x4a0   : > { %v5324_v48 = vor.u32 %v5323_v11, %v5320_v35  ;;  %v9260_v54 = vrot.slane %v5830_v57, 9  ;;  %v12076_v63 = vsub.f32 %v11951_v44, %v12022_v21  ;;  %v4545_v30 = vmul.f32 %v12061_v51, %v12061_v51 }
 0x4a1   : > { %v4572_v52 = vadd.f32 %v4571_v39, %v4541_v45  ;;  %v12085_v39 = vsub.f32 %v11957_v5, %v12022_v21  ;;  %v4546_v34 = vmul.f32 %v12069_v23, %v12069_v23  ;;  %v12093_v27 = vsub.f32 %v11948_v59, %v12022_v21 }
 0x4a2   : > { %v5325_v32 = vrot.slane %v5324_v48, 4  ;;  %v5929_v44 = vsel %vm10121_vm8, %v9260_v54, %v5928_v43  ;;  %v12100_v5 = vsub.f32 %v11954_v50, %v12022_v21  ;;  %v12106_v43 = vsub.f32 %v11963_v17, %v12022_v21 }
 0x4a3   : > { %v4573_v41 = vadd.f32 %v4572_v52, %v4542_v16  ;;  %6040 = vrot.lane.b32.xlu1 %v5932_v3, %s9924_s27  ;;  %v4548_v37 = vmul.f32 %v12085_v39, %v12085_v39  ;;  %v4549_v59 = vmul.f32 %v12093_v27, %v12093_v27  ;;  %v12112_v35 = vsub.f32 %v11969_v4, %v12022_v21 }
 0x4a4   : > { %v5330_v25 = vsel %vm10135_vm11, %v5325_v32, %v5329_v9  ;;  %v4547_v9 = vmul.f32 %v12076_v63, %v12076_v63  ;;  %v4550_v50 = vmul.f32 %v12100_v5, %v12100_v5  ;;  %v12118_v60 = vsub.f32 %v11960_v20, %v12022_v21 }
 0x4a5   : > { %v4574_v55 = vadd.f32 %v4573_v41, %v4543_v12  ;;  %5701 = vrot.lane.b32.xlu0 %v5330_v25, %s9921_s18  ;;  %v4551_v17 = vmul.f32 %v12106_v43, %v12106_v43  ;;  %v12124_v41 = vsub.f32 %v11966_v19, %v12022_v21  ;;  %v4552_v4 = vmul.f32 %v12112_v35, %v12112_v35 }
 0x4a6   : > { %v12130_v3 = vsub.f32 %v11975_v1, %v12022_v21  ;;  %v4553_v20 = vmul.f32 %v12118_v60, %v12118_v60  ;;  %v12142_v57 = vsub.f32 %v11972_v7, %v12022_v21  ;;  %v12154_v25 = vsub.f32 %v11987_v46, %v12022_v21 }
 0x4a7   : > { %v4575_v45 = vadd.f32 %v4574_v55, %v4544_v24  ;;  %v12136_v55 = vsub.f32 %v11981_v56, %v12022_v21  ;;  %v4554_v19 = vmul.f32 %v12124_v41, %v12124_v41 }
 0x4a8   : > { %v4555_v1 = vmul.f32 %v12130_v3, %v12130_v3  ;;  %v4557_v7 = vmul.f32 %v12142_v57, %v12142_v57  ;;  %v4559_v46 = vmul.f32 %v12154_v25, %v12154_v25 }
 0x4a9   : > { %v4576_v58 = vadd.f32 %v4575_v45, %v4545_v30  ;;  %6038 = vrot.lane.b32.xlu0 %v5929_v44, %s9924_s27  ;;  %v12148_v30 = vsub.f32 %v11978_v40, %v12022_v21  ;;  %v4556_v56 = vmul.f32 %v12136_v55, %v12136_v55 }
 0x4ab   : > { %v4577_v16 = vadd.f32 %v4576_v58, %v4546_v34  ;;  %v12160_v58 = vsub.f32 %v11993_v31, %v12022_v21  ;;  %v4558_v40 = vmul.f32 %v12148_v30, %v12148_v30 }
 0x4ad   : > { %v4578_v52 = vadd.f32 %v4577_v16, %v4547_v9  ;;  %v12166_v9 = vsub.f32 %v11984_v62, %v12022_v21  ;;  %v4560_v31 = vmul.f32 %v12160_v58, %v12160_v58 }
 0x4af   : > { %v4579_v14 = vadd.f32 %v4578_v52, %v4548_v37  ;;  %v12172_v37 = vsub.f32 %v11990_v36, %v12022_v21  ;;  %v4561_v62 = vmul.f32 %v12166_v9, %v12166_v9 }
 0x4b1   : > { %v4580_v11 = vadd.f32 %v4579_v14, %v4549_v59  ;;  %v12178_v59 = vsub.f32 %v11999_v28, %v12022_v21  ;;  %v4562_v36 = vmul.f32 %v12172_v37, %v12172_v37 }
 0x4b3   : > { %v4581_v12 = vadd.f32 %v4580_v11, %v4550_v50  ;;  %v12184_v50 = vsub.f32 %v12005_v15, %v12022_v21  ;;  %v4563_v28 = vmul.f32 %v12178_v59, %v12178_v59 }
 0x4b5   : > { %v4582_v48 = vadd.f32 %v4581_v12, %v4551_v17  ;;  %v12190_v17 = vsub.f32 %v11996_v6, %v12022_v21  ;;  %v4564_v15 = vmul.f32 %v12184_v50, %v12184_v50 }
 0x4b7   : > { %v4583_v24 = vadd.f32 %v4582_v48, %v4552_v4  ;;  %v12196_v4 = vsub.f32 %v12002_v42, %v12022_v21  ;;  %v4537_v42 = vsub.f32 %v12009_v61, %v12022_v21 }
 0x4b9   : > { %v4584_v32 = vadd.f32 %v4583_v24, %v4553_v20  ;;  %v4535_v20 = vsub.f32 %v12011_v18, %v12022_v21  ;;  %v4565_v24 = vmul.f32 %v12190_v17, %v12190_v17 }
 0x4bb   : > { %v4585_v54 = vadd.f32 %v4584_v32, %v4554_v19  ;;  %v4536_v19 = vsub.f32 %v12017_v53, %v12022_v21  ;;  %v4566_v32 = vmul.f32 %v12196_v4, %v12196_v4 }
 0x4bd   : > { %v4586_v45 = vadd.f32 %v4585_v54, %v4555_v1  ;;  %v4567_v54 = vmul.f32 %v4535_v20, %v4535_v20  ;;  %v4568_v18 = vmul.f32 %v4536_v19, %v4536_v19 }
 0x4bf   : > { %v4587_v34 = vadd.f32 %v4586_v45, %v4556_v56  ;;  %v4538_v45 = vsub.f32 %v12014_v47, %v12022_v21 }
 0x4c1   : > { %v4588_v44 = vadd.f32 %v4587_v34, %v4557_v7  ;;  %v4569_v34 = vmul.f32 %v4537_v42, %v4537_v42 }
 0x4c3   : > { %v4589_v16 = vadd.f32 %v4588_v44, %v4558_v40  ;;  %v4570_v44 = vmul.f32 %v4538_v45, %v4538_v45 }
 0x4c5   : > { %v4590_v52 = vadd.f32 %v4589_v16, %v4559_v46 }
 0x4c7   : > { %v4591_v14 = vadd.f32 %v4590_v52, %v4560_v31 }
 0x4c9   : > { %v4592_v11 = vadd.f32 %v4591_v14, %v4561_v62 }
 0x4cb   : > { %v4593_v12 = vadd.f32 %v4592_v11, %v4562_v36 }
 0x4cd   : > { %v4594_v48 = vadd.f32 %v4593_v12, %v4563_v28 }
 0x4cf   : > { %v4595_v6 = vadd.f32 %v4594_v48, %v4564_v15 }
 0x4d1   : > { %v4596_v1 = vadd.f32 %v4595_v6, %v4565_v24 }
 0x4d3   : > { %v4597_v56 = vadd.f32 %v4596_v1, %v4566_v32 }
 0x4d5   : > { %v4598_v7 = vadd.f32 %v4597_v56, %v4567_v54 }
 0x4d7   : > { %v4599_v40 = vadd.f32 %v4598_v7, %v4568_v18 }
 0x4d9   : > { %v4600_v46 = vadd.f32 %v4599_v40, %v4569_v34 }
 0x4db   : > { %v4601_v16 = vadd.f32 %v4600_v46, %v4570_v44 }
 0x4dd   : > { %v4602_v53 = vrot.slane %v4601_v16, 4 }
 0x4df   : > { %v4603_v31 = vadd.f32 %v4602_v53, %v4601_v16 }
 0x4e1   : > { %v4604_v52 = vrot.slane %v4603_v31, 2 }
 0x4e3   : > { %v4605_v62 = vadd.f32 %v4604_v52, %v4603_v31 }
 0x4e5   : > { %v4606_v14 = vrot.slane %v4605_v62, 1 }
 0x4e7   : > { %v4607_v36 = vadd.f32 %v4606_v14, %v4605_v62 }
 0x4e9   : > { %v4608_v11 = vmul.f32 0.00390625, %v4607_v36 }
 0x4eb   : > { %v4609_v61 = vadd.f32 1e-05, %v4608_v11 }
 0x4ed   : > { %9761 = vrsqrt.f32 %v4609_v61 }
 0x4fa   : > { %v9762_v28 = vpop.eup %9761 }
 0x4fb   : > { %v4639_v12 = vmul.f32 %v9762_v28, %v4535_v20  ;;  %v4640_v15 = vmul.f32 %v9762_v28, %v4536_v19  ;;  %v12213_v47 = vmul.f32 %v9762_v28, %v12026_v26  ;;  %v12216_v21 = vmul.f32 %v9762_v28, %v12030_v13 }
 0x4fc   : > { %v12219_v48 = vmul.f32 %v9762_v28, %v12034_v2  ;;  %v12222_v24 = vmul.f32 %v9762_v28, %v12042_v29  ;;  %v12225_v6 = vmul.f32 %v9762_v28, %v12046_v49  ;;  %v12228_v32 = vmul.f32 %v9762_v28, %v12052_v38 }
 0x4fd   : > { %v4671_v20 = vmax.f32 %v4639_v12, 0.0  ;;  %v4672_v19 = vmax.f32 %v4640_v15, 0.0  ;;  %v12231_v26 = vmul.f32 %v9762_v28, %v12061_v51  ;;  %v12234_v13 = vmul.f32 %v9762_v28, %v12069_v23 }
 0x4fe   : > { %v12237_v2 = vmul.f32 %v9762_v28, %v12076_v63  ;;  %v12240_v29 = vmul.f32 %v9762_v28, %v12085_v39  ;;  %v12243_v49 = vmul.f32 %v9762_v28, %v12093_v27  ;;  %v12246_v38 = vmul.f32 %v9762_v28, %v12100_v5 }
 0x4ff   : > { %v12248_v1 = vpack.c.bf16 %v4671_v20, %v4671_v20  ;;  %v9399_v54 = vpack.c.bf16 %v4672_v19, %v4672_v19  ;;  %v12251_v51 = vmul.f32 %v9762_v28, %v12106_v43  ;;  %v12254_v23 = vmul.f32 %v9762_v28, %v12112_v35 }
 0x500   : > { %v12257_v63 = vmul.f32 %v9762_v28, %v12118_v60  ;;  %v12260_v39 = vmul.f32 %v9762_v28, %v12124_v41  ;;  %v12263_v27 = vmul.f32 %v9762_v28, %v12130_v3  ;;  %v12266_v5 = vmul.f32 %v9762_v28, %v12136_v55 }
 0x501   : > { %v5010_v56 = vshrl.u32 %v12248_v1, 16  ;;  %v5018_v18 = vshrl.u32 %v9399_v54, 16  ;;  %v5021_v43 = vshll.u32 %v9399_v54, 16  ;;  %v12270_v7 = vmul.f32 %v9762_v28, %v12142_v57 }
 0x502   : > { %v12273_v35 = vmul.f32 %v9762_v28, %v12148_v30  ;;  %v12276_v60 = vmul.f32 %v9762_v28, %v12154_v25  ;;  %v12279_v41 = vmul.f32 %v9762_v28, %v12160_v58  ;;  %v12282_v3 = vmul.f32 %v9762_v28, %v12166_v9 }
 0x503   : > { %v5012_v55 = vrot.slane %v5010_v56, 7  ;;  %v5020_v34 = vrot.slane %v5018_v18, 7  ;;  %v12285_v40 = vmul.f32 %v9762_v28, %v12172_v37  ;;  %v12288_v57 = vmul.f32 %v9762_v28, %v12178_v59  ;;  %v5195_v37 = vld [vmem:[#allocation2 + $0xbc] sm:$0x1] }
 0x504   : > { %v12291_v30 = vmul.f32 %v9762_v28, %v12184_v50  ;;  %v12294_v25 = vmul.f32 %v9762_v28, %v12190_v17  ;;  %v12297_v58 = vmul.f32 %v9762_v28, %v12196_v4  ;;  %v12299_v44 = vmul.f32 %v9762_v28, %v4537_v42 }
 0x505   : > { %v5016_v9 = vrot.slane %v5012_v55, 4  ;;  %v5023_v46 = vor.u32 %v5021_v43, %v5020_v34  ;;  %v5025_v16 = vrot.slane %v5020_v34, 4  ;;  %v12301_v53 = vmul.f32 %v9762_v28, %v4538_v45 }
 0x506   : > { %v5013_v59 = vshll.u32 %v12248_v1, 16  ;;  %v4643_v31 = vmax.f32 %v12213_v47, 0.0  ;;  %v4644_v50 = vmax.f32 %v12216_v21, 0.0  ;;  %v4645_v17 = vmax.f32 %v12219_v48, 0.0 }
 0x507   : > { %v5024_v4 = vsel %vm10215_vm0, %v5016_v9, %v5023_v46  ;;  %v5196_v42 = vsel %vm10086_vm2, %v5025_v16, %v5195_v37  ;;  %v4646_v52 = vmax.f32 %v12222_v24, 0.0  ;;  %v4647_v45 = vmax.f32 %v12225_v6, 0.0 }
 0x508   : > { %5194 = vst.msk [vmem:[#allocation2 + $0xb8] sm:$0xf] %vm217_vm4, %v5024_v4  ;;  %5197 = vst [vmem:[#allocation2 + $0xbc] sm:$0x1] %v5196_v42  ;;  %v4648_v62 = vmax.f32 %v12228_v32, 0.0  ;;  %v4649_v14 = vmax.f32 %v12231_v26, 0.0 }
 0x509   : > { %v4650_v36 = vmax.f32 %v12234_v13, 0.0  ;;  %v4651_v11 = vmax.f32 %v12237_v2, 0.0  ;;  %v4652_v61 = vmax.f32 %v12240_v29, 0.0  ;;  %v4653_v28 = vmax.f32 %v12243_v49, 0.0 }
 0x50a   : > { %v4654_v12 = vmax.f32 %v12246_v38, 0.0  ;;  %v4655_v15 = vmax.f32 %v12251_v51, 0.0  ;;  %v4656_v47 = vmax.f32 %v12254_v23, 0.0  ;;  %v4657_v21 = vmax.f32 %v12257_v63, 0.0 }
 0x50b   : > { %v4658_v48 = vmax.f32 %v12260_v39, 0.0  ;;  %v4659_v24 = vmax.f32 %v12263_v27, 0.0  ;;  %v4660_v6 = vmax.f32 %v12266_v5, 0.0  ;;  %v4661_v32 = vmax.f32 %v12270_v7, 0.0 }
 0x50c   : > { %v4662_v20 = vmax.f32 %v12273_v35, 0.0  ;;  %v4663_v19 = vmax.f32 %v12276_v60, 0.0  ;;  %v4664_v26 = vmax.f32 %v12279_v41, 0.0  ;;  %v4665_v13 = vmax.f32 %v12282_v3, 0.0 }
 0x50d   : > { %v4666_v2 = vmax.f32 %v12285_v40, 0.0  ;;  %v4667_v29 = vmax.f32 %v12288_v57, 0.0  ;;  %v4668_v49 = vmax.f32 %v12291_v30, 0.0  ;;  %v4669_v38 = vmax.f32 %v12294_v25, 0.0 }
 0x50e   : > { %v4670_v1 = vmax.f32 %v12297_v58, 0.0  ;;  %v4673_v54 = vmax.f32 %v12299_v44, 0.0  ;;  %v4674_v51 = vmax.f32 %v12301_v53, 0.0  ;;  %v5015_v23 = vor.u32 %v5013_v59, %v5012_v55 }
 0x50f   : > { %v12339_v63 = vpack.c.bf16 %v4643_v31, %v4643_v31  ;;  %v12341_v39 = vpack.c.bf16 %v4644_v50, %v4644_v50  ;;  %v12343_v27 = vpack.c.bf16 %v4645_v17, %v4645_v17  ;;  %v12345_v5 = vpack.c.bf16 %v4646_v52, %v4646_v52  ;;  %v5191_v50 = vld [vmem:[#allocation2 + $0xb4] sm:$0xf] }
 0x510   : > { %v12347_v56 = vpack.c.bf16 %v4647_v45, %v4647_v45  ;;  %v12349_v18 = vpack.c.bf16 %v4648_v62, %v4648_v62  ;;  %v12351_v43 = vpack.c.bf16 %v4649_v14, %v4649_v14  ;;  %v12353_v7 = vpack.c.bf16 %v4650_v36, %v4650_v36 }
 0x511   : > { %v12355_v35 = vpack.c.bf16 %v4651_v11, %v4651_v11  ;;  %v12357_v60 = vpack.c.bf16 %v4652_v61, %v4652_v61  ;;  %v12359_v41 = vpack.c.bf16 %v4653_v28, %v4653_v28  ;;  %v12361_v3 = vpack.c.bf16 %v4654_v12, %v4654_v12 }
 0x512   : > { %v12363_v55 = vpack.c.bf16 %v4655_v15, %v4655_v15  ;;  %v12365_v34 = vpack.c.bf16 %v4656_v47, %v4656_v47  ;;  %v12367_v40 = vpack.c.bf16 %v4657_v21, %v4657_v21  ;;  %v12369_v57 = vpack.c.bf16 %v4658_v48, %v4658_v48 }
 0x513   : > { %v12371_v30 = vpack.c.bf16 %v4659_v24, %v4659_v24  ;;  %v12373_v25 = vpack.c.bf16 %v4660_v6, %v4660_v6  ;;  %v14478_v58 = vmov 0  ;;  %v12381_v44 = vpack.c.bf16 %v4661_v32, %v4661_v32 }
 0x514   : > { %v14479_v58 = vsel %vm12377_vm5, 4294967295, %v14478_v58  ;;  %v12383_v9 = vpack.c.bf16 %v4662_v20, %v4662_v20  ;;  %v12385_v46 = vpack.c.bf16 %v4663_v19, %v4663_v19  ;;  %v12387_v16 = vpack.c.bf16 %v4664_v26, %v4664_v26 }
 0x515   : > { %14480 = vst [vmem:[#allocation17_spill] sm:$0xff] %v14479_v58  ;;  %v12389_v53 = vpack.c.bf16 %v4665_v13, %v4665_v13  ;;  %v12391_v37 = vpack.c.bf16 %v4666_v2, %v4666_v2  ;;  %v12393_v59 = vpack.c.bf16 %v4667_v29, %v4667_v29  ;;  %v12395_v31 = vpack.c.bf16 %v4668_v49, %v4668_v49 }
 0x516   : > { %14481 = vst [vmem:[#allocation18_spill] sm:$0xff] %v12387_v16  ;;  %v12397_v17 = vpack.c.bf16 %v4669_v38, %v4669_v38  ;;  %v12399_v4 = vpack.c.bf16 %v4670_v1, %v4670_v1  ;;  %v12401_v42 = vpack.c.bf16 %v4673_v54, %v4673_v54  ;;  %v12403_v52 = vpack.c.bf16 %v4674_v51, %v4674_v51 }
 0x517   : > { %14482 = vst [vmem:[#allocation19_spill] sm:$0xff] %v12389_v53  ;;  %14483 = vst [vmem:[#allocation20_spill] sm:$0xff] %v12391_v37  ;;  %v5192_v45 = vsel %vm12377_vm5, %v5015_v23, %v5191_v50  ;;  %v4772_v62 = vshrl.u32 %v12339_v63, 16  ;;  %v4780_v36 = vshrl.u32 %v12341_v39, 16  ;;  %v4789_v61 = vshrl.u32 %v12343_v27, 16 }
 0x518   : > { %14484 = vst [vmem:[#allocation21_spill] sm:$0xff] %v12393_v59  ;;  %14485 = vst [vmem:[#allocation22_spill] sm:$0xff] %v12395_v31  ;;  %v4797_v12 = vshrl.u32 %v12345_v5, 16  ;;  %v4806_v47 = vshrl.u32 %v12347_v56, 16  ;;  %v4814_v48 = vshrl.u32 %v12349_v18, 16  ;;  %v4823_v6 = vshrl.u32 %v12351_v43, 16 }
 0x519   : > { %14486 = vst [vmem:[#allocation23_spill] sm:$0xff] %v12397_v17  ;;  %14487 = vst [vmem:[#allocation24_spill] sm:$0xff] %v12399_v4  ;;  %v4831_v20 = vshrl.u32 %v12353_v7, 16  ;;  %v4840_v26 = vshrl.u32 %v12355_v35, 16  ;;  %v4848_v2 = vshrl.u32 %v12357_v60, 16  ;;  %v4857_v49 = vshrl.u32 %v12359_v41, 16 }
 0x51a   : > { %14488 = vst [vmem:[#allocation25_spill] sm:$0xff] %v12401_v42  ;;  %14489 = vst [vmem:[#allocation26_spill] sm:$0xff] %v12403_v52  ;;  %v4865_v1 = vshrl.u32 %v12361_v3, 16  ;;  %v4874_v51 = vshrl.u32 %v12363_v55, 16  ;;  %v4882_v50 = vshrl.u32 %v12365_v34, 16  ;;  %v4891_v8 = vshrl.u32 %v12367_v40, 16 }
 0x51b   : > { %5193 = vst [vmem:[#allocation2 + $0xb4] sm:$0xf] %v5192_v45  ;;  %v4899_v13 = vshrl.u32 %v12369_v57, 16  ;;  %v4908_v19 = vshrl.u32 %v12371_v30, 16  ;;  %v4916_v32 = vshrl.u32 %v12373_v25, 16  ;;  %v4925_v24 = vshrl.u32 %v12381_v44, 16 }
 0x51c   : > { %v4933_v21 = vshrl.u32 %v12383_v9, 16  ;;  %v4942_v15 = vshrl.u32 %v12385_v46, 16  ;;  %v4950_v28 = vshrl.u32 %v12387_v16, 16  ;;  %v4959_v14 = vshrl.u32 %v12389_v53, 16 }
 0x51d   : > { %v4967_v11 = vshrl.u32 %v12391_v37, 16  ;;  %v4976_v33 = vshrl.u32 %v12393_v59, 16  ;;  %v4984_v22 = vshrl.u32 %v12395_v31, 16  ;;  %v4993_v0 = vshrl.u32 %v12397_v17, 16 }
 0x51e   : > { %v5001_v58 = vshrl.u32 %v12399_v4, 16  ;;  %v5027_v53 = vshrl.u32 %v12401_v42, 16  ;;  %v5035_v37 = vshrl.u32 %v12403_v52, 16  ;;  %v4774_v59 = vrot.slane %v4772_v62, 7 }
 0x51f   : > { %v12467_v16 = vrot.slane %v4780_v36, 7  ;;  %v12469_v38 = vrot.slane %v4789_v61, 7  ;;  %v12471_v31 = vrot.slane %v4797_v12, 7  ;;  %v12473_v54 = vrot.slane %v4806_v47, 7 }
 0x520   : > { %v12475_v17 = vrot.slane %v4814_v48, 7  ;;  %v12477_v23 = vrot.slane %v4823_v6, 7  ;;  %v12479_v4 = vrot.slane %v4831_v20, 7  ;;  %v12481_v45 = vrot.slane %v4840_v26, 7 }
 0x521   : > { %v12483_v42 = vrot.slane %v4848_v2, 7  ;;  %v12485_v29 = vrot.slane %v4857_v49, 7  ;;  %v12487_v62 = vrot.slane %v4865_v1, 7  ;;  %v12489_v36 = vrot.slane %v4874_v51, 7 }
 0x522   : > { %v12491_v61 = vrot.slane %v4882_v50, 7  ;;  %v12493_v12 = vrot.slane %v4891_v8, 7  ;;  %v12495_v47 = vrot.slane %v4899_v13, 7  ;;  %v12497_v48 = vrot.slane %v4908_v19, 7 }
 0x523   : > { %v12499_v6 = vrot.slane %v4916_v32, 7  ;;  %v12501_v20 = vrot.slane %v4925_v24, 7  ;;  %v12503_v26 = vrot.slane %v4933_v21, 7  ;;  %v12505_v2 = vrot.slane %v4942_v15, 7 }
 0x524   : > { %v12507_v49 = vrot.slane %v4950_v28, 7  ;;  %v12509_v1 = vrot.slane %v4959_v14, 7  ;;  %v12511_v51 = vrot.slane %v4967_v11, 7  ;;  %v12513_v8 = vrot.slane %v4976_v33, 7 }
 0x525   : > { %v12515_v13 = vrot.slane %v4984_v22, 7  ;;  %v12517_v19 = vrot.slane %v4993_v0, 7  ;;  %v12519_v32 = vrot.slane %v5001_v58, 7  ;;  %v12521_v24 = vrot.slane %v5027_v53, 7  ;;  %v5206_v58 = vld [vmem:[#allocation2 + $0x4] sm:$0xf] }
 0x526   : > { %14490 = vst [vmem:[#allocation27_spill] sm:$0xff] %v12507_v49  ;;  %14491 = vst [vmem:[#allocation28_spill] sm:$0xff] %v12511_v51  ;;  %v12523_v21 = vrot.slane %v5035_v37, 7  ;;  %v4778_v15 = vrot.slane %v4774_v59, 4  ;;  %v14493_v28 = vshll.u32 %v12341_v39, 16  ;;  %v14494_v11 = vshll.u32 %v12339_v63, 16 }
 0x527   : > { %14492 = vst [vmem:[#allocation29_spill] sm:$0xff] %v12515_v13  ;;  %v14495_v0 = vshll.u32 %v12343_v27, 16  ;;  %v5205_v53 = vld [vmem:[#allocation2] sm:$0xf]  ;;  %v14496_v52 = vshll.u32 %v12345_v5, 16  ;;  %v14498_v5 = vshll.u32 %v12349_v18, 16 }
 0x528   : > { %v4785_v14 = vor.u32 %v14493_v28, %v12467_v16  ;;  %v12530_v50 = vor.u32 %v14494_v11, %v4774_v59  ;;  %v14497_v59 = vshll.u32 %v12347_v56, 16  ;;  %5238 = vst.msk [vmem:[#allocation3 + $0x4] sm:$0xf] %vm217_vm4, %v5206_v58  ;;  %5237 = vst.msk [vmem:[#allocation3] sm:$0xf] %vm217_vm4, %v5205_v53  ;;  %v4812_v11 = vrot.slane %v12473_v54, 4 }
 0x529   : > { %v12536_v33 = vor.u32 %v14495_v0, %v12469_v38  ;;  %v12542_v39 = vor.u32 %v14496_v52, %v12471_v31  ;;  %v4819_v52 = vor.u32 %v14498_v5, %v12475_v17  ;;  %v14499_v56 = vshll.u32 %v12351_v43, 16 }
 0x52a   : > { %v12548_v28 = vor.u32 %v14497_v59, %v12473_v54  ;;  %v4786_v27 = vsel %vm10215_vm0, %v4778_v15, %v4785_v14  ;;  %v4829_v58 = vrot.slane %v12477_v23, 4  ;;  %v14500_v15 = vshll.u32 %v12353_v7, 16 }
 0x52b   : > { %5096 = vst.msk [vmem:[#allocation2 + $0x10] sm:$0xf] %vm217_vm4, %v4786_v27  ;;  %v12563_v59 = vor.u32 %v14499_v56, %v12477_v23  ;;  %v14501_v18 = vshll.u32 %v12355_v35, 16  ;;  %v4846_v27 = vrot.slane %v12481_v45, 4  ;;  %v14502_v43 = vshll.u32 %v12357_v60, 16 }
 0x52c   : > { %v4836_v14 = vor.u32 %v14500_v15, %v12479_v4  ;;  %v14503_v23 = vshll.u32 %v12359_v41, 16  ;;  %v4863_v15 = vrot.slane %v12485_v29, 4  ;;  %v14504_v35 = vshll.u32 %v12361_v3, 16 }
 0x52d   : > { %v12573_v53 = vor.u32 %v14501_v18, %v12481_v45  ;;  %v4853_v5 = vor.u32 %v14502_v43, %v12483_v42  ;;  %v14505_v45 = vshll.u32 %v12363_v55, 16  ;;  %v4880_v43 = vrot.slane %v12489_v36, 4 }
 0x52e   : > { %v12583_v7 = vor.u32 %v14503_v23, %v12485_v29  ;;  %v4870_v18 = vor.u32 %v14504_v35, %v12487_v62  ;;  %v14506_v41 = vshll.u32 %v12365_v34, 16  ;;  %v14507_v29 = vshll.u32 %v12367_v40, 16 }
 0x52f   : > { %v12593_v60 = vor.u32 %v14505_v45, %v12489_v36  ;;  %v4897_v35 = vrot.slane %v12493_v12, 4  ;;  %v14508_v55 = vshll.u32 %v12369_v57, 16  ;;  %v14509_v36 = vshll.u32 %v12371_v30, 16 }
 0x530   : > { %v4887_v23 = vor.u32 %v14506_v41, %v12491_v61  ;;  %v12603_v3 = vor.u32 %v14507_v29, %v12493_v12  ;;  %v4914_v41 = vrot.slane %v12497_v48, 4  ;;  %v14510_v40 = vshll.u32 %v12373_v25, 16 }
 0x531   : > { %v4904_v45 = vor.u32 %v14508_v55, %v12495_v47  ;;  %v12613_v34 = vor.u32 %v14509_v36, %v12497_v48  ;;  %v14511_v12 = vshll.u32 %v12381_v44, 16  ;;  %v4931_v55 = vrot.slane %v12501_v20, 4  ;;  %v14514_v44 = vld [vmem:[#allocation18_spill] sm:$0xff] }
 0x532   : > { %v4921_v29 = vor.u32 %v14510_v40, %v12499_v6  ;;  %v14512_v30 = vshll.u32 %v12383_v9, 16  ;;  %v6168_v48 = vld [vmem:[#allocation2 + $0x10] sm:$0xf]  ;;  %v14513_v25 = vshll.u32 %v12385_v46, 16  ;;  %v4948_v56 = vrot.slane %v12505_v2, 4  ;;  %v14519_v46 = vld [vmem:[#allocation20_spill] sm:$0xff] }
 0x533   : > { %v12623_v57 = vor.u32 %v14511_v12, %v12501_v20  ;;  %v14515_v12 = vshll.u32 %v14514_v44, 16  ;;  %6233 = vrot.lane.b32.xlu1 %v6168_v48, %s9926_s29  ;;  %v14516_v9 = vld [vmem:[#allocation19_spill] sm:$0xff]  ;;  %v4965_v63 = vrot.slane %v12509_v1, 4  ;;  %v14521_v44 = vld [vmem:[#allocation21_spill] sm:$0xff]  ;;  %v4982_v48 = vrot.slane %v12513_v8, 4  ;;  %v14524_v20 = vld [vmem:[#allocation22_spill] sm:$0xff] }
 0x534   : > { %v4938_v36 = vor.u32 %v14512_v30, %v12503_v26  ;;  %v12633_v40 = vor.u32 %v14513_v25, %v12505_v2  ;;  %v14517_v30 = vshll.u32 %v14516_v9, 16  ;;  %v14520_v25 = vshll.u32 %v14519_v46, 16  ;;  %v14529_v2 = vld [vmem:[#allocation24_spill] sm:$0xff] }
 0x535   : > { %v4955_v0 = vor.u32 %v14515_v12, %v12507_v49  ;;  %v14522_v12 = vshll.u32 %v14521_v44, 16  ;;  %v14525_v9 = vshll.u32 %v14524_v20, 16  ;;  %v14530_v44 = vshll.u32 %v14529_v2, 16 }
 0x536   : > { %v12644_v54 = vor.u32 %v14517_v30, %v12509_v1  ;;  %v4972_v22 = vor.u32 %v14520_v25, %v12511_v51  ;;  %v14526_v1 = vld [vmem:[#allocation23_spill] sm:$0xff]  ;;  %v4999_v25 = vrot.slane %v12517_v19, 4  ;;  %v14531_v51 = vld [vmem:[#allocation25_spill] sm:$0xff] }
 0x537   : > { %v12654_v37 = vor.u32 %v14522_v12, %v12513_v8  ;;  %v4989_v30 = vor.u32 %v14525_v9, %v12515_v13  ;;  %v14527_v49 = vshll.u32 %v14526_v1, 16  ;;  %v5006_v12 = vor.u32 %v14530_v44, %v12519_v32  ;;  %v5093_v8 = vld [vmem:[#allocation2 + $0xc] sm:$0xf] }
 0x538   : > { %14518 = vst [vmem:[#allocation18_spill] sm:$0xff] %v12644_v54  ;;  %v14532_v20 = vshll.u32 %v14531_v51, 16  ;;  %v5033_v54 = vrot.slane %v12521_v24, 4  ;;  %v14533_v1 = vld [vmem:[#allocation26_spill] sm:$0xff]  ;;  %v5094_v2 = vsel %vm12377_vm5, %v12530_v50, %v5093_v8  ;;  %v14536_v44 = vrot.slane %v12469_v38, 4 }
 0x539   : > { %14523 = vst [vmem:[#allocation19_spill] sm:$0xff] %v12654_v37  ;;  %v12664_v46 = vor.u32 %v14527_v49, %v12517_v19  ;;  %v14534_v49 = vshll.u32 %v14533_v1, 16  ;;  %v5100_v1 = vld [vmem:[#allocation2 + $0x18] sm:$0xf]  ;;  %v5097_v37 = vld [vmem:[#allocation2 + $0x14] sm:$0x1]  ;;  %v4854_v50 = vsel %vm10215_vm0, %v4846_v27, %v4853_v5  ;;  %v4871_v38 = vsel %vm10215_vm0, %v4863_v15, %v4870_v18 }
 0x53a   : > { %v12674_v9 = vor.u32 %v14532_v20, %v12521_v24  ;;  %v4803_v51 = vsel %vm10215_vm0, %v14536_v44, %v12542_v39  ;;  %v4820_v20 = vsel %vm10215_vm0, %v4812_v11, %v4819_v52  ;;  %v4837_v24 = vsel %vm10215_vm0, %v4829_v58, %v4836_v14  ;;  %v5107_v19 = vld [vmem:[#allocation2 + $0x24] sm:$0xf]  ;;  %5095 = vst [vmem:[#allocation2 + $0xc] sm:$0xf] %v5094_v2  ;;  %v5114_v52 = vld [vmem:[#allocation2 + $0x30] sm:$0xf] }
 0x53b   : > { %14528 = vst [vmem:[#allocation20_spill] sm:$0xff] %v12664_v46  ;;  %v5040_v46 = vor.u32 %v14534_v49, %v12523_v21  ;;  %v5104_v49 = vld [vmem:[#allocation2 + $0x20] sm:$0x1]  ;;  %v4888_v39 = vsel %vm10215_vm0, %v4880_v43, %v4887_v23  ;;  %v4905_v11 = vsel %vm10215_vm0, %v4897_v35, %v4904_v45  ;;  %5103 = vst.msk [vmem:[#allocation2 + $0x1c] sm:$0xf] %vm217_vm4, %v4803_v51  ;;  %v14542_v44 = vrot.slane %v12483_v42, 4 }
 0x53c   : > { %5110 = vst.msk [vmem:[#allocation2 + $0x28] sm:$0xf] %vm217_vm4, %v4820_v20  ;;  %5117 = vst.msk [vmem:[#allocation2 + $0x34] sm:$0xf] %vm217_vm4, %v4837_v24  ;;  %v5118_v58 = vld [vmem:[#allocation2 + $0x38] sm:$0x1]  ;;  %v4922_v27 = vsel %vm10215_vm0, %v4914_v41, %v4921_v29  ;;  %v4939_v5 = vsel %vm10215_vm0, %v4931_v55, %v4938_v36  ;;  %v4956_v15 = vsel %vm10215_vm0, %v4948_v56, %v4955_v0 }
 0x53d   : > { %v5111_v14 = vld [vmem:[#allocation2 + $0x2c] sm:$0x1]  ;;  %v5121_v8 = vld [vmem:[#allocation2 + $0x3c] sm:$0xf]  ;;  %v4973_v18 = vsel %vm10215_vm0, %v4965_v63, %v4972_v22  ;;  %5124 = vst.msk [vmem:[#allocation2 + $0x40] sm:$0xf] %vm217_vm4, %v4854_v50  ;;  %v4990_v45 = vsel %vm10215_vm0, %v4982_v48, %v4989_v30  ;;  %v5007_v0 = vsel %vm10215_vm0, %v4999_v25, %v5006_v12  ;;  %v5041_v22 = vsel %vm10215_vm0, %v5033_v54, %v5040_v46 }
 0x53e   : > { %5131 = vst.msk [vmem:[#allocation2 + $0x4c] sm:$0xf] %vm217_vm4, %v4871_v38  ;;  %5138 = vst.msk [vmem:[#allocation2 + $0x58] sm:$0xf] %vm217_vm4, %v4888_v39  ;;  %v5128_v43 = vld [vmem:[#allocation2 + $0x48] sm:$0xf]  ;;  %v5101_v10 = vsel %vm12377_vm5, %v12536_v33, %v5100_v1  ;;  %v5108_v54 = vsel %vm12377_vm5, %v12548_v28, %v5107_v19  ;;  %v5115_v28 = vsel %vm12377_vm5, %v12563_v59, %v5114_v52 }
 0x53f   : > { %5145 = vst.msk [vmem:[#allocation2 + $0x64] sm:$0xf] %vm217_vm4, %v4905_v11  ;;  %v5132_v23 = vld [vmem:[#allocation2 + $0x50] sm:$0x1]  ;;  %v5125_v35 = vld [vmem:[#allocation2 + $0x44] sm:$0x1]  ;;  %v5122_v2 = vsel %vm12377_vm5, %v12573_v53, %v5121_v8  ;;  %v5129_v1 = vsel %vm12377_vm5, %v12583_v7, %v5128_v43 }
 0x540   : > { %v14537_v63 = vrot.slane %v12467_v16, 4  ;;  %5152 = vst.msk [vmem:[#allocation2 + $0x70] sm:$0xf] %vm217_vm4, %v4922_v27  ;;  %5159 = vst.msk [vmem:[#allocation2 + $0x7c] sm:$0xf] %vm217_vm4, %v4939_v5  ;;  %v14539_v16 = vrot.slane %v12471_v31, 4  ;;  %v5126_v51 = vsel %vm10086_vm2, %v14542_v44, %v5125_v35 }
 0x541   : > { %5166 = vst.msk [vmem:[#allocation2 + $0x88] sm:$0xf] %vm217_vm4, %v4956_v15  ;;  %5173 = vst.msk [vmem:[#allocation2 + $0x94] sm:$0xf] %vm217_vm4, %v4973_v18  ;;  %v5142_v29 = vld [vmem:[#allocation2 + $0x60] sm:$0xf] }
 0x542   : > { %v5098_v41 = vsel %vm10086_vm2, %v14537_v63, %v5097_v37  ;;  %v5135_v55 = vld [vmem:[#allocation2 + $0x54] sm:$0xf]  ;;  %v5146_v36 = vld [vmem:[#allocation2 + $0x68] sm:$0x1]  ;;  %v5139_v48 = vld [vmem:[#allocation2 + $0x5c] sm:$0x1]  ;;  %v5105_v37 = vsel %vm10086_vm2, %v14539_v16, %v5104_v49 }
 0x543   : > { %v14540_v30 = vrot.slane %v12475_v17, 4  ;;  %5099 = vst [vmem:[#allocation2 + $0x14] sm:$0x1] %v5098_v41  ;;  %5180 = vst.msk [vmem:[#allocation2 + $0xa0] sm:$0xf] %vm217_vm4, %v4990_v45  ;;  %v14541_v17 = vrot.slane %v12479_v4, 4  ;;  %v5136_v53 = vsel %vm12377_vm5, %v12593_v60, %v5135_v55 }
 0x544   : > { %5187 = vst.msk [vmem:[#allocation2 + $0xac] sm:$0xf] %vm217_vm4, %v5007_v0  ;;  %5201 = vst.msk [vmem:[#allocation2 + $0xc4] sm:$0xf] %vm217_vm4, %v5041_v22  ;;  %v5156_v31 = vld [vmem:[#allocation2 + $0x78] sm:$0xf] }
 0x545   : > { %v5112_v46 = vsel %vm10086_vm2, %v14540_v30, %v5111_v14  ;;  %v5149_v33 = vld [vmem:[#allocation2 + $0x6c] sm:$0xf]  ;;  %v5160_v25 = vld [vmem:[#allocation2 + $0x80] sm:$0x1]  ;;  %v5153_v12 = vld [vmem:[#allocation2 + $0x74] sm:$0x1]  ;;  %v5119_v19 = vsel %vm10086_vm2, %v14541_v17, %v5118_v58 }
 0x546   : > { %5102 = vst [vmem:[#allocation2 + $0x18] sm:$0xf] %v5101_v10  ;;  %5106 = vst [vmem:[#allocation2 + $0x20] sm:$0x1] %v5105_v37  ;;  %v5170_v20 = vld [vmem:[#allocation2 + $0x90] sm:$0xf] }
 0x547   : > { %5109 = vst [vmem:[#allocation2 + $0x24] sm:$0xf] %v5108_v54  ;;  %5113 = vst [vmem:[#allocation2 + $0x2c] sm:$0x1] %v5112_v46  ;;  %v5163_v59 = vld [vmem:[#allocation2 + $0x84] sm:$0xf] }
 0x548   : > { %v5174_v24 = vld [vmem:[#allocation2 + $0x98] sm:$0x1]  ;;  %v5167_v4 = vld [vmem:[#allocation2 + $0x8c] sm:$0x1]  ;;  %v14543_v49 = vrot.slane %v12487_v62, 4  ;;  %v14544_v50 = vrot.slane %v12491_v61, 4  ;;  %v5143_v62 = vsel %vm12377_vm5, %v12603_v3, %v5142_v29  ;;  %v5150_v61 = vsel %vm12377_vm5, %v12613_v34, %v5149_v33 }
 0x549   : > { %5116 = vst [vmem:[#allocation2 + $0x30] sm:$0xf] %v5115_v28  ;;  %5120 = vst [vmem:[#allocation2 + $0x38] sm:$0x1] %v5119_v19  ;;  %v5184_v39 = vld [vmem:[#allocation2 + $0xa8] sm:$0xf] }
 0x54a   : > { %v5133_v42 = vsel %vm10086_vm2, %v14543_v49, %v5132_v23  ;;  %v5140_v38 = vsel %vm10086_vm2, %v14544_v50, %v5139_v48  ;;  %5123 = vst [vmem:[#allocation2 + $0x3c] sm:$0xf] %v5122_v2  ;;  %5127 = vst [vmem:[#allocation2 + $0x44] sm:$0x1] %v5126_v51  ;;  %v5177_v7 = vld [vmem:[#allocation2 + $0x9c] sm:$0xf] }
 0x54b   : > { %v5188_v11 = vld [vmem:[#allocation2 + $0xb0] sm:$0x1]  ;;  %v14545_v52 = vrot.slane %v12495_v47, 4  ;;  %v14546_v58 = vrot.slane %v12499_v6, 4  ;;  %5130 = vst [vmem:[#allocation2 + $0x48] sm:$0xf] %v5129_v1  ;;  %v5157_v47 = vsel %vm12377_vm5, %v12623_v57, %v5156_v31  ;;  %v5164_v6 = vsel %vm12377_vm5, %v12633_v40, %v5163_v59 }
 0x54c   : > { %5134 = vst [vmem:[#allocation2 + $0x50] sm:$0x1] %v5133_v42  ;;  %5137 = vst [vmem:[#allocation2 + $0x54] sm:$0xf] %v5136_v53  ;;  %v5181_v8 = vld [vmem:[#allocation2 + $0xa4] sm:$0x1] }
 0x54d   : > { %v5147_v60 = vsel %vm10086_vm2, %v14545_v52, %v5146_v36  ;;  %v5154_v14 = vsel %vm10086_vm2, %v14546_v58, %v5153_v12  ;;  %5141 = vst [vmem:[#allocation2 + $0x5c] sm:$0x1] %v5140_v38  ;;  %v6167_v3 = vld [vmem:[#allocation2 + $0xc] sm:$0xf]  ;;  %v14547_v27 = vrot.slane %v12503_v26, 4  ;;  %v14548_v5 = vld [vmem:[#allocation27_spill] sm:$0xff] }
 0x54e   : > { %v14549_v15 = vrot.slane %v14548_v5, 4  ;;  %5144 = vst [vmem:[#allocation2 + $0x60] sm:$0xf] %v5143_v62  ;;  %5148 = vst [vmem:[#allocation2 + $0x68] sm:$0x1] %v5147_v60  ;;  %6231 = vrot.lane.b32.xlu0 %v6167_v3, %s9926_s29  ;;  %v14550_v23 = vld [vmem:[#allocation18_spill] sm:$0xff] }
 0x54f   : > { %v5161_v34 = vsel %vm10086_vm2, %v14547_v27, %v5160_v25  ;;  %5151 = vst [vmem:[#allocation2 + $0x6c] sm:$0xf] %v5150_v61  ;;  %5155 = vst [vmem:[#allocation2 + $0x74] sm:$0x1] %v5154_v14  ;;  %v12803_v43 = vld [vmem:[#allocation2 + $0x10] sm:$0xf]  ;;  %v5171_v35 = vsel %vm12377_vm5, %v14550_v23, %v5170_v20 }
 0x550   : > { %v5168_v18 = vsel %vm10086_vm2, %v14549_v15, %v5167_v4  ;;  %v5198_v57 = vld [vmem:[#allocation2 + $0xc0] sm:$0xf]  ;;  %v5202_v26 = vld [vmem:[#allocation2 + $0xc8] sm:$0x1]  ;;  %v14551_v40 = vld [vmem:[#allocation28_spill] sm:$0xff]  ;;  %v14557_v16 = vrot.slane %v12519_v32, 4 }
 0x551   : > { %v14552_v45 = vrot.slane %v14551_v40, 4  ;;  %v14553_v22 = vld [vmem:[#allocation19_spill] sm:$0xff]  ;;  %v14554_v41 = vld [vmem:[#allocation29_spill] sm:$0xff]  ;;  %v6170_v36 = vld [vmem:[#allocation2 + $0x1c] sm:$0xf]  ;;  %v5199_v54 = vsel %vm12377_vm5, %v12674_v9, %v5198_v57  ;;  %v14558_v30 = vrot.slane %v12523_v21, 4 }
 0x552   : > { %v5178_v63 = vsel %vm12377_vm5, %v14553_v22, %v5177_v7  ;;  %v14555_v29 = vrot.slane %v14554_v41, 4  ;;  %5158 = vst [vmem:[#allocation2 + $0x78] sm:$0xf] %v5157_v47  ;;  %5162 = vst [vmem:[#allocation2 + $0x80] sm:$0x1] %v5161_v34  ;;  %v14556_v48 = vld [vmem:[#allocation20_spill] sm:$0xff]  ;;  %v5189_v37 = vsel %vm10086_vm2, %v14557_v16, %v5188_v11  ;;  %6237 = vrot.lane.b32.xlu1 %v6170_v36, %s9926_s29 }
 0x553   : > { %v5175_v0 = vsel %vm10086_vm2, %v14552_v45, %v5174_v24  ;;  %5165 = vst [vmem:[#allocation2 + $0x84] sm:$0xf] %v5164_v6  ;;  %5169 = vst [vmem:[#allocation2 + $0x8c] sm:$0x1] %v5168_v18  ;;  %v5185_v10 = vsel %vm12377_vm5, %v14556_v48, %v5184_v39  ;;  %v5203_v46 = vsel %vm10086_vm2, %v14558_v30, %v5202_v26  ;;  %v12835_v31 = vld [vmem:[#allocation2 + $0x1c] sm:$0xf] }
 0x554   : > { %v5182_v55 = vsel %vm10086_vm2, %v14555_v29, %v5181_v8  ;;  %5172 = vst [vmem:[#allocation2 + $0x90] sm:$0xf] %v5171_v35  ;;  %5176 = vst [vmem:[#allocation2 + $0x98] sm:$0x1] %v5175_v0  ;;  %v5935_v13 = vrot.slane %v12803_v43, 5  ;;  %v5942_v12 = vrot.slane %v12835_v31, 5 }
 0x555   : > { %5179 = vst [vmem:[#allocation2 + $0x9c] sm:$0xf] %v5178_v63  ;;  %5183 = vst [vmem:[#allocation2 + $0xa4] sm:$0x1] %v5182_v55  ;;  %v12838_v32 = vld [vmem:[#allocation2 + $0x10] sm:$0xf] }
 0x556   : > { %5186 = vst [vmem:[#allocation2 + $0xa8] sm:$0xf] %v5185_v10  ;;  %5190 = vst [vmem:[#allocation2 + $0xb0] sm:$0x1] %v5189_v37  ;;  %v6169_v21 = vld [vmem:[#allocation2 + $0x18] sm:$0xf] }
 0x557   : > { %5200 = vst [vmem:[#allocation2 + $0xc0] sm:$0xf] %v5199_v54  ;;  %5204 = vst [vmem:[#allocation2 + $0xc8] sm:$0x1] %v5203_v46  ;;  %v5835_v9 = vld [vmem:[#allocation2 + $0x14] sm:$0x1]  ;;  %6235 = vrot.lane.b32.xlu0 %v6169_v21, %s9926_s29 }
 0x558   : > { %v5833_v56 = vld [vmem:[#allocation2 + $0xc] sm:$0xe]  ;;  %v7259_v33 = vld [vmem:[#allocation2 + $0x1c] sm:$0xf]  ;;  %v5937_v25 = vrot.slane %v5935_v13, 4  ;;  %v7019_v17 = vrot.slane %v12838_v32, 5 }
 0x559   : > { %v5273_v28 = vld [vmem:[#allocation2 + $0x10] sm:$0xf]  ;;  %7324 = vrot.lane.b32.xlu1 %v7259_v33, %s9929_s8  ;;  %v12844_v19 = vld [vmem:[#allocation2 + $0x1c] sm:$0xf]  ;;  %v5938_v2 = vrot.slane %v5835_v9, 5  ;;  %v9261_v51 = vrot.slane %v5833_v56, 9 }
 0x55a   : > { %v5838_v44 = vld [vmem:[#allocation2 + $0x20] sm:$0x1]  ;;  %v5276_v20 = vld [vmem:[#allocation2 + $0x1c] sm:$0xf]  ;;  %v7258_v59 = vld [vmem:[#allocation2 + $0x18] sm:$0xf] }
 0x55b   : > { %v5351_v24 = vshll.u32 %v5273_v28, 16  ;;  %v5272_v4 = vld [vmem:[#allocation2 + $0xc] sm:$0xf]  ;;  %7322 = vrot.lane.b32.xlu0 %v7258_v59, %s9929_s8  ;;  %v5939_v49 = vsel %vm10121_vm8, %v5937_v25, %v5938_v2  ;;  %v5944_v42 = vrot.slane %v5942_v12, 4  ;;  %v6923_v53 = vld [vmem:[#allocation2 + $0x14] sm:$0x1]  ;;  %v5936_v61 = vsel %vm10121_vm8, %v9261_v51, %v5935_v13 }
 0x55c   : > { %v7026_v50 = vrot.slane %v12844_v19, 5  ;;  %v6921_v38 = vld [vmem:[#allocation2 + $0xc] sm:$0xe]  ;;  %v5355_v39 = vshrl.u32 %v5273_v28, 16  ;;  %v7260_v7 = vld [vmem:[#allocation2 + $0x24] sm:$0xf] }
 0x55d   : > { %6044 = vrot.lane.b32.xlu1 %v5939_v49, %s9924_s27  ;;  %v5945_v11 = vrot.slane %v5838_v44, 5  ;;  %v7021_v62 = vrot.slane %v7019_v17, 4  ;;  %v5836_v52 = vld [vmem:[#allocation2 + $0x18] sm:$0xe]  ;;  %v5279_v60 = vld [vmem:[#allocation2 + $0x28] sm:$0xf] }
 0x55e   : > { %v6926_v58 = vld [vmem:[#allocation2 + $0x20] sm:$0x1]  ;;  %v5274_v14 = vld [vmem:[#allocation2 + $0x14] sm:$0x1]  ;;  %v12857_v8 = vrot.slane %v5351_v24, 5  ;;  %v5357_v3 = vrot.slane %v5355_v39, 4 }
 0x55f   : > { %v7022_v47 = vrot.slane %v6923_v53, 5  ;;  %v6924_v27 = vld [vmem:[#allocation2 + $0x18] sm:$0xe]  ;;  %v5375_v34 = vshll.u32 %v5276_v20, 16  ;;  %v5379_v6 = vshrl.u32 %v5276_v20, 16  ;;  %v5342_v5 = vshrl.u32 %v5272_v4, 16  ;;  %7326 = vrot.lane.b32.xlu0 %v7260_v7, %s9929_s8 }
 0x560   : > { %v5946_v15 = vsel %vm10121_vm8, %v5944_v42, %v5945_v11  ;;  %v9262_v18 = vrot.slane %v5836_v52, 9  ;;  %v5277_v43 = vld [vmem:[#allocation2 + $0x20] sm:$0x1]  ;;  %v5345_v57 = vshll.u32 %v5272_v4, 16  ;;  %v5399_v26 = vshll.u32 %v5279_v60, 16 }
 0x561   : > { %6048 = vrot.lane.b32.xlu1 %v5946_v15, %s9924_s27  ;;  %v7028_v23 = vrot.slane %v7026_v50, 4  ;;  %v7029_v35 = vrot.slane %v6926_v58, 5  ;;  %v9276_v40 = vrot.slane %v6921_v38, 9  ;;  %v5403_v45 = vshrl.u32 %v5279_v60, 16  ;;  %v5275_v0 = vld [vmem:[#allocation2 + $0x18] sm:$0xf] }
 0x562   : > { %v7023_v22 = vsel %vm10121_vm8, %v7021_v62, %v7022_v47  ;;  %v5358_v63 = vor.u32 %v5357_v3, %v12857_v8  ;;  %v5361_v41 = vshll.u32 %v5274_v14, 16  ;;  %v9277_v29 = vrot.slane %v6924_v27, 9  ;;  %v5282_v55 = vld [vmem:[#allocation2 + $0x34] sm:$0xf]  ;;  %v5280_v54 = vld [vmem:[#allocation2 + $0x2c] sm:$0x1] }
 0x563   : > { %v12866_v36 = vrot.slane %v5375_v34, 5  ;;  %v5381_v48 = vrot.slane %v5379_v6, 4  ;;  %v5385_v10 = vshll.u32 %v5277_v43, 16  ;;  %v5344_v16 = vrot.slane %v5342_v5, 4  ;;  %6042 = vrot.lane.b32.xlu0 %v5936_v61, %s9924_s27  ;;  %v5278_v2 = vld [vmem:[#allocation2 + $0x24] sm:$0xf] }
 0x564   : > { %v5347_v37 = vrot.slane %v5345_v57, 5  ;;  %v12869_v30 = vrot.slane %v5399_v26, 5  ;;  %v5405_v46 = vrot.slane %v5403_v45, 4  ;;  %v5366_v13 = vshrl.u32 %v5275_v0, 16  ;;  %v5285_v20 = vld [vmem:[#allocation2 + $0x40] sm:$0xf] }
 0x565   : > { %7131 = vrot.lane.b32.xlu1 %v7023_v22, %s9930_s9  ;;  %v5943_v21 = vsel %vm10121_vm8, %v9262_v18, %v5942_v12  ;;  %v5369_v9 = vshll.u32 %v5275_v0, 16  ;;  %v5423_v56 = vshll.u32 %v5282_v55, 16  ;;  %v7030_v33 = vsel %vm10121_vm8, %v7028_v23, %v7029_v35  ;;  %v5283_v49 = vld [vmem:[#allocation2 + $0x38] sm:$0x1]  ;;  %v5288_v39 = vld [vmem:[#allocation2 + $0x4c] sm:$0xf] }
 0x566   : > { %v7020_v25 = vsel %vm10121_vm8, %v9276_v40, %v7019_v17  ;;  %v5359_v28 = vrot.slane %v5358_v63, 4  ;;  %v5427_v19 = vshrl.u32 %v5282_v55, 16  ;;  %v5363_v44 = vrot.slane %v5361_v41, 5  ;;  %v5281_v17 = vld [vmem:[#allocation2 + $0x30] sm:$0xf] }
 0x567   : > { %v7027_v31 = vsel %vm10121_vm8, %v9277_v29, %v7026_v50  ;;  %v5382_v51 = vor.u32 %v5381_v48, %v12866_v36  ;;  %v5409_v12 = vshll.u32 %v5280_v54, 16  ;;  %6046 = vrot.lane.b32.xlu0 %v5943_v21, %s9924_s27  ;;  %v5387_v59 = vrot.slane %v5385_v10, 5  ;;  %v5284_v5 = vld [vmem:[#allocation2 + $0x3c] sm:$0xf]  ;;  %v5291_v26 = vld [vmem:[#allocation2 + $0x58] sm:$0xf] }
 0x568   : > { %v5348_v24 = vor.u32 %v5347_v37, %v5344_v16  ;;  %v5406_v32 = vor.u32 %v5405_v46, %v12869_v30  ;;  %v5368_v4 = vrot.slane %v5366_v13, 4  ;;  %v5371_v42 = vrot.slane %v5369_v9, 5  ;;  %v5286_v35 = vld [vmem:[#allocation2 + $0x44] sm:$0x1]  ;;  %v5287_v21 = vld [vmem:[#allocation2 + $0x48] sm:$0xf] }
 0x569   : > { %7135 = vrot.lane.b32.xlu1 %v7030_v33, %s9930_s9  ;;  %v12888_v53 = vrot.slane %v5423_v56, 5  ;;  %v5429_v38 = vrot.slane %v5427_v19, 4  ;;  %v5390_v50 = vshrl.u32 %v5278_v2, 16  ;;  %v5364_v11 = vsel %vm10135_vm11, %v5359_v28, %v5363_v44  ;;  %v5294_v28 = vld [vmem:[#allocation2 + $0x64] sm:$0xf] }
 0x56a   : > { %v5393_v62 = vshll.u32 %v5278_v2, 16  ;;  %v5447_v52 = vshll.u32 %v5285_v20, 16  ;;  %v5451_v60 = vshrl.u32 %v5285_v20, 16  ;;  %v5383_v61 = vrot.slane %v5382_v51, 4  ;;  %v5289_v2 = vld [vmem:[#allocation2 + $0x50] sm:$0x1] }
 0x56b   : > { %v5411_v58 = vrot.slane %v5409_v12, 5  ;;  %v5414_v14 = vshrl.u32 %v5281_v17, 16  ;;  %v5417_v3 = vshll.u32 %v5281_v17, 16  ;;  %7129 = vrot.lane.b32.xlu0 %v7020_v25, %s9930_s9  ;;  %v5349_v47 = vrot.slane %v5348_v24, 4  ;;  %v5292_v51 = vld [vmem:[#allocation2 + $0x5c] sm:$0x1] }
 0x56c   : > { %v5407_v27 = vrot.slane %v5406_v32, 4  ;;  %v5433_v34 = vshll.u32 %v5283_v49, 16  ;;  %v5471_v6 = vshll.u32 %v5288_v39, 16  ;;  %v5372_v15 = vor.u32 %v5371_v42, %v5368_v4 }
 0x56d   : > { %5707 = vrot.lane.b32.xlu1 %v5364_v11, %s9921_s18  ;;  %v5430_v18 = vor.u32 %v5429_v38, %v12888_v53  ;;  %v5392_v43 = vrot.slane %v5390_v50, 4  ;;  %v5475_v57 = vshrl.u32 %v5288_v39, 16  ;;  %v5395_v23 = vrot.slane %v5393_v62, 5  ;;  %v5290_v39 = vld [vmem:[#allocation2 + $0x54] sm:$0xf] }
 0x56e   : > { %v12895_v40 = vrot.slane %v5447_v52, 5  ;;  %v5453_v45 = vrot.slane %v5451_v60, 4  ;;  %v5416_v0 = vrot.slane %v5414_v14, 4  ;;  %v5419_v22 = vrot.slane %v5417_v3, 5 }
 0x56f   : > { %v12897_v63 = vrot.slane %v5471_v6, 5  ;;  %v5477_v41 = vrot.slane %v5475_v57, 4  ;;  %v5438_v29 = vshrl.u32 %v5284_v5, 16  ;;  %7133 = vrot.lane.b32.xlu0 %v7027_v31, %s9930_s9  ;;  %v5388_v55 = vsel %vm10135_vm11, %v5383_v61, %v5387_v59  ;;  %v5297_v61 = vld [vmem:[#allocation2 + $0x70] sm:$0xf] }
 0x570   : > { %v5354_v48 = vsel %vm10135_vm11, %v5349_v47, %v12857_v8  ;;  %v5441_v10 = vshll.u32 %v5284_v5, 16  ;;  %v5495_v16 = vshll.u32 %v5291_v26, 16  ;;  %v5412_v37 = vsel %vm10135_vm11, %v5407_v27, %v5411_v58  ;;  %v5295_v47 = vld [vmem:[#allocation2 + $0x68] sm:$0x1] }
 0x571   : > { %5711 = vrot.lane.b32.xlu1 %v5388_v55, %s9921_s18  ;;  %v5373_v54 = vrot.slane %v5372_v15, 4  ;;  %v5435_v46 = vrot.slane %v5433_v34, 5  ;;  %v5457_v13 = vshll.u32 %v5286_v35, 16  ;;  %v5431_v9 = vrot.slane %v5430_v18, 4  ;;  %v5300_v55 = vld [vmem:[#allocation2 + $0x7c] sm:$0xf] }
 0x572   : > { %v5396_v56 = vor.u32 %v5395_v23, %v5392_v43  ;;  %v5454_v33 = vor.u32 %v5453_v45, %v12895_v40  ;;  %v5499_v25 = vshrl.u32 %v5291_v26, 16  ;;  %v5420_v19 = vor.u32 %v5419_v22, %v5416_v0  ;;  %v5293_v45 = vld [vmem:[#allocation2 + $0x60] sm:$0xf] }
 0x573   : > { %v5478_v8 = vor.u32 %v5477_v41, %v12897_v63  ;;  %v5440_v44 = vrot.slane %v5438_v29, 4  ;;  %v5443_v31 = vrot.slane %v5441_v10, 5  ;;  %5705 = vrot.lane.b32.xlu0 %v5354_v48, %s9921_s18  ;;  %v12911_v12 = vrot.slane %v5495_v16, 5  ;;  %v5296_v48 = vld [vmem:[#allocation2 + $0x6c] sm:$0xf] }
 0x574   : > { %v5501_v20 = vrot.slane %v5499_v25, 4  ;;  %v5462_v59 = vshrl.u32 %v5287_v21, 16  ;;  %v5465_v24 = vshll.u32 %v5287_v21, 16  ;;  %v5378_v32 = vsel %vm10135_vm11, %v5373_v54, %v12866_v36  ;;  %v5298_v54 = vld [vmem:[#allocation2 + $0x74] sm:$0x1] }
 0x575   : > { %5715 = vrot.lane.b32.xlu1 %v5412_v37, %s9921_s18  ;;  %v5519_v4 = vshll.u32 %v5294_v28, 16  ;;  %v5523_v49 = vshrl.u32 %v5294_v28, 16  ;;  %v5436_v17 = vsel %vm10135_vm11, %v5431_v9, %v5435_v46  ;;  %v5397_v42 = vrot.slane %v5396_v56, 4 }
 0x576   : > { %v5459_v38 = vrot.slane %v5457_v13, 5  ;;  %v5481_v50 = vshll.u32 %v5289_v2, 16  ;;  %v5455_v11 = vrot.slane %v5454_v33, 4  ;;  %v5421_v62 = vrot.slane %v5420_v19, 4 }
 0x577   : > { %v5479_v52 = vrot.slane %v5478_v8, 4  ;;  %v5505_v60 = vshll.u32 %v5292_v51, 16  ;;  %5709 = vrot.lane.b32.xlu0 %v5378_v32, %s9921_s18  ;;  %v5444_v58 = vor.u32 %v5443_v31, %v5440_v44  ;;  %v5502_v14 = vor.u32 %v5501_v20, %v12911_v12 }
 0x578   : > { %v5464_v36 = vrot.slane %v5462_v59, 4  ;;  %v5467_v3 = vrot.slane %v5465_v24, 5  ;;  %v12922_v27 = vrot.slane %v5519_v4, 5  ;;  %v5525_v34 = vrot.slane %v5523_v49, 4  ;;  %v5299_v24 = vld [vmem:[#allocation2 + $0x78] sm:$0xf] }
 0x579   : > { %5719 = vrot.lane.b32.xlu1 %v5436_v17, %s9921_s18  ;;  %v5486_v6 = vshrl.u32 %v5290_v39, 16  ;;  %v5489_v5 = vshll.u32 %v5290_v39, 16  ;;  %v5483_v15 = vrot.slane %v5481_v50, 5  ;;  %v5543_v18 = vshll.u32 %v5297_v61, 16 }
 0x57a   : > { %v5547_v43 = vshrl.u32 %v5297_v61, 16  ;;  %v5402_v57 = vsel %vm10135_vm11, %v5397_v42, %v12869_v30  ;;  %v5460_v26 = vsel %vm10135_vm11, %v5455_v11, %v5459_v38  ;;  %v5426_v23 = vsel %vm10135_vm11, %v5421_v62, %v12888_v53  ;;  %v5303_v53 = vld [vmem:[#allocation2 + $0x88] sm:$0xf]  ;;  %v5306_v42 = vld [vmem:[#allocation2 + $0x94] sm:$0xf] }
 0x57b   : > { %v5507_v35 = vrot.slane %v5505_v60, 5  ;;  %5713 = vrot.lane.b32.xlu0 %v5402_v57, %s9921_s18  ;;  %v5484_v0 = vsel %vm10135_vm11, %v5479_v52, %v5483_v15  ;;  %v5445_v22 = vrot.slane %v5444_v58, 4  ;;  %v5468_v41 = vor.u32 %v5467_v3, %v5464_v36  ;;  %v5301_v11 = vld [vmem:[#allocation2 + $0x80] sm:$0x1] }
 0x57c   : > { %v5529_v29 = vshll.u32 %v5295_v47, 16  ;;  %v5503_v30 = vrot.slane %v5502_v14, 4  ;;  %v5526_v10 = vor.u32 %v5525_v34, %v12922_v27  ;;  %v5488_v16 = vrot.slane %v5486_v6, 4  ;;  %v5302_v6 = vld [vmem:[#allocation2 + $0x84] sm:$0xf] }
 0x57d   : > { %5723 = vrot.lane.b32.xlu1 %v5460_v26, %s9921_s18  ;;  %v5491_v37 = vrot.slane %v5489_v5, 5  ;;  %v12937_v46 = vrot.slane %v5543_v18, 5  ;;  %v5549_v13 = vrot.slane %v5547_v43, 4  ;;  %v5510_v21 = vshrl.u32 %v5293_v45, 16  ;;  %v5309_v57 = vld [vmem:[#allocation2 + $0xa0] sm:$0xf] }
 0x57e   : > { %v5513_v9 = vshll.u32 %v5293_v45, 16  ;;  %v5567_v56 = vshll.u32 %v5300_v55, 16  ;;  %v5571_v33 = vshrl.u32 %v5300_v55, 16  ;;  %v5534_v25 = vshrl.u32 %v5296_v48, 16 }
 0x57f   : > { %v5537_v28 = vshll.u32 %v5296_v48, 16  ;;  %5717 = vrot.lane.b32.xlu0 %v5426_v23, %s9921_s18  ;;  %v5450_v19 = vsel %vm10135_vm11, %v5445_v22, %v12895_v40  ;;  %v5469_v2 = vrot.slane %v5468_v41, 4  ;;  %v5531_v8 = vrot.slane %v5529_v29, 5  ;;  %v5304_v23 = vld [vmem:[#allocation2 + $0x8c] sm:$0x1] }
 0x580   : > { %v5591_v44 = vshll.u32 %v5303_v53, 16  ;;  %v5508_v31 = vsel %vm10135_vm11, %v5503_v30, %v5507_v35  ;;  %v5527_v51 = vrot.slane %v5526_v10, 4  ;;  %v5553_v20 = vshll.u32 %v5298_v54, 16 }
 0x581   : > { %5727 = vrot.lane.b32.xlu1 %v5484_v0, %s9921_s18  ;;  %v5595_v59 = vshrl.u32 %v5303_v53, 16  ;;  %v5492_v32 = vor.u32 %v5491_v37, %v5488_v16  ;;  %v5550_v4 = vor.u32 %v5549_v13, %v12937_v46  ;;  %v5512_v49 = vrot.slane %v5510_v21, 4  ;;  %v5307_v0 = vld [vmem:[#allocation2 + $0x98] sm:$0x1]  ;;  %v5305_v13 = vld [vmem:[#allocation2 + $0x90] sm:$0xf] }
 0x582   : > { %v5515_v17 = vrot.slane %v5513_v9, 5  ;;  %v12947_v38 = vrot.slane %v5567_v56, 5  ;;  %v5573_v40 = vrot.slane %v5571_v33, 4  ;;  %v5536_v50 = vrot.slane %v5534_v25, 4  ;;  %v5312_v25 = vld [vmem:[#allocation2 + $0xac] sm:$0xf] }
 0x583   : > { %v5539_v39 = vrot.slane %v5537_v28, 5  ;;  %5721 = vrot.lane.b32.xlu0 %v5450_v19, %s9921_s18  ;;  %v12950_v62 = vrot.slane %v5591_v44, 5  ;;  %v5597_v52 = vrot.slane %v5595_v59, 4  ;;  %v5558_v60 = vshrl.u32 %v5299_v24, 16 }
 0x584   : > { %v5561_v61 = vshll.u32 %v5299_v24, 16  ;;  %v5474_v58 = vsel %vm10135_vm11, %v5469_v2, %v12897_v63  ;;  %v5615_v14 = vshll.u32 %v5306_v42, 16  ;;  %v5532_v36 = vsel %vm10135_vm11, %v5527_v51, %v5531_v8 }
 0x585   : > { %5731 = vrot.lane.b32.xlu1 %v5508_v31, %s9921_s18  ;;  %v5493_v3 = vrot.slane %v5492_v32, 4  ;;  %v5555_v47 = vrot.slane %v5553_v20, 5  ;;  %v5619_v34 = vshrl.u32 %v5306_v42, 16  ;;  %v5551_v5 = vrot.slane %v5550_v4, 4  ;;  %v5315_v42 = vld [vmem:[#allocation2 + $0xb8] sm:$0xf] }
 0x586   : > { %v5516_v15 = vor.u32 %v5515_v17, %v5512_v49  ;;  %v5574_v18 = vor.u32 %v5573_v40, %v12947_v38  ;;  %v5577_v43 = vshll.u32 %v5301_v11, 16  ;;  %v5540_v26 = vor.u32 %v5539_v39, %v5536_v50  ;;  %v5308_v17 = vld [vmem:[#allocation2 + $0x9c] sm:$0xf]  ;;  %v5311_v11 = vld [vmem:[#allocation2 + $0xa8] sm:$0xf] }
 0x587   : > { %5725 = vrot.lane.b32.xlu0 %v5474_v58, %s9921_s18  ;;  %v5598_v63 = vor.u32 %v5597_v52, %v12950_v62  ;;  %v5560_v35 = vrot.slane %v5558_v60, 4  ;;  %v5563_v45 = vrot.slane %v5561_v61, 5  ;;  %v12962_v22 = vrot.slane %v5615_v14, 5  ;;  %v6361_v52 = vld [vmem:[#allocation2 + $0x10] sm:$0xf] }
 0x588   : > { %v5621_v41 = vrot.slane %v5619_v34, 4  ;;  %v5582_v29 = vshrl.u32 %v5302_v6, 16  ;;  %v5585_v55 = vshll.u32 %v5302_v6, 16  ;;  %v5498_v48 = vsel %vm10135_vm11, %v5493_v3, %v12911_v12  ;;  %v5310_v61 = vld [vmem:[#allocation2 + $0xa4] sm:$0x1] }
 0x589   : > { %5735 = vrot.lane.b32.xlu1 %v5532_v36, %s9921_s18  ;;  %v5639_v30 = vshll.u32 %v5309_v57, 16  ;;  %v5643_v10 = vshrl.u32 %v5309_v57, 16  ;;  %v5556_v16 = vsel %vm10135_vm11, %v5551_v5, %v5555_v47  ;;  %v5517_v37 = vrot.slane %v5516_v15, 4 }
 0x58a   : > { %v5579_v53 = vrot.slane %v5577_v43, 5  ;;  %v5601_v54 = vshll.u32 %v5304_v23, 16  ;;  %v5575_v21 = vrot.slane %v5574_v18, 4  ;;  %v5541_v9 = vrot.slane %v5540_v26, 4 }
 0x58b   : > { %5729 = vrot.lane.b32.xlu0 %v5498_v48, %s9921_s18  ;;  %v5599_v56 = vrot.slane %v5598_v63, 4  ;;  %v5625_v33 = vshll.u32 %v5307_v0, 16  ;;  %v5564_v28 = vor.u32 %v5563_v45, %v5560_v35  ;;  %v5622_v12 = vor.u32 %v5621_v41, %v12962_v22  ;;  %v5314_v0 = vld [vmem:[#allocation2 + $0xb4] sm:$0xf] }
 0x58c   : > { %v5584_v19 = vrot.slane %v5582_v29, 4  ;;  %v5587_v2 = vrot.slane %v5585_v55, 5  ;;  %v12972_v8 = vrot.slane %v5639_v30, 5  ;;  %v5645_v44 = vrot.slane %v5643_v10, 4  ;;  %v5313_v29 = vld [vmem:[#allocation2 + $0xb0] sm:$0x1] }
 0x58d   : > { %5739 = vrot.lane.b32.xlu1 %v5556_v16, %s9921_s18  ;;  %v5606_v31 = vshrl.u32 %v5305_v13, 16  ;;  %v5609_v51 = vshll.u32 %v5305_v13, 16  ;;  %v5522_v20 = vsel %vm10135_vm11, %v5517_v37, %v12922_v27  ;;  %v5603_v59 = vrot.slane %v5601_v54, 5  ;;  %v5316_v54 = vld [vmem:[#allocation2 + $0xbc] sm:$0x1] }
 0x58e   : > { %v5663_v24 = vshll.u32 %v5312_v25, 16  ;;  %v5667_v32 = vshrl.u32 %v5312_v25, 16  ;;  %v5580_v4 = vsel %vm10135_vm11, %v5575_v21, %v5579_v53  ;;  %v5546_v49 = vsel %vm10135_vm11, %v5541_v9, %v12937_v46 }
 0x58f   : > { %5733 = vrot.lane.b32.xlu0 %v5522_v20, %s9921_s18  ;;  %v5604_v40 = vsel %vm10135_vm11, %v5599_v56, %v5603_v59  ;;  %v5565_v27 = vrot.slane %v5564_v28, 4  ;;  %v5627_v50 = vrot.slane %v5625_v33, 5  ;;  %v5588_v39 = vor.u32 %v5587_v2, %v5584_v19 }
 0x590   : > { %v5623_v60 = vrot.slane %v5622_v12, 4  ;;  %v5646_v58 = vor.u32 %v5645_v44, %v12972_v8  ;;  %v5608_v14 = vrot.slane %v5606_v31, 4  ;;  %v5611_v36 = vrot.slane %v5609_v51, 5  ;;  %v6360_v31 = vld [vmem:[#allocation2 + $0xc] sm:$0xf] }
 0x591   : > { %5743 = vrot.lane.b32.xlu1 %v5580_v4, %s9921_s18  ;;  %v12987_v3 = vrot.slane %v5663_v24, 5  ;;  %v5669_v46 = vrot.slane %v5667_v32, 4  ;;  %v5630_v47 = vshrl.u32 %v5308_v17, 16  ;;  %v5633_v34 = vshll.u32 %v5308_v17, 16  ;;  %v6362_v32 = vld [vmem:[#allocation2 + $0x14] sm:$0x1] }
 0x592   : > { %v5687_v6 = vshll.u32 %v5315_v42, 16  ;;  %v5691_v5 = vshrl.u32 %v5315_v42, 16  ;;  %v5654_v15 = vshrl.u32 %v5311_v11, 16  ;;  %v5657_v18 = vshll.u32 %v5311_v11, 16 }
 0x593   : > { %5737 = vrot.lane.b32.xlu0 %v5546_v49, %s9921_s18  ;;  %v5649_v43 = vshll.u32 %v5310_v61, 16  ;;  %v6418_v57 = vshll.u32 %v6361_v52, 16  ;;  %v6422_v26 = vshrl.u32 %v6361_v52, 16  ;;  %v5570_v23 = vsel %vm10135_vm11, %v5565_v27, %v12947_v38  ;;  %v6364_v38 = vld [vmem:[#allocation2 + $0x1c] sm:$0xf] }
 0x594   : > { %v5628_v63 = vsel %vm10135_vm11, %v5623_v60, %v5627_v50  ;;  %v5589_v35 = vrot.slane %v5588_v39, 4  ;;  %v5612_v45 = vor.u32 %v5611_v36, %v5608_v14  ;;  %v5647_v41 = vrot.slane %v5646_v58, 4  ;;  %v6363_v61 = vld [vmem:[#allocation2 + $0x18] sm:$0xf]  ;;  %v7452_v36 = vld [vmem:[#allocation2 + $0x1c] sm:$0xf] }
 0x595   : > { %5747 = vrot.lane.b32.xlu1 %v5604_v40, %s9921_s18  ;;  %v5670_v55 = vor.u32 %v5669_v46, %v12987_v3  ;;  %v5632_v48 = vrot.slane %v5630_v47, 4  ;;  %v5635_v30 = vrot.slane %v5633_v34, 5  ;;  %v12998_v10 = vrot.slane %v5687_v6, 5  ;;  %v5704_v46 = vpop.permute.xlu1 %5703  ;;  %v5702_v47 = vpop.permute.xlu0 %5701  ;;  %v5208_v34 = vld [vmem:[#allocation2 + $0x10] sm:$0xf] }
 0x596   : > { %v5693_v16 = vrot.slane %v5691_v5, 4  ;;  %v5656_v37 = vrot.slane %v5654_v15, 4  ;;  %v5659_v53 = vrot.slane %v5657_v18, 5  ;;  %v13001_v13 = vrot.slane %v6418_v57, 5  ;;  %5240 = vst.msk [vmem:[#allocation3 + $0xc] sm:$0xf] %vm217_vm4, %v5208_v34 }
 0x597   : > { %5741 = vrot.lane.b32.xlu0 %v5570_v23, %s9921_s18  ;;  %v6424_v21 = vrot.slane %v6422_v26, 4  ;;  %v5678_v9 = vshrl.u32 %v5314_v0, 16  ;;  %v5681_v56 = vshll.u32 %v5314_v0, 16  ;;  %v5651_v33 = vrot.slane %v5649_v43, 5  ;;  %v6365_v18 = vld [vmem:[#allocation2 + $0x20] sm:$0x1] }
 0x598   : > { %v5613_v25 = vrot.slane %v5612_v45, 4  ;;  %v5673_v28 = vshll.u32 %v5313_v29, 16  ;;  %v5594_v12 = vsel %vm10135_vm11, %v5589_v35, %v12950_v62  ;;  %v5636_v19 = vor.u32 %v5635_v30, %v5632_v48  ;;  %v5207_v29 = vld [vmem:[#allocation2 + $0xc] sm:$0xf]  ;;  %v7451_v30 = vld [vmem:[#allocation2 + $0x18] sm:$0xf] }
 0x599   : > { %5751 = vrot.lane.b32.xlu1 %v5628_v63, %s9921_s18  ;;  %v6442_v2 = vshll.u32 %v6364_v38, 16  ;;  %v6446_v44 = vshrl.u32 %v6364_v38, 16  ;;  %v5652_v51 = vsel %vm10135_vm11, %v5647_v41, %v5651_v33  ;;  %v5671_v20 = vrot.slane %v5670_v55, 4  ;;  %v5210_v41 = vld [vmem:[#allocation2 + $0x1c] sm:$0xf]  ;;  %v6039_v33 = vpop.permute.xlu0 %6038 }
 0x59a   : > { %v5694_v59 = vor.u32 %v5693_v16, %v12998_v10  ;;  %v5697_v24 = vshll.u32 %v5316_v54, 16  ;;  %v5660_v4 = vor.u32 %v5659_v53, %v5656_v37  ;;  %v6425_v49 = vor.u32 %v6424_v21, %v13001_v13  ;;  %5242 = vst.msk [vmem:[#allocation3 + $0x14] sm:$0xf] %vm217_vm4, %v5210_v41  ;;  %5239 = vst.msk [vmem:[#allocation3 + $0x8] sm:$0xf] %vm217_vm4, %v5207_v29 }
 0x59b   : > { %5745 = vrot.lane.b32.xlu0 %v5594_v12, %s9921_s18  ;;  %v5680_v62 = vrot.slane %v5678_v9, 4  ;;  %v5683_v17 = vrot.slane %v5681_v56, 5  ;;  %v5618_v42 = vsel %vm10135_vm11, %v5613_v25, %v12962_v22  ;;  %v5675_v40 = vrot.slane %v5673_v28, 5  ;;  %v7455_v38 = vld [vmem:[#allocation2 + $0x28] sm:$0xf]  ;;  %v6041_v56 = vpop.permute.xlu1 %6040 }
 0x59c   : > { %v6409_v27 = vshrl.u32 %v6360_v31, 16  ;;  %v6412_v50 = vshll.u32 %v6360_v31, 16  ;;  %v5637_v39 = vrot.slane %v5636_v19, 4  ;;  %v6428_v11 = vshll.u32 %v6362_v32, 16  ;;  %v5212_v25 = vld [vmem:[#allocation2 + $0x28] sm:$0xf] }
 0x59d   : > { %5755 = vrot.lane.b32.xlu1 %v5652_v51, %s9921_s18  ;;  %v13015_v52 = vrot.slane %v6442_v2, 5  ;;  %v6448_v60 = vrot.slane %v6446_v44, 4  ;;  %v5676_v58 = vsel %vm10135_vm11, %v5671_v20, %v5675_v40  ;;  %v5695_v14 = vrot.slane %v5694_v59, 4  ;;  %5244 = vst.msk [vmem:[#allocation3 + $0x1c] sm:$0xf] %vm217_vm4, %v5212_v25 }
 0x59e   : > { %v5699_v22 = vrot.slane %v5697_v24, 5  ;;  %v5661_v6 = vrot.slane %v5660_v4, 4  ;;  %v6426_v5 = vrot.slane %v6425_v49, 4  ;;  %v5684_v15 = vor.u32 %v5683_v17, %v5680_v62  ;;  %v7454_v20 = vld [vmem:[#allocation2 + $0x24] sm:$0xf] }
 0x59f   : > { %5749 = vrot.lane.b32.xlu0 %v5618_v42, %s9921_s18  ;;  %v6411_v43 = vrot.slane %v6409_v27, 4  ;;  %v6414_v57 = vrot.slane %v6412_v50, 5  ;;  %v6433_v26 = vshrl.u32 %v6363_v61, 16  ;;  %v6436_v23 = vshll.u32 %v6363_v61, 16  ;;  %v5214_v49 = vld [vmem:[#allocation2 + $0x34] sm:$0xf] }
 0x5a0   : > { %v5642_v63 = vsel %vm10135_vm11, %v5637_v39, %v12972_v8  ;;  %v6430_v35 = vrot.slane %v6428_v11, 5  ;;  %v6449_v45 = vor.u32 %v6448_v60, %v13015_v52  ;;  %v7509_v0 = vshll.u32 %v7452_v36, 16  ;;  %v5211_v62 = vld [vmem:[#allocation2 + $0x24] sm:$0xf]  ;;  %v7453_v17 = vld [vmem:[#allocation2 + $0x20] sm:$0x1] }
 0x5a1   : > { %5759 = vrot.lane.b32.xlu1 %v5676_v58, %s9921_s18  ;;  %v5700_v55 = vsel %vm10135_vm11, %v5695_v14, %v5699_v22  ;;  %v7513_v48 = vshrl.u32 %v7452_v36, 16  ;;  %v5666_v8 = vsel %vm10135_vm11, %v5661_v6, %v12987_v3  ;;  %v5685_v37 = vrot.slane %v5684_v15, 4  ;;  %v5209_v3 = vld [vmem:[#allocation2 + $0x18] sm:$0xf]  ;;  %5246 = vst.msk [vmem:[#allocation3 + $0x24] sm:$0xf] %vm217_vm4, %v5214_v49 }
 0x5a2   : > { %v6431_v16 = vsel %vm10135_vm11, %v6426_v5, %v6430_v35  ;;  %v6452_v53 = vshll.u32 %v6365_v18, 16  ;;  %v6415_v54 = vor.u32 %v6414_v57, %v6411_v43  ;;  %v6435_v21 = vrot.slane %v6433_v26, 4  ;;  %5241 = vst.msk [vmem:[#allocation3 + $0x10] sm:$0xf] %vm217_vm4, %v5209_v3  ;;  %5243 = vst.msk [vmem:[#allocation3 + $0x18] sm:$0xf] %vm217_vm4, %v5211_v62 }
 0x5a3   : > { %5753 = vrot.lane.b32.xlu0 %v5642_v63, %s9921_s18  ;;  %v6438_v9 = vrot.slane %v6436_v23, 5  ;;  %vm5797_vm2 = vcmask 126016   ;;  %v6450_v28 = vrot.slane %v6449_v45, 4  ;;  %v13037_v12 = vrot.slane %v7509_v0, 5  ;;  %v5216_v61 = vld [vmem:[#allocation2 + $0x40] sm:$0xf] }
 0x5a4   : > { %v7500_v19 = vshrl.u32 %v7451_v30, 16  ;;  %v7503_v2 = vshll.u32 %v7451_v30, 16  ;;  %5799 = vst.msk [vmem:[#allocation3 + $0x4] sm:$0xf] %vm5797_vm2, %v5704_v46  ;;  %5798 = vst.msk [vmem:[#allocation3] sm:$0xf] %vm5797_vm2, %v5702_v47  ;;  %v5690_v59 = vsel %vm10135_vm11, %v5685_v37, %v12998_v10 }
 0x5a5   : > { %5763 = vrot.lane.b32.xlu1 %v5700_v55, %s9921_s18  ;;  %v7515_v44 = vrot.slane %v7513_v48, 4  ;;  %v7533_v31 = vshll.u32 %v7455_v38, 16  ;;  %v7537_v51 = vshrl.u32 %v7455_v38, 16  ;;  %6136 = vst.msk [vmem:[#allocation3 + $0x4] sm:$0xf] %vm6134_vm3, %v6041_v56  ;;  %v6454_v24 = vrot.slane %v6452_v53, 5 }
 0x5a6   : > { %6135 = vst.msk [vmem:[#allocation3] sm:$0xf] %vm6134_vm3, %v6039_v33  ;;  %v6416_v32 = vrot.slane %v6415_v54, 4  ;;  %v6439_v4 = vor.u32 %v6438_v9, %v6435_v21  ;;  %v7502_v42 = vrot.slane %v7500_v19, 4  ;;  %v7505_v40 = vrot.slane %v7503_v2, 5  ;;  %v6234_v9 = vpop.permute.xlu1 %6233 }
 0x5a7   : > { %5757 = vrot.lane.b32.xlu0 %v5666_v8, %s9921_s18  ;;  %v7524_v27 = vshrl.u32 %v7454_v20, 16  ;;  %v7527_v50 = vshll.u32 %v7454_v20, 16  ;;  %v6455_v39 = vsel %vm10135_vm11, %v6450_v28, %v6454_v24  ;;  %v7516_v10 = vor.u32 %v7515_v44, %v13037_v12  ;;  %v5213_v58 = vld [vmem:[#allocation2 + $0x30] sm:$0xf]  ;;  %5248 = vst.msk [vmem:[#allocation3 + $0x2c] sm:$0xf] %vm217_vm4, %v5216_v61 }
 0x5a8   : > { %v13056_v11 = vrot.slane %v7533_v31, 5  ;;  %v7539_v60 = vrot.slane %v7537_v51, 4  ;;  %v6421_v14 = vsel %vm10135_vm11, %v6416_v32, %v13001_v13  ;;  %v7519_v36 = vshll.u32 %v7453_v17, 16  ;;  %5245 = vst.msk [vmem:[#allocation3 + $0x20] sm:$0xf] %vm217_vm4, %v5213_v58 }
 0x5a9   : > { %6794 = vrot.lane.b32.xlu1 %v6431_v16, %s9928_s6  ;;  %v6440_v46 = vrot.slane %v6439_v4, 4  ;;  %v7506_v47 = vor.u32 %v7505_v40, %v7502_v42  ;;  %v7456_v34 = vld [vmem:[#allocation2 + $0x2c] sm:$0x1]  ;;  %v7526_v22 = vrot.slane %v7524_v27, 4  ;;  %v7529_v6 = vrot.slane %v7527_v50, 5 }
 0x5aa   : > { %v7261_v5 = vld [vmem:[#allocation2 + $0x28] sm:$0xf]  ;;  %v7517_v15 = vrot.slane %v7516_v10, 4  ;;  %v7540_v18 = vor.u32 %v7539_v60, %v13056_v11  ;;  %v8013_v43 = vld [vmem:[#allocation2 + $0x1c] sm:$0xf]  ;;  %v7521_v57 = vrot.slane %v7519_v36, 5 }
 0x5ab   : > { %5761 = vrot.lane.b32.xlu0 %v5690_v59, %s9921_s18  ;;  %v5218_v13 = vld [vmem:[#allocation2 + $0x4c] sm:$0xf]  ;;  %v7543_v26 = vshll.u32 %v7456_v34, 16  ;;  %v5215_v23 = vld [vmem:[#allocation2 + $0x3c] sm:$0xf]  ;;  %v6445_v63 = vsel %vm10135_vm11, %v6440_v46, %v13015_v52  ;;  %v7507_v35 = vrot.slane %v7506_v47, 4  ;;  %v7530_v45 = vor.u32 %v7529_v6, %v7526_v22 }
 0x5ac   : > { %5250 = vst.msk [vmem:[#allocation3 + $0x34] sm:$0xf] %vm217_vm4, %v5218_v13  ;;  %5247 = vst.msk [vmem:[#allocation3 + $0x28] sm:$0xf] %vm217_vm4, %v5215_v23  ;;  %v7522_v0 = vsel %vm10135_vm11, %v7517_v15, %v7521_v57  ;;  %v7541_v41 = vrot.slane %v7540_v18, 4  ;;  %v8110_v29 = vrot.slane %v8013_v43, 5 }
 0x5ad   : > { %6798 = vrot.lane.b32.xlu1 %v6455_v39, %s9928_s6  ;;  %v8016_v55 = vld [vmem:[#allocation2 + $0x28] sm:$0xf]  ;;  %v7545_v48 = vrot.slane %v7543_v26, 5  ;;  %v5220_v30 = vld [vmem:[#allocation2 + $0x58] sm:$0xf]  ;;  %v7512_v52 = vsel %vm10135_vm11, %v7507_v35, %v13037_v12  ;;  %v7531_v16 = vrot.slane %v7530_v45, 4 }
 0x5ae   : > { %v5217_v8 = vld [vmem:[#allocation2 + $0x48] sm:$0xf]  ;;  %v8014_v37 = vld [vmem:[#allocation2 + $0x20] sm:$0x1]  ;;  %vm6327_vm0 = vcmask 257216   ;;  %v8112_v38 = vrot.slane %v8110_v29, 4 }
 0x5af   : > { %6792 = vrot.lane.b32.xlu0 %v6421_v14, %s9928_s6  ;;  %5252 = vst.msk [vmem:[#allocation3 + $0x3c] sm:$0xf] %vm217_vm4, %v5220_v30  ;;  %5249 = vst.msk [vmem:[#allocation3 + $0x30] sm:$0xf] %vm217_vm4, %v5217_v8  ;;  %v7546_v53 = vsel %vm10135_vm11, %v7541_v41, %v7545_v48  ;;  %v8012_v54 = vld [vmem:[#allocation2 + $0x18] sm:$0xe]  ;;  %v7536_v12 = vsel %vm10135_vm11, %v7531_v16, %v13056_v11 }
 0x5b0   : > { %v8117_v21 = vrot.slane %v8016_v55, 5  ;;  %v5840_v56 = vld [vmem:[#allocation2 + $0x28] sm:$0xf]  ;;  %v5222_v33 = vld [vmem:[#allocation2 + $0x64] sm:$0xf]  ;;  %v8113_v28 = vrot.slane %v8014_v37, 5 }
 0x5b1   : > { %7328 = vrot.lane.b32.xlu1 %v7261_v5, %s9929_s8  ;;  %v5219_v25 = vld [vmem:[#allocation2 + $0x54] sm:$0xf]  ;;  %6329 = vst.msk [vmem:[#allocation3 + $0x4] sm:$0xf] %vm6327_vm0, %v6234_v9  ;;  %v9292_v19 = vrot.slane %v8012_v54, 9  ;;  %v5949_v51 = vrot.slane %v5840_v56, 5 }
 0x5b2   : > { %5254 = vst.msk [vmem:[#allocation3 + $0x44] sm:$0xf] %vm217_vm4, %v5222_v33  ;;  %5251 = vst.msk [vmem:[#allocation3 + $0x38] sm:$0xf] %vm217_vm4, %v5219_v25  ;;  %v8017_v2 = vld [vmem:[#allocation2 + $0x2c] sm:$0x1]  ;;  %v8114_v44 = vsel %vm10121_vm8, %v8112_v38, %v8113_v28 }
 0x5b3   : > { %6796 = vrot.lane.b32.xlu0 %v6445_v63, %s9928_s6  ;;  %v8015_v3 = vld [vmem:[#allocation2 + $0x24] sm:$0xe]  ;;  %v8119_v31 = vrot.slane %v8117_v21, 4  ;;  %v6367_v20 = vld [vmem:[#allocation2 + $0x28] sm:$0xf]  ;;  %v8120_v32 = vrot.slane %v8017_v2, 5  ;;  %v8111_v49 = vsel %vm10121_vm8, %v9292_v19, %v8110_v29 }
 0x5b4   : > { %v5224_v59 = vld [vmem:[#allocation2 + $0x70] sm:$0xf]  ;;  %v5221_v24 = vld [vmem:[#allocation2 + $0x60] sm:$0xf]  ;;  %v5841_v4 = vld [vmem:[#allocation2 + $0x2c] sm:$0x1] }
 0x5b5   : > { %7885 = vrot.lane.b32.xlu1 %v7522_v0, %s9931_s21  ;;  %5256 = vst.msk [vmem:[#allocation3 + $0x4c] sm:$0xf] %vm217_vm4, %v5224_v59  ;;  %5253 = vst.msk [vmem:[#allocation3 + $0x40] sm:$0xf] %vm217_vm4, %v5221_v24  ;;  %v9293_v62 = vrot.slane %v8015_v3, 9  ;;  %v6466_v42 = vshll.u32 %v6367_v20, 16  ;;  %v8121_v27 = vsel %vm10121_vm8, %v8119_v31, %v8120_v32 }
 0x5b6   : > { %v5839_v17 = vld [vmem:[#allocation2 + $0x24] sm:$0xe]  ;;  %v5951_v50 = vrot.slane %v5949_v51, 4  ;;  %v6470_v39 = vshrl.u32 %v6367_v20, 16  ;;  %v5226_v10 = vld [vmem:[#allocation2 + $0x7c] sm:$0xf] }
 0x5b7   : > { %7883 = vrot.lane.b32.xlu0 %v7512_v52, %s9931_s21  ;;  %v6366_v40 = vld [vmem:[#allocation2 + $0x24] sm:$0xf]  ;;  %v5223_v11 = vld [vmem:[#allocation2 + $0x6c] sm:$0xf]  ;;  %v6370_v60 = vld [vmem:[#allocation2 + $0x34] sm:$0xf]  ;;  %v8118_v36 = vsel %vm10121_vm8, %v9293_v62, %v8117_v21 }
 0x5b8   : > { %5258 = vst.msk [vmem:[#allocation3 + $0x54] sm:$0xf] %vm217_vm4, %v5226_v10  ;;  %5255 = vst.msk [vmem:[#allocation3 + $0x48] sm:$0xf] %vm217_vm4, %v5223_v11  ;;  %v5952_v61 = vrot.slane %v5841_v4, 5  ;;  %v9263_v58 = vrot.slane %v5839_v17, 9 }
 0x5b9   : > { %7889 = vrot.lane.b32.xlu1 %v7546_v53, %s9931_s21  ;;  %v5228_v14 = vld [vmem:[#allocation2 + $0x88] sm:$0xf]  ;;  %v13107_v46 = vrot.slane %v6466_v42, 5  ;;  %v6457_v47 = vshrl.u32 %v6366_v40, 16  ;;  %v6460_v34 = vshll.u32 %v6366_v40, 16  ;;  %v6472_v5 = vrot.slane %v6470_v39, 4 }
 0x5ba   : > { %5260 = vst.msk [vmem:[#allocation3 + $0x5c] sm:$0xf] %vm217_vm4, %v5228_v14  ;;  %v5225_v22 = vld [vmem:[#allocation2 + $0x78] sm:$0xf]  ;;  %v5953_v6 = vsel %vm10121_vm8, %v5951_v50, %v5952_v61  ;;  %v6490_v15 = vshll.u32 %v6370_v60, 16  ;;  %v6494_v18 = vshrl.u32 %v6370_v60, 16  ;;  %v5950_v57 = vsel %vm10121_vm8, %v9263_v58, %v5949_v51 }
 0x5bb   : > { %7887 = vrot.lane.b32.xlu0 %v7536_v12, %s9931_s21  ;;  %v6369_v43 = vld [vmem:[#allocation2 + $0x30] sm:$0xf]  ;;  %5257 = vst.msk [vmem:[#allocation3 + $0x50] sm:$0xf] %vm217_vm4, %v5225_v22  ;;  %v6368_v26 = vld [vmem:[#allocation2 + $0x2c] sm:$0x1]  ;;  %v6473_v48 = vor.u32 %v6472_v5, %v13107_v46 }
 0x5bc   : > { %v5230_v23 = vld [vmem:[#allocation2 + $0x94] sm:$0xf]  ;;  %v6459_v35 = vrot.slane %v6457_v47, 4  ;;  %v6462_v45 = vrot.slane %v6460_v34, 5  ;;  %v6481_v0 = vshrl.u32 %v6369_v43, 16  ;;  %v6484_v41 = vshll.u32 %v6369_v43, 16 }
 0x5bd   : > { %8222 = vrot.lane.b32.xlu1 %v8114_v44, %s9932_s17  ;;  %5262 = vst.msk [vmem:[#allocation3 + $0x64] sm:$0xf] %vm217_vm4, %v5230_v23  ;;  %v5227_v29 = vld [vmem:[#allocation2 + $0x84] sm:$0xf]  ;;  %v6172_v55 = vld [vmem:[#allocation2 + $0x28] sm:$0xf] }
 0x5be   : > { %v13123_v30 = vrot.slane %v6490_v15, 5  ;;  %v6496_v8 = vrot.slane %v6494_v18, 4  ;;  %5259 = vst.msk [vmem:[#allocation3 + $0x58] sm:$0xf] %vm217_vm4, %v5227_v29  ;;  %v6171_v16 = vld [vmem:[#allocation2 + $0x24] sm:$0xf]  ;;  %v6463_v38 = vor.u32 %v6462_v45, %v6459_v35 }
 0x5bf   : > { %8220 = vrot.lane.b32.xlu0 %v8111_v49, %s9932_s17  ;;  %v6476_v37 = vshll.u32 %v6368_v26, 16  ;;  %v6371_v54 = vld [vmem:[#allocation2 + $0x38] sm:$0x1]  ;;  %v6483_v21 = vrot.slane %v6481_v0, 4  ;;  %v6486_v9 = vrot.slane %v6484_v41, 5  ;;  %v6474_v25 = vrot.slane %v6473_v48, 4 }
 0x5c0   : > { %v6232_v13 = vpop.permute.xlu0 %6231  ;;  %v5232_v56 = vld [vmem:[#allocation2 + $0xa0] sm:$0xf]  ;;  %v6174_v33 = vld [vmem:[#allocation2 + $0x34] sm:$0xf]  ;;  %v6497_v28 = vor.u32 %v6496_v8, %v13123_v30  ;;  %v5229_v12 = vld [vmem:[#allocation2 + $0x90] sm:$0xf] }
 0x5c1   : > { %8226 = vrot.lane.b32.xlu1 %v8121_v27, %s9932_s17  ;;  %6328 = vst.msk [vmem:[#allocation3] sm:$0xf] %vm6327_vm0, %v6232_v13  ;;  %v6928_v19 = vld [vmem:[#allocation2 + $0x28] sm:$0xf]  ;;  %v6478_v3 = vrot.slane %v6476_v37, 5  ;;  %v6500_v44 = vshll.u32 %v6371_v54, 16  ;;  %v6487_v24 = vor.u32 %v6486_v9, %v6483_v21 }
 0x5c2   : > { %5264 = vst.msk [vmem:[#allocation3 + $0x6c] sm:$0xf] %vm217_vm4, %v5232_v56  ;;  %5261 = vst.msk [vmem:[#allocation3 + $0x60] sm:$0xf] %vm217_vm4, %v5229_v12  ;;  %v5234_v31 = vld [vmem:[#allocation2 + $0xac] sm:$0xf] }
 0x5c3   : > { %8224 = vrot.lane.b32.xlu0 %v8118_v36, %s9932_s17  ;;  %v6173_v51 = vld [vmem:[#allocation2 + $0x30] sm:$0xf]  ;;  %v6464_v59 = vrot.slane %v6463_v38, 4  ;;  %5266 = vst.msk [vmem:[#allocation3 + $0x74] sm:$0xf] %vm217_vm4, %v5234_v31  ;;  %v6479_v4 = vsel %vm10135_vm11, %v6474_v25, %v6478_v3  ;;  %v6498_v49 = vrot.slane %v6497_v28, 4 }
 0x5c4   : > { %v13118_v63 = vpop.permute.xlu1 %6237  ;;  %v5231_v32 = vld [vmem:[#allocation2 + $0x9c] sm:$0xf]  ;;  %v7033_v62 = vrot.slane %v6928_v19, 5  ;;  %v6931_v17 = vld [vmem:[#allocation2 + $0x34] sm:$0xf]  ;;  %v6502_v27 = vrot.slane %v6500_v44, 5 }
 0x5c5   : > { %6052 = vrot.lane.b32.xlu1 %v5953_v6, %s9924_s27  ;;  %5263 = vst.msk [vmem:[#allocation3 + $0x68] sm:$0xf] %vm217_vm4, %v5231_v32  ;;  %v5236_v42 = vld [vmem:[#allocation2 + $0xb8] sm:$0xf]  ;;  %v5233_v50 = vld [vmem:[#allocation2 + $0xa8] sm:$0xf]  ;;  %v6469_v39 = vsel %vm10135_vm11, %v6464_v59, %v13107_v46 }
 0x5c6   : > { %5268 = vst.msk [vmem:[#allocation3 + $0x7c] sm:$0xf] %vm217_vm4, %v5236_v42  ;;  %v6488_v11 = vrot.slane %v6487_v24, 4  ;;  %v6929_v60 = vld [vmem:[#allocation2 + $0x2c] sm:$0x1]  ;;  %v7040_v61 = vrot.slane %v6931_v17, 5  ;;  %v6503_v14 = vsel %vm10135_vm11, %v6498_v49, %v6502_v27 }
 0x5c7   : > { %6050 = vrot.lane.b32.xlu0 %v5950_v57, %s9924_s27  ;;  %5265 = vst.msk [vmem:[#allocation3 + $0x70] sm:$0xf] %vm217_vm4, %v5233_v50  ;;  %v5235_v58 = vld [vmem:[#allocation2 + $0xb4] sm:$0xf]  ;;  %v7035_v36 = vrot.slane %v7033_v62, 4  ;;  %v7036_v22 = vrot.slane %v6929_v60, 5 }
 0x5c8   : > { %v6927_v47 = vld [vmem:[#allocation2 + $0x24] sm:$0xe]  ;;  %5267 = vst.msk [vmem:[#allocation3 + $0x78] sm:$0xf] %vm217_vm4, %v5235_v58  ;;  %v7458_v46 = vld [vmem:[#allocation2 + $0x34] sm:$0xf]  ;;  %v6493_v5 = vsel %vm10135_vm11, %v6488_v11, %v13123_v30 }
 0x5c9   : > { %6241 = vrot.lane.b32.xlu1 %v6172_v55, %s9926_s29  ;;  %v13127_v52 = vpop.permute.xlu0 %6235  ;;  %v6932_v6 = vld [vmem:[#allocation2 + $0x38] sm:$0x1]  ;;  %v9278_v18 = vrot.slane %v6927_v47, 9  ;;  %v7042_v43 = vrot.slane %v7040_v61, 4  ;;  %v6930_v13 = vld [vmem:[#allocation2 + $0x30] sm:$0xe]  ;;  %v7037_v57 = vsel %vm10121_vm8, %v7035_v36, %v7036_v22 }
 0x5ca   : > { %v7557_v26 = vshll.u32 %v7458_v46, 16  ;;  %v7561_v23 = vshrl.u32 %v7458_v46, 16  ;;  %v7457_v35 = vld [vmem:[#allocation2 + $0x30] sm:$0xf]  ;;  %v7043_v45 = vrot.slane %v6932_v6, 5  ;;  %v9279_v29 = vrot.slane %v6930_v13, 9 }
 0x5cb   : > { %v13129_v53 = vpop.permute.xlu1 %7324  ;;  %6239 = vrot.lane.b32.xlu0 %v6171_v16, %s9926_s29  ;;  %v7461_v0 = vld [vmem:[#allocation2 + $0x40] sm:$0xf]  ;;  %v7034_v55 = vsel %vm10121_vm8, %v9278_v18, %v7033_v62  ;;  %v7548_v8 = vshrl.u32 %v7457_v35, 16  ;;  %v7551_v16 = vshll.u32 %v7457_v35, 16  ;;  %v7460_v9 = vld [vmem:[#allocation2 + $0x3c] sm:$0xf] }
 0x5cc   : > { %v7044_v30 = vsel %vm10121_vm8, %v7042_v43, %v7043_v45  ;;  %v13180_v37 = vrot.slane %v7557_v26, 5  ;;  %v7563_v38 = vrot.slane %v7561_v23, 4  ;;  %v7581_v54 = vshll.u32 %v7461_v0, 16  ;;  %v7459_v28 = vld [vmem:[#allocation2 + $0x38] sm:$0x1] }
 0x5cd   : > { %6245 = vrot.lane.b32.xlu1 %v6174_v33, %s9926_s29  ;;  %v13136_v2 = vpop.permute.xlu0 %7322  ;;  %v7585_v21 = vshrl.u32 %v7461_v0, 16  ;;  %v7041_v33 = vsel %vm10121_vm8, %v9279_v29, %v7040_v61  ;;  %v7550_v12 = vrot.slane %v7548_v8, 4  ;;  %v7553_v19 = vrot.slane %v7551_v16, 5  ;;  %v7263_v31 = vld [vmem:[#allocation2 + $0x34] sm:$0xf] }
 0x5ce   : > { %v7572_v3 = vshrl.u32 %v7460_v9, 16  ;;  %v7575_v44 = vshll.u32 %v7460_v9, 16  ;;  %v7583_v59 = vrot.slane %v7581_v54, 5  ;;  %v7262_v49 = vld [vmem:[#allocation2 + $0x30] sm:$0xf]  ;;  %vm6888_vm4 = vcmask 322816  }
 0x5cf   : > { %v13138_v20 = vpop.permute.xlu1 %6044  ;;  %6243 = vrot.lane.b32.xlu0 %v6173_v51, %s9926_s29  ;;  %v7564_v51 = vor.u32 %v7563_v38, %v13180_v37  ;;  %v7587_v24 = vrot.slane %v7585_v21, 4  ;;  %v7554_v17 = vor.u32 %v7553_v19, %v7550_v12  ;;  %v7462_v42 = vld [vmem:[#allocation2 + $0x44] sm:$0x1]  ;;  %v8020_v26 = vld [vmem:[#allocation2 + $0x38] sm:$0x1] }
 0x5d0   : > { %v7574_v27 = vrot.slane %v7572_v3, 4  ;;  %v7577_v50 = vrot.slane %v7575_v44, 5  ;;  %v7591_v58 = vshll.u32 %v7462_v42, 16  ;;  %v8018_v35 = vld [vmem:[#allocation2 + $0x30] sm:$0xe] }
 0x5d1   : > { %6802 = vrot.lane.b32.xlu1 %v6479_v4, %s9928_s6  ;;  %v13146_v40 = vpop.permute.xlu0 %7326  ;;  %v7567_v4 = vshll.u32 %v7459_v28, 16  ;;  %v7588_v11 = vor.u32 %v7587_v24, %v7583_v59  ;;  %v7555_v47 = vrot.slane %v7554_v17, 4  ;;  %v5843_v0 = vld [vmem:[#allocation2 + $0x34] sm:$0xf]  ;;  %v9294_v8 = vrot.slane %v8018_v35, 9 }
 0x5d2   : > { %v7578_v46 = vor.u32 %v7577_v50, %v7574_v27  ;;  %v7593_v43 = vrot.slane %v7591_v58, 5  ;;  %v8023_v16 = vld [vmem:[#allocation2 + $0x44] sm:$0x1]  ;;  %v8021_v54 = vld [vmem:[#allocation2 + $0x3c] sm:$0xe]  ;;  %v5956_v21 = vrot.slane %v5843_v0, 5 }
 0x5d3   : > { %v13152_v10 = vpop.permute.xlu1 %6048  ;;  %6800 = vrot.lane.b32.xlu0 %v6469_v39, %s9928_s6  ;;  %v7265_v39 = vld [vmem:[#allocation2 + $0x40] sm:$0xf]  ;;  %v7569_v61 = vrot.slane %v7567_v4, 5  ;;  %v7589_v22 = vrot.slane %v7588_v11, 4  ;;  %v9295_v19 = vrot.slane %v8021_v54, 9 }
 0x5d4   : > { %v5846_v9 = vld [vmem:[#allocation2 + $0x40] sm:$0xf]  ;;  %v5844_v3 = vld [vmem:[#allocation2 + $0x38] sm:$0x1]  ;;  %v5847_v27 = vld [vmem:[#allocation2 + $0x44] sm:$0x1] }
 0x5d5   : > { %6806 = vrot.lane.b32.xlu1 %v6503_v14, %s9928_s6  ;;  %v13160_v34 = vpop.permute.xlu0 %6042  ;;  %v7264_v14 = vld [vmem:[#allocation2 + $0x3c] sm:$0xf]  ;;  %v6373_v24 = vld [vmem:[#allocation2 + $0x40] sm:$0xf] }
 0x5d6   : > { %v5845_v50 = vld [vmem:[#allocation2 + $0x3c] sm:$0xe] }
 0x5d7   : > { %v13165_v15 = vpop.permute.xlu1 %7131  ;;  %6804 = vrot.lane.b32.xlu0 %v6493_v5, %s9928_s6  ;;  %v8022_v5 = vld [vmem:[#allocation2 + $0x40] sm:$0xf] }
 0x5d8   : > { %v8131_v45 = vrot.slane %v8022_v5, 5 }
 0x5d9   : > { %7139 = vrot.lane.b32.xlu1 %v7037_v57, %s9930_s9  ;;  %v13171_v41 = vpop.permute.xlu0 %6046  ;;  %v7579_v57 = vrot.slane %v7578_v46, 4 }
 0x5da   : > { %v8133_v38 = vrot.slane %v8131_v45, 4 }
 0x5db   : > { %v13175_v48 = vpop.permute.xlu1 %7135  ;;  %7137 = vrot.lane.b32.xlu0 %v7034_v55, %s9930_s9  ;;  %v8127_v55 = vrot.slane %v8020_v26, 5 }
 0x5dd   : > { %7143 = vrot.lane.b32.xlu1 %v7044_v30, %s9930_s9  ;;  %v13183_v56 = vpop.permute.xlu0 %7129 }
 0x5df   : > { %v5708_v25 = vpop.permute.xlu1 %5707  ;;  %7141 = vrot.lane.b32.xlu0 %v7041_v33, %s9930_s9 }
 0x5e0   : > { %5801 = vst.msk [vmem:[#allocation3 + $0xc] sm:$0xf] %vm5797_vm2, %v5708_v25  ;;  %v8134_v25 = vrot.slane %v8023_v16, 5 }
 0x5e1   : > { %6138 = vst.msk [vmem:[#allocation3 + $0xc] sm:$0xf] %vm6134_vm3, %v13138_v20  ;;  %7332 = vrot.lane.b32.xlu1 %v7263_v31, %s9929_s8  ;;  %v13195_v32 = vpop.permute.xlu0 %7133  ;;  %v7565_v20 = vrot.slane %v7564_v51, 4  ;;  %v5958_v31 = vrot.slane %v5956_v21, 4  ;;  %v5842_v51 = vld [vmem:[#allocation2 + $0x30] sm:$0xe] }
 0x5e2   : > { %6331 = vst.msk [vmem:[#allocation3 + $0xc] sm:$0xf] %vm6327_vm0, %v13118_v63  ;;  %v8019_v63 = vld [vmem:[#allocation2 + $0x34] sm:$0xf]  ;;  %v8135_v44 = vsel %vm10121_vm8, %v8133_v38, %v8134_v25  ;;  %v9264_v42 = vrot.slane %v5842_v51, 9 }
 0x5e3   : > { %v5712_v62 = vpop.permute.xlu1 %5711  ;;  %7330 = vrot.lane.b32.xlu0 %v7262_v49, %s9929_s8  ;;  %v8124_v6 = vrot.slane %v8019_v63, 5  ;;  %v5959_v49 = vrot.slane %v5844_v3, 5  ;;  %v6518_v63 = vshrl.u32 %v6373_v24, 16  ;;  %v6175_v38 = vld [vmem:[#allocation2 + $0x3c] sm:$0xf] }
 0x5e4   : > { %5803 = vst.msk [vmem:[#allocation3 + $0x14] sm:$0xf] %vm5797_vm2, %v5712_v62  ;;  %v8132_v62 = vsel %vm10121_vm8, %v9295_v19, %v8131_v45  ;;  %v6934_v3 = vld [vmem:[#allocation2 + $0x40] sm:$0xf] }
 0x5e5   : > { %6140 = vst.msk [vmem:[#allocation3 + $0x14] sm:$0xf] %vm6134_vm3, %v13152_v10  ;;  %7336 = vrot.lane.b32.xlu1 %v7265_v39, %s9929_s8  ;;  %v5706_v60 = vpop.permute.xlu0 %5705  ;;  %v7570_v10 = vsel %vm10135_vm11, %v7565_v20, %v7569_v61  ;;  %v8126_v23 = vrot.slane %v8124_v6, 4  ;;  %v8125_v28 = vsel %vm10121_vm8, %v9294_v8, %v8124_v6  ;;  %v6514_v39 = vshll.u32 %v6373_v24, 16  ;;  %v6376_v61 = vld [vmem:[#allocation2 + $0x4c] sm:$0xf] }
 0x5e6   : > { %5800 = vst.msk [vmem:[#allocation3 + $0x8] sm:$0xf] %vm5797_vm2, %v5706_v60  ;;  %v5960_v20 = vsel %vm10121_vm8, %v5958_v31, %v5959_v49  ;;  %v6372_v60 = vld [vmem:[#allocation2 + $0x3c] sm:$0xf] }
 0x5e7   : > { %v5716_v36 = vpop.permute.xlu1 %5715  ;;  %6137 = vst.msk [vmem:[#allocation3 + $0x8] sm:$0xf] %vm6134_vm3, %v13160_v34  ;;  %7334 = vrot.lane.b32.xlu0 %v7264_v14, %s9929_s8  ;;  %v7560_v34 = vsel %vm10135_vm11, %v7555_v47, %v13180_v37  ;;  %v8128_v37 = vsel %vm10121_vm8, %v8126_v23, %v8127_v55  ;;  %v5966_v14 = vrot.slane %v5847_v27, 5  ;;  %v5957_v47 = vsel %vm10121_vm8, %v9264_v42, %v5956_v21  ;;  %v6374_v23 = vld [vmem:[#allocation2 + $0x44] sm:$0x1] }
 0x5e8   : > { %5805 = vst.msk [vmem:[#allocation3 + $0x1c] sm:$0xf] %vm5797_vm2, %v5716_v36  ;;  %v9265_v36 = vrot.slane %v5845_v50, 9  ;;  %v6508_v6 = vshll.u32 %v6372_v60, 16  ;;  %v6176_v55 = vld [vmem:[#allocation2 + $0x40] sm:$0xf] }
 0x5e9   : > { %6330 = vst.msk [vmem:[#allocation3 + $0x8] sm:$0xf] %vm6327_vm0, %v13127_v52  ;;  %7893 = vrot.lane.b32.xlu1 %v7570_v10, %s9931_s21  ;;  %v5710_v18 = vpop.permute.xlu0 %5709  ;;  %v7594_v52 = vsel %vm10135_vm11, %v7589_v22, %v7593_v43  ;;  %v13250_v10 = vrot.slane %v6514_v39, 5  ;;  %v6505_v22 = vshrl.u32 %v6372_v60, 16  ;;  %v6538_v43 = vshll.u32 %v6376_v61, 16 }
 0x5ea   : > { %5802 = vst.msk [vmem:[#allocation3 + $0x10] sm:$0xf] %vm5797_vm2, %v5710_v18  ;;  %v6520_v18 = vrot.slane %v6518_v63, 4  ;;  %v6510_v45 = vrot.slane %v6508_v6, 5  ;;  %v7047_v42 = vrot.slane %v6934_v3, 5 }
 0x5eb   : > { %v5720_v13 = vpop.permute.xlu1 %5719  ;;  %6139 = vst.msk [vmem:[#allocation3 + $0x10] sm:$0xf] %vm6134_vm3, %v13171_v41  ;;  %7891 = vrot.lane.b32.xlu0 %v7560_v34, %s9931_s21  ;;  %v7584_v41 = vsel %vm10135_vm11, %v7579_v57, %v7583_v59  ;;  %v5963_v59 = vrot.slane %v5846_v9, 5  ;;  %v6542_v34 = vshrl.u32 %v6376_v61, 16  ;;  %v6507_v35 = vrot.slane %v6505_v22, 4 }
 0x5ec   : > { %5807 = vst.msk [vmem:[#allocation3 + $0x24] sm:$0xf] %vm5797_vm2, %v5720_v13  ;;  %v6375_v13 = vld [vmem:[#allocation2 + $0x48] sm:$0xf]  ;;  %v6377_v9 = vld [vmem:[#allocation2 + $0x50] sm:$0x1] }
 0x5ed   : > { %7897 = vrot.lane.b32.xlu1 %v7594_v52, %s9931_s21  ;;  %v5714_v29 = vpop.permute.xlu0 %5713  ;;  %v5965_v11 = vrot.slane %v5963_v59, 4  ;;  %v5964_v26 = vsel %vm10121_vm8, %v9265_v36, %v5963_v59  ;;  %v6529_v0 = vshrl.u32 %v6375_v13, 16  ;;  %v6544_v8 = vrot.slane %v6542_v34, 4  ;;  %v6177_v59 = vld [vmem:[#allocation2 + $0x48] sm:$0xf] }
 0x5ee   : > { %5804 = vst.msk [vmem:[#allocation3 + $0x18] sm:$0xf] %vm5797_vm2, %v5714_v29  ;;  %v6532_v29 = vshll.u32 %v6375_v13, 16  ;;  %v6511_v21 = vor.u32 %v6510_v45, %v6507_v35  ;;  %v6548_v51 = vshll.u32 %v6377_v9, 16  ;;  %v6937_v27 = vld [vmem:[#allocation2 + $0x4c] sm:$0xf] }
 0x5ef   : > { %v5724_v30 = vpop.permute.xlu1 %5723  ;;  %7895 = vrot.lane.b32.xlu0 %v7584_v41, %s9931_s21  ;;  %v5967_v5 = vsel %vm10121_vm8, %v5965_v11, %v5966_v14  ;;  %v6521_v41 = vor.u32 %v6520_v18, %v13250_v10  ;;  %v6935_v60 = vld [vmem:[#allocation2 + $0x44] sm:$0x1]  ;;  %v7054_v61 = vrot.slane %v6937_v27, 5  ;;  %v7049_v14 = vrot.slane %v7047_v42, 4  ;;  %v6933_v36 = vld [vmem:[#allocation2 + $0x3c] sm:$0xe] }
 0x5f0   : > { %5809 = vst.msk [vmem:[#allocation3 + $0x2c] sm:$0xf] %vm5797_vm2, %v5724_v30  ;;  %v6540_v30 = vrot.slane %v6538_v43, 5  ;;  %v6534_v25 = vrot.slane %v6532_v29, 5  ;;  %v6550_v39 = vrot.slane %v6548_v51, 5  ;;  %v7050_v22 = vrot.slane %v6935_v60, 5 }
 0x5f1   : > { %8230 = vrot.lane.b32.xlu1 %v8128_v37, %s9932_s17  ;;  %v5718_v33 = vpop.permute.xlu0 %5717  ;;  %v6524_v37 = vshll.u32 %v6374_v23, 16  ;;  %v6938_v6 = vld [vmem:[#allocation2 + $0x50] sm:$0x1]  ;;  %v9280_v18 = vrot.slane %v6933_v36, 9  ;;  %v7056_v43 = vrot.slane %v7054_v61, 4 }
 0x5f2   : > { %5806 = vst.msk [vmem:[#allocation3 + $0x20] sm:$0xf] %vm5797_vm2, %v5718_v33  ;;  %v6531_v33 = vrot.slane %v6529_v0, 4  ;;  %v6545_v19 = vor.u32 %v6544_v8, %v6540_v30  ;;  %v6936_v34 = vld [vmem:[#allocation2 + $0x48] sm:$0xe]  ;;  %v7051_v13 = vsel %vm10121_vm8, %v7049_v14, %v7050_v22  ;;  %v7057_v23 = vrot.slane %v6938_v6, 5 }
 0x5f3   : > { %v5728_v12 = vpop.permute.xlu1 %5727  ;;  %8228 = vrot.lane.b32.xlu0 %v8125_v28, %s9932_s17  ;;  %v6178_v28 = vld [vmem:[#allocation2 + $0x4c] sm:$0xf]  ;;  %v6526_v31 = vrot.slane %v6524_v37, 5  ;;  %v7467_v35 = vld [vmem:[#allocation2 + $0x58] sm:$0xf]  ;;  %v9281_v0 = vrot.slane %v6936_v34, 9  ;;  %v7048_v29 = vsel %vm10121_vm8, %v9280_v18, %v7047_v42 }
 0x5f4   : > { %5811 = vst.msk [vmem:[#allocation3 + $0x34] sm:$0xf] %vm5797_vm2, %v5728_v12  ;;  %v6522_v12 = vrot.slane %v6521_v41, 4  ;;  %v6535_v49 = vor.u32 %v6534_v25, %v6531_v33  ;;  %v7058_v41 = vsel %vm10121_vm8, %v7056_v43, %v7057_v23  ;;  %v7468_v27 = vld [vmem:[#allocation2 + $0x5c] sm:$0x1] }
 0x5f5   : > { %8234 = vrot.lane.b32.xlu1 %v8135_v44, %s9932_s17  ;;  %v5722_v4 = vpop.permute.xlu0 %5721  ;;  %v7055_v33 = vsel %vm10121_vm8, %v9281_v0, %v7054_v61  ;;  %v8025_v60 = vld [vmem:[#allocation2 + $0x4c] sm:$0xf]  ;;  %v7639_v14 = vshll.u32 %v7468_v27, 16  ;;  %v7268_v36 = vld [vmem:[#allocation2 + $0x54] sm:$0xf] }
 0x5f6   : > { %5808 = vst.msk [vmem:[#allocation3 + $0x28] sm:$0xf] %vm5797_vm2, %v5722_v4  ;;  %v6512_v4 = vrot.slane %v6511_v21, 4  ;;  %v6536_v63 = vrot.slane %v6535_v49, 4  ;;  %v7466_v21 = vld [vmem:[#allocation2 + $0x54] sm:$0xf] }
 0x5f7   : > { %v5732_v17 = vpop.permute.xlu1 %5731  ;;  %8232 = vrot.lane.b32.xlu0 %v8132_v62, %s9932_s17  ;;  %v6527_v62 = vsel %vm10135_vm11, %v6522_v12, %v6526_v31  ;;  %v7620_v3 = vshrl.u32 %v7466_v21, 16  ;;  %v7267_v31 = vld [vmem:[#allocation2 + $0x4c] sm:$0xf]  ;;  %v7266_v49 = vld [vmem:[#allocation2 + $0x48] sm:$0xf]  ;;  %v7641_v18 = vrot.slane %v7639_v14, 5 }
 0x5f8   : > { %5813 = vst.msk [vmem:[#allocation3 + $0x3c] sm:$0xf] %vm5797_vm2, %v5732_v17  ;;  %v6546_v17 = vrot.slane %v6545_v19, 4  ;;  %v6378_v27 = vld [vmem:[#allocation2 + $0x54] sm:$0xf] }
 0x5f9   : > { %6056 = vrot.lane.b32.xlu1 %v5960_v20, %s9924_s27  ;;  %v5726_v58 = vpop.permute.xlu0 %5725  ;;  %v6517_v20 = vsel %vm10135_vm11, %v6512_v4, %v13250_v10  ;;  %v6541_v10 = vsel %vm10135_vm11, %v6536_v63, %v6540_v30  ;;  %v6553_v14 = vshrl.u32 %v6378_v27, 16 }
 0x5fa   : > { %5810 = vst.msk [vmem:[#allocation3 + $0x30] sm:$0xf] %vm5797_vm2, %v5726_v58  ;;  %v6551_v58 = vsel %vm10135_vm11, %v6546_v17, %v6550_v39 }
 0x5fb   : > { %v5736_v46 = vpop.permute.xlu1 %5735  ;;  %6054 = vrot.lane.b32.xlu0 %v5957_v47, %s9924_s27  ;;  %v7464_v47 = vld [vmem:[#allocation2 + $0x4c] sm:$0xf] }
 0x5fc   : > { %5815 = vst.msk [vmem:[#allocation3 + $0x44] sm:$0xf] %vm5797_vm2, %v5736_v46 }
 0x5fd   : > { %6060 = vrot.lane.b32.xlu1 %v5967_v5, %s9924_s27  ;;  %v5730_v57 = vpop.permute.xlu0 %5729 }
 0x5fe   : > { %5812 = vst.msk [vmem:[#allocation3 + $0x38] sm:$0xf] %vm5797_vm2, %v5730_v57  ;;  %v7605_v57 = vshll.u32 %v7464_v47, 16 }
 0x5ff   : > { %v5740_v52 = vpop.permute.xlu1 %5739  ;;  %6058 = vrot.lane.b32.xlu0 %v5964_v26, %s9924_s27  ;;  %v7609_v26 = vshrl.u32 %v7464_v47, 16 }
 0x600   : > { %5817 = vst.msk [vmem:[#allocation3 + $0x4c] sm:$0xf] %vm5797_vm2, %v5740_v52  ;;  %v7463_v52 = vld [vmem:[#allocation2 + $0x48] sm:$0xf] }
 0x601   : > { %6249 = vrot.lane.b32.xlu1 %v6176_v55, %s9926_s29  ;;  %v5734_v16 = vpop.permute.xlu0 %5733  ;;  %v7596_v30 = vshrl.u32 %v7463_v52, 16  ;;  %v7599_v8 = vshll.u32 %v7463_v52, 16  ;;  %v7611_v37 = vrot.slane %v7609_v26, 4  ;;  %v8024_v52 = vld [vmem:[#allocation2 + $0x48] sm:$0xe] }
 0x602   : > { %5814 = vst.msk [vmem:[#allocation3 + $0x40] sm:$0xf] %vm5797_vm2, %v5734_v16  ;;  %v13298_v16 = vrot.slane %v7605_v57, 5  ;;  %v8026_v57 = vld [vmem:[#allocation2 + $0x50] sm:$0x1] }
 0x603   : > { %v5744_v54 = vpop.permute.xlu1 %5743  ;;  %6247 = vrot.lane.b32.xlu0 %v6175_v38, %s9926_s29  ;;  %v7629_v38 = vshll.u32 %v7467_v35, 16  ;;  %v7598_v12 = vrot.slane %v7596_v30, 4  ;;  %v7601_v19 = vrot.slane %v7599_v8, 5  ;;  %v8141_v0 = vrot.slane %v8026_v57, 5  ;;  %v8027_v8 = vld [vmem:[#allocation2 + $0x54] sm:$0xe] }
 0x604   : > { %5819 = vst.msk [vmem:[#allocation3 + $0x54] sm:$0xf] %vm5797_vm2, %v5744_v54  ;;  %v7633_v54 = vshrl.u32 %v7467_v35, 16  ;;  %v7612_v51 = vor.u32 %v7611_v37, %v13298_v16  ;;  %v5849_v35 = vld [vmem:[#allocation2 + $0x4c] sm:$0xf] }
 0x605   : > { %6253 = vrot.lane.b32.xlu1 %v6178_v28, %s9926_s29  ;;  %v5738_v44 = vpop.permute.xlu0 %5737  ;;  %v7465_v28 = vld [vmem:[#allocation2 + $0x50] sm:$0x1]  ;;  %v7602_v42 = vor.u32 %v7601_v19, %v7598_v12  ;;  %v5852_v37 = vld [vmem:[#allocation2 + $0x58] sm:$0xf]  ;;  %v5848_v12 = vld [vmem:[#allocation2 + $0x48] sm:$0xe] }
 0x606   : > { %5816 = vst.msk [vmem:[#allocation3 + $0x48] sm:$0xf] %vm5797_vm2, %v5738_v44  ;;  %v7623_v44 = vshll.u32 %v7466_v21, 16  ;;  %v6379_v19 = vld [vmem:[#allocation2 + $0x58] sm:$0xf] }
 0x607   : > { %v5748_v24 = vpop.permute.xlu1 %5747  ;;  %6251 = vrot.lane.b32.xlu0 %v6177_v59, %s9926_s29  ;;  %v13307_v59 = vrot.slane %v7629_v38, 5 }
 0x608   : > { %5821 = vst.msk [vmem:[#allocation3 + $0x5c] sm:$0xf] %vm5797_vm2, %v5748_v24  ;;  %v7635_v24 = vrot.slane %v7633_v54, 4  ;;  %v7625_v39 = vrot.slane %v7623_v44, 5 }
 0x609   : > { %6810 = vrot.lane.b32.xlu1 %v6527_v62, %s9928_s6  ;;  %v5742_v50 = vpop.permute.xlu0 %5741  ;;  %v7615_v62 = vshll.u32 %v7465_v28, 16 }
 0x60a   : > { %5818 = vst.msk [vmem:[#allocation3 + $0x50] sm:$0xf] %vm5797_vm2, %v5742_v50  ;;  %v7622_v50 = vrot.slane %v7620_v3, 4  ;;  %v7636_v63 = vor.u32 %v7635_v24, %v13307_v59  ;;  %v9266_v24 = vrot.slane %v5848_v12, 9 }
 0x60b   : > { %v5752_v11 = vpop.permute.xlu1 %5751  ;;  %6808 = vrot.lane.b32.xlu0 %v6517_v20, %s9928_s6  ;;  %v7269_v20 = vld [vmem:[#allocation2 + $0x58] sm:$0xf] }
 0x60c   : > { %5823 = vst.msk [vmem:[#allocation3 + $0x64] sm:$0xf] %vm5797_vm2, %v5752_v11  ;;  %v7613_v11 = vrot.slane %v7612_v51, 4  ;;  %v7626_v22 = vor.u32 %v7625_v39, %v7622_v50  ;;  %v7637_v6 = vrot.slane %v7636_v63, 4  ;;  %v14561_v50 = vmov 0  }
 0x60d   : > { %6814 = vrot.lane.b32.xlu1 %v6551_v58, %s9928_s6  ;;  %v5746_v46 = vpop.permute.xlu0 %5745  ;;  %v7617_v58 = vrot.slane %v7615_v62, 5 }
 0x60e   : > { %5820 = vst.msk [vmem:[#allocation3 + $0x58] sm:$0xf] %vm5797_vm2, %v5746_v46  ;;  %v7603_v46 = vrot.slane %v7602_v42, 4  ;;  %v6566_v42 = vshrl.u32 %v6379_v19, 16 }
 0x60f   : > { %v5756_v5 = vpop.permute.xlu1 %5755  ;;  %6812 = vrot.lane.b32.xlu0 %v6541_v10, %s9928_s6  ;;  %v8138_v10 = vrot.slane %v8025_v60, 5 }
 0x610   : > { %5825 = vst.msk [vmem:[#allocation3 + $0x6c] sm:$0xf] %vm5797_vm2, %v5756_v5  ;;  %v7608_v43 = vsel %vm10135_vm11, %v7603_v46, %v13298_v16  ;;  %v5970_v16 = vrot.slane %v5849_v35, 5  ;;  %v6568_v46 = vrot.slane %v6566_v42, 4  ;;  %v7470_v42 = vld [vmem:[#allocation2 + $0x64] sm:$0xf] }
 0x611   : > { %7147 = vrot.lane.b32.xlu1 %v7051_v13, %s9930_s9  ;;  %v5750_v45 = vpop.permute.xlu0 %5749  ;;  %v7627_v13 = vrot.slane %v7626_v22, 4  ;;  %v8140_v26 = vrot.slane %v8138_v10, 4 }
 0x612   : > { %5822 = vst.msk [vmem:[#allocation3 + $0x60] sm:$0xf] %vm5797_vm2, %v5750_v45  ;;  %v5972_v28 = vrot.slane %v5970_v16, 4  ;;  %v5971_v60 = vsel %vm10121_vm8, %v9266_v24, %v5970_v16  ;;  %v6941_v24 = vld [vmem:[#allocation2 + $0x5c] sm:$0x1] }
 0x613   : > { %v5760_v55 = vpop.permute.xlu1 %5759  ;;  %7145 = vrot.lane.b32.xlu0 %v7048_v29, %s9930_s9 }
 0x614   : > { %5827 = vst.msk [vmem:[#allocation3 + $0x74] sm:$0xf] %vm5797_vm2, %v5760_v55  ;;  %v9296_v55 = vrot.slane %v8024_v52, 9 }
 0x615   : > { %7151 = vrot.lane.b32.xlu1 %v7058_v41, %s9930_s9  ;;  %v5754_v9 = vpop.permute.xlu0 %5753  ;;  %v8029_v41 = vld [vmem:[#allocation2 + $0x5c] sm:$0x1] }
 0x616   : > { %5824 = vst.msk [vmem:[#allocation3 + $0x68] sm:$0xf] %vm5797_vm2, %v5754_v9  ;;  %v8148_v54 = vrot.slane %v8029_v41, 5  ;;  %v9297_v9 = vrot.slane %v8027_v8, 9 }
 0x617   : > { %v5764_v25 = vpop.permute.xlu1 %5763  ;;  %7149 = vrot.lane.b32.xlu0 %v7055_v33, %s9930_s9  ;;  %v5850_v33 = vld [vmem:[#allocation2 + $0x50] sm:$0x1] }
 0x618   : > { %5829 = vst.msk [vmem:[#allocation3 + $0x7c] sm:$0xf] %vm5797_vm2, %v5764_v25  ;;  %v5977_v25 = vrot.slane %v5852_v37, 5  ;;  %v5973_v44 = vrot.slane %v5850_v33, 5  ;;  %v6940_v37 = vld [vmem:[#allocation2 + $0x58] sm:$0xf] }
 0x619   : > { %7340 = vrot.lane.b32.xlu1 %v7267_v31, %s9929_s8  ;;  %v5758_v4 = vpop.permute.xlu0 %5757  ;;  %v5853_v31 = vld [vmem:[#allocation2 + $0x5c] sm:$0x1]  ;;  %v7061_v12 = vrot.slane %v6940_v37, 5 }
 0x61a   : > { %5826 = vst.msk [vmem:[#allocation3 + $0x70] sm:$0xf] %vm5797_vm2, %v5758_v4  ;;  %v5979_v4 = vrot.slane %v5977_v25, 4  ;;  %v5974_v62 = vsel %vm10121_vm8, %v5972_v28, %v5973_v44  ;;  %v5980_v39 = vrot.slane %v5853_v31, 5 }
 0x61b   : > { %v6795_v17 = vpop.permute.xlu1 %6794  ;;  %7338 = vrot.lane.b32.xlu0 %v7266_v49, %s9929_s8  ;;  %v5851_v49 = vld [vmem:[#allocation2 + $0x54] sm:$0xe] }
 0x61c   : > { %6890 = vst.msk [vmem:[#allocation3 + $0x4] sm:$0xf] %vm6888_vm4, %v6795_v17  ;;  %v6562_v17 = vshll.u32 %v6379_v19, 16  ;;  %v9267_v63 = vrot.slane %v5851_v49, 9  ;;  %v6943_v19 = vld [vmem:[#allocation2 + $0x64] sm:$0xf] }
 0x61d   : > { %7227 = vst.msk [vmem:[#allocation3 + $0x4] sm:$0xf] %vm7225_vm1, %v13165_v15  ;;  %7344 = vrot.lane.b32.xlu1 %v7269_v20, %s9929_s8  ;;  %v5762_v61 = vpop.permute.xlu0 %5761  ;;  %v7618_v15 = vsel %vm10135_vm11, %v7613_v11, %v7617_v58  ;;  %v6382_v20 = vld [vmem:[#allocation2 + $0x64] sm:$0xf]  ;;  %v5981_v58 = vsel %vm10121_vm8, %v5979_v4, %v5980_v39  ;;  %v7068_v4 = vrot.slane %v6943_v19, 5  ;;  %v7064_v39 = vrot.slane %v6941_v24, 5 }
 0x61e   : > { %7420 = vst.msk [vmem:[#allocation3 + $0x4] sm:$0xf] %vm7418_vm6, %v13129_v53  ;;  %v8028_v53 = vld [vmem:[#allocation2 + $0x58] sm:$0xf]  ;;  %v6586_v22 = vshll.u32 %v6382_v20, 16 }
 0x61f   : > { %5828 = vst.msk [vmem:[#allocation3 + $0x78] sm:$0xf] %vm5797_vm2, %v5762_v61  ;;  %v6799_v47 = vpop.permute.xlu1 %6798  ;;  %7342 = vrot.lane.b32.xlu0 %v7268_v36, %s9929_s8  ;;  %v8145_v23 = vrot.slane %v8028_v53, 5  ;;  %v6556_v36 = vshll.u32 %v6378_v27, 16  ;;  %v5978_v53 = vsel %vm10121_vm8, %v9267_v63, %v5977_v25  ;;  %v8031_v19 = vld [vmem:[#allocation2 + $0x64] sm:$0xf] }
 0x620   : > { %6892 = vst.msk [vmem:[#allocation3 + $0xc] sm:$0xf] %vm6888_vm4, %v6799_v47  ;;  %v13380_v47 = vrot.slane %v6562_v17, 5  ;;  %v6588_v52 = vrot.slane %v6586_v22, 5  ;;  %v6939_v17 = vld [vmem:[#allocation2 + $0x54] sm:$0xe] }
 0x621   : > { %7229 = vst.msk [vmem:[#allocation3 + $0xc] sm:$0xf] %vm7225_vm1, %v13175_v48  ;;  %7901 = vrot.lane.b32.xlu1 %v7618_v15, %s9931_s21  ;;  %v6793_v5 = vpop.permute.xlu0 %6792  ;;  %v7642_v48 = vsel %vm10135_vm11, %v7637_v6, %v7641_v18  ;;  %v8147_v30 = vrot.slane %v8145_v23, 4  ;;  %v8146_v51 = vsel %vm10121_vm8, %v9297_v9, %v8145_v23  ;;  %v6590_v15 = vshrl.u32 %v6382_v20, 16  ;;  %v6381_v6 = vld [vmem:[#allocation2 + $0x60] sm:$0xf] }
 0x622   : > { %6889 = vst.msk [vmem:[#allocation3] sm:$0xf] %vm6888_vm4, %v6793_v5  ;;  %v6380_v18 = vld [vmem:[#allocation2 + $0x5c] sm:$0x1]  ;;  %v6580_v57 = vshll.u32 %v6381_v6, 16 }
 0x623   : > { %v7329_v34 = vpop.permute.xlu1 %7328  ;;  %7226 = vst.msk [vmem:[#allocation3] sm:$0xf] %vm7225_vm1, %v13183_v56  ;;  %7899 = vrot.lane.b32.xlu0 %v7608_v43, %s9931_s21  ;;  %v7632_v56 = vsel %vm10135_vm11, %v7627_v13, %v13307_v59  ;;  %v6555_v43 = vrot.slane %v6553_v14, 4  ;;  %v6577_v13 = vshrl.u32 %v6381_v6, 16  ;;  %v6592_v23 = vrot.slane %v6590_v15, 4 }
 0x624   : > { %7422 = vst.msk [vmem:[#allocation3 + $0xc] sm:$0xf] %vm7418_vm6, %v7329_v34  ;;  %7419 = vst.msk [vmem:[#allocation3] sm:$0xf] %vm7418_vm6, %v13136_v2  ;;  %v8142_v2 = vsel %vm10121_vm8, %v8140_v26, %v8141_v0  ;;  %v6558_v34 = vrot.slane %v6556_v36, 5  ;;  %v6569_v26 = vor.u32 %v6568_v46, %v13380_v47  ;;  %v7653_v36 = vshll.u32 %v7470_v42, 16 }
 0x625   : > { %7905 = vrot.lane.b32.xlu1 %v7642_v48, %s9931_s21  ;;  %v6797_v45 = vpop.permute.xlu0 %6796  ;;  %v6180_v48 = vld [vmem:[#allocation2 + $0x58] sm:$0xf]  ;;  %v6179_v0 = vld [vmem:[#allocation2 + $0x54] sm:$0xf]  ;;  %v6579_v41 = vrot.slane %v6577_v13, 4  ;;  %v6593_v16 = vor.u32 %v6592_v23, %v6588_v52 }
 0x626   : > { %6891 = vst.msk [vmem:[#allocation3 + $0x8] sm:$0xf] %vm6888_vm4, %v6797_v45  ;;  %v6572_v45 = vshll.u32 %v6380_v18, 16  ;;  %v6570_v8 = vrot.slane %v6569_v26, 4  ;;  %v6944_v20 = vld [vmem:[#allocation2 + $0x68] sm:$0x1] }
 0x627   : > { %v7886_v29 = vpop.permute.xlu1 %7885  ;;  %7228 = vst.msk [vmem:[#allocation3 + $0x8] sm:$0xf] %vm7225_vm1, %v13195_v32  ;;  %7903 = vrot.lane.b32.xlu0 %v7632_v56, %s9931_s21  ;;  %v8139_v32 = vsel %vm10121_vm8, %v9296_v55, %v8138_v10  ;;  %v6383_v55 = vld [vmem:[#allocation2 + $0x68] sm:$0x1]  ;;  %v6594_v28 = vrot.slane %v6593_v16, 4  ;;  %v7071_v22 = vrot.slane %v6944_v20, 5 }
 0x628   : > { %7981 = vst.msk [vmem:[#allocation3 + $0x4] sm:$0xf] %vm7979_vm7, %v7886_v29  ;;  %v6559_v29 = vor.u32 %v6558_v34, %v6555_v43  ;;  %v7469_v46 = vld [vmem:[#allocation2 + $0x60] sm:$0xf]  ;;  %v7473_v15 = vld [vmem:[#allocation2 + $0x70] sm:$0xf] }
 0x629   : > { %7421 = vst.msk [vmem:[#allocation3 + $0x8] sm:$0xf] %vm7418_vm6, %v13146_v40  ;;  %8238 = vrot.lane.b32.xlu1 %v8142_v2, %s9932_s17  ;;  %v7884_v38 = vpop.permute.xlu0 %7883  ;;  %v8149_v40 = vsel %vm10121_vm8, %v8147_v30, %v8148_v54  ;;  %v6582_v2 = vrot.slane %v6580_v57, 5  ;;  %v6182_v30 = vld [vmem:[#allocation2 + $0x64] sm:$0xf]  ;;  %v6574_v54 = vrot.slane %v6572_v45, 5 }
 0x62a   : > { %7980 = vst.msk [vmem:[#allocation3] sm:$0xf] %vm7979_vm7, %v7884_v38  ;;  %v6560_v33 = vrot.slane %v6559_v29, 4  ;;  %v7644_v43 = vshrl.u32 %v7469_v46, 16  ;;  %v7647_v34 = vshll.u32 %v7469_v46, 16  ;;  %v7655_v13 = vrot.slane %v7653_v36, 5 }
 0x62b   : > { %v7890_v21 = vpop.permute.xlu1 %7889  ;;  %8236 = vrot.lane.b32.xlu0 %v8139_v32, %s9932_s17  ;;  %v6596_v32 = vshll.u32 %v6383_v55, 16  ;;  %v6583_v25 = vor.u32 %v6582_v2, %v6579_v41  ;;  %v7681_v26 = vshrl.u32 %v7473_v15, 16  ;;  %v7271_v2 = vld [vmem:[#allocation2 + $0x64] sm:$0xf] }
 0x62c   : > { %7983 = vst.msk [vmem:[#allocation3 + $0xc] sm:$0xf] %vm7979_vm7, %v7890_v21  ;;  %v6181_v21 = vld [vmem:[#allocation2 + $0x60] sm:$0xf]  ;;  %v6565_v31 = vsel %vm10135_vm11, %v6560_v33, %v13380_v47  ;;  %v7657_v47 = vshrl.u32 %v7470_v42, 16  ;;  %v7649_v29 = vrot.slane %v7647_v34, 5 }
 0x62d   : > { %8242 = vrot.lane.b32.xlu1 %v8149_v40, %s9932_s17  ;;  %v7888_v3 = vpop.permute.xlu0 %7887  ;;  %v6575_v40 = vsel %vm10135_vm11, %v6570_v8, %v6574_v54  ;;  %v6598_v44 = vrot.slane %v6596_v32, 5  ;;  %v7683_v16 = vrot.slane %v7681_v26, 4  ;;  %v7270_v54 = vld [vmem:[#allocation2 + $0x60] sm:$0xf]  ;;  %v8034_v42 = vld [vmem:[#allocation2 + $0x70] sm:$0xf] }
 0x62e   : > { %7982 = vst.msk [vmem:[#allocation3 + $0x8] sm:$0xf] %vm7979_vm7, %v7888_v3  ;;  %v7659_v57 = vrot.slane %v7657_v47, 4  ;;  %v8159_v36 = vrot.slane %v8034_v42, 5  ;;  %v5855_v47 = vld [vmem:[#allocation2 + $0x64] sm:$0xf] }
 0x62f   : > { %v8223_v59 = vpop.permute.xlu1 %8222  ;;  %8240 = vrot.lane.b32.xlu0 %v8146_v51, %s9932_s17  ;;  %v6599_v49 = vsel %vm10135_vm11, %v6594_v28, %v6598_v44  ;;  %v5984_v34 = vrot.slane %v5855_v47, 5 }
 0x630   : > { %8318 = vst.msk [vmem:[#allocation3 + $0x4] sm:$0xf] %vm8316_vm9, %v8223_v59  ;;  %v6584_v59 = vrot.slane %v6583_v25, 4 }
 0x631   : > { %8351 = vst.msk [vmem:[#allocation3 + $0x4] sm:$0xf] %vm8349_vm10, %v14561_v50  ;;  %6064 = vrot.lane.b32.xlu1 %v5974_v62, %s9924_s27  ;;  %v8221_v11 = vpop.permute.xlu0 %8220  ;;  %v7063_v62 = vrot.slane %v7061_v12, 4 }
 0x632   : > { %8317 = vst.msk [vmem:[#allocation3] sm:$0xf] %vm8316_vm9, %v8221_v11  ;;  %v6589_v11 = vsel %vm10135_vm11, %v6584_v59, %v6588_v52  ;;  %v7472_v52 = vld [vmem:[#allocation2 + $0x6c] sm:$0xf] }
 0x633   : > { %v8227_v61 = vpop.permute.xlu1 %8226  ;;  %8350 = vst.msk [vmem:[#allocation3] sm:$0xf] %vm8349_vm10, %v14561_v50  ;;  %6062 = vrot.lane.b32.xlu0 %v5971_v60, %s9924_s27  ;;  %v9282_v60 = vrot.slane %v6939_v17, 9  ;;  %v7065_v14 = vsel %vm10121_vm8, %v7063_v62, %v7064_v39  ;;  %v7668_v55 = vshrl.u32 %v7472_v52, 16  ;;  %v7671_v41 = vshll.u32 %v7472_v52, 16 }
 0x634   : > { %8320 = vst.msk [vmem:[#allocation3 + $0xc] sm:$0xf] %vm8316_vm9, %v8227_v61  ;;  %v7070_v61 = vrot.slane %v7068_v4, 4  ;;  %v8152_v17 = vrot.slane %v8031_v19, 5 }
 0x635   : > { %8353 = vst.msk [vmem:[#allocation3 + $0xc] sm:$0xf] %vm8349_vm10, %v14561_v50  ;;  %6068 = vrot.lane.b32.xlu1 %v5981_v58, %s9924_s27  ;;  %v8225_v10 = vpop.permute.xlu0 %8224  ;;  %v6942_v58 = vld [vmem:[#allocation2 + $0x60] sm:$0xe]  ;;  %v7670_v33 = vrot.slane %v7668_v55, 4  ;;  %v7673_v25 = vrot.slane %v7671_v41, 5 }
 0x636   : > { %8319 = vst.msk [vmem:[#allocation3 + $0x8] sm:$0xf] %vm8316_vm9, %v8225_v10  ;;  %v9283_v10 = vrot.slane %v6942_v58, 9  ;;  %v7072_v18 = vsel %vm10121_vm8, %v7070_v61, %v7071_v22  ;;  %v8154_v58 = vrot.slane %v8152_v17, 4  ;;  %v6385_v55 = vld [vmem:[#allocation2 + $0x70] sm:$0xf] }
 0x637   : > { %v6053_v5 = vpop.permute.xlu1 %6052  ;;  %8352 = vst.msk [vmem:[#allocation3 + $0x8] sm:$0xf] %vm8349_vm10, %v14561_v50  ;;  %6066 = vrot.lane.b32.xlu0 %v5978_v53, %s9924_s27  ;;  %v7062_v53 = vsel %vm10121_vm8, %v9282_v60, %v7061_v12  ;;  %v8032_v60 = vld [vmem:[#allocation2 + $0x68] sm:$0x1] }
 0x638   : > { %6142 = vst.msk [vmem:[#allocation3 + $0x1c] sm:$0xf] %vm6134_vm3, %v6053_v5  ;;  %v8155_v22 = vrot.slane %v8032_v60, 5 }
 0x639   : > { %6257 = vrot.lane.b32.xlu1 %v6180_v48, %s9926_s29  ;;  %v6051_v35 = vpop.permute.xlu0 %6050  ;;  %v7677_v48 = vshll.u32 %v7473_v15, 16 }
 0x63a   : > { %6141 = vst.msk [vmem:[#allocation3 + $0x18] sm:$0xf] %vm6134_vm3, %v6051_v35  ;;  %v7069_v35 = vsel %vm10121_vm8, %v9283_v10, %v7068_v4  ;;  %v7674_v4 = vor.u32 %v7673_v25, %v7670_v33  ;;  %v6384_v33 = vld [vmem:[#allocation2 + $0x6c] sm:$0xf]  ;;  %v6388_v25 = vld [vmem:[#allocation2 + $0x7c] sm:$0xf] }
 0x63b   : > { %v6242_v56 = vpop.permute.xlu1 %6241  ;;  %6255 = vrot.lane.b32.xlu0 %v6179_v0, %s9926_s29  ;;  %v7471_v0 = vld [vmem:[#allocation2 + $0x68] sm:$0x1]  ;;  %v7679_v8 = vrot.slane %v7677_v48, 5 }
 0x63c   : > { %6333 = vst.msk [vmem:[#allocation3 + $0x14] sm:$0xf] %vm6327_vm0, %v6242_v56  ;;  %v7646_v56 = vrot.slane %v7644_v43, 4  ;;  %v8033_v43 = vld [vmem:[#allocation2 + $0x6c] sm:$0xe] }
 0x63d   : > { %6261 = vrot.lane.b32.xlu1 %v6182_v30, %s9926_s29  ;;  %v6240_v38 = vpop.permute.xlu0 %6239  ;;  %v7660_v30 = vor.u32 %v7659_v57, %v7655_v13  ;;  %v7684_v12 = vor.u32 %v7683_v16, %v7679_v8 }
 0x63e   : > { %6332 = vst.msk [vmem:[#allocation3 + $0x10] sm:$0xf] %vm6327_vm0, %v6240_v38  ;;  %v7663_v38 = vshll.u32 %v7471_v0, 16 }
 0x63f   : > { %v6246_v9 = vpop.permute.xlu1 %6245  ;;  %6259 = vrot.lane.b32.xlu0 %v6181_v21, %s9926_s29  ;;  %v7650_v21 = vor.u32 %v7649_v29, %v7646_v56  ;;  %v7661_v28 = vrot.slane %v7660_v30, 4  ;;  %v7685_v62 = vrot.slane %v7684_v12, 4  ;;  %v5986_v56 = vrot.slane %v5984_v34, 4 }
 0x640   : > { %6335 = vst.msk [vmem:[#allocation3 + $0x1c] sm:$0xf] %vm6327_vm0, %v6246_v9  ;;  %v7474_v9 = vld [vmem:[#allocation2 + $0x74] sm:$0x1]  ;;  %v7665_v44 = vrot.slane %v7663_v38, 5 }
 0x641   : > { %6818 = vrot.lane.b32.xlu1 %v6575_v40, %s9928_s6  ;;  %v6244_v3 = vpop.permute.xlu0 %6243  ;;  %v7273_v40 = vld [vmem:[#allocation2 + $0x70] sm:$0xf]  ;;  %v7651_v24 = vrot.slane %v7650_v21, 4  ;;  %v5857_v38 = vld [vmem:[#allocation2 + $0x6c] sm:$0xe] }
 0x642   : > { %6334 = vst.msk [vmem:[#allocation3 + $0x18] sm:$0xf] %vm6327_vm0, %v6244_v3  ;;  %v9269_v19 = vrot.slane %v5857_v38, 9 }
 0x643   : > { %v6803_v51 = vpop.permute.xlu1 %6802  ;;  %6816 = vrot.lane.b32.xlu0 %v6565_v31, %s9928_s6  ;;  %v7687_v31 = vshll.u32 %v7474_v9, 16  ;;  %v7656_v20 = vsel %vm10135_vm11, %v7651_v24, %v7655_v13  ;;  %v5858_v13 = vld [vmem:[#allocation2 + $0x70] sm:$0xf] }
 0x644   : > { %6894 = vst.msk [vmem:[#allocation3 + $0x14] sm:$0xf] %vm6888_vm4, %v6803_v51  ;;  %v7272_v51 = vld [vmem:[#allocation2 + $0x6c] sm:$0xf]  ;;  %v5991_v29 = vrot.slane %v5858_v13, 5 }
 0x645   : > { %6822 = vrot.lane.b32.xlu1 %v6599_v49, %s9928_s6  ;;  %v6801_v27 = vpop.permute.xlu0 %6800  ;;  %v7666_v49 = vsel %vm10135_vm11, %v7661_v28, %v7665_v44  ;;  %v7689_v39 = vrot.slane %v7687_v31, 5  ;;  %v6946_v13 = vld [vmem:[#allocation2 + $0x70] sm:$0xf] }
 0x646   : > { %6893 = vst.msk [vmem:[#allocation3 + $0x10] sm:$0xf] %vm6888_vm4, %v6801_v27  ;;  %v5993_v9 = vrot.slane %v5991_v29, 4  ;;  %v5992_v42 = vsel %vm10121_vm8, %v9269_v19, %v5991_v29  ;;  %v7075_v29 = vrot.slane %v6946_v13, 5 }
 0x647   : > { %v6807_v63 = vpop.permute.xlu1 %6806  ;;  %6820 = vrot.lane.b32.xlu0 %v6589_v11, %s9928_s6  ;;  %v7690_v61 = vsel %vm10135_vm11, %v7685_v62, %v7689_v39  ;;  %v6387_v62 = vld [vmem:[#allocation2 + $0x78] sm:$0xf] }
 0x648   : > { %6896 = vst.msk [vmem:[#allocation3 + $0x1c] sm:$0xf] %vm6888_vm4, %v6807_v63  ;;  %v7675_v63 = vrot.slane %v7674_v4, 4  ;;  %v6634_v4 = vshll.u32 %v6388_v25, 16  ;;  %v6628_v60 = vshll.u32 %v6387_v62, 16 }
 0x649   : > { %7155 = vrot.lane.b32.xlu1 %v7065_v14, %s9930_s9  ;;  %v6805_v6 = vpop.permute.xlu0 %6804  ;;  %v8030_v14 = vld [vmem:[#allocation2 + $0x60] sm:$0xe] }
 0x64a   : > { %6895 = vst.msk [vmem:[#allocation3 + $0x18] sm:$0xf] %vm6888_vm4, %v6805_v6  ;;  %v7680_v15 = vsel %vm10135_vm11, %v7675_v63, %v7679_v8  ;;  %v9298_v10 = vrot.slane %v8030_v14, 9  ;;  %v6625_v63 = vshrl.u32 %v6387_v62, 16  ;;  %v6636_v14 = vrot.slane %v6634_v4, 5 }
 0x64b   : > { %v7140_v5 = vpop.permute.xlu1 %7139  ;;  %7153 = vrot.lane.b32.xlu0 %v7062_v53, %s9930_s9  ;;  %v8035_v53 = vld [vmem:[#allocation2 + $0x74] sm:$0x1] }
 0x64c   : > { %7231 = vst.msk [vmem:[#allocation3 + $0x14] sm:$0xf] %vm7225_vm1, %v7140_v5  ;;  %v8156_v5 = vsel %vm10121_vm8, %v8154_v58, %v8155_v22  ;;  %v8162_v48 = vrot.slane %v8035_v53, 5  ;;  %v8153_v26 = vsel %vm10121_vm8, %v9298_v10, %v8152_v17  ;;  %v6389_v10 = vld [vmem:[#allocation2 + $0x80] sm:$0x1]  ;;  %v6627_v53 = vrot.slane %v6625_v63, 4 }
 0x64d   : > { %7159 = vrot.lane.b32.xlu1 %v7072_v18, %s9930_s9  ;;  %v7138_v23 = vpop.permute.xlu0 %7137  ;;  %v8161_v18 = vrot.slane %v8159_v36, 4 }
 0x64e   : > { %7230 = vst.msk [vmem:[#allocation3 + $0x10] sm:$0xf] %vm7225_vm1, %v7138_v23  ;;  %v9299_v23 = vrot.slane %v8033_v43, 9 }
 0x64f   : > { %v7144_v45 = vpop.permute.xlu1 %7143  ;;  %7157 = vrot.lane.b32.xlu0 %v7069_v35, %s9930_s9  ;;  %v5856_v35 = vld [vmem:[#allocation2 + $0x68] sm:$0x1]  ;;  %v8163_v0 = vsel %vm10121_vm8, %v8161_v18, %v8162_v48  ;;  %v6186_v18 = vld [vmem:[#allocation2 + $0x7c] sm:$0xf] }
 0x650   : > { %7233 = vst.msk [vmem:[#allocation3 + $0x1c] sm:$0xf] %vm7225_vm1, %v7144_v45  ;;  %v5854_v45 = vld [vmem:[#allocation2 + $0x60] sm:$0xe]  ;;  %v8160_v8 = vsel %vm10121_vm8, %v9299_v23, %v8159_v36 }
 0x651   : > { %7348 = vrot.lane.b32.xlu1 %v7271_v2, %s9929_s8  ;;  %v7142_v37 = vpop.permute.xlu0 %7141  ;;  %v5987_v2 = vrot.slane %v5856_v35, 5  ;;  %v9268_v30 = vrot.slane %v5854_v45, 9 }
 0x652   : > { %7232 = vst.msk [vmem:[#allocation3 + $0x18] sm:$0xf] %vm7225_vm1, %v7142_v37  ;;  %v5859_v37 = vld [vmem:[#allocation2 + $0x74] sm:$0x1] }
 0x653   : > { %v7333_v32 = vpop.permute.xlu1 %7332  ;;  %7346 = vrot.lane.b32.xlu0 %v7270_v54, %s9929_s8  ;;  %v6610_v54 = vshll.u32 %v6385_v55, 16  ;;  %v5988_v21 = vsel %vm10121_vm8, %v5986_v56, %v5987_v2  ;;  %v5985_v28 = vsel %vm10121_vm8, %v9268_v30, %v5984_v34  ;;  %v5994_v12 = vrot.slane %v5859_v37, 5  ;;  %v6947_v37 = vld [vmem:[#allocation2 + $0x74] sm:$0x1] }
 0x654   : > { %7424 = vst.msk [vmem:[#allocation3 + $0x14] sm:$0xf] %vm7418_vm6, %v7333_v32  ;;  %v6614_v32 = vshrl.u32 %v6385_v55, 16  ;;  %v6949_v55 = vld [vmem:[#allocation2 + $0x7c] sm:$0xf] }
 0x655   : > { %7352 = vrot.lane.b32.xlu1 %v7273_v40, %s9929_s8  ;;  %v7331_v3 = vpop.permute.xlu0 %7330  ;;  %v13486_v44 = vrot.slane %v6610_v54, 5  ;;  %v5995_v24 = vsel %vm10121_vm8, %v5993_v9, %v5994_v12  ;;  %v7082_v38 = vrot.slane %v6949_v55, 5  ;;  %v7476_v9 = vld [vmem:[#allocation2 + $0x7c] sm:$0xf] }
 0x656   : > { %7423 = vst.msk [vmem:[#allocation3 + $0x10] sm:$0xf] %vm7418_vm6, %v7331_v3  ;;  %v6616_v31 = vrot.slane %v6614_v32, 4  ;;  %v7077_v32 = vrot.slane %v7075_v29, 4  ;;  %v8037_v55 = vld [vmem:[#allocation2 + $0x7c] sm:$0xf] }
 0x657   : > { %v7337_v59 = vpop.permute.xlu1 %7336  ;;  %7350 = vrot.lane.b32.xlu0 %v7272_v51, %s9929_s8  ;;  %v6601_v51 = vshrl.u32 %v6384_v33, 16 }
 0x658   : > { %7426 = vst.msk [vmem:[#allocation3 + $0x1c] sm:$0xf] %vm7418_vm6, %v7337_v59  ;;  %v6604_v59 = vshll.u32 %v6384_v33, 16  ;;  %v6617_v58 = vor.u32 %v6616_v31, %v13486_v44 }
 0x659   : > { %7909 = vrot.lane.b32.xlu1 %v7666_v49, %s9931_s21  ;;  %v7335_v27 = vpop.permute.xlu0 %7334  ;;  %v6638_v49 = vshrl.u32 %v6388_v25, 16  ;;  %v7078_v25 = vrot.slane %v6947_v37, 5 }
 0x65a   : > { %7425 = vst.msk [vmem:[#allocation3 + $0x18] sm:$0xf] %vm7418_vm6, %v7335_v27  ;;  %v6386_v27 = vld [vmem:[#allocation2 + $0x74] sm:$0x1]  ;;  %v6618_v43 = vrot.slane %v6617_v58, 4 }
 0x65b   : > { %v7894_v11 = vpop.permute.xlu1 %7893  ;;  %7907 = vrot.lane.b32.xlu0 %v7656_v20, %s9931_s21  ;;  %v6603_v20 = vrot.slane %v6601_v51, 4  ;;  %v6640_v36 = vrot.slane %v6638_v49, 4  ;;  %v6620_v22 = vshll.u32 %v6386_v27, 16  ;;  %v7079_v31 = vsel %vm10121_vm8, %v7077_v32, %v7078_v25  ;;  %v7479_v49 = vld [vmem:[#allocation2 + $0x88] sm:$0xf] }
 0x65c   : > { %7985 = vst.msk [vmem:[#allocation3 + $0x14] sm:$0xf] %vm7979_vm7, %v7894_v11  ;;  %v6606_v11 = vrot.slane %v6604_v59, 5  ;;  %v7701_v51 = vshll.u32 %v7476_v9, 16  ;;  %v7705_v59 = vshrl.u32 %v7476_v9, 16  ;;  %v7729_v58 = vshrl.u32 %v7479_v49, 16 }
 0x65d   : > { %7913 = vrot.lane.b32.xlu1 %v7690_v61, %s9931_s21  ;;  %v7892_v46 = vpop.permute.xlu0 %7891  ;;  %v6184_v61 = vld [vmem:[#allocation2 + $0x70] sm:$0xf]  ;;  %v6641_v34 = vor.u32 %v6640_v36, %v6636_v14  ;;  %v6622_v48 = vrot.slane %v6620_v22, 5  ;;  %v7477_v22 = vld [vmem:[#allocation2 + $0x80] sm:$0x1] }
 0x65e   : > { %7984 = vst.msk [vmem:[#allocation3 + $0x10] sm:$0xf] %vm7979_vm7, %v7892_v46  ;;  %v6183_v46 = vld [vmem:[#allocation2 + $0x6c] sm:$0xf]  ;;  %v7703_v63 = vrot.slane %v7701_v51, 5 }
 0x65f   : > { %v7898_v6 = vpop.permute.xlu1 %7897  ;;  %7911 = vrot.lane.b32.xlu0 %v7680_v15, %s9931_s21  ;;  %v6642_v56 = vrot.slane %v6641_v34, 4  ;;  %v7731_v34 = vrot.slane %v7729_v58, 4  ;;  %v8040_v9 = vld [vmem:[#allocation2 + $0x88] sm:$0xf] }
 0x660   : > { %7987 = vst.msk [vmem:[#allocation3 + $0x1c] sm:$0xf] %vm7979_vm7, %v7898_v6  ;;  %v6607_v6 = vor.u32 %v6606_v11, %v6603_v20  ;;  %v8173_v51 = vrot.slane %v8040_v9, 5 }
 0x661   : > { %8246 = vrot.lane.b32.xlu1 %v8156_v5, %s9932_s17  ;;  %v7896_v57 = vpop.permute.xlu0 %7895  ;;  %v6630_v5 = vrot.slane %v6628_v60, 5  ;;  %v7707_v60 = vrot.slane %v7705_v59, 4  ;;  %v5861_v59 = vld [vmem:[#allocation2 + $0x7c] sm:$0xf] }
 0x662   : > { %7986 = vst.msk [vmem:[#allocation3 + $0x18] sm:$0xf] %vm7979_vm7, %v7896_v57  ;;  %v6608_v35 = vrot.slane %v6607_v6, 4 }
 0x663   : > { %v8231_v52 = vpop.permute.xlu1 %8230  ;;  %8244 = vrot.lane.b32.xlu0 %v8153_v26, %s9932_s17  ;;  %v6644_v26 = vshll.u32 %v6389_v10, 16  ;;  %v6631_v45 = vor.u32 %v6630_v5, %v6627_v53  ;;  %v7275_v5 = vld [vmem:[#allocation2 + $0x7c] sm:$0xf] }
 0x664   : > { %8322 = vst.msk [vmem:[#allocation3 + $0x14] sm:$0xf] %vm8316_vm9, %v8231_v52  ;;  %v6185_v52 = vld [vmem:[#allocation2 + $0x78] sm:$0xf]  ;;  %v6613_v30 = vsel %vm10135_vm11, %v6608_v35, %v13486_v44 }
 0x665   : > { %8355 = vst.msk [vmem:[#allocation3 + $0x14] sm:$0xf] %vm8349_vm10, %v14561_v50  ;;  %8250 = vrot.lane.b32.xlu1 %v8163_v0, %s9932_s17  ;;  %v8229_v41 = vpop.permute.xlu0 %8228  ;;  %v6623_v0 = vsel %vm10135_vm11, %v6618_v43, %v6622_v48  ;;  %v6646_v2 = vrot.slane %v6644_v26, 5  ;;  %v6948_v44 = vld [vmem:[#allocation2 + $0x78] sm:$0xe] }
 0x666   : > { %8321 = vst.msk [vmem:[#allocation3 + $0x10] sm:$0xf] %vm8316_vm9, %v8229_v41  ;;  %v7274_v48 = vld [vmem:[#allocation2 + $0x78] sm:$0xf] }
 0x667   : > { %v8235_v16 = vpop.permute.xlu1 %8234  ;;  %8354 = vst.msk [vmem:[#allocation3 + $0x10] sm:$0xf] %vm8349_vm10, %v14561_v50  ;;  %8248 = vrot.lane.b32.xlu0 %v8160_v8, %s9932_s17  ;;  %v6647_v54 = vsel %vm10135_vm11, %v6642_v56, %v6646_v2 }
 0x668   : > { %8324 = vst.msk [vmem:[#allocation3 + $0x1c] sm:$0xf] %vm8316_vm9, %v8235_v16  ;;  %v6632_v16 = vrot.slane %v6631_v45, 4 }
 0x669   : > { %8357 = vst.msk [vmem:[#allocation3 + $0x1c] sm:$0xf] %vm8349_vm10, %v14561_v50  ;;  %6072 = vrot.lane.b32.xlu1 %v5988_v21, %s9924_s27  ;;  %v8233_v40 = vpop.permute.xlu0 %8232  ;;  %v6945_v21 = vld [vmem:[#allocation2 + $0x6c] sm:$0xe] }
 0x66a   : > { %8323 = vst.msk [vmem:[#allocation3 + $0x18] sm:$0xf] %vm8316_vm9, %v8233_v40  ;;  %v6950_v40 = vld [vmem:[#allocation2 + $0x80] sm:$0x1]  ;;  %v9284_v19 = vrot.slane %v6945_v21, 9  ;;  %v8166_v21 = vrot.slane %v8037_v55, 5 }
 0x66b   : > { %v6057_v3 = vpop.permute.xlu1 %6056  ;;  %8356 = vst.msk [vmem:[#allocation3 + $0x18] sm:$0xf] %vm8349_vm10, %v14561_v50  ;;  %6070 = vrot.lane.b32.xlu0 %v5985_v28, %s9924_s27  ;;  %v6637_v28 = vsel %vm10135_vm11, %v6632_v16, %v6636_v14  ;;  %v7085_v4 = vrot.slane %v6950_v40, 5  ;;  %v7478_v14 = vld [vmem:[#allocation2 + $0x84] sm:$0xf] }
 0x66c   : > { %6144 = vst.msk [vmem:[#allocation3 + $0x24] sm:$0xf] %vm6134_vm3, %v6057_v3  ;;  %v7084_v3 = vrot.slane %v7082_v38, 4  ;;  %v7716_v10 = vshrl.u32 %v7478_v14, 16  ;;  %v7719_v53 = vshll.u32 %v7478_v14, 16 }
 0x66d   : > { %6076 = vrot.lane.b32.xlu1 %v5995_v24, %s9924_s27  ;;  %v6055_v17 = vpop.permute.xlu0 %6054  ;;  %v7475_v24 = vld [vmem:[#allocation2 + $0x78] sm:$0xf] }
 0x66e   : > { %6143 = vst.msk [vmem:[#allocation3 + $0x20] sm:$0xf] %vm6134_vm3, %v6055_v17  ;;  %v9285_v17 = vrot.slane %v6948_v44, 9  ;;  %v7692_v20 = vshrl.u32 %v7475_v24, 16  ;;  %v7695_v11 = vshll.u32 %v7475_v24, 16  ;;  %v7718_v35 = vrot.slane %v7716_v10, 4 }
 0x66f   : > { %v6061_v39 = vpop.permute.xlu1 %6060  ;;  %6074 = vrot.lane.b32.xlu0 %v5992_v42, %s9924_s27  ;;  %v7076_v42 = vsel %vm10121_vm8, %v9284_v19, %v7075_v29  ;;  %v7721_v45 = vrot.slane %v7719_v53, 5  ;;  %v8038_v19 = vld [vmem:[#allocation2 + $0x80] sm:$0x1]  ;;  %v8168_v44 = vrot.slane %v8166_v21, 4  ;;  %v6391_v10 = vld [vmem:[#allocation2 + $0x88] sm:$0xf] }
 0x670   : > { %6146 = vst.msk [vmem:[#allocation3 + $0x2c] sm:$0xf] %vm6134_vm3, %v6061_v39  ;;  %v7086_v39 = vsel %vm10121_vm8, %v7084_v3, %v7085_v4  ;;  %v7697_v6 = vrot.slane %v7695_v11, 5  ;;  %v8169_v4 = vrot.slane %v8038_v19, 5  ;;  %v5998_v11 = vrot.slane %v5861_v59, 5 }
 0x671   : > { %6265 = vrot.lane.b32.xlu1 %v6184_v61, %s9926_s29  ;;  %v6059_v47 = vpop.permute.xlu0 %6058  ;;  %v7725_v61 = vshll.u32 %v7479_v49, 16 }
 0x672   : > { %6145 = vst.msk [vmem:[#allocation3 + $0x28] sm:$0xf] %vm6134_vm3, %v6059_v47  ;;  %v7083_v47 = vsel %vm10121_vm8, %v9285_v17, %v7082_v38  ;;  %v7722_v38 = vor.u32 %v7721_v45, %v7718_v35  ;;  %v6390_v35 = vld [vmem:[#allocation2 + $0x84] sm:$0xf]  ;;  %v6394_v45 = vld [vmem:[#allocation2 + $0x94] sm:$0xf] }
 0x673   : > { %v6250_v15 = vpop.permute.xlu1 %6249  ;;  %6263 = vrot.lane.b32.xlu0 %v6183_v46, %s9926_s29  ;;  %v7727_v43 = vrot.slane %v7725_v61, 5 }
 0x674   : > { %6337 = vst.msk [vmem:[#allocation3 + $0x24] sm:$0xf] %vm6327_vm0, %v6250_v15  ;;  %v7694_v15 = vrot.slane %v7692_v20, 4  ;;  %v8039_v20 = vld [vmem:[#allocation2 + $0x84] sm:$0xe] }
 0x675   : > { %6269 = vrot.lane.b32.xlu1 %v6186_v18, %s9926_s29  ;;  %v6248_v57 = vpop.permute.xlu0 %6247  ;;  %v7708_v18 = vor.u32 %v7707_v60, %v7703_v63  ;;  %v7732_v29 = vor.u32 %v7731_v34, %v7727_v43 }
 0x676   : > { %6336 = vst.msk [vmem:[#allocation3 + $0x20] sm:$0xf] %vm6327_vm0, %v6248_v57  ;;  %v7711_v57 = vshll.u32 %v7477_v22, 16 }
 0x677   : > { %v6254_v23 = vpop.permute.xlu1 %6253  ;;  %6267 = vrot.lane.b32.xlu0 %v6185_v52, %s9926_s29  ;;  %v7698_v52 = vor.u32 %v7697_v6, %v7694_v15  ;;  %v7709_v56 = vrot.slane %v7708_v18, 4  ;;  %v7733_v32 = vrot.slane %v7732_v29, 4  ;;  %v6000_v15 = vrot.slane %v5998_v11, 4 }
 0x678   : > { %6339 = vst.msk [vmem:[#allocation3 + $0x2c] sm:$0xf] %vm6327_vm0, %v6254_v23  ;;  %v7480_v23 = vld [vmem:[#allocation2 + $0x8c] sm:$0x1]  ;;  %v7713_v2 = vrot.slane %v7711_v57, 5 }
 0x679   : > { %6826 = vrot.lane.b32.xlu1 %v6623_v0, %s9928_s6  ;;  %v6252_v41 = vpop.permute.xlu0 %6251  ;;  %v7277_v0 = vld [vmem:[#allocation2 + $0x88] sm:$0xf]  ;;  %v7699_v37 = vrot.slane %v7698_v52, 4  ;;  %v5863_v57 = vld [vmem:[#allocation2 + $0x84] sm:$0xe] }
 0x67a   : > { %6338 = vst.msk [vmem:[#allocation3 + $0x28] sm:$0xf] %vm6327_vm0, %v6252_v41  ;;  %v9271_v55 = vrot.slane %v5863_v57, 9 }
 0x67b   : > { %v6811_v8 = vpop.permute.xlu1 %6810  ;;  %6824 = vrot.lane.b32.xlu0 %v6613_v30, %s9928_s6  ;;  %v7735_v30 = vshll.u32 %v7480_v23, 16  ;;  %v7704_v40 = vsel %vm10135_vm11, %v7699_v37, %v7703_v63  ;;  %v5864_v63 = vld [vmem:[#allocation2 + $0x88] sm:$0xf]  ;;  %v6662_v23 = vshrl.u32 %v6391_v10, 16 }
 0x67c   : > { %6898 = vst.msk [vmem:[#allocation3 + $0x24] sm:$0xf] %vm6888_vm4, %v6811_v8  ;;  %v7276_v8 = vld [vmem:[#allocation2 + $0x84] sm:$0xf]  ;;  %v6005_v6 = vrot.slane %v5864_v63, 5 }
 0x67d   : > { %6830 = vrot.lane.b32.xlu1 %v6647_v54, %s9928_s6  ;;  %v6809_v33 = vpop.permute.xlu0 %6808  ;;  %v7714_v54 = vsel %vm10135_vm11, %v7709_v56, %v7713_v2  ;;  %v7737_v25 = vrot.slane %v7735_v30, 5  ;;  %v6649_v30 = vshrl.u32 %v6390_v35, 16  ;;  %v6952_v63 = vld [vmem:[#allocation2 + $0x88] sm:$0xf] }
 0x67e   : > { %6897 = vst.msk [vmem:[#allocation3 + $0x20] sm:$0xf] %vm6888_vm4, %v6809_v33  ;;  %v6007_v52 = vrot.slane %v6005_v6, 4  ;;  %v6006_v9 = vsel %vm10121_vm8, %v9271_v55, %v6005_v6  ;;  %v7089_v6 = vrot.slane %v6952_v63, 5 }
 0x67f   : > { %v6815_v12 = vpop.permute.xlu1 %6814  ;;  %6828 = vrot.lane.b32.xlu0 %v6637_v28, %s9928_s6  ;;  %v7738_v3 = vsel %vm10135_vm11, %v7733_v32, %v7737_v25  ;;  %v6393_v32 = vld [vmem:[#allocation2 + $0x90] sm:$0xf] }
 0x680   : > { %6900 = vst.msk [vmem:[#allocation3 + $0x2c] sm:$0xf] %vm6888_vm4, %v6815_v12  ;;  %v7723_v12 = vrot.slane %v7722_v38, 4  ;;  %v6664_v38 = vrot.slane %v6662_v23, 4  ;;  %v6676_v19 = vshll.u32 %v6393_v32, 16 }
 0x681   : > { %7163 = vrot.lane.b32.xlu1 %v7079_v31, %s9930_s9  ;;  %v6813_v62 = vpop.permute.xlu0 %6812  ;;  %v8036_v31 = vld [vmem:[#allocation2 + $0x78] sm:$0xe]  ;;  %v7482_v23 = vld [vmem:[#allocation2 + $0x94] sm:$0xf] }
 0x682   : > { %6899 = vst.msk [vmem:[#allocation3 + $0x28] sm:$0xf] %vm6888_vm4, %v6813_v62  ;;  %v7728_v49 = vsel %vm10135_vm11, %v7723_v12, %v7727_v43  ;;  %v9300_v17 = vrot.slane %v8036_v31, 9  ;;  %v6673_v12 = vshrl.u32 %v6393_v32, 16 }
 0x683   : > { %v7148_v27 = vpop.permute.xlu1 %7147  ;;  %7161 = vrot.lane.b32.xlu0 %v7076_v42, %s9930_s9  ;;  %v8041_v42 = vld [vmem:[#allocation2 + $0x8c] sm:$0x1] }
 0x684   : > { %7235 = vst.msk [vmem:[#allocation3 + $0x24] sm:$0xf] %vm7225_vm1, %v7148_v27  ;;  %v8170_v27 = vsel %vm10121_vm8, %v8168_v44, %v8169_v4  ;;  %v8176_v61 = vrot.slane %v8041_v42, 5  ;;  %v8167_v58 = vsel %vm10121_vm8, %v9300_v17, %v8166_v21  ;;  %v6395_v17 = vld [vmem:[#allocation2 + $0x98] sm:$0x1]  ;;  %v6675_v42 = vrot.slane %v6673_v12, 4 }
 0x685   : > { %7167 = vrot.lane.b32.xlu1 %v7086_v39, %s9930_s9  ;;  %v7146_v36 = vpop.permute.xlu0 %7145  ;;  %v8175_v39 = vrot.slane %v8173_v51, 4 }
 0x686   : > { %7234 = vst.msk [vmem:[#allocation3 + $0x20] sm:$0xf] %vm7225_vm1, %v7146_v36  ;;  %v9301_v36 = vrot.slane %v8039_v20, 9 }
 0x687   : > { %v7152_v46 = vpop.permute.xlu1 %7151  ;;  %7165 = vrot.lane.b32.xlu0 %v7083_v47, %s9930_s9  ;;  %v5862_v47 = vld [vmem:[#allocation2 + $0x80] sm:$0x1]  ;;  %v8177_v22 = vsel %vm10121_vm8, %v8175_v39, %v8176_v61  ;;  %v6190_v39 = vld [vmem:[#allocation2 + $0x94] sm:$0xf] }
 0x688   : > { %7237 = vst.msk [vmem:[#allocation3 + $0x2c] sm:$0xf] %vm7225_vm1, %v7152_v46  ;;  %v5860_v46 = vld [vmem:[#allocation2 + $0x78] sm:$0xe]  ;;  %v8174_v43 = vsel %vm10121_vm8, %v9301_v36, %v8173_v51 }
 0x689   : > { %7356 = vrot.lane.b32.xlu1 %v7275_v5, %s9929_s8  ;;  %v7150_v13 = vpop.permute.xlu0 %7149  ;;  %v6001_v5 = vrot.slane %v5862_v47, 5  ;;  %v9270_v18 = vrot.slane %v5860_v46, 9 }
 0x68a   : > { %7236 = vst.msk [vmem:[#allocation3 + $0x28] sm:$0xf] %vm7225_vm1, %v7150_v13  ;;  %v5865_v13 = vld [vmem:[#allocation2 + $0x8c] sm:$0x1] }
 0x68b   : > { %v7341_v26 = vpop.permute.xlu1 %7340  ;;  %7354 = vrot.lane.b32.xlu0 %v7274_v48, %s9929_s8  ;;  %v6658_v48 = vshll.u32 %v6391_v10, 16  ;;  %v5999_v56 = vsel %vm10121_vm8, %v9270_v18, %v5998_v11  ;;  %v6008_v29 = vrot.slane %v5865_v13, 5  ;;  %v6955_v10 = vld [vmem:[#allocation2 + $0x94] sm:$0xf]  ;;  %v6953_v13 = vld [vmem:[#allocation2 + $0x8c] sm:$0x1] }
 0x68c   : > { %7428 = vst.msk [vmem:[#allocation3 + $0x24] sm:$0xf] %vm7418_vm6, %v7341_v26  ;;  %v6002_v26 = vsel %vm10121_vm8, %v6000_v15, %v6001_v5  ;;  %v7096_v57 = vrot.slane %v6955_v10, 5  ;;  %v8043_v10 = vld [vmem:[#allocation2 + $0x94] sm:$0xf] }
 0x68d   : > { %7360 = vrot.lane.b32.xlu1 %v7277_v0, %s9929_s8  ;;  %v7339_v41 = vpop.permute.xlu0 %7338  ;;  %v13594_v2 = vrot.slane %v6658_v48, 5  ;;  %v6009_v37 = vsel %vm10121_vm8, %v6007_v52, %v6008_v29  ;;  %v6951_v52 = vld [vmem:[#allocation2 + $0x84] sm:$0xe] }
 0x68e   : > { %7427 = vst.msk [vmem:[#allocation3 + $0x20] sm:$0xf] %vm7418_vm6, %v7339_v41  ;;  %v9286_v55 = vrot.slane %v6951_v52, 9  ;;  %v8180_v52 = vrot.slane %v8043_v10, 5 }
 0x68f   : > { %v7345_v16 = vpop.permute.xlu1 %7344  ;;  %7358 = vrot.lane.b32.xlu0 %v7276_v8, %s9929_s8  ;;  %v6652_v8 = vshll.u32 %v6390_v35, 16  ;;  %v6665_v44 = vor.u32 %v6664_v38, %v13594_v2 }
 0x690   : > { %7430 = vst.msk [vmem:[#allocation3 + $0x2c] sm:$0xf] %vm7418_vm6, %v7345_v16  ;;  %v6682_v16 = vshll.u32 %v6394_v45, 16 }
 0x691   : > { %7917 = vrot.lane.b32.xlu1 %v7714_v54, %s9931_s21  ;;  %v7343_v33 = vpop.permute.xlu0 %7342  ;;  %v6686_v54 = vshrl.u32 %v6394_v45, 16  ;;  %v6666_v20 = vrot.slane %v6665_v44, 4  ;;  %v7092_v45 = vrot.slane %v6953_v13, 5 }
 0x692   : > { %7429 = vst.msk [vmem:[#allocation3 + $0x28] sm:$0xf] %vm7418_vm6, %v7343_v33  ;;  %v6392_v33 = vld [vmem:[#allocation2 + $0x8c] sm:$0x1]  ;;  %v6684_v31 = vrot.slane %v6682_v16, 5  ;;  %v7753_v16 = vshrl.u32 %v7482_v23, 16 }
 0x693   : > { %v7902_v28 = vpop.permute.xlu1 %7901  ;;  %7915 = vrot.lane.b32.xlu0 %v7704_v40, %s9931_s21  ;;  %v6651_v40 = vrot.slane %v6649_v30, 4  ;;  %v6688_v51 = vrot.slane %v6686_v54, 4  ;;  %v6668_v4 = vshll.u32 %v6392_v33, 16  ;;  %v7485_v54 = vld [vmem:[#allocation2 + $0xa0] sm:$0xf] }
 0x694   : > { %7989 = vst.msk [vmem:[#allocation3 + $0x24] sm:$0xf] %vm7979_vm7, %v7902_v28  ;;  %v6654_v28 = vrot.slane %v6652_v8, 5  ;;  %v7749_v8 = vshll.u32 %v7482_v23, 16  ;;  %v7777_v44 = vshrl.u32 %v7485_v54, 16 }
 0x695   : > { %7921 = vrot.lane.b32.xlu1 %v7738_v3, %s9931_s21  ;;  %v7900_v24 = vpop.permute.xlu0 %7899  ;;  %v6188_v3 = vld [vmem:[#allocation2 + $0x88] sm:$0xf]  ;;  %v6689_v11 = vor.u32 %v6688_v51, %v6684_v31  ;;  %v6670_v61 = vrot.slane %v6668_v4, 5  ;;  %v7483_v4 = vld [vmem:[#allocation2 + $0x98] sm:$0x1] }
 0x696   : > { %7988 = vst.msk [vmem:[#allocation3 + $0x20] sm:$0xf] %vm7979_vm7, %v7900_v24  ;;  %v6187_v24 = vld [vmem:[#allocation2 + $0x84] sm:$0xf]  ;;  %v7751_v12 = vrot.slane %v7749_v8, 5 }
 0x697   : > { %v7906_v62 = vpop.permute.xlu1 %7905  ;;  %7919 = vrot.lane.b32.xlu0 %v7728_v49, %s9931_s21  ;;  %v6690_v15 = vrot.slane %v6689_v11, 4  ;;  %v7779_v11 = vrot.slane %v7777_v44, 4  ;;  %v8046_v23 = vld [vmem:[#allocation2 + $0xa0] sm:$0xf] }
 0x698   : > { %7991 = vst.msk [vmem:[#allocation3 + $0x2c] sm:$0xf] %vm7979_vm7, %v7906_v62  ;;  %v6655_v62 = vor.u32 %v6654_v28, %v6651_v40  ;;  %v8187_v8 = vrot.slane %v8046_v23, 5 }
 0x699   : > { %8254 = vrot.lane.b32.xlu1 %v8170_v27, %s9932_s17  ;;  %v7904_v60 = vpop.permute.xlu0 %7903  ;;  %v6678_v27 = vrot.slane %v6676_v19, 5  ;;  %v7755_v19 = vrot.slane %v7753_v16, 4  ;;  %v5867_v16 = vld [vmem:[#allocation2 + $0x94] sm:$0xf] }
 0x69a   : > { %7990 = vst.msk [vmem:[#allocation3 + $0x28] sm:$0xf] %vm7979_vm7, %v7904_v60  ;;  %v6656_v47 = vrot.slane %v6655_v62, 4 }
 0x69b   : > { %v8239_v14 = vpop.permute.xlu1 %8238  ;;  %8252 = vrot.lane.b32.xlu0 %v8167_v58, %s9932_s17  ;;  %v6692_v58 = vshll.u32 %v6395_v17, 16  ;;  %v6679_v46 = vor.u32 %v6678_v27, %v6675_v42  ;;  %v7279_v27 = vld [vmem:[#allocation2 + $0x94] sm:$0xf] }
 0x69c   : > { %8326 = vst.msk [vmem:[#allocation3 + $0x24] sm:$0xf] %vm8316_vm9, %v8239_v14  ;;  %v6189_v14 = vld [vmem:[#allocation2 + $0x90] sm:$0xf]  ;;  %v6661_v18 = vsel %vm10135_vm11, %v6656_v47, %v13594_v2 }
 0x69d   : > { %8359 = vst.msk [vmem:[#allocation3 + $0x24] sm:$0xf] %vm8349_vm10, %v14561_v50  ;;  %8258 = vrot.lane.b32.xlu1 %v8177_v22, %s9932_s17  ;;  %v8237_v53 = vpop.permute.xlu0 %8236  ;;  %v6671_v22 = vsel %vm10135_vm11, %v6666_v20, %v6670_v61  ;;  %v6694_v5 = vrot.slane %v6692_v58, 5  ;;  %v6954_v2 = vld [vmem:[#allocation2 + $0x90] sm:$0xe] }
 0x69e   : > { %8325 = vst.msk [vmem:[#allocation3 + $0x20] sm:$0xf] %vm8316_vm9, %v8237_v53  ;;  %v7278_v61 = vld [vmem:[#allocation2 + $0x90] sm:$0xf] }
 0x69f   : > { %v8243_v34 = vpop.permute.xlu1 %8242  ;;  %8358 = vst.msk [vmem:[#allocation3 + $0x20] sm:$0xf] %vm8349_vm10, %v14561_v50  ;;  %8256 = vrot.lane.b32.xlu0 %v8174_v43, %s9932_s17  ;;  %v6695_v48 = vsel %vm10135_vm11, %v6690_v15, %v6694_v5 }
 0x6a0   : > { %8328 = vst.msk [vmem:[#allocation3 + $0x2c] sm:$0xf] %vm8316_vm9, %v8243_v34  ;;  %v6680_v34 = vrot.slane %v6679_v46, 4 }
 0x6a1   : > { %8361 = vst.msk [vmem:[#allocation3 + $0x2c] sm:$0xf] %vm8349_vm10, %v14561_v50  ;;  %6080 = vrot.lane.b32.xlu1 %v6002_v26, %s9924_s27  ;;  %v8241_v0 = vpop.permute.xlu0 %8240  ;;  %v7091_v26 = vrot.slane %v7089_v6, 4 }
 0x6a2   : > { %8327 = vst.msk [vmem:[#allocation3 + $0x28] sm:$0xf] %vm8316_vm9, %v8241_v0  ;;  %v6956_v0 = vld [vmem:[#allocation2 + $0x98] sm:$0x1] }
 0x6a3   : > { %v6065_v41 = vpop.permute.xlu1 %6064  ;;  %8360 = vst.msk [vmem:[#allocation3 + $0x28] sm:$0xf] %vm8349_vm10, %v14561_v50  ;;  %6078 = vrot.lane.b32.xlu0 %v5999_v56, %s9924_s27  ;;  %v6685_v56 = vsel %vm10135_vm11, %v6680_v34, %v6684_v31  ;;  %v7093_v30 = vsel %vm10121_vm8, %v7091_v26, %v7092_v45  ;;  %v7099_v38 = vrot.slane %v6956_v0, 5  ;;  %v7484_v31 = vld [vmem:[#allocation2 + $0x9c] sm:$0xf] }
 0x6a4   : > { %6148 = vst.msk [vmem:[#allocation3 + $0x34] sm:$0xf] %vm6134_vm3, %v6065_v41  ;;  %v7098_v41 = vrot.slane %v7096_v57, 4  ;;  %v7764_v17 = vshrl.u32 %v7484_v31, 16  ;;  %v7767_v42 = vshll.u32 %v7484_v31, 16 }
 0x6a5   : > { %6084 = vrot.lane.b32.xlu1 %v6009_v37, %s9924_s27  ;;  %v6063_v21 = vpop.permute.xlu0 %6062  ;;  %v7481_v37 = vld [vmem:[#allocation2 + $0x90] sm:$0xf] }
 0x6a6   : > { %6147 = vst.msk [vmem:[#allocation3 + $0x30] sm:$0xf] %vm6134_vm3, %v6063_v21  ;;  %v9287_v21 = vrot.slane %v6954_v2, 9  ;;  %v7740_v40 = vshrl.u32 %v7481_v37, 16  ;;  %v7743_v28 = vshll.u32 %v7481_v37, 16  ;;  %v7766_v47 = vrot.slane %v7764_v17, 4 }
 0x6a7   : > { %v6069_v25 = vpop.permute.xlu1 %6068  ;;  %6082 = vrot.lane.b32.xlu0 %v6006_v9, %s9924_s27  ;;  %v7090_v9 = vsel %vm10121_vm8, %v9286_v55, %v7089_v6  ;;  %v7769_v46 = vrot.slane %v7767_v42, 5  ;;  %v8044_v55 = vld [vmem:[#allocation2 + $0x98] sm:$0x1]  ;;  %v8182_v2 = vrot.slane %v8180_v52, 4  ;;  %v6397_v17 = vld [vmem:[#allocation2 + $0xa0] sm:$0xf] }
 0x6a8   : > { %6150 = vst.msk [vmem:[#allocation3 + $0x3c] sm:$0xf] %vm6134_vm3, %v6069_v25  ;;  %v7100_v25 = vsel %vm10121_vm8, %v7098_v41, %v7099_v38  ;;  %v7745_v62 = vrot.slane %v7743_v28, 5  ;;  %v8183_v38 = vrot.slane %v8044_v55, 5  ;;  %v6012_v28 = vrot.slane %v5867_v16, 5 }
 0x6a9   : > { %6273 = vrot.lane.b32.xlu1 %v6188_v3, %s9926_s29  ;;  %v6067_v59 = vpop.permute.xlu0 %6066  ;;  %v7773_v3 = vshll.u32 %v7485_v54, 16 }
 0x6aa   : > { %6149 = vst.msk [vmem:[#allocation3 + $0x38] sm:$0xf] %vm6134_vm3, %v6067_v59  ;;  %v7097_v59 = vsel %vm10121_vm8, %v9287_v21, %v7096_v57  ;;  %v7770_v57 = vor.u32 %v7769_v46, %v7766_v47  ;;  %v6396_v47 = vld [vmem:[#allocation2 + $0x9c] sm:$0xf]  ;;  %v6400_v46 = vld [vmem:[#allocation2 + $0xac] sm:$0xf] }
 0x6ab   : > { %v6258_v49 = vpop.permute.xlu1 %6257  ;;  %6271 = vrot.lane.b32.xlu0 %v6187_v24, %s9926_s29  ;;  %v7775_v20 = vrot.slane %v7773_v3, 5 }
 0x6ac   : > { %6341 = vst.msk [vmem:[#allocation3 + $0x34] sm:$0xf] %vm6327_vm0, %v6258_v49  ;;  %v7742_v49 = vrot.slane %v7740_v40, 4  ;;  %v8045_v40 = vld [vmem:[#allocation2 + $0x9c] sm:$0xe] }
 0x6ad   : > { %6277 = vrot.lane.b32.xlu1 %v6190_v39, %s9926_s29  ;;  %v6256_v60 = vpop.permute.xlu0 %6255  ;;  %v7756_v39 = vor.u32 %v7755_v19, %v7751_v12  ;;  %v7780_v6 = vor.u32 %v7779_v11, %v7775_v20 }
 0x6ae   : > { %6340 = vst.msk [vmem:[#allocation3 + $0x30] sm:$0xf] %vm6327_vm0, %v6256_v60  ;;  %v7759_v60 = vshll.u32 %v7483_v4, 16 }
 0x6af   : > { %v6262_v36 = vpop.permute.xlu1 %6261  ;;  %6275 = vrot.lane.b32.xlu0 %v6189_v14, %s9926_s29  ;;  %v7746_v14 = vor.u32 %v7745_v62, %v7742_v49  ;;  %v7757_v15 = vrot.slane %v7756_v39, 4  ;;  %v7781_v26 = vrot.slane %v7780_v6, 4  ;;  %v6014_v49 = vrot.slane %v6012_v28, 4 }
 0x6b0   : > { %6343 = vst.msk [vmem:[#allocation3 + $0x3c] sm:$0xf] %vm6327_vm0, %v6262_v36  ;;  %v7486_v36 = vld [vmem:[#allocation2 + $0xa4] sm:$0x1]  ;;  %v7761_v5 = vrot.slane %v7759_v60, 5 }
 0x6b1   : > { %6834 = vrot.lane.b32.xlu1 %v6671_v22, %s9928_s6  ;;  %v6260_v53 = vpop.permute.xlu0 %6259  ;;  %v7281_v22 = vld [vmem:[#allocation2 + $0xa0] sm:$0xf]  ;;  %v7747_v13 = vrot.slane %v7746_v14, 4  ;;  %v5869_v60 = vld [vmem:[#allocation2 + $0x9c] sm:$0xe] }
 0x6b2   : > { %6342 = vst.msk [vmem:[#allocation3 + $0x38] sm:$0xf] %vm6327_vm0, %v6260_v53  ;;  %v9273_v10 = vrot.slane %v5869_v60, 9 }
 0x6b3   : > { %v6819_v43 = vpop.permute.xlu1 %6818  ;;  %6832 = vrot.lane.b32.xlu0 %v6661_v18, %s9928_s6  ;;  %v7783_v18 = vshll.u32 %v7486_v36, 16  ;;  %v7752_v0 = vsel %vm10135_vm11, %v7747_v13, %v7751_v12  ;;  %v5870_v12 = vld [vmem:[#allocation2 + $0xa0] sm:$0xf] }
 0x6b4   : > { %6902 = vst.msk [vmem:[#allocation3 + $0x34] sm:$0xf] %vm6888_vm4, %v6819_v43  ;;  %v7280_v43 = vld [vmem:[#allocation2 + $0x9c] sm:$0xf]  ;;  %v6019_v62 = vrot.slane %v5870_v12, 5 }
 0x6b5   : > { %6838 = vrot.lane.b32.xlu1 %v6695_v48, %s9928_s6  ;;  %v6817_v35 = vpop.permute.xlu0 %6816  ;;  %v7762_v48 = vsel %vm10135_vm11, %v7757_v15, %v7761_v5  ;;  %v7785_v45 = vrot.slane %v7783_v18, 5 }
 0x6b6   : > { %6901 = vst.msk [vmem:[#allocation3 + $0x30] sm:$0xf] %vm6888_vm4, %v6817_v35  ;;  %v6021_v36 = vrot.slane %v6019_v62, 4  ;;  %v6020_v23 = vsel %vm10121_vm8, %v9273_v10, %v6019_v62  ;;  %v6962_v10 = vld [vmem:[#allocation2 + $0xb0] sm:$0x1] }
 0x6b7   : > { %v6823_v29 = vpop.permute.xlu1 %6822  ;;  %6836 = vrot.lane.b32.xlu0 %v6685_v56, %s9928_s6  ;;  %v7786_v41 = vsel %vm10135_vm11, %v7781_v26, %v7785_v45  ;;  %v6399_v26 = vld [vmem:[#allocation2 + $0xa8] sm:$0xf] }
 0x6b8   : > { %6904 = vst.msk [vmem:[#allocation3 + $0x3c] sm:$0xf] %vm6888_vm4, %v6823_v29  ;;  %v7771_v29 = vrot.slane %v7770_v57, 4  ;;  %v6730_v57 = vshll.u32 %v6400_v46, 16  ;;  %v6724_v55 = vshll.u32 %v6399_v26, 16 }
 0x6b9   : > { %7171 = vrot.lane.b32.xlu1 %v7093_v30, %s9930_s9  ;;  %v6821_v32 = vpop.permute.xlu0 %6820  ;;  %v8042_v30 = vld [vmem:[#allocation2 + $0x90] sm:$0xe] }
 0x6ba   : > { %6903 = vst.msk [vmem:[#allocation3 + $0x38] sm:$0xf] %vm6888_vm4, %v6821_v32  ;;  %v7776_v54 = vsel %vm10135_vm11, %v7771_v29, %v7775_v20  ;;  %v9302_v21 = vrot.slane %v8042_v30, 9  ;;  %v6721_v29 = vshrl.u32 %v6399_v26, 16  ;;  %v13717_v30 = vrot.slane %v6730_v57, 5 }
 0x6bb   : > { %v7156_v33 = vpop.permute.xlu1 %7155  ;;  %7169 = vrot.lane.b32.xlu0 %v7090_v9, %s9930_s9  ;;  %v8047_v9 = vld [vmem:[#allocation2 + $0xa4] sm:$0x1] }
 0x6bc   : > { %7239 = vst.msk [vmem:[#allocation3 + $0x34] sm:$0xf] %vm7225_vm1, %v7156_v33  ;;  %v8184_v33 = vsel %vm10121_vm8, %v8182_v2, %v8183_v38  ;;  %v8190_v3 = vrot.slane %v8047_v9, 5  ;;  %v8181_v44 = vsel %vm10121_vm8, %v9302_v21, %v8180_v52  ;;  %v6723_v9 = vrot.slane %v6721_v29, 4 }
 0x6bd   : > { %7175 = vrot.lane.b32.xlu1 %v7100_v25, %s9930_s9  ;;  %v7154_v51 = vpop.permute.xlu0 %7153  ;;  %v8189_v25 = vrot.slane %v8187_v8, 4 }
 0x6be   : > { %7238 = vst.msk [vmem:[#allocation3 + $0x30] sm:$0xf] %vm7225_vm1, %v7154_v51  ;;  %v9303_v51 = vrot.slane %v8045_v40, 9  ;;  %v6194_v40 = vld [vmem:[#allocation2 + $0xac] sm:$0xf] }
 0x6bf   : > { %v7160_v24 = vpop.permute.xlu1 %7159  ;;  %7173 = vrot.lane.b32.xlu0 %v7097_v59, %s9930_s9  ;;  %v5868_v59 = vld [vmem:[#allocation2 + $0x98] sm:$0x1]  ;;  %v8191_v4 = vsel %vm10121_vm8, %v8189_v25, %v8190_v3  ;;  %v9737_v25 = vld [vmem:[#allocation9 + $0x38] sm:$0xff]  }
 0x6c0   : > { %7241 = vst.msk [vmem:[#allocation3 + $0x3c] sm:$0xf] %vm7225_vm1, %v7160_v24  ;;  %v5866_v24 = vld [vmem:[#allocation2 + $0x90] sm:$0xe]  ;;  %v8188_v20 = vsel %vm10121_vm8, %v9303_v51, %v8187_v8  ;;  %9499 = vmatprep.subr.bf16.mxu1 %v9737_v25  ;;  %v6193_v51 = vld [vmem:[#allocation2 + $0xa8] sm:$0xf] }
 0x6c1   : > { %7364 = vrot.lane.b32.xlu1 %v7279_v27, %s9929_s8  ;;  %v7158_v63 = vpop.permute.xlu0 %7157  ;;  %v6015_v27 = vrot.slane %v5868_v59, 5  ;;  %v9272_v39 = vrot.slane %v5866_v24, 9  ;;  %9500 = vmatpush3.bf16.msra.mxu1 %v9737_v25 }
 0x6c2   : > { %7240 = vst.msk [vmem:[#allocation3 + $0x38] sm:$0xf] %vm7225_vm1, %v7158_v63  ;;  %v5871_v63 = vld [vmem:[#allocation2 + $0xa4] sm:$0x1] }
 0x6c3   : > { %v7349_v58 = vpop.permute.xlu1 %7348  ;;  %7362 = vrot.lane.b32.xlu0 %v7278_v61, %s9929_s8  ;;  %v6706_v61 = vshll.u32 %v6397_v17, 16  ;;  %v6016_v14 = vsel %vm10121_vm8, %v6014_v49, %v6015_v27  ;;  %v6013_v15 = vsel %vm10121_vm8, %v9272_v39, %v6012_v28  ;;  %v6022_v6 = vrot.slane %v5871_v63, 5  ;;  %v9738_v49 = vld [vmem:[#allocation9 + $0x30] sm:$0xff]   ;;  %v13733_v27 = vld [vmem:[#allocation2 + $0xac] sm:$0xf] }
 0x6c4   : > { %7432 = vst.msk [vmem:[#allocation3 + $0x34] sm:$0xf] %vm7418_vm6, %v7349_v58  ;;  %v6710_v58 = vshrl.u32 %v6397_v17, 16  ;;  %9501 = vmatprep.subr.bf16.mxu1 %v9738_v49 }
 0x6c5   : > { %7368 = vrot.lane.b32.xlu1 %v7281_v22, %s9929_s8  ;;  %v7347_v53 = vpop.permute.xlu0 %7346  ;;  %v13702_v5 = vrot.slane %v6706_v61, 5  ;;  %v6023_v13 = vsel %vm10121_vm8, %v6021_v36, %v6022_v6  ;;  %9502 = vmatpush3.bf16.msra.mxu1 %v9738_v49  ;;  %v6959_v61 = vld [vmem:[#allocation2 + $0xa4] sm:$0x1] }
 0x6c6   : > { %7431 = vst.msk [vmem:[#allocation3 + $0x30] sm:$0xf] %vm7418_vm6, %v7347_v53  ;;  %v6712_v18 = vrot.slane %v6710_v58, 4  ;;  %v7110_v58 = vrot.slane %v13733_v27, 5  ;;  %v7106_v6 = vrot.slane %v6959_v61, 5 }
 0x6c7   : > { %v7353_v34 = vpop.permute.xlu1 %7352  ;;  %7366 = vrot.lane.b32.xlu0 %v7280_v43, %s9929_s8  ;;  %v6697_v43 = vshrl.u32 %v6396_v47, 16 }
 0x6c8   : > { %7434 = vst.msk [vmem:[#allocation3 + $0x3c] sm:$0xf] %vm7418_vm6, %v7353_v34  ;;  %v6700_v34 = vshll.u32 %v6396_v47, 16  ;;  %v6713_v2 = vor.u32 %v6712_v18, %v13702_v5 }
 0x6c9   : > { %7925 = vrot.lane.b32.xlu1 %v7762_v48, %s9931_s21  ;;  %v7351_v35 = vpop.permute.xlu0 %7350  ;;  %v6734_v48 = vshrl.u32 %v6400_v46, 16  ;;  %v6957_v46 = vld [vmem:[#allocation2 + $0x9c] sm:$0xe] }
 0x6ca   : > { %7433 = vst.msk [vmem:[#allocation3 + $0x38] sm:$0xf] %vm7418_vm6, %v7351_v35  ;;  %v6398_v35 = vld [vmem:[#allocation2 + $0xa4] sm:$0x1]  ;;  %v6714_v28 = vrot.slane %v6713_v2, 4  ;;  %v9288_v18 = vrot.slane %v6957_v46, 9 }
 0x6cb   : > { %v7910_v56 = vpop.permute.xlu1 %7909  ;;  %7923 = vrot.lane.b32.xlu0 %v7752_v0, %s9931_s21  ;;  %v6699_v0 = vrot.slane %v6697_v43, 4  ;;  %v6736_v8 = vrot.slane %v6734_v48, 4  ;;  %v6716_v38 = vshll.u32 %v6398_v35, 16  ;;  %v7112_v43 = vrot.slane %v7110_v58, 4  ;;  %v7491_v35 = vld [vmem:[#allocation2 + $0xb8] sm:$0xf] }
 0x6cc   : > { %7993 = vst.msk [vmem:[#allocation3 + $0x34] sm:$0xf] %vm7979_vm7, %v7910_v56  ;;  %v6702_v56 = vrot.slane %v6700_v34, 5  ;;  %v6960_v34 = vld [vmem:[#allocation2 + $0xa8] sm:$0xe] }
 0x6cd   : > { %7929 = vrot.lane.b32.xlu1 %v7786_v41, %s9931_s21  ;;  %v7908_v37 = vpop.permute.xlu0 %7907  ;;  %v6192_v41 = vld [vmem:[#allocation2 + $0xa0] sm:$0xf]  ;;  %v6737_v12 = vor.u32 %v6736_v8, %v13717_v30 }
 0x6ce   : > { %7992 = vst.msk [vmem:[#allocation3 + $0x30] sm:$0xf] %vm7979_vm7, %v7908_v37  ;;  %v6191_v37 = vld [vmem:[#allocation2 + $0x9c] sm:$0xf]  ;;  %v6703_v21 = vor.u32 %v6702_v56, %v6699_v0  ;;  %v9289_v0 = vrot.slane %v6960_v34, 9 }
 0x6cf   : > { %v7914_v32 = vpop.permute.xlu1 %7913  ;;  %7927 = vrot.lane.b32.xlu0 %v7776_v54, %s9931_s21  ;;  %v6401_v54 = vld [vmem:[#allocation2 + $0xb0] sm:$0x1]  ;;  %v6738_v17 = vrot.slane %v6737_v12, 4 }
 0x6d0   : > { %7995 = vst.msk [vmem:[#allocation3 + $0x3c] sm:$0xf] %vm7979_vm7, %v7914_v32  ;;  %v6704_v24 = vrot.slane %v6703_v21, 4  ;;  %v7111_v21 = vsel %vm10121_vm8, %v9289_v0, %v7110_v58  ;;  %v9746_v0 = vld [vmem:[#allocation3 + $0x8] sm:$0xff]  }
 0x6d1   : > { %8262 = vrot.lane.b32.xlu1 %v8184_v33, %s9932_s17  ;;  %v7912_v19 = vpop.permute.xlu0 %7911  ;;  %v6726_v33 = vrot.slane %v6724_v55, 5 }
 0x6d2   : > { %7994 = vst.msk [vmem:[#allocation3 + $0x38] sm:$0xf] %vm7979_vm7, %v7912_v19  ;;  %v13725_v19 = vld [vmem:[#allocation2 + $0xa0] sm:$0xf] }
 0x6d3   : > { %v8247_v31 = vpop.permute.xlu1 %8246  ;;  %8260 = vrot.lane.b32.xlu0 %v8181_v44, %s9932_s17  ;;  %v6718_v44 = vrot.slane %v6716_v38, 5  ;;  %v7825_v38 = vshrl.u32 %v7491_v35, 16 }
 0x6d4   : > { %8330 = vst.msk [vmem:[#allocation3 + $0x34] sm:$0xf] %vm8316_vm9, %v8247_v31  ;;  %v6740_v31 = vshll.u32 %v6401_v54, 16  ;;  %v7490_v54 = vld [vmem:[#allocation2 + $0xb4] sm:$0xf] }
 0x6d5   : > { %8363 = vst.msk [vmem:[#allocation3 + $0x34] sm:$0xf] %vm8349_vm10, %v14561_v50  ;;  %8266 = vrot.lane.b32.xlu1 %v8191_v4, %s9932_s17  ;;  %v8245_v42 = vpop.permute.xlu0 %8244  ;;  %v6727_v4 = vor.u32 %v6726_v33, %v6723_v9  ;;  %v6719_v62 = vsel %vm10135_vm11, %v6714_v28, %v6718_v44  ;;  %v7489_v9 = vld [vmem:[#allocation2 + $0xb0] sm:$0x1]  ;;  %v7812_v28 = vshrl.u32 %v7490_v54, 16  ;;  %v7815_v12 = vshll.u32 %v7490_v54, 16 }
 0x6d6   : > { %8329 = vst.msk [vmem:[#allocation3 + $0x30] sm:$0xf] %vm8316_vm9, %v8245_v42  ;;  %v7103_v42 = vrot.slane %v13725_v19, 5  ;;  %v9742_v19 = vld [vmem:[#allocation9 + $0x10] sm:$0xff]  }
 0x6d7   : > { %v8251_v11 = vpop.permute.xlu1 %8250  ;;  %8362 = vst.msk [vmem:[#allocation3 + $0x30] sm:$0xf] %vm8349_vm10, %v14561_v50  ;;  %8264 = vrot.lane.b32.xlu0 %v8188_v20, %s9932_s17  ;;  %v6742_v20 = vrot.slane %v6740_v31, 5  ;;  %v6728_v60 = vrot.slane %v6727_v4, 4  ;;  %v7807_v4 = vshll.u32 %v7489_v9, 16  ;;  %v7817_v27 = vrot.slane %v7815_v12, 5 }
 0x6d8   : > { %8332 = vst.msk [vmem:[#allocation3 + $0x3c] sm:$0xf] %vm8316_vm9, %v8251_v11  ;;  %v6709_v11 = vsel %vm10135_vm11, %v6704_v24, %v13702_v5  ;;  %v7105_v47 = vrot.slane %v7103_v42, 4  ;;  %v7104_v56 = vsel %vm10121_vm8, %v9288_v18, %v7103_v42  ;;  %v7282_v24 = vld [vmem:[#allocation2 + $0xa8] sm:$0xf]  ;;  %v7814_v42 = vrot.slane %v7812_v28, 4 }
 0x6d9   : > { %8365 = vst.msk [vmem:[#allocation3 + $0x3c] sm:$0xf] %vm8349_vm10, %v14561_v50  ;;  %6088 = vrot.lane.b32.xlu1 %v6016_v14, %s9924_s27  ;;  %v8249_v22 = vpop.permute.xlu0 %8248  ;;  %v9739_v14 = vld [vmem:[#allocation9 + $0x28] sm:$0xff]   ;;  %v6743_v36 = vsel %vm10135_vm11, %v6738_v17, %v6742_v20  ;;  %v7492_v17 = vld [vmem:[#allocation2 + $0xbc] sm:$0x1]  ;;  %v7809_v58 = vrot.slane %v7807_v4, 5 }
 0x6da   : > { %8331 = vst.msk [vmem:[#allocation3 + $0x38] sm:$0xf] %vm8316_vm9, %v8249_v22  ;;  %v7488_v22 = vld [vmem:[#allocation2 + $0xac] sm:$0xf]  ;;  %9503 = vmatprep.subr.bf16.mxu1 %v9739_v14  ;;  %v7107_v57 = vsel %vm10121_vm8, %v7105_v47, %v7106_v6  ;;  %v7285_v20 = vld [vmem:[#allocation2 + $0xb8] sm:$0xf] }
 0x6db   : > { %v6073_v53 = vpop.permute.xlu1 %6072  ;;  %8364 = vst.msk [vmem:[#allocation3 + $0x38] sm:$0xf] %vm8349_vm10, %v14561_v50  ;;  %6086 = vrot.lane.b32.xlu0 %v6013_v15, %s9924_s27  ;;  %9504 = vmatpush3.bf16.msra.mxu1 %v9739_v14  ;;  %v7797_v48 = vshll.u32 %v7488_v22, 16  ;;  %v7801_v26 = vshrl.u32 %v7488_v22, 16  ;;  %v7831_v14 = vshll.u32 %v7492_v17, 16  ;;  %v7818_v22 = vor.u32 %v7817_v27, %v7814_v42 }
 0x6dc   : > { %6152 = vst.msk [vmem:[#allocation3 + $0x44] sm:$0xf] %vm6134_vm3, %v6073_v53  ;;  %v6733_v53 = vsel %vm10135_vm11, %v6728_v60, %v13717_v30  ;;  %v9741_v30 = vld [vmem:[#allocation9 + $0x18] sm:$0xff]   ;;  %v8049_v60 = vld [vmem:[#allocation2 + $0xac] sm:$0xf] }
 0x6dd   : > { %6092 = vrot.lane.b32.xlu1 %v6023_v13, %s9924_s27  ;;  %v6071_v52 = vpop.permute.xlu0 %6070  ;;  %v9740_v13 = vld [vmem:[#allocation9 + $0x20] sm:$0xff]   ;;  %v13762_v8 = vrot.slane %v7797_v48, 5  ;;  %v8050_v48 = vld [vmem:[#allocation2 + $0xb0] sm:$0x1]  ;;  %v5877_v42 = vld [vmem:[#allocation2 + $0xbc] sm:$0x1] }
 0x6de   : > { %6151 = vst.msk [vmem:[#allocation3 + $0x40] sm:$0xf] %vm6134_vm3, %v6071_v52  ;;  %v7487_v52 = vld [vmem:[#allocation2 + $0xa8] sm:$0xf]  ;;  %9505 = vmatprep.subr.bf16.mxu1 %v9740_v13  ;;  %v5875_v27 = vld [vmem:[#allocation2 + $0xb4] sm:$0xe] }
 0x6df   : > { %v6077_v45 = vpop.permute.xlu1 %6076  ;;  %6090 = vrot.lane.b32.xlu0 %v6020_v23, %s9924_s27  ;;  %v7113_v23 = vrot.slane %v6962_v10, 5  ;;  %9506 = vmatpush3.bf16.msra.mxu1 %v9740_v13  ;;  %v7791_v2 = vshll.u32 %v7487_v52, 16  ;;  %v8194_v10 = vrot.slane %v8049_v60, 5  ;;  %v5872_v12 = vld [vmem:[#allocation2 + $0xa8] sm:$0xe] }
 0x6e0   : > { %6154 = vst.msk [vmem:[#allocation3 + $0x4c] sm:$0xf] %vm6134_vm3, %v6077_v45  ;;  %9507 = vmatprep.subr.bf16.mxu1 %v9741_v30  ;;  %v6402_v60 = vld [vmem:[#allocation2 + $0xb4] sm:$0xf] }
 0x6e1   : > { %6281 = vrot.lane.b32.xlu1 %v6192_v41, %s9926_s29  ;;  %v6075_v16 = vpop.permute.xlu0 %6074  ;;  %v7114_v55 = vsel %vm10121_vm8, %v7112_v43, %v7113_v23  ;;  %v7788_v41 = vshrl.u32 %v7487_v52, 16  ;;  %v7833_v43 = vrot.slane %v7831_v14, 5  ;;  %v8196_v52 = vrot.slane %v8194_v10, 4  ;;  %v8048_v23 = vld [vmem:[#allocation2 + $0xa8] sm:$0xe] }
 0x6e2   : > { %6153 = vst.msk [vmem:[#allocation3 + $0x48] sm:$0xf] %vm6134_vm3, %v6075_v16  ;;  %v7803_v16 = vrot.slane %v7801_v26, 4 }
 0x6e3   : > { %v6266_v32 = vpop.permute.xlu1 %6265  ;;  %6279 = vrot.lane.b32.xlu0 %v6191_v37, %s9926_s29  ;;  %v7821_v37 = vshll.u32 %v7491_v35, 16  ;;  %9508 = vmatpush3.bf16.msra.mxu1 %v9741_v30  ;;  %v7790_v25 = vrot.slane %v7788_v41, 4  ;;  %v9304_v30 = vrot.slane %v8048_v23, 9 }
 0x6e4   : > { %6345 = vst.msk [vmem:[#allocation3 + $0x44] sm:$0xf] %vm6327_vm0, %v6266_v32  ;;  %v7804_v44 = vor.u32 %v7803_v16, %v13762_v8  ;;  %9509 = vmatprep.subr.bf16.mxu1 %v9742_v19 }
 0x6e5   : > { %6285 = vrot.lane.b32.xlu1 %v6194_v40, %s9926_s29  ;;  %v6264_v3 = vpop.permute.xlu0 %6263  ;;  %v7793_v40 = vrot.slane %v7791_v2, 5  ;;  %v13771_v31 = vrot.slane %v7821_v37, 5 }
 0x6e6   : > { %6344 = vst.msk [vmem:[#allocation3 + $0x40] sm:$0xf] %vm6327_vm0, %v6264_v3  ;;  %v7283_v3 = vld [vmem:[#allocation2 + $0xac] sm:$0xf] }
 0x6e7   : > { %v6270_v59 = vpop.permute.xlu1 %6269  ;;  %6283 = vrot.lane.b32.xlu0 %v6193_v51, %s9926_s29  ;;  %v7827_v51 = vrot.slane %v7825_v38, 4  ;;  %9510 = vmatpush3.bf16.msra.mxu1 %v9742_v19  ;;  %v8051_v38 = vld [vmem:[#allocation2 + $0xb4] sm:$0xe]  ;;  %v9747_v19 = vld [vmem:[#allocation3 + $0x10] sm:$0xff]  }
 0x6e8   : > { %6347 = vst.msk [vmem:[#allocation3 + $0x4c] sm:$0xf] %vm6327_vm0, %v6270_v59  ;;  %v9305_v28 = vrot.slane %v8051_v38, 9 }
 0x6e9   : > { %6842 = vrot.lane.b32.xlu1 %v6719_v62, %s9928_s6  ;;  %v6268_v39 = vpop.permute.xlu0 %6267  ;;  %v7794_v62 = vor.u32 %v7793_v40, %v7790_v25  ;;  %v8195_v25 = vsel %vm10121_vm8, %v9304_v30, %v8194_v10  ;;  %v6748_v10 = vshll.u32 %v6402_v60, 16  ;;  %v6195_v30 = vld [vmem:[#allocation2 + $0xb4] sm:$0xf] }
 0x6ea   : > { %6346 = vst.msk [vmem:[#allocation3 + $0x48] sm:$0xf] %vm6327_vm0, %v6268_v39  ;;  %v9743_v39 = vld [vmem:[#allocation9 + $0x8] sm:$0xff]  }
 0x6eb   : > { %v6827_v63 = vpop.permute.xlu1 %6826  ;;  %6840 = vrot.lane.b32.xlu0 %v6709_v11, %s9928_s6  ;;  %v7805_v11 = vrot.slane %v7804_v44, 4  ;;  %9511 = vmatprep.subr.bf16.mxu1 %v9743_v39  ;;  %v7795_v46 = vrot.slane %v7794_v62, 4 }
 0x6ec   : > { %6906 = vst.msk [vmem:[#allocation3 + $0x44] sm:$0xf] %vm6888_vm4, %v6827_v63  ;;  %v7828_v63 = vor.u32 %v7827_v51, %v13771_v31  ;;  %9512 = vmatpush3.bf16.msra.mxu1 %v9743_v39 }
 0x6ed   : > { %6846 = vrot.lane.b32.xlu1 %v6743_v36, %s9928_s6  ;;  %v6825_v15 = vpop.permute.xlu0 %6824  ;;  %v7284_v36 = vld [vmem:[#allocation2 + $0xb4] sm:$0xf]  ;;  %v7800_v34 = vsel %vm10135_vm11, %v7795_v46, %v13762_v8  ;;  %v8053_v8 = vld [vmem:[#allocation2 + $0xbc] sm:$0x1] }
 0x6ee   : > { %6905 = vst.msk [vmem:[#allocation3 + $0x40] sm:$0xf] %vm6888_vm4, %v6825_v15  ;;  %v7810_v15 = vsel %vm10135_vm11, %v7805_v11, %v7809_v58  ;;  %v7829_v6 = vrot.slane %v7828_v63, 4  ;;  %v8204_v9 = vrot.slane %v8053_v8, 5 }
 0x6ef   : > { %v6831_v5 = vpop.permute.xlu1 %6830  ;;  %6844 = vrot.lane.b32.xlu0 %v6733_v53, %s9928_s6  ;;  %v9744_v53 = vld [vmem:[#allocation9] sm:$0xff]  }
 0x6f0   : > { %6908 = vst.msk [vmem:[#allocation3 + $0x4c] sm:$0xf] %vm6888_vm4, %v6831_v5  ;;  %v8052_v5 = vld [vmem:[#allocation2 + $0xb8] sm:$0xf]  ;;  %9513 = vmatprep.subr.bf16.mxu1 %v9744_v53  ;;  %v7834_v26 = vsel %vm10135_vm11, %v7829_v6, %v7833_v43  ;;  %v6745_v6 = vshrl.u32 %v6402_v60, 16 }
 0x6f1   : > { %7179 = vrot.lane.b32.xlu1 %v7107_v57, %s9930_s9  ;;  %v6829_v45 = vpop.permute.xlu0 %6828  ;;  %v7819_v57 = vrot.slane %v7818_v22, 4  ;;  %9514 = vmatpush3.bf16.msra.mxu1 %v9744_v53  ;;  %v8201_v35 = vrot.slane %v8052_v5, 5  ;;  %v9749_v53 = vld [vmem:[#allocation3 + $0x20] sm:$0xff]   ;;  %v9750_v5 = vld [vmem:[#allocation3 + $0x28] sm:$0xff]  }
 0x6f2   : > { %6907 = vst.msk [vmem:[#allocation3 + $0x48] sm:$0xf] %vm6888_vm4, %v6829_v45  ;;  %v9745_v45 = vld [vmem:[#allocation3] sm:$0xff]   ;;  %v6747_v23 = vrot.slane %v6745_v6, 4 }
 0x6f3   : > { %v7164_v29 = vpop.permute.xlu1 %7163  ;;  %7177 = vrot.lane.b32.xlu0 %v7104_v56, %s9930_s9  ;;  %v5873_v56 = vld [vmem:[#allocation2 + $0xac] sm:$0xf]  ;;  %9515 = vmatprep.mubr.bf16.mxu1 %v9745_v45  ;;  %v7824_v41 = vsel %vm10135_vm11, %v7819_v57, %v13771_v31  ;;  %v8203_v37 = vrot.slane %v8201_v35, 4  ;;  %v8202_v62 = vsel %vm10121_vm8, %v9305_v28, %v8201_v35  ;;  %v6750_v35 = vrot.slane %v6748_v10, 5  ;;  %v6964_v28 = vld [vmem:[#allocation2 + $0xb8] sm:$0xf] }
 0x6f4   : > { %7243 = vst.msk [vmem:[#allocation3 + $0x44] sm:$0xf] %vm7225_vm1, %v7164_v29  ;;  %9516 = vmatmul.mubr.bf16.vlgmr.msra.gmra.mxu1 %v9746_v0  ;;  %v6026_v54 = vrot.slane %v5873_v56, 5  ;;  %v6196_v56 = vld [vmem:[#allocation2 + $0xb8] sm:$0xf] }
 0x6f5   : > { %7183 = vrot.lane.b32.xlu1 %v7114_v55, %s9930_s9  ;;  %v7162_v32 = vpop.permute.xlu0 %7161  ;;  %v8197_v55 = vrot.slane %v8050_v48, 5  ;;  %v8205_v44 = vsel %vm10121_vm8, %v8203_v37, %v8204_v9  ;;  %9519 = vmatprep.mubr.bf16.mxu1 %v9747_v19  ;;  %v6751_v38 = vor.u32 %v6750_v35, %v6747_v23  ;;  %v9752_v9 = vld [vmem:[#allocation3 + $0x38] sm:$0xff]  }
 0x6f6   : > { %7242 = vst.msk [vmem:[#allocation3 + $0x40] sm:$0xf] %vm7225_vm1, %v7162_v32  ;;  %v13803_v32 = vld [vmem:[#allocation2 + $0xb8] sm:$0xf]  ;;  %v6028_v31 = vrot.slane %v6026_v54, 4 }
 0x6f7   : > { %v7168_v33 = vpop.permute.xlu1 %7167  ;;  %7181 = vrot.lane.b32.xlu0 %v7111_v21, %s9930_s9  ;;  %v8198_v16 = vsel %vm10121_vm8, %v8196_v52, %v8197_v55  ;;  %v6033_v51 = vrot.slane %v13803_v32, 5 }
 0x6f8   : > { %7245 = vst.msk [vmem:[#allocation3 + $0x4c] sm:$0xf] %vm7225_vm1, %v7168_v33  ;;  %v5874_v33 = vld [vmem:[#allocation2 + $0xb0] sm:$0x1] }
 0x6f9   : > { %7372 = vrot.lane.b32.xlu1 %v7283_v3, %s9929_s8  ;;  %v7166_v59 = vpop.permute.xlu0 %7165  ;;  %v9748_v3 = vld [vmem:[#allocation3 + $0x18] sm:$0xff]   ;;  %v6029_v4 = vrot.slane %v5874_v33, 5  ;;  %v6035_v63 = vrot.slane %v6033_v51, 4  ;;  %v6198_v33 = vld [vmem:[#allocation2 + $0xc4] sm:$0xf] }
 0x6fa   : > { %7244 = vst.msk [vmem:[#allocation3 + $0x48] sm:$0xf] %vm7225_vm1, %v7166_v59  ;;  %v6403_v59 = vld [vmem:[#allocation2 + $0xb8] sm:$0xf] }
 0x6fb   : > { %v7357_v49 = vpop.permute.xlu1 %7356  ;;  %7370 = vrot.lane.b32.xlu0 %v7282_v24, %s9929_s8  ;;  %v6754_v39 = vshll.u32 %v6403_v59, 16  ;;  %v6030_v11 = vsel %vm10121_vm8, %v6028_v31, %v6029_v4 }
 0x6fc   : > { %7436 = vst.msk [vmem:[#allocation3 + $0x44] sm:$0xf] %vm7418_vm6, %v7357_v49  ;;  %v9274_v49 = vrot.slane %v5872_v12, 9  ;;  %9520 = vmatmul.mubr.bf16.gmra.mxu1 %v9748_v3 }
 0x6fd   : > { %7376 = vrot.lane.b32.xlu1 %v7285_v20, %s9929_s8  ;;  %v7355_v61 = vpop.permute.xlu0 %7354  ;;  %v6758_v20 = vshrl.u32 %v6403_v59, 16  ;;  %v13831_v22 = vrot.slane %v6754_v39, 5  ;;  %9523 = vmatprep.mubr.bf16.mxu1 %v9749_v53  ;;  %v6968_v53 = vld [vmem:[#allocation2 + $0xc8] sm:$0x1] }
 0x6fe   : > { %7435 = vst.msk [vmem:[#allocation3 + $0x40] sm:$0xf] %vm7418_vm6, %v7355_v61  ;;  %v6406_v61 = vld [vmem:[#allocation2 + $0xc4] sm:$0xf]  ;;  %v6027_v14 = vsel %vm10121_vm8, %v9274_v49, %v6026_v54  ;;  %v7117_v49 = vrot.slane %v6964_v28, 5 }
 0x6ff   : > { %v7361_v47 = vpop.permute.xlu1 %7360  ;;  %7374 = vrot.lane.b32.xlu0 %v7284_v36, %s9929_s8  ;;  %v6036_v36 = vrot.slane %v5877_v42, 5  ;;  %v6778_v43 = vshll.u32 %v6406_v61, 16  ;;  %v7498_v28 = vld [vmem:[#allocation2 + $0xd4] sm:$0x1] }
 0x700   : > { %7438 = vst.msk [vmem:[#allocation3 + $0x4c] sm:$0xf] %vm7418_vm6, %v7361_v47  ;;  %v9275_v47 = vrot.slane %v5875_v27, 9  ;;  %v6965_v27 = vld [vmem:[#allocation2 + $0xbc] sm:$0x1] }
 0x701   : > { %7933 = vrot.lane.b32.xlu1 %v7810_v15, %s9931_s21  ;;  %v7359_v18 = vpop.permute.xlu0 %7358  ;;  %v6760_v15 = vrot.slane %v6758_v20, 4  ;;  %v13846_v55 = vrot.slane %v6778_v43, 5 }
 0x702   : > { %7437 = vst.msk [vmem:[#allocation3 + $0x48] sm:$0xf] %vm7418_vm6, %v7359_v18  ;;  %v6037_v18 = vsel %vm10121_vm8, %v6035_v63, %v6036_v36  ;;  %v6034_v48 = vsel %vm10121_vm8, %v9275_v47, %v6033_v51  ;;  %v6752_v51 = vrot.slane %v6751_v38, 4  ;;  %v6963_v63 = vld [vmem:[#allocation2 + $0xb4] sm:$0xe] }
 0x703   : > { %v7918_v13 = vpop.permute.xlu1 %7917  ;;  %7931 = vrot.lane.b32.xlu0 %v7800_v34, %s9931_s21  ;;  %v6782_v34 = vshrl.u32 %v6406_v61, 16  ;;  %v7494_v47 = vld [vmem:[#allocation2 + $0xc4] sm:$0xf] }
 0x704   : > { %7997 = vst.msk [vmem:[#allocation3 + $0x44] sm:$0xf] %vm7979_vm7, %v7918_v13  ;;  %v6405_v13 = vld [vmem:[#allocation2 + $0xc0] sm:$0xf]  ;;  %9524 = vmatmul.mubr.bf16.gmra.mxu1 %v9750_v5  ;;  %v6757_v39 = vsel %vm10135_vm11, %v6752_v51, %v13831_v22  ;;  %v7289_v51 = vld [vmem:[#allocation2 + $0xd0] sm:$0xf] }
 0x705   : > { %7937 = vrot.lane.b32.xlu1 %v7834_v26, %s9931_s21  ;;  %v7916_v29 = vpop.permute.xlu0 %7915  ;;  %v6404_v26 = vld [vmem:[#allocation2 + $0xbc] sm:$0x1]  ;;  %v6769_v45 = vshrl.u32 %v6405_v13, 16  ;;  %v6772_v0 = vshll.u32 %v6405_v13, 16  ;;  %v6966_v5 = vld [vmem:[#allocation2 + $0xc0] sm:$0xe] }
 0x706   : > { %7996 = vst.msk [vmem:[#allocation3 + $0x40] sm:$0xf] %vm7979_vm7, %v7916_v29  ;;  %v6761_v29 = vor.u32 %v6760_v15, %v13831_v22  ;;  %v6764_v8 = vshll.u32 %v6404_v26, 16  ;;  %v7120_v22 = vrot.slane %v6965_v27, 5  ;;  %v9290_v15 = vrot.slane %v6963_v63, 9 }
 0x707   : > { %v7922_v2 = vpop.permute.xlu1 %7921  ;;  %7935 = vrot.lane.b32.xlu0 %v7824_v41, %s9931_s21  ;;  %v6784_v41 = vrot.slane %v6782_v34, 4  ;;  %v6771_v54 = vrot.slane %v6769_v45, 4  ;;  %v6774_v32 = vrot.slane %v6772_v0, 5  ;;  %v7845_v13 = vshll.u32 %v7494_v47, 16  ;;  %v7496_v45 = vld [vmem:[#allocation2 + $0xcc] sm:$0xf] }
 0x708   : > { %7999 = vst.msk [vmem:[#allocation3 + $0x4c] sm:$0xf] %vm7979_vm7, %v7922_v2  ;;  %v6766_v19 = vrot.slane %v6764_v8, 5  ;;  %v7118_v0 = vsel %vm10121_vm8, %v9290_v15, %v7117_v49  ;;  %v7288_v27 = vld [vmem:[#allocation2 + $0xcc] sm:$0xf] }
 0x709   : > { %8270 = vrot.lane.b32.xlu1 %v8198_v16, %s9932_s17  ;;  %v7920_v21 = vpop.permute.xlu0 %7919  ;;  %v6407_v16 = vld [vmem:[#allocation2 + $0xc8] sm:$0x1]  ;;  %v6775_v59 = vor.u32 %v6774_v32, %v6771_v54 }
 0x70a   : > { %7998 = vst.msk [vmem:[#allocation3 + $0x48] sm:$0xf] %vm7979_vm7, %v7920_v21  ;;  %v9751_v21 = vld [vmem:[#allocation3 + $0x30] sm:$0xff]   ;;  %v6788_v3 = vshll.u32 %v6407_v16, 16  ;;  %v7860_v16 = vshrl.u32 %v7496_v45, 16 }
 0x70b   : > { %v8255_v40 = vpop.permute.xlu1 %8254  ;;  %8268 = vrot.lane.b32.xlu0 %v8195_v25, %s9932_s17  ;;  %v6762_v25 = vrot.slane %v6761_v29, 4  ;;  %9527 = vmatprep.mubr.bf16.mxu1 %v9751_v21  ;;  %v9291_v29 = vrot.slane %v6966_v5, 9 }
 0x70c   : > { %8334 = vst.msk [vmem:[#allocation3 + $0x44] sm:$0xf] %vm8316_vm9, %v8255_v40  ;;  %v6785_v40 = vor.u32 %v6784_v41, %v13846_v55  ;;  %9528 = vmatmul.mubr.bf16.gmra.mxu1 %v9752_v9  ;;  %v6790_v42 = vrot.slane %v6788_v3, 5  ;;  %v7862_v3 = vrot.slane %v7860_v16, 4 }
 0x70d   : > { %8367 = vst.msk [vmem:[#allocation3 + $0x44] sm:$0xf] %vm8349_vm10, %v14561_v50  ;;  %8274 = vrot.lane.b32.xlu1 %v8205_v44, %s9932_s17  ;;  %v8253_v24 = vpop.permute.xlu0 %8252  ;;  %v6197_v44 = vld [vmem:[#allocation2 + $0xc0] sm:$0xf] }
 0x70e   : > { %8333 = vst.msk [vmem:[#allocation3 + $0x40] sm:$0xf] %vm8316_vm9, %v8253_v24  ;;  %v6767_v24 = vsel %vm10135_vm11, %v6762_v25, %v6766_v19  ;;  %v6786_v4 = vrot.slane %v6785_v40, 4 }
 0x70f   : > { %v8259_v17 = vpop.permute.xlu1 %8258  ;;  %8366 = vst.msk [vmem:[#allocation3 + $0x40] sm:$0xf] %vm8349_vm10, %v14561_v50  ;;  %8272 = vrot.lane.b32.xlu0 %v8202_v62, %s9932_s17  ;;  %v6967_v62 = vld [vmem:[#allocation2 + $0xc4] sm:$0xf] }
 0x710   : > { %8336 = vst.msk [vmem:[#allocation3 + $0x4c] sm:$0xf] %vm8316_vm9, %v8259_v17  ;;  %v7124_v36 = vrot.slane %v6967_v62, 5 }
 0x711   : > { %8369 = vst.msk [vmem:[#allocation3 + $0x4c] sm:$0xf] %vm8349_vm10, %v14561_v50  ;;  %6096 = vrot.lane.b32.xlu1 %v6030_v11, %s9924_s27  ;;  %v8257_v58 = vpop.permute.xlu0 %8256  ;;  %v6776_v11 = vrot.slane %v6775_v59, 4 }
 0x712   : > { %8335 = vst.msk [vmem:[#allocation3 + $0x48] sm:$0xf] %vm8316_vm9, %v8257_v58  ;;  %v6791_v58 = vsel %vm10135_vm11, %v6786_v4, %v6790_v42  ;;  %v7126_v34 = vrot.slane %v7124_v36, 4  ;;  %v7125_v21 = vsel %vm10121_vm8, %v9291_v29, %v7124_v36  ;;  %v7879_v4 = vshll.u32 %v7498_v28, 16  ;;  %v8058_v36 = vld [vmem:[#allocation2 + $0xd0] sm:$0xf] }
 0x713   : > { %v6081_v46 = vpop.permute.xlu1 %6080  ;;  %8368 = vst.msk [vmem:[#allocation3 + $0x48] sm:$0xf] %vm8349_vm10, %v14561_v50  ;;  %6094 = vrot.lane.b32.xlu0 %v6027_v14, %s9924_s27  ;;  %v7119_v14 = vrot.slane %v7117_v49, 4  ;;  %v6781_v6 = vsel %vm10135_vm11, %v6776_v11, %v13846_v55  ;;  %v7286_v49 = vld [vmem:[#allocation2 + $0xc0] sm:$0xf] }
 0x714   : > { %6156 = vst.msk [vmem:[#allocation3 + $0x54] sm:$0xf] %vm6134_vm3, %v6081_v46 }
 0x715   : > { %6100 = vrot.lane.b32.xlu1 %v6037_v18, %s9924_s27  ;;  %v6079_v57 = vpop.permute.xlu0 %6078  ;;  %v7497_v18 = vld [vmem:[#allocation2 + $0xd0] sm:$0xf]  ;;  %v7121_v43 = vsel %vm10121_vm8, %v7119_v14, %v7120_v22 }
 0x716   : > { %6155 = vst.msk [vmem:[#allocation3 + $0x50] sm:$0xf] %vm6134_vm3, %v6079_v57  ;;  %v9753_v60 = vld [vmem:[#allocation3 + $0x40] sm:$0xff]   ;;  %v7849_v57 = vshrl.u32 %v7494_v47, 16  ;;  %v7869_v23 = vshll.u32 %v7497_v18, 16  ;;  %v7873_v35 = vshrl.u32 %v7497_v18, 16 }
 0x717   : > { %v6085_v52 = vpop.permute.xlu1 %6084  ;;  %6098 = vrot.lane.b32.xlu0 %v6034_v48, %s9924_s27  ;;  %9531 = vmatprep.mubr.bf16.mxu1 %v9753_v60  ;;  %v7493_v48 = vld [vmem:[#allocation2 + $0xc0] sm:$0xf]  ;;  %v8056_v18 = vld [vmem:[#allocation2 + $0xc8] sm:$0x1]  ;;  %s9845_s27 = scalar_lea.vmem %s14374_s26, 256 }
 0x718   : > { %6158 = vst.msk [vmem:[#allocation3 + $0x5c] sm:$0xf] %vm6134_vm3, %v6085_v52  ;;  %v7127_v52 = vrot.slane %v6968_v53, 5  ;;  %v7836_v55 = vshrl.u32 %v7493_v48, 16  ;;  %v7839_v41 = vshll.u32 %v7493_v48, 16  ;;  %v7851_v8 = vrot.slane %v7849_v57, 4  ;;  %p9846_p3 = scmp.ne.s32.totalorder %s14374_s26, %s9845_s27 }
 0x719   : > { %6289 = vrot.lane.b32.xlu1 %v6196_v56, %s9926_s29  ;;  %v6083_v2 = vpop.permute.xlu0 %6082  ;;  %v13886_v54 = vrot.slane %v7869_v23, 5  ;;  %v7875_v32 = vrot.slane %v7873_v35, 4  ;;  %v8057_v35 = vld [vmem:[#allocation2 + $0xcc] sm:$0xe] }
 0x71a   : > { %6157 = vst.msk [vmem:[#allocation3 + $0x58] sm:$0xf] %vm6134_vm3, %v6083_v2  ;;  %v9754_v61 = vld [vmem:[#allocation3 + $0x48] sm:$0xff]   ;;  %v7128_v2 = vsel %vm10121_vm8, %v7126_v34, %v7127_v52  ;;  %v7838_v25 = vrot.slane %v7836_v55, 4  ;;  %v7841_v40 = vrot.slane %v7839_v41, 5  ;;  %v9307_v7 = vrot.slane %v8057_v35, 9  ;;  %p9847_p1 = pnand %p9846_p3, %p14562_p11 }
 0x71b   : > { %v6274_v37 = vpop.permute.xlu1 %6273  ;;  %6287 = vrot.lane.b32.xlu0 %v6195_v30, %s9926_s29  ;;  %9532 = vmatmul.mubr.bf16.gmra.mxu1 %v9754_v61  ;;  %v7847_v30 = vrot.slane %v7845_v13, 5  ;;  %v7881_v61 = vrot.slane %v7879_v4, 5  ;;  %v8054_v13 = vld [vmem:[#allocation2 + $0xc0] sm:$0xe] }
 0x71c   : > { %6349 = vst.msk [vmem:[#allocation3 + $0x54] sm:$0xf] %vm6327_vm0, %v6274_v37  ;;  %v7863_v37 = vshll.u32 %v7496_v45, 16  ;;  %p9848_p2 = pneg %p9847_p1 }
 0x71d   : > { %6293 = vrot.lane.b32.xlu1 %v6198_v33, %s9926_s29  ;;  %v6272_v12 = vpop.permute.xlu0 %6271  ;;  %v7495_v33 = vld [vmem:[#allocation2 + $0xc8] sm:$0x1]  ;;  %v7852_v19 = vor.u32 %v7851_v8, %v7847_v30 }
 0x71e   : > { %6348 = vst.msk [vmem:[#allocation3 + $0x50] sm:$0xf] %vm6327_vm0, %v6272_v12  ;;  %v7287_v12 = vld [vmem:[#allocation2 + $0xc4] sm:$0xf]  ;;  %v7855_v59 = vshll.u32 %v7495_v33, 16 }
 0x71f   : > { %v6278_v31 = vpop.permute.xlu1 %6277  ;;  %6291 = vrot.lane.b32.xlu0 %v6197_v44, %s9926_s29  ;;  %v7865_v44 = vrot.slane %v7863_v37, 5  ;;  %v7853_v42 = vrot.slane %v7852_v19, 4  ;;  %s9851_s29 = scalar_lea.vmem %s9850_s28, 512 }
 0x720   : > { %6351 = vst.msk [vmem:[#allocation3 + $0x5c] sm:$0xf] %vm6327_vm0, %v6278_v31  ;;  %v7857_v63 = vrot.slane %v7855_v59, 5  ;;  %p9853_p12 = scmp.lt.s32.totalorder %s9851_s29, %s9845_s27 }
 0x721   : > { %6850 = vrot.lane.b32.xlu1 %v6767_v24, %s9928_s6  ;;  %v6276_v17 = vpop.permute.xlu0 %6275  ;;  %v7876_v24 = vor.u32 %v7875_v32, %v13886_v54 }
 0x722   : > { %6350 = vst.msk [vmem:[#allocation3 + $0x58] sm:$0xf] %vm6327_vm0, %v6276_v17  ;;  %v7842_v17 = vor.u32 %v7841_v40, %v7838_v25  ;;  %v7858_v47 = vsel %vm10135_vm11, %v7853_v42, %v7857_v63  ;;  %p9854_p7 = por %p9853_p12, %p9852_p6 }
 0x723   : > { %v6835_v20 = vpop.permute.xlu1 %6834  ;;  %6848 = vrot.lane.b32.xlu0 %v6757_v39, %s9928_s6  ;;  %v7866_v39 = vor.u32 %v7865_v44, %v7862_v3  ;;  %v7877_v60 = vrot.slane %v7876_v24, 4 }
 0x724   : > { %6910 = vst.msk [vmem:[#allocation3 + $0x54] sm:$0xf] %vm6888_vm4, %v6835_v20  ;;  %v8055_v20 = vld [vmem:[#allocation2 + $0xc4] sm:$0xf]  ;;  %v7843_v14 = vrot.slane %v7842_v17, 4  ;;  %p9855_p9 = pnand %p9854_p7, %p9848_p2 }
 0x725   : > { %6854 = vrot.lane.b32.xlu1 %v6791_v58, %s9928_s6  ;;  %v6833_v46 = vpop.permute.xlu0 %6832  ;;  %v7867_v22 = vrot.slane %v7866_v39, 4 }
 0x726   : > { %6909 = vst.msk [vmem:[#allocation3 + $0x50] sm:$0xf] %vm6888_vm4, %v6833_v46  ;;  %v8208_v46 = vrot.slane %v8055_v20, 5  ;;  %v7848_v53 = vsel %vm10135_vm11, %v7843_v14, %v7847_v30 }
 0x727   : > { %v6839_v10 = vpop.permute.xlu1 %6838  ;;  %6852 = vrot.lane.b32.xlu0 %v6781_v6, %s9928_s6  ;;  %v7882_v6 = vsel %vm10135_vm11, %v7877_v60, %v7881_v61  ;;  %v7872_v57 = vsel %vm10135_vm11, %v7867_v22, %v13886_v54 }
 0x728   : > { %6912 = vst.msk [vmem:[#allocation3 + $0x5c] sm:$0xf] %vm6888_vm4, %v6839_v10  ;;  %v8215_v10 = vrot.slane %v8058_v36, 5  ;;  %v8210_v34 = vrot.slane %v8208_v46, 4 }
 0x729   : > { %7187 = vrot.lane.b32.xlu1 %v7121_v43, %s9930_s9  ;;  %v6837_v26 = vpop.permute.xlu0 %6836  ;;  %v8059_v43 = vld [vmem:[#allocation2 + $0xd4] sm:$0x1] }
 0x72a   : > { %6911 = vst.msk [vmem:[#allocation3 + $0x58] sm:$0xf] %vm6888_vm4, %v6837_v26  ;;  %v8211_v26 = vrot.slane %v8056_v18, 5  ;;  %v8217_v52 = vrot.slane %v8215_v10, 4  ;;  %v8218_v23 = vrot.slane %v8059_v43, 5  ;;  %v8216_v30 = vsel %vm10121_vm8, %v9307_v7, %v8215_v10 }
 0x72b   : > { %v7172_v56 = vpop.permute.xlu1 %7171  ;;  %7185 = vrot.lane.b32.xlu0 %v7118_v0, %s9930_s9  ;;  %v9306_v0 = vrot.slane %v8054_v13, 9 }
 0x72c   : > { %7247 = vst.msk [vmem:[#allocation3 + $0x54] sm:$0xf] %vm7225_vm1, %v7172_v56  ;;  %v8212_v56 = vsel %vm10121_vm8, %v8210_v34, %v8211_v26  ;;  %v8219_v55 = vsel %vm10121_vm8, %v8217_v52, %v8218_v23 }
 0x72d   : > { %7191 = vrot.lane.b32.xlu1 %v7128_v2, %s9930_s9  ;;  %v7170_v38 = vpop.permute.xlu0 %7169  ;;  %v8209_v41 = vsel %vm10121_vm8, %v9306_v0, %v8208_v46 }
 0x72e   : > { %7246 = vst.msk [vmem:[#allocation3 + $0x50] sm:$0xf] %vm7225_vm1, %v7170_v38 }
 0x72f   : > { %v7176_v9 = vpop.permute.xlu1 %7175  ;;  %7189 = vrot.lane.b32.xlu0 %v7125_v21, %s9930_s9 }
 0x730   : > { %7249 = vst.msk [vmem:[#allocation3 + $0x5c] sm:$0xf] %vm7225_vm1, %v7176_v9 }
 0x731   : > { %7380 = vrot.lane.b32.xlu1 %v7287_v12, %s9929_s8  ;;  %v7174_v31 = vpop.permute.xlu0 %7173 }
 0x732   : > { %7248 = vst.msk [vmem:[#allocation3 + $0x58] sm:$0xf] %vm7225_vm1, %v7174_v31 }
 0x733   : > { %v7365_v62 = vpop.permute.xlu1 %7364  ;;  %7378 = vrot.lane.b32.xlu0 %v7286_v49, %s9929_s8 }
 0x734   : > { %7440 = vst.msk [vmem:[#allocation3 + $0x54] sm:$0xf] %vm7418_vm6, %v7365_v62 }
 0x735   : > { %7384 = vrot.lane.b32.xlu1 %v7289_v51, %s9929_s8  ;;  %v7363_v11 = vpop.permute.xlu0 %7362 }
 0x736   : > { %7439 = vst.msk [vmem:[#allocation3 + $0x50] sm:$0xf] %vm7418_vm6, %v7363_v11 }
 0x737   : > { %v7369_v58 = vpop.permute.xlu1 %7368  ;;  %7382 = vrot.lane.b32.xlu0 %v7288_v27, %s9929_s8 }
 0x738   : > { %7442 = vst.msk [vmem:[#allocation3 + $0x5c] sm:$0xf] %vm7418_vm6, %v7369_v58 }
 0x739   : > { %7941 = vrot.lane.b32.xlu1 %v7858_v47, %s9931_s21  ;;  %v7367_v15 = vpop.permute.xlu0 %7366 }
 0x73a   : > { %7441 = vst.msk [vmem:[#allocation3 + $0x58] sm:$0xf] %vm7418_vm6, %v7367_v15 }
 0x73b   : > { %v7926_v5 = vpop.permute.xlu1 %7925  ;;  %7939 = vrot.lane.b32.xlu0 %v7848_v53, %s9931_s21 }
 0x73c   : > { %8001 = vst.msk [vmem:[#allocation3 + $0x54] sm:$0xf] %vm7979_vm7, %v7926_v5 }
 0x73d   : > { %7945 = vrot.lane.b32.xlu1 %v7882_v6, %s9931_s21  ;;  %v7924_v48 = vpop.permute.xlu0 %7923 }
 0x73e   : > { %8000 = vst.msk [vmem:[#allocation3 + $0x50] sm:$0xf] %vm7979_vm7, %v7924_v48 }
 0x73f   : > { %v7930_v45 = vpop.permute.xlu1 %7929  ;;  %7943 = vrot.lane.b32.xlu0 %v7872_v57, %s9931_s21 }
 0x740   : > { %8003 = vst.msk [vmem:[#allocation3 + $0x5c] sm:$0xf] %vm7979_vm7, %v7930_v45 }
 0x741   : > { %8278 = vrot.lane.b32.xlu1 %v8212_v56, %s9932_s17  ;;  %v7928_v29 = vpop.permute.xlu0 %7927 }
 0x742   : > { %8002 = vst.msk [vmem:[#allocation3 + $0x58] sm:$0xf] %vm7979_vm7, %v7928_v29 }
 0x743   : > { %v8263_v2 = vpop.permute.xlu1 %8262  ;;  %8276 = vrot.lane.b32.xlu0 %v8209_v41, %s9932_s17 }
 0x744   : > { %8338 = vst.msk [vmem:[#allocation3 + $0x54] sm:$0xf] %vm8316_vm9, %v8263_v2 }
 0x745   : > { %8371 = vst.msk [vmem:[#allocation3 + $0x54] sm:$0xf] %vm8349_vm10, %v14561_v50  ;;  %8282 = vrot.lane.b32.xlu1 %v8219_v55, %s9932_s17  ;;  %v8261_v8 = vpop.permute.xlu0 %8260 }
 0x746   : > { %8337 = vst.msk [vmem:[#allocation3 + $0x50] sm:$0xf] %vm8316_vm9, %v8261_v8 }
 0x747   : > { %v8267_v16 = vpop.permute.xlu1 %8266  ;;  %8370 = vst.msk [vmem:[#allocation3 + $0x50] sm:$0xf] %vm8349_vm10, %v14561_v50  ;;  %8280 = vrot.lane.b32.xlu0 %v8216_v30, %s9932_s17 }
 0x748   : > { %8340 = vst.msk [vmem:[#allocation3 + $0x5c] sm:$0xf] %vm8316_vm9, %v8267_v16 }
 0x749   : > { %8373 = vst.msk [vmem:[#allocation3 + $0x5c] sm:$0xf] %vm8349_vm10, %v14561_v50  ;;  %v8265_v37 = vpop.permute.xlu0 %8264 }
 0x74a   : > { %8339 = vst.msk [vmem:[#allocation3 + $0x58] sm:$0xf] %vm8316_vm9, %v8265_v37 }
 0x74b   : > { %v6089_v38 = vpop.permute.xlu1 %6088  ;;  %8372 = vst.msk [vmem:[#allocation3 + $0x58] sm:$0xf] %vm8349_vm10, %v14561_v50 }
 0x74c   : > { %6160 = vst.msk [vmem:[#allocation3 + $0x64] sm:$0xf] %vm6134_vm3, %v6089_v38 }
 0x74d   : > { %v6087_v1 = vpop.permute.xlu0 %6086 }
 0x74e   : > { %6159 = vst.msk [vmem:[#allocation3 + $0x60] sm:$0xf] %vm6134_vm3, %v6087_v1  ;;  %v9755_v32 = vld [vmem:[#allocation3 + $0x50] sm:$0xff]  }
 0x74f   : > { %v6093_v54 = vpop.permute.xlu1 %6092  ;;  %9535 = vmatprep.mubr.bf16.mxu1 %v9755_v32 }
 0x750   : > { %6162 = vst.msk [vmem:[#allocation3 + $0x6c] sm:$0xf] %vm6134_vm3, %v6093_v54 }
 0x751   : > { %v6091_v21 = vpop.permute.xlu0 %6090 }
 0x752   : > { %6161 = vst.msk [vmem:[#allocation3 + $0x68] sm:$0xf] %vm6134_vm3, %v6091_v21  ;;  %v9756_v33 = vld [vmem:[#allocation3 + $0x58] sm:$0xff]  }
 0x753   : > { %v6282_v9 = vpop.permute.xlu1 %6281  ;;  %9536 = vmatmul.mubr.bf16.gmra.mxu1 %v9756_v33 }
 0x754   : > { %6353 = vst.msk [vmem:[#allocation3 + $0x64] sm:$0xf] %vm6327_vm0, %v6282_v9 }
 0x755   : > { %v6280_v25 = vpop.permute.xlu0 %6279 }
 0x756   : > { %6352 = vst.msk [vmem:[#allocation3 + $0x60] sm:$0xf] %vm6327_vm0, %v6280_v25 }
 0x757   : > { %v6286_v40 = vpop.permute.xlu1 %6285 }
 0x758   : > { %6355 = vst.msk [vmem:[#allocation3 + $0x6c] sm:$0xf] %vm6327_vm0, %v6286_v40 }
 0x759   : > { %v6284_v28 = vpop.permute.xlu0 %6283 }
 0x75a   : > { %6354 = vst.msk [vmem:[#allocation3 + $0x68] sm:$0xf] %vm6327_vm0, %v6284_v28 }
 0x75b   : > { %v6843_v12 = vpop.permute.xlu1 %6842 }
 0x75c   : > { %6914 = vst.msk [vmem:[#allocation3 + $0x64] sm:$0xf] %vm6888_vm4, %v6843_v12 }
 0x75d   : > { %v6841_v19 = vpop.permute.xlu0 %6840 }
 0x75e   : > { %6913 = vst.msk [vmem:[#allocation3 + $0x60] sm:$0xf] %vm6888_vm4, %v6841_v19 }
 0x75f   : > { %v6847_v3 = vpop.permute.xlu1 %6846 }
 0x760   : > { %6916 = vst.msk [vmem:[#allocation3 + $0x6c] sm:$0xf] %vm6888_vm4, %v6847_v3 }
 0x761   : > { %v6845_v44 = vpop.permute.xlu0 %6844 }
 0x762   : > { %6915 = vst.msk [vmem:[#allocation3 + $0x68] sm:$0xf] %vm6888_vm4, %v6845_v44 }
 0x763   : > { %v7180_v31 = vpop.permute.xlu1 %7179 }
 0x764   : > { %7251 = vst.msk [vmem:[#allocation3 + $0x64] sm:$0xf] %vm7225_vm1, %v7180_v31 }
 0x765   : > { %v7178_v51 = vpop.permute.xlu0 %7177 }
 0x766   : > { %7250 = vst.msk [vmem:[#allocation3 + $0x60] sm:$0xf] %vm7225_vm1, %v7178_v51 }
 0x767   : > { %v7184_v59 = vpop.permute.xlu1 %7183 }
 0x768   : > { %7253 = vst.msk [vmem:[#allocation3 + $0x6c] sm:$0xf] %vm7225_vm1, %v7184_v59 }
 0x769   : > { %v7182_v24 = vpop.permute.xlu0 %7181 }
 0x76a   : > { %7252 = vst.msk [vmem:[#allocation3 + $0x68] sm:$0xf] %vm7225_vm1, %v7182_v24 }
 0x76b   : > { %v7373_v4 = vpop.permute.xlu1 %7372 }
 0x76c   : > { %7444 = vst.msk [vmem:[#allocation3 + $0x64] sm:$0xf] %vm7418_vm6, %v7373_v4 }
 0x76d   : > { %v7371_v49 = vpop.permute.xlu0 %7370 }
 0x76e   : > { %7443 = vst.msk [vmem:[#allocation3 + $0x60] sm:$0xf] %vm7418_vm6, %v7371_v49 }
 0x76f   : > { %v7377_v62 = vpop.permute.xlu1 %7376 }
 0x770   : > { %7446 = vst.msk [vmem:[#allocation3 + $0x6c] sm:$0xf] %vm7418_vm6, %v7377_v62 }
 0x771   : > { %v7375_v17 = vpop.permute.xlu0 %7374 }
 0x772   : > { %7445 = vst.msk [vmem:[#allocation3 + $0x68] sm:$0xf] %vm7418_vm6, %v7375_v17 }
 0x773   : > { %v7934_v42 = vpop.permute.xlu1 %7933 }
 0x774   : > { %8005 = vst.msk [vmem:[#allocation3 + $0x64] sm:$0xf] %vm7979_vm7, %v7934_v42 }
 0x775   : > { %v7932_v27 = vpop.permute.xlu0 %7931 }
 0x776   : > { %8004 = vst.msk [vmem:[#allocation3 + $0x60] sm:$0xf] %vm7979_vm7, %v7932_v27 }
 0x777   : > { %v7938_v39 = vpop.permute.xlu1 %7937 }
 0x778   : > { %8007 = vst.msk [vmem:[#allocation3 + $0x6c] sm:$0xf] %vm7979_vm7, %v7938_v39 }
 0x779   : > { %v7936_v20 = vpop.permute.xlu0 %7935 }
 0x77a   : > { %8006 = vst.msk [vmem:[#allocation3 + $0x68] sm:$0xf] %vm7979_vm7, %v7936_v20 }
 0x77b   : > { %v8271_v11 = vpop.permute.xlu1 %8270 }
 0x77c   : > { %8342 = vst.msk [vmem:[#allocation3 + $0x64] sm:$0xf] %vm8316_vm9, %v8271_v11 }
 0x77d   : > { %8375 = vst.msk [vmem:[#allocation3 + $0x64] sm:$0xf] %vm8349_vm10, %v14561_v50  ;;  %v8269_v63 = vpop.permute.xlu0 %8268 }
 0x77e   : > { %8341 = vst.msk [vmem:[#allocation3 + $0x60] sm:$0xf] %vm8316_vm9, %v8269_v63 }
 0x77f   : > { %v8275_v60 = vpop.permute.xlu1 %8274  ;;  %8374 = vst.msk [vmem:[#allocation3 + $0x60] sm:$0xf] %vm8349_vm10, %v14561_v50 }
 0x780   : > { %8344 = vst.msk [vmem:[#allocation3 + $0x6c] sm:$0xf] %vm8316_vm9, %v8275_v60 }
 0x781   : > { %8377 = vst.msk [vmem:[#allocation3 + $0x6c] sm:$0xf] %vm8349_vm10, %v14561_v50  ;;  %v8273_v61 = vpop.permute.xlu0 %8272 }
 0x782   : > { %8343 = vst.msk [vmem:[#allocation3 + $0x68] sm:$0xf] %vm8316_vm9, %v8273_v61 }
 0x783   : > { %v6097_v58 = vpop.permute.xlu1 %6096  ;;  %8376 = vst.msk [vmem:[#allocation3 + $0x68] sm:$0xf] %vm8349_vm10, %v14561_v50 }
 0x784   : > { %6164 = vst.msk [vmem:[#allocation3 + $0x74] sm:$0xf] %vm6134_vm3, %v6097_v58 }
 0x785   : > { %v6095_v14 = vpop.permute.xlu0 %6094 }
 0x786   : > { %6163 = vst.msk [vmem:[#allocation3 + $0x70] sm:$0xf] %vm6134_vm3, %v6095_v14  ;;  %v9757_v47 = vld [vmem:[#allocation3 + $0x60] sm:$0xff]  }
 0x787   : > { %v6101_v36 = vpop.permute.xlu1 %6100  ;;  %9539 = vmatprep.mubr.bf16.mxu1 %v9757_v47 }
 0x788   : > { %6166 = vst.msk [vmem:[#allocation3 + $0x7c] sm:$0xf] %vm6134_vm3, %v6101_v36 }
 0x789   : > { %v6099_v46 = vpop.permute.xlu0 %6098 }
 0x78a   : > { %6165 = vst.msk [vmem:[#allocation3 + $0x78] sm:$0xf] %vm6134_vm3, %v6099_v46  ;;  %v9758_v15 = vld [vmem:[#allocation3 + $0x68] sm:$0xff]  }
 0x78b   : > { %v6290_v22 = vpop.permute.xlu1 %6289  ;;  %9540 = vmatmul.mubr.bf16.gmra.mxu1 %v9758_v15 }
 0x78c   : > { %6357 = vst.msk [vmem:[#allocation3 + $0x74] sm:$0xf] %vm6327_vm0, %v6290_v22 }
 0x78d   : > { %v6288_v6 = vpop.permute.xlu0 %6287 }
 0x78e   : > { %6356 = vst.msk [vmem:[#allocation3 + $0x70] sm:$0xf] %vm6327_vm0, %v6288_v6 }
 0x78f   : > { %v6294_v10 = vpop.permute.xlu1 %6293 }
 0x790   : > { %6359 = vst.msk [vmem:[#allocation3 + $0x7c] sm:$0xf] %vm6327_vm0, %v6294_v10 }
 0x791   : > { %v6292_v53 = vpop.permute.xlu0 %6291 }
 0x792   : > { %6358 = vst.msk [vmem:[#allocation3 + $0x78] sm:$0xf] %vm6327_vm0, %v6292_v53 }
 0x793   : > { %v6851_v5 = vpop.permute.xlu1 %6850 }
 0x794   : > { %6918 = vst.msk [vmem:[#allocation3 + $0x74] sm:$0xf] %vm6888_vm4, %v6851_v5 }
 0x795   : > { %v6849_v18 = vpop.permute.xlu0 %6848 }
 0x796   : > { %6917 = vst.msk [vmem:[#allocation3 + $0x70] sm:$0xf] %vm6888_vm4, %v6849_v18 }
 0x797   : > { %v6855_v43 = vpop.permute.xlu1 %6854 }
 0x798   : > { %6920 = vst.msk [vmem:[#allocation3 + $0x7c] sm:$0xf] %vm6888_vm4, %v6855_v43 }
 0x799   : > { %v6853_v34 = vpop.permute.xlu0 %6852 }
 0x79a   : > { %6919 = vst.msk [vmem:[#allocation3 + $0x78] sm:$0xf] %vm6888_vm4, %v6853_v34 }
 0x79b   : > { %v7188_v13 = vpop.permute.xlu1 %7187 }
 0x79c   : > { %7255 = vst.msk [vmem:[#allocation3 + $0x74] sm:$0xf] %vm7225_vm1, %v7188_v13 }
 0x79d   : > { %v7186_v57 = vpop.permute.xlu0 %7185 }
 0x79e   : > { %7254 = vst.msk [vmem:[#allocation3 + $0x70] sm:$0xf] %vm7225_vm1, %v7186_v57 }
 0x79f   : > { %v7192_v48 = vpop.permute.xlu1 %7191 }
 0x7a0   : > { %7257 = vst.msk [vmem:[#allocation3 + $0x7c] sm:$0xf] %vm7225_vm1, %v7192_v48 }
 0x7a1   : > { %v7190_v26 = vpop.permute.xlu0 %7189 }
 0x7a2   : > { %7256 = vst.msk [vmem:[#allocation3 + $0x78] sm:$0xf] %vm7225_vm1, %v7190_v26 }
 0x7a3   : > { %v7381_v52 = vpop.permute.xlu1 %7380 }
 0x7a4   : > { %7448 = vst.msk [vmem:[#allocation3 + $0x74] sm:$0xf] %vm7418_vm6, %v7381_v52 }
 0x7a5   : > { %v7379_v23 = vpop.permute.xlu0 %7378 }
 0x7a6   : > { %7447 = vst.msk [vmem:[#allocation3 + $0x70] sm:$0xf] %vm7418_vm6, %v7379_v23 }
 0x7a7   : > { %v7385_v35 = vpop.permute.xlu1 %7384 }
 0x7a8   : > { %7450 = vst.msk [vmem:[#allocation3 + $0x7c] sm:$0xf] %vm7418_vm6, %v7385_v35 }
 0x7a9   : > { %v7383_v45 = vpop.permute.xlu0 %7382 }
 0x7aa   : > { %7449 = vst.msk [vmem:[#allocation3 + $0x78] sm:$0xf] %vm7418_vm6, %v7383_v45 }
 0x7ab   : > { %v7942_v0 = vpop.permute.xlu1 %7941 }
 0x7ac   : > { %8009 = vst.msk [vmem:[#allocation3 + $0x74] sm:$0xf] %vm7979_vm7, %v7942_v0 }
 0x7ad   : > { %v7940_v56 = vpop.permute.xlu0 %7939 }
 0x7ae   : > { %8008 = vst.msk [vmem:[#allocation3 + $0x70] sm:$0xf] %vm7979_vm7, %v7940_v56 }
 0x7af   : > { %v7946_v7 = vpop.permute.xlu1 %7945 }
 0x7b0   : > { %8011 = vst.msk [vmem:[#allocation3 + $0x7c] sm:$0xf] %vm7979_vm7, %v7946_v7 }
 0x7b1   : > { %v7944_v29 = vpop.permute.xlu0 %7943 }
 0x7b2   : > { %8010 = vst.msk [vmem:[#allocation3 + $0x78] sm:$0xf] %vm7979_vm7, %v7944_v29 }
 0x7b3   : > { %v8279_v55 = vpop.permute.xlu1 %8278 }
 0x7b4   : > { %8346 = vst.msk [vmem:[#allocation3 + $0x74] sm:$0xf] %vm8316_vm9, %v8279_v55  ;;  %v14016_v37 = vpop.f32.mrf.mxu1 }
 0x7b5   : > { %8379 = vst.msk [vmem:[#allocation3 + $0x74] sm:$0xf] %vm8349_vm10, %v14561_v50  ;;  %v8277_v41 = vpop.permute.xlu0 %8276 }
 0x7b6   : > { %8345 = vst.msk [vmem:[#allocation3 + $0x70] sm:$0xf] %vm8316_vm9, %v8277_v41  ;;  %v14018_v38 = vpop.f32.mrf.mxu1 }
 0x7b7   : > { %v8283_v2 = vpop.permute.xlu1 %8282  ;;  %8378 = vst.msk [vmem:[#allocation3 + $0x70] sm:$0xf] %vm8349_vm10, %v14561_v50 }
 0x7b8   : > { %8348 = vst.msk [vmem:[#allocation3 + $0x7c] sm:$0xf] %vm8316_vm9, %v8283_v2  ;;  %v14020_v1 = vpop.f32.mrf.mxu1 }
 0x7b9   : > { %8381 = vst.msk [vmem:[#allocation3 + $0x7c] sm:$0xf] %vm8349_vm10, %v14561_v50  ;;  %v8281_v30 = vpop.permute.xlu0 %8280 }
 0x7ba   : > { %8347 = vst.msk [vmem:[#allocation3 + $0x78] sm:$0xf] %vm8316_vm9, %v8281_v30  ;;  %v14022_v54 = vpop.f32.mrf.mxu1 }
 0x7bb   : > { %8380 = vst.msk [vmem:[#allocation3 + $0x78] sm:$0xf] %vm8349_vm10, %v14561_v50  ;;  %v8735_v32 = vadd.f32 %v14022_v54, %v14018_v38 }
 0x7bc   : > { %v14026_v21 = vpop.f32.mrf.mxu1 }
 0x7bd   : > { %v8736_v9 = vadd.f32 %v14016_v37, %v8735_v32 }
 0x7be   : > { %v9759_v8 = vld [vmem:[#allocation3 + $0x70] sm:$0xff]   ;;  %v14029_v50 = vpop.f32.mrf.mxu1 }
 0x7bf   : > { %9543 = vmatprep.mubr.bf16.mxu1 %v9759_v8  ;;  %v8737_v33 = vadd.f32 %v14020_v1, %v8736_v9 }
 0x7c0   : > { %v14032_v25 = vpop.f32.mrf.mxu1 }
 0x7c1   : > { %v8738_v40 = vadd.f32 %v8737_v33, %v14029_v50 }
 0x7c2   : > { %v9760_v16 = vld [vmem:[#allocation3 + $0x78] sm:$0xff]   ;;  %v14035_v28 = vpop.f32.mrf.mxu1 }
 0x7c3   : > { %9544 = vmatmul.mubr.bf16.gmra.mxu1 %v9760_v16  ;;  %v8739_v12 = vadd.f32 %v8738_v40, %v14035_v28 }
 0x7c4   : > { %v14038_v19 = vpop.f32.mrf.mxu1 }
 0x7c5   : > { %v8740_v3 = vadd.f32 %v14026_v21, %v8739_v12 }
 0x7c6   : > { %v14041_v44 = vpop.f32.mrf.mxu1 }
 0x7c7   : > { %v8741_v31 = vadd.f32 %v14032_v25, %v8740_v3 }
 0x7c8   : > { %v14044_v51 = vpop.f32.mrf.mxu1 }
 0x7c9   : > { %v8742_v59 = vadd.f32 %v8741_v31, %v14041_v44 }
 0x7ca   : > { %v14047_v24 = vpop.f32.mrf.mxu1 }
 0x7cb   : > { %v8743_v4 = vadd.f32 %v8742_v59, %v14047_v24 }
 0x7cc   : > { %v14050_v49 = vpop.f32.mrf.mxu1 }
 0x7cd   : > { %v8744_v62 = vadd.f32 %v14038_v19, %v8743_v4 }
 0x7ce   : > { %v14053_v17 = vpop.f32.mrf.mxu1 }
 0x7cf   : > { %v8745_v42 = vadd.f32 %v14044_v51, %v8744_v62 }
 0x7d0   : > { %v14056_v27 = vpop.f32.mrf.mxu1 }
 0x7d1   : > { %v8746_v39 = vadd.f32 %v8745_v42, %v14053_v17 }
 0x7d2   : > { %v14059_v20 = vpop.f32.mrf.mxu1 }
 0x7d3   : > { %v8747_v11 = vadd.f32 %v8746_v39, %v14059_v20 }
 0x7d5   : > { %v8748_v60 = vadd.f32 %v14050_v49, %v8747_v11 }
 0x7d7   : > { %v8749_v58 = vadd.f32 %v14056_v27, %v8748_v60 }
 0x7db   : > { %v14062_v63 = vpop.f32.mrf.mxu1 }
 0x7dd   : > { %v14065_v61 = vpop.f32.mrf.mxu1 }
 0x7de   : > { %v8750_v36 = vadd.f32 %v8749_v58, %v14065_v61 }
 0x7df   : > { %v14068_v14 = vpop.f32.mrf.mxu1 }
 0x7e1   : > { %v14071_v47 = vpop.f32.mrf.mxu1 }
 0x7e2   : > { %v8751_v46 = vadd.f32 %v8750_v36, %v14071_v47 }
 0x7e4   : > { %v8752_v15 = vadd.f32 %v14062_v63, %v8751_v46 }
 0x7e6   : > { %v8753_v10 = vadd.f32 %v14068_v14, %v8752_v15 }
 0x813   : > { %v14074_v22 = vpop.f32.mrf.mxu1 }
 0x815   : > { %v14077_v6 = vpop.f32.mrf.mxu1 }
 0x816   : > { %v8754_v5 = vadd.f32 %v8753_v10, %v14077_v6 }
 0x817   : > { %v14080_v53 = vpop.f32.mrf.mxu1 }
 0x819   : > { %v14083_v18 = vpop.f32.mrf.mxu1 }
 0x81a   : > { %v8755_v43 = vadd.f32 %v8754_v5, %v14083_v18 }
 0x81c   : > { %v8756_v13 = vadd.f32 %v14074_v22, %v8755_v43 }
 0x81e   : > { %v8757_v48 = vadd.f32 %v14080_v53, %v8756_v13 }
 0x84b   : > { %v14086_v34 = vpop.f32.mrf.mxu1 }
 0x84d   : > { %v14089_v57 = vpop.f32.mrf.mxu1 }
 0x84e   : > { %v8758_v52 = vadd.f32 %v8757_v48, %v14089_v57 }
 0x84f   : > { %v14092_v26 = vpop.f32.mrf.mxu1 }
 0x851   : > { %v14095_v23 = vpop.f32.mrf.mxu1 }
 0x852   : > { %v8759_v35 = vadd.f32 %v8758_v52, %v14095_v23 }
 0x854   : > { %v8760_v45 = vadd.f32 %v14086_v34, %v8759_v35 }
 0x856   : > { %v8761_v7 = vadd.f32 %v14092_v26, %v8760_v45 }
 0x883   : > { %v14099_v0 = vpop.f32.mrf.mxu1 }
 0x885   : > { %v14101_v56 = vpop.f32.mrf.mxu1 }
 0x886   : > { %v8762_v55 = vadd.f32 %v8761_v7, %v14101_v56 }
 0x887   : > { %v14104_v29 = vpop.f32.mrf.mxu1 }
 0x889   : > { %v14107_v41 = vpop.f32.mrf.mxu1 }
 0x88a   : > { %v8763_v2 = vadd.f32 %v8762_v55, %v14107_v41 }
 0x88c   : > { %v8764_v30 = vadd.f32 %v14099_v0, %v8763_v2 }
 0x88e   : > { %v8765_v8 = vadd.f32 %v14104_v29, %v8764_v30 }
 0x890   : > { %v8766_v16 = vrot.slane %v8765_v8, 4 }
 0x892   : > { %v8767_v32 = vadd.f32 %v8766_v16, %v8765_v8 }
 0x894   : > { %v8768_v9 = vrot.slane %v8767_v32, 2 }
 0x896   : > { %v8769_v33 = vadd.f32 %v8768_v9, %v8767_v32 }
 0x898   : > { %v8770_v40 = vrot.slane %v8769_v33, 1 }
 0x89a   : > { %v8771_v12 = vadd.f32 %v8770_v40, %v8769_v33 }
 0x89c   : > { %v14112_v3 = vmul.f32 0.00390625, %v8771_v12 }
 0x89e   : > { %v14116_v31 = vsub.f32 %v14018_v38, %v14112_v3  ;;  %v14120_v59 = vsub.f32 %v14022_v54, %v14112_v3  ;;  %v14124_v4 = vsub.f32 %v14016_v37, %v14112_v3  ;;  %v14132_v39 = vsub.f32 %v14020_v1, %v14112_v3 }
 0x89f   : > { %v14136_v38 = vsub.f32 %v14029_v50, %v14112_v3  ;;  %v14142_v37 = vsub.f32 %v14035_v28, %v14112_v3  ;;  %v14148_v1 = vsub.f32 %v14026_v21, %v14112_v3  ;;  %v14154_v46 = vsub.f32 %v14032_v25, %v14112_v3 }
 0x8a0   : > { %v8805_v62 = vmul.f32 %v14116_v31, %v14116_v31  ;;  %v8806_v42 = vmul.f32 %v14120_v59, %v14120_v59  ;;  %v8807_v54 = vmul.f32 %v14124_v4, %v14124_v4  ;;  %v8808_v60 = vmul.f32 %v14132_v39, %v14132_v39 }
 0x8a1   : > { %v8809_v50 = vmul.f32 %v14136_v38, %v14136_v38  ;;  %v8810_v28 = vmul.f32 %v14142_v37, %v14142_v37  ;;  %v14160_v10 = vsub.f32 %v14041_v44, %v14112_v3  ;;  %v8811_v21 = vmul.f32 %v14148_v1, %v14148_v1 }
 0x8a2   : > { %v8837_v11 = vadd.f32 %v8806_v42, %v8805_v62  ;;  %v14166_v43 = vsub.f32 %v14047_v24, %v14112_v3  ;;  %v8812_v25 = vmul.f32 %v14154_v46, %v14154_v46  ;;  %v14172_v48 = vsub.f32 %v14038_v19, %v14112_v3 }
 0x8a3   : > { %v8813_v44 = vmul.f32 %v14160_v10, %v14160_v10  ;;  %v14178_v35 = vsub.f32 %v14044_v51, %v14112_v3  ;;  %v14184_v7 = vsub.f32 %v14053_v17, %v14112_v3  ;;  %v14190_v2 = vsub.f32 %v14059_v20, %v14112_v3 }
 0x8a4   : > { %v8838_v58 = vadd.f32 %v8837_v11, %v8807_v54  ;;  %v8814_v24 = vmul.f32 %v14166_v43, %v14166_v43  ;;  %v8815_v19 = vmul.f32 %v14172_v48, %v14172_v48  ;;  %v14196_v8 = vsub.f32 %v14050_v49, %v14112_v3 }
 0x8a5   : > { %v8816_v51 = vmul.f32 %v14178_v35, %v14178_v35  ;;  %v8817_v17 = vmul.f32 %v14184_v7, %v14184_v7  ;;  %v14202_v32 = vsub.f32 %v14056_v27, %v14112_v3  ;;  %v8818_v20 = vmul.f32 %v14190_v2, %v14190_v2 }
 0x8a6   : > { %v8839_v36 = vadd.f32 %v8838_v58, %v8808_v60  ;;  %v14208_v33 = vsub.f32 %v14065_v61, %v14112_v3  ;;  %v8819_v49 = vmul.f32 %v14196_v8, %v14196_v8  ;;  %v14214_v12 = vsub.f32 %v14071_v47, %v14112_v3 }
 0x8a7   : > { %v8820_v27 = vmul.f32 %v14202_v32, %v14202_v32  ;;  %v14220_v42 = vsub.f32 %v14062_v63, %v14112_v3  ;;  %v14226_v11 = vsub.f32 %v14068_v14, %v14112_v3  ;;  %v14232_v58 = vsub.f32 %v14077_v6, %v14112_v3 }
 0x8a8   : > { %v8840_v15 = vadd.f32 %v8839_v36, %v8809_v50  ;;  %v8821_v61 = vmul.f32 %v14208_v33, %v14208_v33  ;;  %v8822_v47 = vmul.f32 %v14214_v12, %v14214_v12  ;;  %v14238_v36 = vsub.f32 %v14083_v18, %v14112_v3 }
 0x8a9   : > { %v8823_v63 = vmul.f32 %v14220_v42, %v14220_v42  ;;  %v8824_v14 = vmul.f32 %v14226_v11, %v14226_v11  ;;  %v8825_v6 = vmul.f32 %v14232_v58, %v14232_v58 }
 0x8aa   : > { %v8841_v5 = vadd.f32 %v8840_v15, %v8810_v28  ;;  %v14244_v15 = vsub.f32 %v14074_v22, %v14112_v3  ;;  %v8826_v18 = vmul.f32 %v14238_v36, %v14238_v36 }
 0x8ac   : > { %v8842_v13 = vadd.f32 %v8841_v5, %v8811_v21  ;;  %v14250_v5 = vsub.f32 %v14080_v53, %v14112_v3  ;;  %v8827_v22 = vmul.f32 %v14244_v15, %v14244_v15 }
 0x8ae   : > { %v8843_v52 = vadd.f32 %v8842_v13, %v8812_v25  ;;  %v14256_v13 = vsub.f32 %v14089_v57, %v14112_v3  ;;  %v8828_v53 = vmul.f32 %v14250_v5, %v14250_v5 }
 0x8b0   : > { %v8844_v45 = vadd.f32 %v8843_v52, %v8813_v44  ;;  %v14262_v52 = vsub.f32 %v14095_v23, %v14112_v3  ;;  %v8829_v57 = vmul.f32 %v14256_v13, %v14256_v13 }
 0x8b2   : > { %v8845_v55 = vadd.f32 %v8844_v45, %v8814_v24  ;;  %v14268_v45 = vsub.f32 %v14086_v34, %v14112_v3  ;;  %v8830_v23 = vmul.f32 %v14262_v52, %v14262_v52 }
 0x8b4   : > { %v8846_v30 = vadd.f32 %v8845_v55, %v8815_v19  ;;  %v14274_v55 = vsub.f32 %v14092_v26, %v14112_v3  ;;  %v8831_v34 = vmul.f32 %v14268_v45, %v14268_v45 }
 0x8b6   : > { %v8847_v16 = vadd.f32 %v8846_v30, %v8816_v51  ;;  %v14280_v30 = vsub.f32 %v14101_v56, %v14112_v3  ;;  %v8832_v26 = vmul.f32 %v14274_v55, %v14274_v55 }
 0x8b8   : > { %v8848_v9 = vadd.f32 %v8847_v16, %v8817_v17  ;;  %v14286_v16 = vsub.f32 %v14107_v41, %v14112_v3  ;;  %v8833_v56 = vmul.f32 %v14280_v30, %v14280_v30 }
 0x8ba   : > { %v8849_v40 = vadd.f32 %v8848_v9, %v8818_v20  ;;  %v14292_v9 = vsub.f32 %v14099_v0, %v14112_v3  ;;  %v8834_v41 = vmul.f32 %v14286_v16, %v14286_v16 }
 0x8bc   : > { %v8850_v62 = vadd.f32 %v8849_v40, %v8819_v49  ;;  %v14298_v40 = vsub.f32 %v14104_v29, %v14112_v3 }
 0x8be   : > { %v8851_v54 = vadd.f32 %v8850_v62, %v8820_v27  ;;  %v8835_v62 = vmul.f32 %v14292_v9, %v14292_v9  ;;  %v8836_v0 = vmul.f32 %v14298_v40, %v14298_v40 }
 0x8c0   : > { %v8852_v60 = vadd.f32 %v8851_v54, %v8821_v61 }
 0x8c2   : > { %v8853_v50 = vadd.f32 %v8852_v60, %v8822_v47 }
 0x8c4   : > { %v8854_v28 = vadd.f32 %v8853_v50, %v8823_v63 }
 0x8c6   : > { %v8855_v21 = vadd.f32 %v8854_v28, %v8824_v14 }
 0x8c8   : > { %v8856_v25 = vadd.f32 %v8855_v21, %v8825_v6 }
 0x8ca   : > { %v8857_v44 = vadd.f32 %v8856_v25, %v8826_v18 }
 0x8cc   : > { %v8858_v24 = vadd.f32 %v8857_v44, %v8827_v22 }
 0x8ce   : > { %v8859_v19 = vadd.f32 %v8858_v24, %v8828_v53 }
 0x8d0   : > { %v8860_v51 = vadd.f32 %v8859_v19, %v8829_v57 }
 0x8d2   : > { %v8861_v17 = vadd.f32 %v8860_v51, %v8830_v23 }
 0x8d4   : > { %v8862_v20 = vadd.f32 %v8861_v17, %v8831_v34 }
 0x8d6   : > { %v8863_v49 = vadd.f32 %v8862_v20, %v8832_v26 }
 0x8d8   : > { %v8864_v27 = vadd.f32 %v8863_v49, %v8833_v56 }
 0x8da   : > { %v8865_v61 = vadd.f32 %v8864_v27, %v8834_v41 }
 0x8dc   : > { %v8866_v54 = vadd.f32 %v8865_v61, %v8835_v62 }
 0x8de   : > { %v8867_v47 = vadd.f32 %v8866_v54, %v8836_v0 }
 0x8e0   : > { %v8868_v60 = vrot.slane %v8867_v47, 4 }
 0x8e2   : > { %v8869_v63 = vadd.f32 %v8868_v60, %v8867_v47 }
 0x8e4   : > { %v8870_v50 = vrot.slane %v8869_v63, 2 }
 0x8e6   : > { %v8871_v14 = vadd.f32 %v8870_v50, %v8869_v63 }
 0x8e8   : > { %v8872_v28 = vrot.slane %v8871_v14, 1 }
 0x8ea   : > { %v8873_v29 = vadd.f32 %v8872_v28, %v8871_v14 }
 0x8ec   : > { %v8874_v3 = vmul.f32 0.00390625, %v8873_v29 }
 0x8ee   : > { %v8875_v6 = vadd.f32 1e-05, %v8874_v3 }
 0x8f0   : > { %9763 = vrsqrt.f32 %v8875_v6 }
 0x8fd   : > { %v14306_v21 = vpop.eup %9763 }
 0x8fe   : > { %v8877_v18 = vmul.f32 %v14306_v21, %v14116_v31  ;;  %v8893_v25 = vmul.f32 %v14306_v21, %v14208_v33  ;;  %v8878_v22 = vmul.f32 %v14306_v21, %v14120_v59  ;;  %v8894_v44 = vmul.f32 %v14306_v21, %v14214_v12 }
 0x8ff   : > { %v8879_v57 = vmul.f32 %v14306_v21, %v14124_v4  ;;  %v8895_v19 = vmul.f32 %v14306_v21, %v14220_v42  ;;  %v8880_v59 = vmul.f32 %v14306_v21, %v14132_v39  ;;  %v8896_v33 = vmul.f32 %v14306_v21, %v14226_v11 }
 0x900   : > { %v8925_v53 = vmax.f32 %v8893_v25, 0.0  ;;  %v8909_v24 = vmax.f32 %v8877_v18, 0.0  ;;  %v8910_v31 = vmax.f32 %v8878_v22, 0.0  ;;  %v8926_v23 = vmax.f32 %v8894_v44, 0.0 }
 0x901   : > { %v8911_v12 = vmax.f32 %v8879_v57, 0.0  ;;  %v8927_v51 = vmax.f32 %v8895_v19, 0.0  ;;  %v8881_v4 = vmul.f32 %v14306_v21, %v14136_v38  ;;  %v8897_v42 = vmul.f32 %v14306_v21, %v14232_v58 }
 0x902   : > { %8973 = vxpose.xlu1.b32.start [1/16] (narrow) %v8925_v53, 8  ;;  %8941 = vxpose.xlu0.b32.start [1/16] (narrow) %v8909_v24, 8  ;;  %v8912_v34 = vmax.f32 %v8880_v59, 0.0  ;;  %v8928_v17 = vmax.f32 %v8896_v33, 0.0  ;;  %v8882_v39 = vmul.f32 %v14306_v21, %v14142_v37  ;;  %v8898_v11 = vmul.f32 %v14306_v21, %v14238_v36 }
 0x903   : > { %v8913_v26 = vmax.f32 %v8881_v4, 0.0  ;;  %v8929_v20 = vmax.f32 %v8897_v42, 0.0  ;;  %v8883_v38 = vmul.f32 %v14306_v21, %v14148_v1  ;;  %v8899_v58 = vmul.f32 %v14306_v21, %v14244_v15 }
 0x904   : > { %v8914_v56 = vmax.f32 %v8882_v39, 0.0  ;;  %v8930_v49 = vmax.f32 %v8898_v11, 0.0  ;;  %v8884_v37 = vmul.f32 %v14306_v21, %v14154_v46  ;;  %v8900_v36 = vmul.f32 %v14306_v21, %v14250_v5 }
 0x905   : > { %v8915_v41 = vmax.f32 %v8883_v38, 0.0  ;;  %v8931_v27 = vmax.f32 %v8899_v58, 0.0  ;;  %v8885_v1 = vmul.f32 %v14306_v21, %v14160_v10  ;;  %v8901_v15 = vmul.f32 %v14306_v21, %v14256_v13 }
 0x906   : > { %8974 = vxpose.xlu1.b32.cont [2/16] (narrow) %v8926_v23, 8  ;;  %8942 = vxpose.xlu0.b32.cont [2/16] (narrow) %v8910_v31, 8  ;;  %v8916_v62 = vmax.f32 %v8884_v37, 0.0  ;;  %v8932_v61 = vmax.f32 %v8900_v36, 0.0  ;;  %v8886_v46 = vmul.f32 %v14306_v21, %v14166_v43  ;;  %v8902_v5 = vmul.f32 %v14306_v21, %v14262_v52 }
 0x907   : > { %v8917_v0 = vmax.f32 %v8885_v1, 0.0  ;;  %v8933_v54 = vmax.f32 %v8901_v15, 0.0  ;;  %v8887_v10 = vmul.f32 %v14306_v21, %v14172_v48  ;;  %v8903_v13 = vmul.f32 %v14306_v21, %v14268_v45 }
 0x908   : > { %v8918_v47 = vmax.f32 %v8886_v46, 0.0  ;;  %v8934_v60 = vmax.f32 %v8902_v5, 0.0  ;;  %v8888_v43 = vmul.f32 %v14306_v21, %v14178_v35  ;;  %v8904_v52 = vmul.f32 %v14306_v21, %v14274_v55 }
 0x909   : > { %v8919_v63 = vmax.f32 %v8887_v10, 0.0  ;;  %v8935_v50 = vmax.f32 %v8903_v13, 0.0  ;;  %v8889_v48 = vmul.f32 %v14306_v21, %v14184_v7  ;;  %v8905_v45 = vmul.f32 %v14306_v21, %v14280_v30 }
 0x90a   : > { %8975 = vxpose.xlu1.b32.cont [3/16] (narrow) %v8927_v51, 8  ;;  %8943 = vxpose.xlu0.b32.cont [3/16] (narrow) %v8911_v12, 8  ;;  %v8920_v14 = vmax.f32 %v8888_v43, 0.0  ;;  %v8936_v28 = vmax.f32 %v8904_v52, 0.0  ;;  %v8906_v35 = vmul.f32 %v14306_v21, %v14286_v16  ;;  %v8890_v55 = vmul.f32 %v14306_v21, %v14190_v2 }
 0x90b   : > { %v8921_v29 = vmax.f32 %v8889_v48, 0.0  ;;  %v8937_v3 = vmax.f32 %v8905_v45, 0.0  ;;  %v8891_v7 = vmul.f32 %v14306_v21, %v14196_v8  ;;  %v8907_v30 = vmul.f32 %v14306_v21, %v14292_v9 }
 0x90c   : > { %v8938_v6 = vmax.f32 %v8906_v35, 0.0  ;;  %v8922_v18 = vmax.f32 %v8890_v55, 0.0  ;;  %v8892_v16 = vmul.f32 %v14306_v21, %v14202_v32  ;;  %v8908_v2 = vmul.f32 %v14306_v21, %v14298_v40 }
 0x90d   : > { %v8923_v25 = vmax.f32 %v8891_v7, 0.0  ;;  %v8939_v22 = vmax.f32 %v8907_v30, 0.0 }
 0x90e   : > { %8976 = vxpose.xlu1.b32.cont [4/16] (narrow) %v8928_v17, 8  ;;  %8944 = vxpose.xlu0.b32.cont [4/16] (narrow) %v8912_v34, 8  ;;  %v8924_v44 = vmax.f32 %v8892_v16, 0.0  ;;  %v8940_v8 = vmax.f32 %v8908_v2, 0.0 }
 0x912   : > { %8977 = vxpose.xlu1.b32.cont [5/16] (narrow) %v8929_v20, 8  ;;  %8945 = vxpose.xlu0.b32.cont [5/16] (narrow) %v8913_v26, 8 }
 0x916   : > { %8978 = vxpose.xlu1.b32.cont [6/16] (narrow) %v8930_v49, 8  ;;  %8946 = vxpose.xlu0.b32.cont [6/16] (narrow) %v8914_v56, 8 }
 0x91a   : > { %8979 = vxpose.xlu1.b32.cont [7/16] (narrow) %v8931_v27, 8  ;;  %8947 = vxpose.xlu0.b32.cont [7/16] (narrow) %v8915_v41, 8 }
 0x91e   : > { %8980 = vxpose.xlu1.b32.cont [8/16] (narrow) %v8932_v61, 8  ;;  %8948 = vxpose.xlu0.b32.cont [8/16] (narrow) %v8916_v62, 8 }
 0x922   : > { %8981 = vxpose.xlu1.b32.cont [9/16] (narrow) %v8933_v54, 8  ;;  %8949 = vxpose.xlu0.b32.cont [9/16] (narrow) %v8917_v0, 8 }
 0x926   : > { %8982 = vxpose.xlu1.b32.cont [10/16] (narrow) %v8934_v60, 8  ;;  %8950 = vxpose.xlu0.b32.cont [10/16] (narrow) %v8918_v47, 8 }
 0x92a   : > { %8983 = vxpose.xlu1.b32.cont [11/16] (narrow) %v8935_v50, 8  ;;  %8951 = vxpose.xlu0.b32.cont [11/16] (narrow) %v8919_v63, 8 }
 0x92e   : > { %8984 = vxpose.xlu1.b32.cont [12/16] (narrow) %v8936_v28, 8  ;;  %8952 = vxpose.xlu0.b32.cont [12/16] (narrow) %v8920_v14, 8 }
 0x932   : > { %8985 = vxpose.xlu1.b32.cont [13/16] (narrow) %v8937_v3, 8  ;;  %8953 = vxpose.xlu0.b32.cont [13/16] (narrow) %v8921_v29, 8 }
 0x936   : > { %8986 = vxpose.xlu1.b32.cont [14/16] (narrow) %v8938_v6, 8  ;;  %8954 = vxpose.xlu0.b32.cont [14/16] (narrow) %v8922_v18, 8 }
 0x93a   : > { %8987 = vxpose.xlu1.b32.cont [15/16] (narrow) %v8939_v22, 8  ;;  %8955 = vxpose.xlu0.b32.cont [15/16] (narrow) %v8923_v25, 8 }
 0x93e   : > { %8988 = vxpose.xlu1.b32.end [16/16] (narrow) %v8940_v8, 8  ;;  %8956 = vxpose.xlu0.b32.end [16/16] (narrow) %v8924_v44, 8 }
 0x97e   : > { %v8989_v32 = vpop.trf.xlu1  ;;  %v8957_v9 = vpop.trf.xlu0 }
 0x97f   : > { %9006 = vst [vmem:[%s215_s23 + $0x8] sm:$0xff] %v8989_v32  ;;  %9005 = vst [vmem:[%s215_s23] sm:$0xff] %v8957_v9 }
 0x980   : > { %9858 = shalt.err (!%p9855_p9)
}
 0x981   : > { %s9859_s5 = scalar_lea.hbm %s14379_s20, 256  ;;  %s9863_s8 = scalar_lea.hbm %s14423_s3, 512 }
 0x982   : > { %p9860_p13 = scmp.ne.s32.totalorder %s14379_s20, %s9859_s5  ;;  %p9864_p0 = scmp.lt.s32.totalorder %s14379_s20, %s14423_s3 }
 0x983   : > { %p9865_p4 = scmp.lt.s32.totalorder %s9863_s8, %s9859_s5 }
 0x984   : > { %p9861_p5 = pnand %p9860_p13, %p14562_p11 }
 0x985   : > { %p9866_p8 = por %p9865_p4, %p9864_p0 }
 0x986   : > { %p9862_p10 = pneg %p9861_p5 }
 0x988   : > { %p9867_p3 = pnand %p9866_p8, %p9862_p10 }
 0x98a   : > { %9870 = shalt.err (!%p9867_p3)
}
 0x98b   : > { %9557 = dma.vmem_to_hbm [thread:$0]  (%p14562_p11), %s14374_s26, 256, %s14379_s20, %s9008_s25  }
 0x98c PF: > { %s9034_s17 = sand.u32 1, %s9901_s12   ;;  %p14563_p1 = scmp.ne.s32.totalorder %s14451_s19, 0 }
 0x98d   : > { %p14564_p2 = scmp.ge.s32.totalorder %s9913_s15, 2  ;;  %s9035_s22 = scalar_lea.sflag [#allocation6], %s9034_s17 }
 0x98f   : > { %p9571_p6 = pnand %p14564_p2, %p14563_p1 }
 0x991   : > { %p9572_p12 = pneg %p9571_p6 }
 0x993   : > { %9896 = dma.done.wait (%p9572_p12), %s9035_s22, 256  }
 0x994   : > { %9898 = vsyncadd (%p9572_p12), %s9035_s22, 4294967040  ;;  %p17_p7 = scmp.ge.s32.totalorder %s10026_s7, 4   ;;  %s14565_s12 = smov %s9905_s13 }
 0x995   : > { %s14566_s13 = smov %s9909_s14  ;;  %s14567_s14 = smov %s10042_s11 }
 0x996   : > { %s14568_s15 = smov %s10026_s7  ;;  %19 = sbr.rel (!%p17_p7) target bundleno = 6 (0x6), region = 88 }
 0x99b   :  { %9040 = vsyncpa [#allocation5], 1 }
 0x99c   :  { %9042 = vsyncpa [#allocation5 + $0x1], 1 }
 0x99d   :  { %9043 = vsyncpa [#allocation8], 1 }
 0x99e   :  { %9044 = vsyncpa [#allocation6], 1 }
 0x99f   :  { %9046 = vsyncpa [#allocation6 + $0x1], 1 }

</bundles_post_ra>
